<compile_context>
chip_gen: v5e
topology: v5e:2x2
jax: 0.10.0
libtpu: 0.0.40
codegen_flags: <defaults>
</compile_context>

<pallas_src>
import jax
import jax.numpy as jnp
from jax.experimental import pallas as pl
from jax.experimental.pallas import tpu as pltpu


def _mm_kernel(
    mf_ref, fp_ref,
    w1_ref, b1_ref, w2_ref, b2_ref, w3_ref, b3_ref,      # molecule_mlp (bf16 W, f32 b)
    wf1_ref, bf1_ref, wf2_ref, bf2_ref,                  # fingerprint_mlp (bf16 W, f32 b)
    wg1m_ref, wg1f_ref, bg1_ref, wg2_ref, bg2_ref,       # fusion (split / softmax-folded wg1)
    wg3_ref, bg3_ref,                                    # final 256 -> 1 (f32 row vector)
    out_ref,
):
    f32, bf16 = jnp.float32, jnp.bfloat16

    # ---- molecule MLP: 8(pad of 6) -> 64 -> 128 -> 256 ; bf16 MXU operands, f32 accumulate ----
    x = mf_ref[...].astype(bf16)
    h = jnp.maximum(jnp.dot(x, w1_ref[...], preferred_element_type=f32) + b1_ref[...], 0.0)
    h = jnp.maximum(jnp.dot(h.astype(bf16), w2_ref[...], preferred_element_type=f32) + b2_ref[...], 0.0)
    mol = jnp.dot(h.astype(bf16), w3_ref[...], preferred_element_type=f32) + b3_ref[...]

    # ---- fingerprint MLP: 2048 -> 512 -> 256 ; in-kernel bf16 cast (exact for 0/1 input) ----
    f = fp_ref[...].astype(bf16)
    fh = jnp.maximum(jnp.dot(f, wf1_ref[...], preferred_element_type=f32) + bf1_ref[...], 0.0)
    fo = jnp.maximum(jnp.dot(fh.astype(bf16), wf2_ref[...], preferred_element_type=f32) + bf2_ref[...], 0.0)

    # ---- fusion layer 1, split form (concat eliminated): softmax scales are pre-folded into
    #      wg1m / wg1f in the wrapper, so  comb @ wg1 == mol @ wg1m + fo @ wg1f ----
    g = (jnp.dot(mol.astype(bf16), wg1m_ref[...], preferred_element_type=f32)
         + jnp.dot(fo.astype(bf16), wg1f_ref[...], preferred_element_type=f32)
         + bg1_ref[...])
    g = jnp.maximum(g, 0.0)

    # ---- fusion layer 2: 512 -> 256 ----
    g = jnp.maximum(jnp.dot(g.astype(bf16), wg2_ref[...], preferred_element_type=f32) + bg2_ref[...], 0.0)

    # ---- final 256 -> 1 as VPU multiply + lane reduction (skip N=1 MXU matmul) ----
    out_ref[...] = jnp.sum(g * wg3_ref[...], axis=-1, keepdims=True) + bg3_ref[...]


def multimodal_molecule_forward(molecule_features, fingerprint, params, *, tb_cap=1024):
    """molecule_features: (B, 6) f32, fingerprint: (B, 2048) binary -> (B,) f32."""
    B, nmf = molecule_features.shape
    nfp = fingerprint.shape[1]
    nmf_pad = 8

    # Pad molecule features 6 -> 8 lanes (exact: matching zero rows added to w1). Tiny copy.
    mf = jnp.pad(molecule_features.astype(jnp.float32), ((0, 0), (0, nmf_pad - nmf)))

    # Fingerprint passed straight through — no wrapper cast, no wrapper pad (saves 1-2 extra HBM
    # passes over the dominant operand). A caller that already stores it as bf16 can pass that.
    fp = fingerprint

    # Batch tile: multiple of 16, >=2 grid steps when B allows (v7x has 2 TensorCores),
    # capped at 1024 to leave headroom below v7x's 64 MiB VMEM while amortizing per-step
    # overhead on v5e/v6e (~3.6 us/step of MXU work at TB=1024).
    TB = min(tb_cap, max(16, ((pl.cdiv(B, 2) + 15) // 16) * 16))
    grid_b = pl.cdiv(B, TB)   # ragged last block handled by Pallas masked edge blocks

    # Hoisted 2-way softmax; fold scalar modality weights into the split fusion-layer-1 weights.
    w = jax.nn.softmax(params["model_weights"].astype(jnp.float32).reshape(-1))
    wg1 = params["wg1"].astype(jnp.float32)
    wg1m = (wg1[:256] * w[0]).astype(jnp.bfloat16)     # scales molecule branch
    wg1f = (wg1[256:] * w[1]).astype(jnp.bfloat16)     # scales fingerprint branch

    w1 = jnp.pad(params["w1"], ((0, nmf_pad - nmf), (0, 0)))  # zero rows -> exact

    bf16 = jnp.bfloat16
    weights = [
        w1.astype(bf16), params["b1"], params["w2"].astype(bf16), params["b2"],
        params["w3"].astype(bf16), params["b3"],
        params["wf1"].astype(bf16), params["bf1"],
        params["wf2"].astype(bf16), params["bf2"],
        wg1m, wg1f, params["bg1"],
        params["wg2"].astype(bf16), params["bg2"],
        params["wg3"].reshape(1, 256).astype(jnp.float32), params["bg3"],
    ]

    in_specs = (
        [pl.BlockSpec((TB, nmf_pad), lambda i: (i, 0)),
         pl.BlockSpec((TB, nfp), lambda i: (i, 0))]
        # full-array blocks with constant index -> weights stay VMEM-resident across steps
        + [pl.BlockSpec(a.shape, lambda i: (0, 0)) for a in weights]
    )

    out = pl.pallas_call(
        _mm_kernel,
        out_shape=jax.ShapeDtypeStruct((B, 1), jnp.float32),
        grid=(grid_b,),
        in_specs=in_specs,
        out_specs=pl.BlockSpec((TB, 1), lambda i: (i, 0)),
        compiler_params=pltpu.CompilerParams(
            dimension_semantics=("parallel",),      # megacore batch sharding on v7x
            # TB=1024: ~16 MiB double-buffered f32 fp tiles + ~12 MiB temps + ~6 MiB weights.
            vmem_limit_bytes=48 << 20,
        ),
    )(mf, fp, *weights)

    return out[:, 0]  # .squeeze() of (B, 1) -> (B,)


def init_params(key, n_molecule_features=6):
    """Deterministic synthetic parameters (PyTorch nn.Linear-style fan-in scaling)."""
    def linear(key, fan_in, fan_out):
        kw, kb = jax.random.split(key)
        bound = 1.0 / jnp.sqrt(jnp.float32(fan_in))
        w = jax.random.uniform(kw, (fan_in, fan_out), jnp.float32, -bound, bound)
        b = jax.random.uniform(kb, (1, fan_out), jnp.float32, -bound, bound)
        return w, b

    keys = jax.random.split(key, 9)
    p = {}
    p["w1"], p["b1"] = linear(keys[0], n_molecule_features, 64)
    p["w2"], p["b2"] = linear(keys[1], 64, 128)
    p["w3"], p["b3"] = linear(keys[2], 128, 256)
    p["wf1"], p["bf1"] = linear(keys[3], 2048, 512)
    p["wf2"], p["bf2"] = linear(keys[4], 512, 256)
    p["wg1"], p["bg1"] = linear(keys[5], 512, 512)
    p["wg2"], p["bg2"] = linear(keys[6], 512, 256)
    p["wg3"], p["bg3"] = linear(keys[7], 256, 1)
    p["model_weights"] = jnp.ones((2,), jnp.float32)   # torch.ones(2)
    return p


def _reference(mf, fp, p):
    relu = lambda x: jnp.maximum(x, 0.0)
    mol = relu(mf @ p["w1"] + p["b1"])
    mol = relu(mol @ p["w2"] + p["b2"])
    mol = mol @ p["w3"] + p["b3"]
    fo = relu(fp @ p["wf1"] + p["bf1"])
    fo = relu(fo @ p["wf2"] + p["bf2"])
    w = jax.nn.softmax(p["model_weights"].reshape(-1))
    comb = jnp.concatenate([mol * w[0], fo * w[1]], axis=-1)
    g = relu(comb @ p["wg1"] + p["bg1"])
    g = relu(g @ p["wg2"] + p["bg2"])
    return (g @ p["wg3"] + p["bg3"])[:, 0]


if __name__ == "__main__":
    key = jax.random.PRNGKey(0)
    k_mol, k_fp, k_params = jax.random.split(key, 3)

    B = 32  # small; divides cleanly into two 16-row tiles (exercises the 2-step grid path)
    molecule_features = jax.random.normal(k_mol, (B, 6), jnp.float32)
    fingerprint = (jax.random.uniform(k_fp, (B, 2048), jnp.float32) > 0.5).astype(jnp.float32)

    params = init_params(k_params)

    out = multimodal_molecule_forward(molecule_features, fingerprint, params)
    out = jax.block_until_ready(out)
    assert out.shape == (B,)
    assert bool(jnp.all(jnp.isfinite(out)))

    # loose check vs pure-JAX f32 reference (bf16 weight/activation rounding is the only delta)
    ref = _reference(molecule_features, fingerprint, params)
    assert bool(jnp.allclose(out, ref, rtol=1e-1, atol=1e-1))

    print("KERNEL_OK")
</pallas_src>

<mosaic_0001>
module attributes {stable_mosaic.version = 11 : i64} {
  func.func @_mm_kernel(%arg0: i32, %arg1: memref<16x8xf32, #tpu.memory_space<vmem>>, %arg2: memref<16x2048xf32, #tpu.memory_space<vmem>>, %arg3: memref<8x64xbf16, #tpu.memory_space<vmem>>, %arg4: memref<1x64xf32, #tpu.memory_space<vmem>>, %arg5: memref<64x128xbf16, #tpu.memory_space<vmem>>, %arg6: memref<1x128xf32, #tpu.memory_space<vmem>>, %arg7: memref<128x256xbf16, #tpu.memory_space<vmem>>, %arg8: memref<1x256xf32, #tpu.memory_space<vmem>>, %arg9: memref<2048x512xbf16, #tpu.memory_space<vmem>>, %arg10: memref<1x512xf32, #tpu.memory_space<vmem>>, %arg11: memref<512x256xbf16, #tpu.memory_space<vmem>>, %arg12: memref<1x256xf32, #tpu.memory_space<vmem>>, %arg13: memref<256x512xbf16, #tpu.memory_space<vmem>>, %arg14: memref<256x512xbf16, #tpu.memory_space<vmem>>, %arg15: memref<1x512xf32, #tpu.memory_space<vmem>>, %arg16: memref<512x256xbf16, #tpu.memory_space<vmem>>, %arg17: memref<1x256xf32, #tpu.memory_space<vmem>>, %arg18: memref<1x256xf32, #tpu.memory_space<vmem>>, %arg19: memref<1x1xf32, #tpu.memory_space<vmem>>, %arg20: memref<16x1xf32, #tpu.memory_space<vmem>>) attributes {dimension_semantics = [#tpu.dimension_semantics<parallel>], iteration_bounds = array<i64: 2>, scalar_prefetch = 0 : i64, scratch_operands = 0 : i64, tpu.core_type = #tpu.core_type<tc>, window_params = [{transform_indices = @transform_0, window_bounds = array<i64: 16, 8>}, {transform_indices = @transform_1, window_bounds = array<i64: 16, 2048>}, {pipeline_mode = #tpu.pipeline_mode<synchronous>, transform_indices = @transform_2, window_bounds = array<i64: 8, 64>}, {pipeline_mode = #tpu.pipeline_mode<synchronous>, transform_indices = @transform_3, window_bounds = array<i64: 1, 64>}, {pipeline_mode = #tpu.pipeline_mode<synchronous>, transform_indices = @transform_4, window_bounds = array<i64: 64, 128>}, {pipeline_mode = #tpu.pipeline_mode<synchronous>, transform_indices = @transform_5, window_bounds = array<i64: 1, 128>}, {pipeline_mode = #tpu.pipeline_mode<synchronous>, transform_indices = @transform_6, window_bounds = array<i64: 128, 256>}, {pipeline_mode = #tpu.pipeline_mode<synchronous>, transform_indices = @transform_7, window_bounds = array<i64: 1, 256>}, {pipeline_mode = #tpu.pipeline_mode<synchronous>, transform_indices = @transform_8, window_bounds = array<i64: 2048, 512>}, {pipeline_mode = #tpu.pipeline_mode<synchronous>, transform_indices = @transform_9, window_bounds = array<i64: 1, 512>}, {pipeline_mode = #tpu.pipeline_mode<synchronous>, transform_indices = @transform_10, window_bounds = array<i64: 512, 256>}, {pipeline_mode = #tpu.pipeline_mode<synchronous>, transform_indices = @transform_11, window_bounds = array<i64: 1, 256>}, {pipeline_mode = #tpu.pipeline_mode<synchronous>, transform_indices = @transform_12, window_bounds = array<i64: 256, 512>}, {pipeline_mode = #tpu.pipeline_mode<synchronous>, transform_indices = @transform_13, window_bounds = array<i64: 256, 512>}, {pipeline_mode = #tpu.pipeline_mode<synchronous>, transform_indices = @transform_14, window_bounds = array<i64: 1, 512>}, {pipeline_mode = #tpu.pipeline_mode<synchronous>, transform_indices = @transform_15, window_bounds = array<i64: 512, 256>}, {pipeline_mode = #tpu.pipeline_mode<synchronous>, transform_indices = @transform_16, window_bounds = array<i64: 1, 256>}, {pipeline_mode = #tpu.pipeline_mode<synchronous>, transform_indices = @transform_17, window_bounds = array<i64: 1, 256>}, {pipeline_mode = #tpu.pipeline_mode<synchronous>, transform_indices = @transform_18, window_bounds = array<i64: 1, 1>}, {transform_indices = @transform_19, window_bounds = array<i64: 16, 1>}]} {
    %c0 = arith.constant 0 : index
    %c0_0 = arith.constant 0 : index
    %0 = vector.load %arg1[%c0, %c0_0] : memref<16x8xf32, #tpu.memory_space<vmem>>, vector<16x8xf32>
    %1 = arith.truncf %0 : vector<16x8xf32> to vector<16x8xbf16>
    %c0_1 = arith.constant 0 : index
    %c0_2 = arith.constant 0 : index
    %2 = vector.load %arg3[%c0_1, %c0_2] : memref<8x64xbf16, #tpu.memory_space<vmem>>, vector<8x64xbf16>
    %cst = arith.constant dense<0.000000e+00> : vector<16x64xf32>
    %3 = tpu.matmul %1, %2, %cst {dimension_numbers = #tpu.dot_dimension_numbers<[1], [0], [0], [1], [0, 0, 1, 1], [], []>} : vector<16x8xbf16>, vector<8x64xbf16>, vector<16x64xf32> -> vector<16x64xf32>
    %c0_3 = arith.constant 0 : index
    %c0_4 = arith.constant 0 : index
    %4 = vector.load %arg4[%c0_3, %c0_4] : memref<1x64xf32, #tpu.memory_space<vmem>>, vector<1x64xf32>
    %5 = vector.broadcast %4 : vector<1x64xf32> to vector<16x64xf32>
    %6 = arith.addf %3, %5 : vector<16x64xf32>
    %cst_5 = arith.constant 0.000000e+00 : f32
    %7 = vector.broadcast %cst_5 : f32 to vector<16x64xf32>
    %8 = arith.maximumf %6, %7 : vector<16x64xf32>
    %9 = arith.truncf %8 : vector<16x64xf32> to vector<16x64xbf16>
    %c0_6 = arith.constant 0 : index
    %c0_7 = arith.constant 0 : index
    %10 = vector.load %arg5[%c0_6, %c0_7] : memref<64x128xbf16, #tpu.memory_space<vmem>>, vector<64x128xbf16>
    %cst_8 = arith.constant dense<0.000000e+00> : vector<16x128xf32>
    %11 = tpu.matmul %9, %10, %cst_8 {dimension_numbers = #tpu.dot_dimension_numbers<[1], [0], [0], [1], [0, 0, 1, 1], [], []>} : vector<16x64xbf16>, vector<64x128xbf16>, vector<16x128xf32> -> vector<16x128xf32>
    %c0_9 = arith.constant 0 : index
    %c0_10 = arith.constant 0 : index
    %12 = vector.load %arg6[%c0_9, %c0_10] : memref<1x128xf32, #tpu.memory_space<vmem>>, vector<1x128xf32>
    %13 = vector.broadcast %12 : vector<1x128xf32> to vector<16x128xf32>
    %14 = arith.addf %11, %13 : vector<16x128xf32>
    %cst_11 = arith.constant 0.000000e+00 : f32
    %15 = vector.broadcast %cst_11 : f32 to vector<16x128xf32>
    %16 = arith.maximumf %14, %15 : vector<16x128xf32>
    %17 = arith.truncf %16 : vector<16x128xf32> to vector<16x128xbf16>
    %c0_12 = arith.constant 0 : index
    %c0_13 = arith.constant 0 : index
    %18 = vector.load %arg7[%c0_12, %c0_13] : memref<128x256xbf16, #tpu.memory_space<vmem>>, vector<128x256xbf16>
    %cst_14 = arith.constant dense<0.000000e+00> : vector<16x256xf32>
    %19 = tpu.matmul %17, %18, %cst_14 {dimension_numbers = #tpu.dot_dimension_numbers<[1], [0], [0], [1], [0, 0, 1, 1], [], []>} : vector<16x128xbf16>, vector<128x256xbf16>, vector<16x256xf32> -> vector<16x256xf32>
    %c0_15 = arith.constant 0 : index
    %c0_16 = arith.constant 0 : index
    %20 = vector.load %arg8[%c0_15, %c0_16] : memref<1x256xf32, #tpu.memory_space<vmem>>, vector<1x256xf32>
    %21 = vector.broadcast %20 : vector<1x256xf32> to vector<16x256xf32>
    %22 = arith.addf %19, %21 : vector<16x256xf32>
    %c0_17 = arith.constant 0 : index
    %c0_18 = arith.constant 0 : index
    %23 = vector.load %arg2[%c0_17, %c0_18] : memref<16x2048xf32, #tpu.memory_space<vmem>>, vector<16x2048xf32>
    %24 = arith.truncf %23 : vector<16x2048xf32> to vector<16x2048xbf16>
    %c0_19 = arith.constant 0 : index
    %c0_20 = arith.constant 0 : index
    %25 = vector.load %arg9[%c0_19, %c0_20] : memref<2048x512xbf16, #tpu.memory_space<vmem>>, vector<2048x512xbf16>
    %cst_21 = arith.constant dense<0.000000e+00> : vector<16x512xf32>
    %26 = tpu.matmul %24, %25, %cst_21 {dimension_numbers = #tpu.dot_dimension_numbers<[1], [0], [0], [1], [0, 0, 1, 1], [], []>} : vector<16x2048xbf16>, vector<2048x512xbf16>, vector<16x512xf32> -> vector<16x512xf32>
    %c0_22 = arith.constant 0 : index
    %c0_23 = arith.constant 0 : index
    %27 = vector.load %arg10[%c0_22, %c0_23] : memref<1x512xf32, #tpu.memory_space<vmem>>, vector<1x512xf32>
    %28 = vector.broadcast %27 : vector<1x512xf32> to vector<16x512xf32>
    %29 = arith.addf %26, %28 : vector<16x512xf32>
    %cst_24 = arith.constant 0.000000e+00 : f32
    %30 = vector.broadcast %cst_24 : f32 to vector<16x512xf32>
    %31 = arith.maximumf %29, %30 : vector<16x512xf32>
    %32 = arith.truncf %31 : vector<16x512xf32> to vector<16x512xbf16>
    %c0_25 = arith.constant 0 : index
    %c0_26 = arith.constant 0 : index
    %33 = vector.load %arg11[%c0_25, %c0_26] : memref<512x256xbf16, #tpu.memory_space<vmem>>, vector<512x256xbf16>
    %cst_27 = arith.constant dense<0.000000e+00> : vector<16x256xf32>
    %34 = tpu.matmul %32, %33, %cst_27 {dimension_numbers = #tpu.dot_dimension_numbers<[1], [0], [0], [1], [0, 0, 1, 1], [], []>} : vector<16x512xbf16>, vector<512x256xbf16>, vector<16x256xf32> -> vector<16x256xf32>
    %c0_28 = arith.constant 0 : index
    %c0_29 = arith.constant 0 : index
    %35 = vector.load %arg12[%c0_28, %c0_29] : memref<1x256xf32, #tpu.memory_space<vmem>>, vector<1x256xf32>
    %36 = vector.broadcast %35 : vector<1x256xf32> to vector<16x256xf32>
    %37 = arith.addf %34, %36 : vector<16x256xf32>
    %cst_30 = arith.constant 0.000000e+00 : f32
    %38 = vector.broadcast %cst_30 : f32 to vector<16x256xf32>
    %39 = arith.maximumf %37, %38 : vector<16x256xf32>
    %40 = arith.truncf %22 : vector<16x256xf32> to vector<16x256xbf16>
    %c0_31 = arith.constant 0 : index
    %c0_32 = arith.constant 0 : index
    %41 = vector.load %arg13[%c0_31, %c0_32] : memref<256x512xbf16, #tpu.memory_space<vmem>>, vector<256x512xbf16>
    %cst_33 = arith.constant dense<0.000000e+00> : vector<16x512xf32>
    %42 = tpu.matmul %40, %41, %cst_33 {dimension_numbers = #tpu.dot_dimension_numbers<[1], [0], [0], [1], [0, 0, 1, 1], [], []>} : vector<16x256xbf16>, vector<256x512xbf16>, vector<16x512xf32> -> vector<16x512xf32>
    %43 = arith.truncf %39 : vector<16x256xf32> to vector<16x256xbf16>
    %c0_34 = arith.constant 0 : index
    %c0_35 = arith.constant 0 : index
    %44 = vector.load %arg14[%c0_34, %c0_35] : memref<256x512xbf16, #tpu.memory_space<vmem>>, vector<256x512xbf16>
    %cst_36 = arith.constant dense<0.000000e+00> : vector<16x512xf32>
    %45 = tpu.matmul %43, %44, %cst_36 {dimension_numbers = #tpu.dot_dimension_numbers<[1], [0], [0], [1], [0, 0, 1, 1], [], []>} : vector<16x256xbf16>, vector<256x512xbf16>, vector<16x512xf32> -> vector<16x512xf32>
    %46 = arith.addf %42, %45 : vector<16x512xf32>
    %c0_37 = arith.constant 0 : index
    %c0_38 = arith.constant 0 : index
    %47 = vector.load %arg15[%c0_37, %c0_38] : memref<1x512xf32, #tpu.memory_space<vmem>>, vector<1x512xf32>
    %48 = vector.broadcast %47 : vector<1x512xf32> to vector<16x512xf32>
    %49 = arith.addf %46, %48 : vector<16x512xf32>
    %cst_39 = arith.constant 0.000000e+00 : f32
    %50 = vector.broadcast %cst_39 : f32 to vector<16x512xf32>
    %51 = arith.maximumf %49, %50 : vector<16x512xf32>
    %52 = arith.truncf %51 : vector<16x512xf32> to vector<16x512xbf16>
    %c0_40 = arith.constant 0 : index
    %c0_41 = arith.constant 0 : index
    %53 = vector.load %arg16[%c0_40, %c0_41] : memref<512x256xbf16, #tpu.memory_space<vmem>>, vector<512x256xbf16>
    %cst_42 = arith.constant dense<0.000000e+00> : vector<16x256xf32>
    %54 = tpu.matmul %52, %53, %cst_42 {dimension_numbers = #tpu.dot_dimension_numbers<[1], [0], [0], [1], [0, 0, 1, 1], [], []>} : vector<16x512xbf16>, vector<512x256xbf16>, vector<16x256xf32> -> vector<16x256xf32>
    %c0_43 = arith.constant 0 : index
    %c0_44 = arith.constant 0 : index
    %55 = vector.load %arg17[%c0_43, %c0_44] : memref<1x256xf32, #tpu.memory_space<vmem>>, vector<1x256xf32>
    %56 = vector.broadcast %55 : vector<1x256xf32> to vector<16x256xf32>
    %57 = arith.addf %54, %56 : vector<16x256xf32>
    %cst_45 = arith.constant 0.000000e+00 : f32
    %58 = vector.broadcast %cst_45 : f32 to vector<16x256xf32>
    %59 = arith.maximumf %57, %58 : vector<16x256xf32>
    %c0_46 = arith.constant 0 : index
    %c0_47 = arith.constant 0 : index
    %60 = vector.load %arg18[%c0_46, %c0_47] : memref<1x256xf32, #tpu.memory_space<vmem>>, vector<1x256xf32>
    %61 = vector.broadcast %60 : vector<1x256xf32> to vector<16x256xf32>
    %62 = arith.mulf %59, %61 : vector<16x256xf32>
    %cst_48 = arith.constant dense<0.000000e+00> : vector<16xf32>
    %63 = vector.multi_reduction <add>, %62, %cst_48 [1] : vector<16x256xf32> to vector<16xf32>
    %64 = vector.shape_cast %63 : vector<16xf32> to vector<16x1xf32>
    %c0_49 = arith.constant 0 : index
    %c0_50 = arith.constant 0 : index
    %65 = vector.load %arg19[%c0_49, %c0_50] : memref<1x1xf32, #tpu.memory_space<vmem>>, vector<1x1xf32>
    %66 = vector.broadcast %65 : vector<1x1xf32> to vector<16x1xf32>
    %67 = arith.addf %64, %66 : vector<16x1xf32>
    %c0_51 = arith.constant 0 : index
    %c0_52 = arith.constant 0 : index
    %68 = vector.load %arg20[%c0_51, %c0_52] : memref<16x1xf32, #tpu.memory_space<vmem>>, vector<16x1xf32>
    tpu.vector_store %arg20[%c0_51, %c0_52], %67 {strides = array<i32>} : memref<16x1xf32, #tpu.memory_space<vmem>>, vector<16x1xf32>,
    return
  }
  func.func @transform_0(%arg0: i32) -> (i32, i32) {
    %c0_i32 = arith.constant 0 : i32
    %c0_i32_0 = arith.constant 0 : i32
    return %arg0, %c0_i32 : i32, i32
  }
  func.func @transform_1(%arg0: i32) -> (i32, i32) {
    %c0_i32 = arith.constant 0 : i32
    %c0_i32_0 = arith.constant 0 : i32
    return %arg0, %c0_i32 : i32, i32
  }
  func.func @transform_2(%arg0: i32) -> (i32, i32) {
    %c0_i32 = arith.constant 0 : i32
    %c0_i32_0 = arith.constant 0 : i32
    %c0_i32_1 = arith.constant 0 : i32
    return %c0_i32, %c0_i32_0 : i32, i32
  }
  func.func @transform_3(%arg0: i32) -> (i32, i32) {
    %c0_i32 = arith.constant 0 : i32
    %c0_i32_0 = arith.constant 0 : i32
    %c0_i32_1 = arith.constant 0 : i32
    return %c0_i32, %c0_i32_0 : i32, i32
  }
  func.func @transform_4(%arg0: i32) -> (i32, i32) {
    %c0_i32 = arith.constant 0 : i32
    %c0_i32_0 = arith.constant 0 : i32
    %c0_i32_1 = arith.constant 0 : i32
    return %c0_i32, %c0_i32_0 : i32, i32
  }
  func.func @transform_5(%arg0: i32) -> (i32, i32) {
    %c0_i32 = arith.constant 0 : i32
    %c0_i32_0 = arith.constant 0 : i32
    %c0_i32_1 = arith.constant 0 : i32
    return %c0_i32, %c0_i32_0 : i32, i32
  }
  func.func @transform_6(%arg0: i32) -> (i32, i32) {
    %c0_i32 = arith.constant 0 : i32
    %c0_i32_0 = arith.constant 0 : i32
    %c0_i32_1 = arith.constant 0 : i32
    return %c0_i32, %c0_i32_0 : i32, i32
  }
  func.func @transform_7(%arg0: i32) -> (i32, i32) {
    %c0_i32 = arith.constant 0 : i32
    %c0_i32_0 = arith.constant 0 : i32
    %c0_i32_1 = arith.constant 0 : i32
    return %c0_i32, %c0_i32_0 : i32, i32
  }
  func.func @transform_8(%arg0: i32) -> (i32, i32) {
    %c0_i32 = arith.constant 0 : i32
    %c0_i32_0 = arith.constant 0 : i32
    %c0_i32_1 = arith.constant 0 : i32
    return %c0_i32, %c0_i32_0 : i32, i32
  }
  func.func @transform_9(%arg0: i32) -> (i32, i32) {
    %c0_i32 = arith.constant 0 : i32
    %c0_i32_0 = arith.constant 0 : i32
    %c0_i32_1 = arith.constant 0 : i32
    return %c0_i32, %c0_i32_0 : i32, i32
  }
  func.func @transform_10(%arg0: i32) -> (i32, i32) {
    %c0_i32 = arith.constant 0 : i32
    %c0_i32_0 = arith.constant 0 : i32
    %c0_i32_1 = arith.constant 0 : i32
    return %c0_i32, %c0_i32_0 : i32, i32
  }
  func.func @transform_11(%arg0: i32) -> (i32, i32) {
    %c0_i32 = arith.constant 0 : i32
    %c0_i32_0 = arith.constant 0 : i32
    %c0_i32_1 = arith.constant 0 : i32
    return %c0_i32, %c0_i32_0 : i32, i32
  }
  func.func @transform_12(%arg0: i32) -> (i32, i32) {
    %c0_i32 = arith.constant 0 : i32
    %c0_i32_0 = arith.constant 0 : i32
    %c0_i32_1 = arith.constant 0 : i32
    return %c0_i32, %c0_i32_0 : i32, i32
  }
  func.func @transform_13(%arg0: i32) -> (i32, i32) {
    %c0_i32 = arith.constant 0 : i32
    %c0_i32_0 = arith.constant 0 : i32
    %c0_i32_1 = arith.constant 0 : i32
    return %c0_i32, %c0_i32_0 : i32, i32
  }
  func.func @transform_14(%arg0: i32) -> (i32, i32) {
    %c0_i32 = arith.constant 0 : i32
    %c0_i32_0 = arith.constant 0 : i32
    %c0_i32_1 = arith.constant 0 : i32
    return %c0_i32, %c0_i32_0 : i32, i32
  }
  func.func @transform_15(%arg0: i32) -> (i32, i32) {
    %c0_i32 = arith.constant 0 : i32
    %c0_i32_0 = arith.constant 0 : i32
    %c0_i32_1 = arith.constant 0 : i32
    return %c0_i32, %c0_i32_0 : i32, i32
  }
  func.func @transform_16(%arg0: i32) -> (i32, i32) {
    %c0_i32 = arith.constant 0 : i32
    %c0_i32_0 = arith.constant 0 : i32
    %c0_i32_1 = arith.constant 0 : i32
    return %c0_i32, %c0_i32_0 : i32, i32
  }
  func.func @transform_17(%arg0: i32) -> (i32, i32) {
    %c0_i32 = arith.constant 0 : i32
    %c0_i32_0 = arith.constant 0 : i32
    %c0_i32_1 = arith.constant 0 : i32
    return %c0_i32, %c0_i32_0 : i32, i32
  }
  func.func @transform_18(%arg0: i32) -> (i32, i32) {
    %c0_i32 = arith.constant 0 : i32
    %c0_i32_0 = arith.constant 0 : i32
    %c0_i32_1 = arith.constant 0 : i32
    return %c0_i32, %c0_i32_0 : i32, i32
  }
  func.func @transform_19(%arg0: i32) -> (i32, i32) {
    %c0_i32 = arith.constant 0 : i32
    %c0_i32_0 = arith.constant 0 : i32
    return %arg0, %c0_i32 : i32, i32
  }
}

</mosaic_0001>

<bundles_post_ra>
// kernel: tpu_custom_call.1
= control target key start
LH: loop header
LB: loop body
LE: loop exit
PB: predicated region body
PF: predicated region fallthrough
CT: control target
= control target key end

     0   :  { %s12922_s0 = inlined_call_operand.vmem [shape: f32[32,8], index: 0, kind: input, shape index: {}]   ;;  %s12923_s1 = inlined_call_operand.hbm [shape: f32[32,2048], index: 1, kind: input, shape index: {}]   ;;  %s12924_s2 = inlined_call_operand.hbm [shape: bf16[8,64], index: 2, kind: input, shape index: {}]   ;;  %s12925_s3 = inlined_call_operand.hbm [shape: f32[1,64], index: 3, kind: input, shape index: {}]   ;;  %s12926_s4 = inlined_call_operand.hbm [shape: bf16[64,128], index: 4, kind: input, shape index: {}]   ;;  %s12927_s5 = inlined_call_operand.hbm [shape: f32[1,128], index: 5, kind: input, shape index: {}]   ;;  %s12928_s6 = inlined_call_operand.hbm [shape: bf16[128,256], index: 6, kind: input, shape index: {}]   ;;  %s12929_s7 = inlined_call_operand.hbm [shape: f32[1,256], index: 7, kind: input, shape index: {}]   ;;  %s12930_s8 = inlined_call_operand.hbm [shape: bf16[2048,512], index: 8, kind: input, shape index: {}]   ;;  %s12931_s9 = inlined_call_operand.hbm [shape: f32[1,512], index: 9, kind: input, shape index: {}]   ;;  %s12932_s10 = inlined_call_operand.hbm [shape: bf16[512,256], index: 10, kind: input, shape index: {}]   ;;  %s12933_s11 = inlined_call_operand.hbm [shape: f32[1,256], index: 11, kind: input, shape index: {}]   ;;  %s12934_s12 = inlined_call_operand.hbm [shape: bf16[256,512], index: 12, kind: input, shape index: {}]   ;;  %s12935_s13 = inlined_call_operand.hbm [shape: bf16[256,512], index: 13, kind: input, shape index: {}]   ;;  %s12936_s14 = inlined_call_operand.hbm [shape: f32[1,512], index: 14, kind: input, shape index: {}]   ;;  %s12937_s15 = inlined_call_operand.hbm [shape: bf16[512,256], index: 15, kind: input, shape index: {}]   ;;  %s12938_s16 = inlined_call_operand.hbm [shape: f32[1,256], index: 16, kind: input, shape index: {}]   ;;  %s12939_s17 = inlined_call_operand.hbm [shape: f32[1,256], index: 17, kind: input, shape index: {}]   ;;  %s12940_s18 = inlined_call_operand.<no memory space> [shape: f32[1,1], index: 18, kind: input, shape index: {}]   ;;  %s12941_s19 = inlined_call_operand.vmem [shape: f32[32,1], index: 19, kind: output, shape index: {}]  }
   0x1   :  { %12950 = sst [smem:[#allocation41_spill]] %s12922_s0  ;;  %v24_v0 = vstv %s12940_s18 }
   0x2   :  { %12951 = sst [smem:[#allocation42_spill]] %s12923_s1  ;;  %25 = vst [vmem:[#allocation2] sm:$0x1] %v24_v0 }
   0x3   :  { %12952 = sst [smem:[#allocation43_spill]] %s12924_s2 }
   0x4   :  { %12953 = sst [smem:[#allocation44_spill]] %s12925_s3 }
   0x5   :  { %12954 = sst [smem:[#allocation45_spill]] %s12926_s4 }
   0x6   :  { %12955 = sst [smem:[#allocation46_spill]] %s12927_s5 }
   0x7   :  { %12956 = sst [smem:[#allocation47_spill]] %s12928_s6 }
   0x8   :  { %12957 = sst [smem:[#allocation48_spill]] %s12929_s7 }
   0x9   :  { %12958 = sst [smem:[#allocation49_spill]] %s12930_s8 }
   0xa   :  { %12959 = sst [smem:[#allocation50_spill]] %s12939_s17 }
   0xb   :  { %12960 = sst [smem:[#allocation51_spill]] %s12941_s19 }
   0xc   :  { %26 = vsyncpa [#allocation4], 0 }
   0xd   :  { %28 = vsyncpa [#allocation4 + $0x1], 0 }
   0xe   :  { %29 = vsyncpa [#allocation6], 0 }
   0xf   :  { %30 = vsyncpa [#allocation9], 0 }
  0x10   :  { %31 = vsyncpa [#allocation12], 0 }
  0x11   :  { %32 = vsyncpa [#allocation15], 0 }
  0x12   :  { %33 = vsyncpa [#allocation18], 0 }
  0x13   :  { %34 = vsyncpa [#allocation21], 0 }
  0x14   :  { %35 = vsyncpa [#allocation24], 0 }
  0x15   :  { %36 = vsyncpa [#allocation27], 0  ;;  %s12359_s20 = smov 0   ;;  %s12361_s21 = smov 0  }
  0x16   :  { %s12363_s1 = smov 0   ;;  %s12365_s22 = smov 0  }
  0x17 LB: > { %12961 = sst [smem:[#allocation38_spill]] %s12219_s20  ;;  %s12943_s25 = sadd.s32 4294967295, %s12231_s22   ;;  %s12231_s22 = sphi %s12365_s22, %s12990_s22   ;;  %s12227_s1 = sphi %s12363_s1, %s12989_s1   ;;  %s12223_s21 = sphi %s12361_s21, %s12988_s21   ;;  %s12219_s20 = sphi %s12359_s20, %s12987_s20  }
  0x18   : > { %s12962_s23 = sld [smem:[#allocation43_spill]]  ;;  %p7453_p0 = scmp.ge.s32.totalorder %s12231_s22, 1 }
  0x19   : > { %p12386_p1 = scmp.eq.s32.totalorder %s12943_s25, 0  ;;  %p482_p2 = scmp.lt.s32.totalorder %s12231_s22, 3 }
  0x1a   : > { %s12233_s27 = smov [#allocation5]   ;;  %s12967_s4 = sld [smem:[#allocation45_spill]] }
  0x1b   : > { %s12963_s3 = scalar_select %p12386_p1, 1, 0 }
  0x1c   : > { %p12391_p3 = pnand %p7453_p0, %p482_p2  ;;  %s496_s28 = sshll.u32 %s12233_s27, 4  ;;  %s497_s28 = int_to_ptr.vmem [resolvable:$true] %s496_s28 }
  0x1d   : > { %12964 = sst [smem:[#allocation39_spill]] %s12963_s3  ;;  %s12234_s2 = smov [#allocation8]  }
  0x1e   : > { %s494_s24 = sshll.u32 %s12962_s23, 4  ;;  %p11509_p4 = pneg %p12391_p3  ;;  %s495_s24 = int_to_ptr.hbm [resolvable:$true] %s494_s24 }
  0x1f   : > { %s12965_s26 = scalar_select %p12391_p3, 1, 0 }
  0x20   : > { %s517_s30 = sshll.u32 %s12967_s4, 4  ;;  %p12402_p5 = pnand %p11509_p4, %p12386_p1  ;;  %s518_s30 = int_to_ptr.hbm [resolvable:$true] %s517_s30 }
  0x21   : > { %12966 = sst [smem:[#allocation40_spill]] %s12965_s26  ;;  %s519_s23 = sshll.u32 %s12234_s2, 4  ;;  %s520_s23 = int_to_ptr.vmem [resolvable:$true] %s519_s23 }
  0x22   : > { %11512 = dma.hbm_to_vmem [thread:$0]  (!%p12402_p5), %s495_s24, 64, %s497_s28, [#allocation6]  }
  0x23   : > { %s12235_s27 = smov 64   ;;  %s12236_s25 = smov 4  }
  0x24   : > { %11518 = dma.hbm_to_vmem [thread:$0]  (!%p12402_p5), %s518_s30, 512, %s520_s23, [#allocation9], %s12235_s27, %s12235_s27, %s12236_s25  }
  0x25   : > { %s12969_s6 = sld [smem:[#allocation47_spill]]  ;;  %s12237_s19 = smov [#allocation11]  }
  0x26   : > { %s545_s26 = sshll.u32 %s12237_s19, 4  ;;  %s12970_s8 = sld [smem:[#allocation49_spill]]  ;;  %s546_s26 = int_to_ptr.vmem [resolvable:$true] %s545_s26 }
  0x27   : > { %s12947_s17 = smov 128   ;;  %s12949_s24 = smov 8  }
  0x28   : > { %s12240_s25 = smov [#allocation14]   ;;  %s12241_s30 = smov 256  }
  0x29   : > { %s571_s28 = sshll.u32 %s12240_s25, 4  ;;  %s12242_s19 = smov 16   ;;  %s572_s28 = int_to_ptr.vmem [resolvable:$true] %s571_s28 }
  0x2a   : > { %s595_s23 = sshll.u32 %s12932_s10, 4  ;;  %s12243_s27 = smov [#allocation17]   ;;  %s596_s23 = int_to_ptr.hbm [resolvable:$true] %s595_s23 }
  0x2b   : > { %s543_s4 = sshll.u32 %s12969_s6, 4  ;;  %s597_s29 = sshll.u32 %s12243_s27, 4  ;;  %s544_s4 = int_to_ptr.hbm [resolvable:$true] %s543_s4  ;;  %s598_s29 = int_to_ptr.vmem [resolvable:$true] %s597_s29 }
  0x2c   : > { %s569_s2 = sshll.u32 %s12970_s8, 4  ;;  %s621_s0 = sshll.u32 %s12934_s12, 4  ;;  %s570_s2 = int_to_ptr.hbm [resolvable:$true] %s569_s2  ;;  %s622_s0 = int_to_ptr.hbm [resolvable:$true] %s621_s0 }
  0x2d   : > { %11524 = dma.hbm_to_vmem [thread:$0]  (!%p12402_p5), %s544_s4, 2048, %s546_s26, [#allocation12], %s12947_s17, %s12947_s17, %s12949_s24  }
  0x2e   : > { %11530 = dma.hbm_to_vmem [thread:$0]  (!%p12402_p5), %s570_s2, 65536, %s572_s28, [#allocation15], %s12241_s30, %s12241_s30, %s12242_s19  }
  0x2f   : > { %11536 = dma.hbm_to_vmem [thread:$0]  (!%p12402_p5), %s596_s23, 8192, %s598_s29, [#allocation18], %s12947_s17, %s12947_s17, %s12949_s24  }
  0x30   : > { %s12244_s2 = smov [#allocation20]   ;;  %s650_s3 = sshll.u32 %s12936_s14, 4  ;;  %s651_s3 = int_to_ptr.hbm [resolvable:$true] %s650_s3 }
  0x31   : > { %s623_s25 = sshll.u32 %s12244_s2, 4  ;;  %s676_s26 = sshll.u32 %s12938_s16, 4  ;;  %s624_s25 = int_to_ptr.vmem [resolvable:$true] %s623_s25  ;;  %s677_s26 = int_to_ptr.hbm [resolvable:$true] %s676_s26 }
  0x32   : > { %11542 = dma.hbm_to_vmem [thread:$0]  (!%p12402_p5), %s622_s0, 8192, %s624_s25, [#allocation21], %s12241_s30, %s12241_s30, %s12242_s19  }
  0x33   : > { %s12245_s23 = smov [#allocation23]   ;;  %s12246_s2 = smov [#allocation26]  }
  0x34   : > { %s652_s29 = sshll.u32 %s12245_s23, 4  ;;  %s678_s28 = sshll.u32 %s12246_s2, 4  ;;  %s653_s29 = int_to_ptr.vmem [resolvable:$true] %s652_s29  ;;  %s679_s28 = int_to_ptr.vmem [resolvable:$true] %s678_s28 }
  0x35   : > { %11548 = dma.hbm_to_vmem [thread:$0]  (!%p12402_p5), %s651_s3, 64, %s653_s29, [#allocation24]  }
  0x36   : > { %s12971_s24 = sld [smem:[#allocation44_spill]]  ;;  %s12247_s4 = smov [#allocation7]  }
  0x37   : > { %11554 = dma.hbm_to_vmem [thread:$0]  (!%p12402_p5), %s677_s26, 32, %s679_s28, [#allocation27]  }
  0x38   : > { %s12972_s5 = sld [smem:[#allocation46_spill]]  ;;  %s508_s23 = sshll.u32 %s12247_s4, 4  ;;  %s509_s23 = int_to_ptr.vmem [resolvable:$true] %s508_s23 }
  0x39   : > { %s12248_s3 = smov [#allocation10]   ;;  %s12973_s7 = sld [smem:[#allocation48_spill]] }
  0x3a   : > { %s534_s29 = sshll.u32 %s12248_s3, 4  ;;  %s584_s20 = sshll.u32 %s12931_s9, 4  ;;  %s535_s29 = int_to_ptr.vmem [resolvable:$true] %s534_s29  ;;  %s585_s20 = int_to_ptr.hbm [resolvable:$true] %s584_s20 }
  0x3b   : > { %s12249_s0 = smov [#allocation13]   ;;  %s610_s17 = sshll.u32 %s12933_s11, 4  ;;  %s611_s17 = int_to_ptr.hbm [resolvable:$true] %s610_s17 }
  0x3c   : > { %s506_s6 = sshll.u32 %s12971_s24, 4  ;;  %s560_s25 = sshll.u32 %s12249_s0, 4  ;;  %s507_s6 = int_to_ptr.hbm [resolvable:$true] %s506_s6  ;;  %s561_s25 = int_to_ptr.vmem [resolvable:$true] %s560_s25 }
  0x3d   : > { %11515 = dma.hbm_to_vmem [thread:$0]  (!%p12402_p5), %s507_s6, 16, %s509_s23, [#allocation6]  }
  0x3e   : > { %s532_s27 = sshll.u32 %s12972_s5, 4  ;;  %s12250_s6 = smov [#allocation16]   ;;  %s533_s27 = int_to_ptr.hbm [resolvable:$true] %s532_s27 }
  0x3f   : > { %s558_s24 = sshll.u32 %s12973_s7, 4  ;;  %s586_s4 = sshll.u32 %s12250_s6, 4  ;;  %s559_s24 = int_to_ptr.hbm [resolvable:$true] %s558_s24  ;;  %s587_s4 = int_to_ptr.vmem [resolvable:$true] %s586_s4 }
  0x40   : > { %11521 = dma.hbm_to_vmem [thread:$0]  (!%p12402_p5), %s533_s27, 16, %s535_s29, [#allocation9]  }
  0x41   : > { %11527 = dma.hbm_to_vmem [thread:$0]  (!%p12402_p5), %s559_s24, 32, %s561_s25, [#allocation12]  }
  0x42   : > { %11533 = dma.hbm_to_vmem [thread:$0]  (!%p12402_p5), %s585_s20, 64, %s587_s4, [#allocation15]  }
  0x43   : > { %s635_s2 = sshll.u32 %s12935_s13, 4  ;;  %s12251_s26 = smov [#allocation19]   ;;  %s636_s2 = int_to_ptr.hbm [resolvable:$true] %s635_s2 }
  0x44   : > { %s612_s28 = sshll.u32 %s12251_s26, 4  ;;  %s12252_s24 = smov [#allocation22]   ;;  %s613_s28 = int_to_ptr.vmem [resolvable:$true] %s612_s28 }
  0x45   : > { %11539 = dma.hbm_to_vmem [thread:$0]  (!%p12402_p5), %s611_s17, 32, %s613_s28, [#allocation18]  }
  0x46   : > { %s637_s0 = sshll.u32 %s12252_s24, 4  ;;  %s661_s20 = sshll.u32 %s12937_s15, 4  ;;  %s638_s0 = int_to_ptr.vmem [resolvable:$true] %s637_s0  ;;  %s662_s20 = int_to_ptr.hbm [resolvable:$true] %s661_s20 }
  0x47   : > { %11545 = dma.hbm_to_vmem [thread:$0]  (!%p12402_p5), %s636_s2, 8192, %s638_s0, [#allocation21], %s12241_s30, %s12241_s30, %s12242_s19  }
  0x48   : > { %s12974_s3 = sld [smem:[#allocation50_spill]]  ;;  %s12253_s29 = smov [#allocation25]  }
  0x49   : > { %s12975_s27 = sld [smem:[#allocation38_spill]]  ;;  %s663_s26 = sshll.u32 %s12253_s29, 4  ;;  %s664_s26 = int_to_ptr.vmem [resolvable:$true] %s663_s26 }
  0x4a   : > { %s12976_s28 = smov 8   ;;  %s12977_s24 = smov 128  }
  0x4b   : > { %11551 = dma.hbm_to_vmem [thread:$0]  (!%p12402_p5), %s662_s20, 8192, %s664_s26, [#allocation24], %s12977_s24, %s12977_s24, %s12976_s28  }
  0x4c   : > { %s12254_s30 = smov [#allocation28]   ;;  %s12499_s2 = sadd.s32 1, %s12231_s22  }
  0x4d   : > { %s690_s19 = sshll.u32 %s12254_s30, 4  ;;  %s75_s0 = sadd.s32 1, %s12227_s1  ;;  %s691_s19 = int_to_ptr.vmem [resolvable:$true] %s690_s19 }
  0x4e   : > { %s688_s17 = sshll.u32 %s12974_s3, 4  ;;  %s72_s6 = ssub.s32 %s12231_s22, %s12499_s2  ;;  %s689_s17 = int_to_ptr.hbm [resolvable:$true] %s688_s17 }
  0x4f   : > { %11557 = dma.hbm_to_vmem [thread:$0]  (!%p12402_p5), %s689_s17, 32, %s691_s19, [#allocation27]  }
  0x50   : > { %p82_p6 = scmp.ne.s32.totalorder %s12227_s1, %s12223_s21  ;;  %p73_p7 = scmp.eq.s32.totalorder %s72_s6, 0 }
  0x51   : > { %p83_p8 = scmp.eq.s32.totalorder %s12231_s22, 0  ;;  %p88_p9 = scmp.ne.s32.totalorder %s12223_s21, %s12975_s27 }
  0x52   : > { %p11578_p10 = scmp.lt.s32.totalorder %s12231_s22, 2  ;;  %s713_s18 = sand.u32 1, %s12227_s1  }
  0x53   : > { %s12511_s4 = scalar_select %p73_p7, %s12227_s1, %s75_s0  }
  0x54   : > { %p84_p11 = por %p83_p8, %p82_p6  ;;  %p12515_p12 = por %p12386_p1, %p88_p9 }
  0x55   : > { %s10654_s23 = sshll.u32 %s12231_s22, 8  ;;  %s7471_s3 = sshll.u32 %s713_s18, 8 }
  0x56   : > { %s12980_s26 = sld [smem:[#allocation42_spill]]  ;;  %s717_s19 = scalar_lea.vmem [#allocation3], %s7471_s3 }
  0x57   : > { %s726_s6 = sshll.u32 %s717_s19, 4  ;;  %p12526_p13 = pnand %p11578_p10, %p84_p11  ;;  %s727_s6 = int_to_ptr.vmem [resolvable:$true] %s726_s6 }
  0x58   : > { %s714_s25 = scalar_lea.sflag [#allocation4], %s713_s18 }
  0x59   : > { %p12139_p2 = pneg %p12526_p13 }
  0x5c   : > { %s723_s28 = scalar_lea.hbm %s12980_s26, %s10654_s23  ;;  %s12142_s17 = scalar_lea.hbm %s12980_s26, 512 }
  0x5d   : > { %s724_s30 = sshll.u32 %s723_s28, 4  ;;  %s725_s30 = int_to_ptr.hbm [resolvable:$true] %s724_s30 }
  0x5e   : > { %s12135_s0 = sshra.s32 %s725_s30, 4  ;;  %s12136_s0 = int_to_ptr.hbm [resolvable:$true] %s12135_s0 }
  0x5f   : > { %s12137_s5 = scalar_lea.hbm %s12136_s0, 256  ;;  %p12143_p6 = scmp.lt.s32.totalorder %s12136_s0, %s12980_s26 }
  0x60   : > { %p12138_p0 = scmp.ne.s32.totalorder %s12136_s0, %s12137_s5  ;;  %p12144_p7 = scmp.lt.s32.totalorder %s12142_s17, %s12137_s5 }
  0x62   : > { %p12140_p4 = pnand %p12139_p2, %p12138_p0  ;;  %p12145_p8 = por %p12144_p7, %p12143_p6 }
  0x64   : > { %p12141_p5 = pneg %p12140_p4 }
  0x66   : > { %p12146_p9 = pnand %p12145_p8, %p12141_p5 }
  0x68   : > { %12149 = shalt.err (!%p12146_p9)
}
  0x69   : > { %s12255_s18 = smov 2048   ;;  %738 = sbr.rel (%p12391_p3) target bundleno = 1718 (0x6b6), region = 96 }
  0x6a   : > { %11561 = dma.hbm_to_vmem [thread:$0]  (!%p12526_p13), %s725_s30, 4096, %s727_s6, %s714_s25, %s12255_s18, %s12255_s18, %s12977_s24  }
  0x6b   : > { %s740_s23 = sand.u32 (!%p12391_p3), 1, %s12223_s21  }
  0x6c   : > { %s7476_s3 = sshll.u32 (!%p12391_p3), %s740_s23, 8  ;;  %s741_s7 = scalar_lea.sflag (!%p12391_p3), [#allocation4], %s740_s23 }
  0x6d   : > { %s12544_s8 = scalar_lea.vmem (!%p12391_p3), [#allocation3], %s7476_s3 }
  0x6e   : > { %12182 = dma.done.wait (%p12515_p12), %s741_s7, 4096  }
  0x6f   : > { %12184 = vsyncadd (%p12515_p12), %s741_s7, 4294963200 }
  0x70   : > { %12186 = dma.done.wait (%p12386_p1), [#allocation6], 80  }
  0x71   : > { %12188 = vsyncadd (%p12386_p1), [#allocation6], 4294967216 }
  0x72   : > { %12190 = dma.done.wait (%p12386_p1), [#allocation9], 528  }
  0x73   : > { %12192 = vsyncadd (%p12386_p1), [#allocation9], 4294966768 }
  0x74   : > { %12194 = dma.done.wait (%p12386_p1), [#allocation12], 2080  }
  0x75   : > { %12196 = vsyncadd (%p12386_p1), [#allocation12], 4294965216 }
  0x76   : > { %12198 = dma.done.wait (%p12386_p1), [#allocation15], 65600  }
  0x77   : > { %12200 = vsyncadd (%p12386_p1), [#allocation15], 4294901696 }
  0x78   : > { %12202 = dma.done.wait (%p12386_p1), [#allocation18], 8224  }
  0x79   : > { %12204 = vsyncadd (%p12386_p1), [#allocation18], 4294959072 }
  0x7a   : > { %12206 = dma.done.wait (%p12386_p1), [#allocation21], 16384  }
  0x7b   : > { %12208 = vsyncadd (%p12386_p1), [#allocation21], 4294950912 }
  0x7c   : > { %12210 = dma.done.wait (%p12386_p1), [#allocation24], 8256  }
  0x7d   : > { %12212 = vsyncadd (%p12386_p1), [#allocation24], 4294959040 }
  0x7e   : > { %12214 = dma.done.wait (%p12386_p1), [#allocation27], 64  }
  0x7f   : > { %12216 = vsyncadd (%p12386_p1), [#allocation27], 4294967232  ;;  %s12984_s7 = sadd.s32 4294967295, %s12231_s22   ;;  %vm911_vm0 = vcmask 1043456   ;;  %s12985_s27 = sld [smem:[#allocation41_spill]]  ;;  %vm907_vm1 = vcmask 64512  }
  0x80   : > { %s7493_s24 = sshll.u32 %s12984_s7, 1  ;;  %v902_v1 = vld [vmem:[#allocation5] sm:$0xf]  ;;  %v7693_v6 = vld [vmem:[#allocation14 + $0xe0] sm:$0xf]  ;;  %vm968_vm2 = vcmask 523264  }
  0x81   : > { %p886_p3 = scmp.lt.s32.totalorder %s7493_s24, 3  ;;  %v913_v4 = vsel %vm911_vm0, %v902_v1, 0  ;;  %v10705_v7 = vld [vmem:[#allocation14 + $0xec] sm:$0xf0]  ;;  %v7677_v9 = vld [vmem:[#allocation14 + $0xc0] sm:$0xf] }
  0x82   : > { %922 = vmatpush.bf16.msra.mxu0 %v913_v4  ;;  %v7694_v8 = vor.u32 %v10705_v7, %v7693_v6  ;;  %v10701_v10 = vld [vmem:[#allocation14 + $0xcc] sm:$0xf0]  ;;  %v7661_v12 = vld [vmem:[#allocation14 + $0xa0] sm:$0xf]  ;;  %v1119_v33 = vld [vmem:[%s12544_s8] sm:$0xff]  ;;  %s12986_s0 = sld [smem:[#allocation51_spill]] }
  0x83   : > { %s12992_s24 = smov (!%p886_p3, %s7493_s24), 3  ;;  %v7678_v11 = vor.u32 %v10701_v10, %v7677_v9  ;;  %v10697_v13 = vld [vmem:[#allocation14 + $0xac] sm:$0xf0]  ;;  %v7645_v15 = vld [vmem:[#allocation14 + $0x80] sm:$0xf]  ;;  %v1135_v34 = vld [vmem:[%s12544_s8 + $0x80] sm:$0xff] }
  0x84   : > { %s7494_s20 = sshll.u32 %s12992_s24, 3  ;;  %v7662_v14 = vor.u32 %v10697_v13, %v7661_v12  ;;  %v10693_v16 = vld [vmem:[#allocation14 + $0x8c] sm:$0xf0]  ;;  %v7629_v18 = vld [vmem:[#allocation14 + $0x60] sm:$0xf]  ;;  %v12594_v37 = vpack.c.bf16 %v1135_v34, %v1119_v33  ;;  %v1123_v60 = vld [vmem:[%s12544_s8 + $0x20] sm:$0xff] }
  0x85   : > { %s889_s25 = scalar_lea.vmem %s12985_s27, %s7494_s20  ;;  %v7646_v17 = vor.u32 %v10693_v16, %v7645_v15  ;;  %v10689_v19 = vld [vmem:[#allocation14 + $0x6c] sm:$0xf0]  ;;  %v7613_v21 = vld [vmem:[#allocation14 + $0x40] sm:$0xf]  ;;  %v1139_v61 = vld [vmem:[%s12544_s8 + $0xa0] sm:$0xff]  ;;  %vm7217_vm3 = vcmask 7168  }
  0x86   : > { %v899_v2 = vld [vmem:[%s889_s25] sm:$0xff]  ;;  %v900_v3 = vld [vmem:[%s889_s25 + $0x8] sm:$0xff]  ;;  %4249 = vmatpush.bf16.msrb.mxu0 %v7694_v8  ;;  %v7630_v20 = vor.u32 %v10689_v19, %v7629_v18  ;;  %v10685_v22 = vld [vmem:[#allocation14 + $0x4c] sm:$0xf0]  ;;  %v12599_v0 = vpack.c.bf16 %v1139_v61, %v1123_v60 }
  0x87   : > { %v901_v5 = vpack.c.bf16 %v900_v3, %v899_v2  ;;  %v7614_v23 = vor.u32 %v10685_v22, %v7613_v21  ;;  %v7597_v24 = vld [vmem:[#allocation14 + $0x20] sm:$0xf]  ;;  %v10681_v25 = vld [vmem:[#allocation14 + $0x2c] sm:$0xf0]  ;;  %v10658_v10 = vld [vmem:[#allocation8 + $0x18] sm:$0xff] }
  0x88   : > { %v7598_v26 = vor.u32 %v10681_v25, %v7597_v24  ;;  %v7581_v27 = vld [vmem:[#allocation14] sm:$0xf]  ;;  %v10677_v28 = vld [vmem:[#allocation14 + $0xc] sm:$0xf0]  ;;  %976 = vmatpush.bf16.msra.mxu1 %v10658_v10  ;;  %v10656_v18 = vld [vmem:[#allocation8 + $0x8] sm:$0xff]  ;;  %s896_s17 = scalar_lea.vmem %s12986_s0, %s7494_s20 }
  0x89   : > { %7497 = vmatmul.msk.bf16.vlgmr.msra.gmra.mxu0 %vm907_vm1, %v901_v5  ;;  %v8205_v29 = vld [vmem:[#allocation14 + $0x4e0] sm:$0xf]  ;;  %v10833_v30 = vld [vmem:[#allocation14 + $0x4ec] sm:$0xf0]  ;;  %v7582_v31 = vor.u32 %v10677_v28, %v7581_v27 }
  0x8a   : > { %4250 = vmatpush.bf16.msrb.mxu0 %v7678_v11  ;;  %v8206_v32 = vor.u32 %v10833_v30, %v8205_v29  ;;  %v8189_v35 = vld [vmem:[#allocation14 + $0x4c0] sm:$0xf]  ;;  %v10829_v36 = vld [vmem:[#allocation14 + $0x4cc] sm:$0xf0] }
  0x8b   : > { %v8190_v38 = vor.u32 %v10829_v36, %v8189_v35  ;;  %v8173_v39 = vld [vmem:[#allocation14 + $0x4a0] sm:$0xf]  ;;  %v10825_v40 = vld [vmem:[#allocation14 + $0x4ac] sm:$0xf0]  ;;  %v1127_v35 = vld [vmem:[%s12544_s8 + $0x40] sm:$0xff] }
  0x8c   : > { %v8174_v41 = vor.u32 %v10825_v40, %v8173_v39  ;;  %v8157_v42 = vld [vmem:[#allocation14 + $0x480] sm:$0xf]  ;;  %v10821_v43 = vld [vmem:[#allocation14 + $0x48c] sm:$0xf0]  ;;  %v1143_v40 = vld [vmem:[%s12544_s8 + $0xc0] sm:$0xff] }
  0x8d   : > { %v8158_v44 = vor.u32 %v10821_v43, %v8157_v42  ;;  %v8141_v45 = vld [vmem:[#allocation14 + $0x460] sm:$0xf]  ;;  %v10817_v46 = vld [vmem:[#allocation14 + $0x46c] sm:$0xf0] }
  0x8e   : > { %4251 = vmatpush.bf16.msrb.mxu0 %v7662_v14  ;;  %v8142_v47 = vor.u32 %v10817_v46, %v8141_v45  ;;  %v8125_v48 = vld [vmem:[#allocation14 + $0x440] sm:$0xf]  ;;  %v10813_v49 = vld [vmem:[#allocation14 + $0x44c] sm:$0xf0] }
  0x8f   : > { %v8126_v50 = vor.u32 %v10813_v49, %v8125_v48  ;;  %v8109_v51 = vld [vmem:[#allocation14 + $0x420] sm:$0xf]  ;;  %v10809_v52 = vld [vmem:[#allocation14 + $0x42c] sm:$0xf0] }
  0x90   : > { %v8110_v53 = vor.u32 %v10809_v52, %v8109_v51  ;;  %v8093_v54 = vld [vmem:[#allocation14 + $0x400] sm:$0xf]  ;;  %v10805_v55 = vld [vmem:[#allocation14 + $0x40c] sm:$0xf0] }
  0x91   : > { %v8717_v56 = vld [vmem:[#allocation14 + $0x8e0] sm:$0xf]  ;;  %v10961_v57 = vld [vmem:[#allocation14 + $0x8ec] sm:$0xf0]  ;;  %v8094_v58 = vor.u32 %v10805_v55, %v8093_v54 }
  0x92   : > { %4252 = vmatpush.bf16.msrb.mxu0 %v7646_v17  ;;  %v8718_v59 = vor.u32 %v10961_v57, %v8717_v56  ;;  %v8701_v62 = vld [vmem:[#allocation14 + $0x8c0] sm:$0xf]  ;;  %v10957_v63 = vld [vmem:[#allocation14 + $0x8cc] sm:$0xf0] }
  0x93   : > { %v8702_v1 = vor.u32 %v10957_v63, %v8701_v62  ;;  %v8685_v2 = vld [vmem:[#allocation14 + $0x8a0] sm:$0xf]  ;;  %v10953_v3 = vld [vmem:[#allocation14 + $0x8ac] sm:$0xf0] }
  0x94   : > { %v8686_v4 = vor.u32 %v10953_v3, %v8685_v2  ;;  %v8669_v5 = vld [vmem:[#allocation14 + $0x880] sm:$0xf]  ;;  %v10949_v6 = vld [vmem:[#allocation14 + $0x88c] sm:$0xf0]  ;;  %v10703_v2 = vld [vmem:[#allocation14 + $0xe4] sm:$0xf] }
  0x95   : > { %v8670_v7 = vor.u32 %v10949_v6, %v8669_v5  ;;  %v8653_v8 = vld [vmem:[#allocation14 + $0x860] sm:$0xf]  ;;  %v10945_v9 = vld [vmem:[#allocation14 + $0x86c] sm:$0xf0] }
  0x96   : > { %4253 = vmatpush.bf16.msrb.mxu0 %v7630_v20  ;;  %v8654_v11 = vor.u32 %v10945_v9, %v8653_v8  ;;  %v8637_v12 = vld [vmem:[#allocation14 + $0x840] sm:$0xf]  ;;  %v10941_v13 = vld [vmem:[#allocation14 + $0x84c] sm:$0xf0] }
  0x97   : > { %v10657_v14 = vld [vmem:[#allocation8 + $0x10] sm:$0xff]  ;;  %v8638_v15 = vor.u32 %v10941_v13, %v8637_v12  ;;  %v8621_v16 = vld [vmem:[#allocation14 + $0x820] sm:$0xf]  ;;  %v10699_v12 = vld [vmem:[#allocation14 + $0xc4] sm:$0xf] }
  0x98   : > { %977 = vmatpush.bf16.msra.mxu1 %v10657_v14  ;;  %v10937_v17 = vld [vmem:[#allocation14 + $0x82c] sm:$0xf0]  ;;  %v8605_v20 = vld [vmem:[#allocation14 + $0x800] sm:$0xf]  ;;  %v7679_v13 = vld [vmem:[#allocation14 + $0xd0] sm:$0xf0] }
  0x99   : > { %v8622_v19 = vor.u32 %v10937_v17, %v8621_v16  ;;  %v10933_v21 = vld [vmem:[#allocation14 + $0x80c] sm:$0xf0]  ;;  %v10655_v22 = vld [vmem:[#allocation8] sm:$0xff] }
  0x9a   : > { %4254 = vmatpush.bf16.msrb.mxu0 %v7614_v23  ;;  %v9229_v23 = vld [vmem:[#allocation14 + $0xce0] sm:$0xf]  ;;  %v11089_v24 = vld [vmem:[#allocation14 + $0xcec] sm:$0xf0]  ;;  %v8606_v25 = vor.u32 %v10933_v21, %v8605_v20  ;;  %v1131_v14 = vld [vmem:[%s12544_s8 + $0x60] sm:$0xff]  ;;  %v7682_v20 = vor.u32 %v10699_v12, %v7679_v13 }
  0x9b   : > { %v9213_v27 = vld [vmem:[#allocation14 + $0xcc0] sm:$0xf]  ;;  %v11085_v28 = vld [vmem:[#allocation14 + $0xccc] sm:$0xf0]  ;;  %v1147_v16 = vld [vmem:[%s12544_s8 + $0xe0] sm:$0xff] }
  0x9c   : > { %978 = vmatpush.bf16.msra.mxu1 %v10656_v18  ;;  %v9214_v29 = vor.u32 %v11085_v28, %v9213_v27  ;;  %v9197_v30 = vld [vmem:[#allocation14 + $0xca0] sm:$0xf]  ;;  %v10737_v34 = vld [vmem:[#allocation14 + $0x1ec] sm:$0xf0]  ;;  %v10695_v21 = vld [vmem:[#allocation14 + $0xa4] sm:$0xf] }
  0x9d   : > { %v7821_v33 = vld [vmem:[#allocation14 + $0x1e0] sm:$0xf]  ;;  %v11073_v46 = vld [vmem:[#allocation14 + $0xc6c] sm:$0xf0]  ;;  %v10687_v28 = vld [vmem:[#allocation14 + $0x64] sm:$0xf] }
  0x9e   : > { %4255 = vmatpush.bf16.msrb.mxu0 %v7598_v26  ;;  %v9230_v26 = vor.u32 %v11089_v24, %v9229_v23  ;;  %v9181_v36 = vld [vmem:[#allocation14 + $0xc80] sm:$0xf]  ;;  %v7822_v39 = vor.u32 %v10737_v34, %v7821_v33  ;;  %v11069_v52 = vld [vmem:[#allocation14 + $0xc4c] sm:$0xf0]  ;;  %v10683_v33 = vld [vmem:[#allocation14 + $0x44] sm:$0xf] }
  0x9f   : > { %v7805_v43 = vld [vmem:[#allocation14 + $0x1c0] sm:$0xf]  ;;  %v10725_v56 = vld [vmem:[#allocation14 + $0x18c] sm:$0xf0]  ;;  %v7615_v34 = vld [vmem:[#allocation14 + $0x50] sm:$0xf0] }
  0xa0   : > { %979 = vmatpush.bf16.msra.mxu1 %v10655_v22  ;;  %v9165_v45 = vld [vmem:[#allocation14 + $0xc60] sm:$0xf]  ;;  %v10721_v62 = vld [vmem:[#allocation14 + $0x16c] sm:$0xf0]  ;;  %v7663_v22 = vld [vmem:[#allocation14 + $0xb0] sm:$0xf0] }
  0xa1   : > { %v9166_v48 = vor.u32 %v11073_v46, %v9165_v45  ;;  %v7789_v49 = vld [vmem:[#allocation14 + $0x1a0] sm:$0xf]  ;;  %v10717_v6 = vld [vmem:[#allocation14 + $0x14c] sm:$0xf0]  ;;  %v7666_v24 = vor.u32 %v10695_v21, %v7663_v22 }
  0xa2   : > { %4256 = vmatpush.bf16.msrb.mxu0 %v7582_v31  ;;  %v11081_v31 = vld [vmem:[#allocation14 + $0xcac] sm:$0xf0]  ;;  %v9149_v51 = vld [vmem:[#allocation14 + $0xc40] sm:$0xf] }
  0xa3   : > { %v9150_v54 = vor.u32 %v11069_v52, %v9149_v51  ;;  %v7773_v55 = vld [vmem:[#allocation14 + $0x180] sm:$0xf]  ;;  %v10713_v10 = vld [vmem:[#allocation14 + $0x12c] sm:$0xf0]  ;;  %v10831_v51 = vld [vmem:[#allocation14 + $0x4e4] sm:$0xf] }
  0xa4   : > { %4263 = vmatpush.bf16.msrb.mxu1 %v7822_v39  ;;  %v9133_v57 = vld [vmem:[#allocation14 + $0xc20] sm:$0xf]  ;;  %v10709_v18 = vld [vmem:[#allocation14 + $0x10c] sm:$0xf0]  ;;  %v7599_v39 = vld [vmem:[#allocation14 + $0x30] sm:$0xf0] }
  0xa5   : > { %4257 = vmatmul.bf16.vlgmr.msrb.gmra.mxu0 %v12594_v37  ;;  %v7757_v61 = vld [vmem:[#allocation14 + $0x160] sm:$0xf]  ;;  %v8207_v52 = vld [vmem:[#allocation14 + $0x4f0] sm:$0xf0]  ;;  %v10849_v13 = vld [vmem:[#allocation14 + $0x56c] sm:$0xf0] }
  0xa6   : > { %4305 = vmatpush.bf16.msra.mxu0 %v8206_v32  ;;  %v9198_v32 = vor.u32 %v11081_v31, %v9197_v30  ;;  %v9117_v63 = vld [vmem:[#allocation14 + $0xc00] sm:$0xf]  ;;  %v7758_v3 = vor.u32 %v10721_v62, %v7757_v61  ;;  %v10857_v62 = vld [vmem:[#allocation14 + $0x5ac] sm:$0xf0] }
  0xa7   : > { %v7741_v5 = vld [vmem:[#allocation14 + $0x140] sm:$0xf]  ;;  %v10845_v21 = vld [vmem:[#allocation14 + $0x54c] sm:$0xf0] }
  0xa8   : > { %v7725_v9 = vld [vmem:[#allocation14 + $0x120] sm:$0xf] }
  0xa9   : > { %v7709_v17 = vld [vmem:[#allocation14 + $0x100] sm:$0xf] }
  0xaa   : > { %4306 = vmatpush.bf16.msra.mxu0 %v8190_v38  ;;  %v11077_v38 = vld [vmem:[#allocation14 + $0xc8c] sm:$0xf0]  ;;  %v7710_v23 = vor.u32 %v10709_v18, %v7709_v17  ;;  %v8301_v61 = vld [vmem:[#allocation14 + $0x5a0] sm:$0xf]  ;;  %v10815_v17 = vld [vmem:[#allocation14 + $0x464] sm:$0xf] }
  0xab   : > { %v9182_v42 = vor.u32 %v11077_v38, %v9181_v36  ;;  %v10679_v38 = vld [vmem:[#allocation14 + $0x24] sm:$0xf]  ;;  %v8269_v12 = vld [vmem:[#allocation14 + $0x560] sm:$0xf]  ;;  %v8143_v18 = vld [vmem:[#allocation14 + $0x470] sm:$0xf0] }
  0xac   : > { %v7602_v45 = vor.u32 %v10679_v38, %v7599_v39  ;;  %v8146_v22 = vor.u32 %v10815_v17, %v8143_v18  ;;  %v10803_v39 = vld [vmem:[#allocation14 + $0x404] sm:$0xf]  ;;  %v7565_v17 = vld [vmem:[#allocation11 + $0x60] sm:$0xf] }
  0xad   : > { %v10672_v18 = vld [vmem:[#allocation11 + $0x64] sm:$0xf0] }
  0xae   : > { %4307 = vmatpush.bf16.msra.mxu0 %v8174_v41  ;;  %v12604_v41 = vpack.c.bf16 %v1143_v40, %v1127_v35  ;;  %v7618_v35 = vor.u32 %v10683_v33, %v7615_v34  ;;  %v10837_v33 = vld [vmem:[#allocation14 + $0x50c] sm:$0xf0]  ;;  %v8845_v34 = vld [vmem:[#allocation14 + $0x9e0] sm:$0xf] }
  0xb2   : > { %4308 = vmatpush.bf16.msra.mxu0 %v8158_v44  ;;  %v10733_v44 = vld [vmem:[#allocation14 + $0x1cc] sm:$0xf0] }
  0xb6   : > { %4309 = vmatpush.bf16.msra.mxu0 %v8142_v47  ;;  %v7806_v47 = vor.u32 %v10733_v44, %v7805_v43  ;;  %v8333_v43 = vld [vmem:[#allocation14 + $0x5e0] sm:$0xf]  ;;  %v10865_v44 = vld [vmem:[#allocation14 + $0x5ec] sm:$0xf0] }
  0xb8   : > { %4264 = vmatpush.bf16.msrb.mxu1 %v7806_v47 }
  0xba   : > { %4310 = vmatpush.bf16.msra.mxu0 %v8126_v50  ;;  %v10729_v50 = vld [vmem:[#allocation14 + $0x1ac] sm:$0xf0] }
  0xbe   : > { %4311 = vmatpush.bf16.msra.mxu0 %v8110_v53  ;;  %v7790_v53 = vor.u32 %v10729_v50, %v7789_v49  ;;  %v7583_v49 = vld [vmem:[#allocation14 + $0x10] sm:$0xf0]  ;;  %v8334_v50 = vor.u32 %v10865_v44, %v8333_v43  ;;  %v10959_v43 = vld [vmem:[#allocation14 + $0x8e4] sm:$0xf] }
  0xbf   : > { %v8719_v44 = vld [vmem:[#allocation14 + $0x8f0] sm:$0xf0] }
  0xc0   : > { %4265 = vmatpush.bf16.msrb.mxu1 %v7790_v53 }
  0xc2   : > { %4312 = vmatpush.bf16.msra.mxu0 %v8094_v58  ;;  %v11065_v58 = vld [vmem:[#allocation14 + $0xc2c] sm:$0xf0] }
  0xc3   : > { %v9134_v60 = vor.u32 %v11065_v58, %v9133_v57  ;;  %v8210_v57 = vor.u32 %v10831_v51, %v8207_v52  ;;  %v10955_v52 = vld [vmem:[#allocation14 + $0x8c4] sm:$0xf] }
  0xc5   : > { %4313 = vmatmul.bf16.vlgmr.msra.gmra.mxu0 %v12599_v0 }
  0xc6   : > { %4361 = vmatpush.bf16.msrb.mxu0 %v8718_v59  ;;  %v7774_v59 = vor.u32 %v10725_v56, %v7773_v55  ;;  %v10861_v55 = vld [vmem:[#allocation14 + $0x5cc] sm:$0xf0] }
  0xc8   : > { %4266 = vmatpush.bf16.msrb.mxu1 %v7774_v59  ;;  %v10827_v59 = vld [vmem:[#allocation14 + $0x4c4] sm:$0xf] }
  0xca   : > { %4362 = vmatpush.bf16.msrb.mxu0 %v8702_v1  ;;  %v11061_v1 = vld [vmem:[#allocation14 + $0xc0c] sm:$0xf0] }
  0xcb   : > { %v9118_v8 = vor.u32 %v11061_v1, %v9117_v63  ;;  %v8302_v1 = vor.u32 %v10857_v62, %v8301_v61  ;;  %v8797_v61 = vld [vmem:[#allocation14 + $0x980] sm:$0xf]  ;;  %v10981_v62 = vld [vmem:[#allocation14 + $0x98c] sm:$0xf0] }
  0xcc   : > { %4267 = vmatpush.bf16.msrb.mxu1 %v7758_v3  ;;  %v8175_v3 = vld [vmem:[#allocation14 + $0x4b0] sm:$0xf0] }
  0xce   : > { %4363 = vmatpush.bf16.msrb.mxu0 %v8686_v4  ;;  %v7695_v4 = vld [vmem:[#allocation14 + $0xf0] sm:$0xf0] }
  0xd2   : > { %4364 = vmatpush.bf16.msrb.mxu0 %v8670_v7  ;;  %v7742_v7 = vor.u32 %v10717_v6, %v7741_v5  ;;  %v10853_v5 = vld [vmem:[#allocation14 + $0x58c] sm:$0xf0] }
  0xd4   : > { %4268 = vmatpush.bf16.msrb.mxu1 %v7742_v7  ;;  %v10819_v7 = vld [vmem:[#allocation14 + $0x484] sm:$0xf] }
  0xd6   : > { %4365 = vmatpush.bf16.msrb.mxu0 %v8654_v11  ;;  %v7698_v11 = vor.u32 %v10703_v2, %v7695_v4  ;;  %v10823_v2 = vld [vmem:[#allocation14 + $0x4a4] sm:$0xf]  ;;  %v8285_v4 = vld [vmem:[#allocation14 + $0x580] sm:$0xf] }
  0xd7   : > { %v8178_v6 = vor.u32 %v10823_v2, %v8175_v3  ;;  %v8671_v2 = vld [vmem:[#allocation14 + $0x890] sm:$0xf0]  ;;  %v8798_v3 = vor.u32 %v10981_v62, %v8797_v61 }
  0xd8   : > { %v10665_v61 = vld [vmem:[#allocation11 + $0x34] sm:$0xf] }
  0xda   : > { %4366 = vmatpush.bf16.msrb.mxu0 %v8638_v15  ;;  %v7726_v15 = vor.u32 %v10713_v10, %v7725_v9  ;;  %v8159_v9 = vld [vmem:[#allocation14 + $0x490] sm:$0xf0]  ;;  %v1120_v10 = vld [vmem:[%s12544_s8 + $0x8] sm:$0xff] }
  0xdc   : > { %4269 = vmatpush.bf16.msrb.mxu1 %v7726_v15 }
  0xde   : > { %4367 = vmatpush.bf16.msrb.mxu0 %v8622_v19  ;;  %v12609_v19 = vpack.c.bf16 %v1147_v16, %v1131_v14  ;;  %v8162_v14 = vor.u32 %v10819_v7, %v8159_v9  ;;  %v8270_v16 = vor.u32 %v10849_v13, %v8269_v12  ;;  %v8781_v7 = vld [vmem:[#allocation14 + $0x960] sm:$0xf]  ;;  %v10943_v13 = vld [vmem:[#allocation14 + $0x864] sm:$0xf] }
  0xe0   : > { %4270 = vmatpush.bf16.msrb.mxu1 %v7710_v23 }
  0xe2   : > { %4368 = vmatpush.bf16.msrb.mxu0 %v8606_v25  ;;  %v10691_v25 = vld [vmem:[#allocation14 + $0x84] sm:$0xf] }
  0xe5   : > { %4369 = vmatmul.bf16.vlgmr.msrb.gmra.mxu0 %v12604_v41 }
  0xe6   : > { %4417 = vmatpush.bf16.msra.mxu0 %v9230_v26  ;;  %v7647_v26 = vld [vmem:[#allocation14 + $0x90] sm:$0xf0] }
  0xe7   : > { %v7650_v27 = vor.u32 %v10691_v25, %v7647_v26  ;;  %v8127_v25 = vld [vmem:[#allocation14 + $0x450] sm:$0xf0]  ;;  %v8237_v26 = vld [vmem:[#allocation14 + $0x520] sm:$0xf] }
  0xea   : > { %4418 = vmatpush.bf16.msra.mxu0 %v9214_v29  ;;  %v7631_v29 = vld [vmem:[#allocation14 + $0x70] sm:$0xf0] }
  0xeb   : > { %v7634_v31 = vor.u32 %v10687_v28, %v7631_v29 }
  0xee   : > { %4419 = vmatpush.bf16.msra.mxu0 %v9198_v32  ;;  %v11650_v32 = vld [vmem:[#allocation7] ss:$0 sm:$0xff] }
  0xf2   : > { %4420 = vmatpush.bf16.msra.mxu0 %v9182_v42 }
  0xf6   : > { %4421 = vmatpush.bf16.msra.mxu0 %v9166_v48  ;;  %v10675_v48 = vld [vmem:[#allocation14 + $0x4] sm:$0xf] }
  0xf7   : > { %v7586_v56 = vor.u32 %v10675_v48, %v7583_v49  ;;  %v8722_v48 = vor.u32 %v10959_v43, %v8719_v44  ;;  %v1124_v49 = vld [vmem:[%s12544_s8 + $0x28] sm:$0xff] }
  0xf8   : > { %v7549_v44 = vld [vmem:[#allocation11 + $0x40] sm:$0xf] }
  0xfa   : > { %4422 = vmatpush.bf16.msra.mxu0 %v9150_v54  ;;  %v8317_v54 = vld [vmem:[#allocation14 + $0x5c0] sm:$0xf] }
  0xfb   : > { %v8318_v58 = vor.u32 %v10861_v55, %v8317_v54  ;;  %v8813_v55 = vld [vmem:[#allocation14 + $0x9a0] sm:$0xf] }
  0xfe   : > { %4423 = vmatpush.bf16.msra.mxu0 %v9134_v60  ;;  %v8191_v60 = vld [vmem:[#allocation14 + $0x4d0] sm:$0xf0] }
  0xff   : > { %v8194_v63 = vor.u32 %v10827_v59, %v8191_v60  ;;  %v10951_v59 = vld [vmem:[#allocation14 + $0x8a4] sm:$0xf]  ;;  %v8687_v60 = vld [vmem:[#allocation14 + $0x8b0] sm:$0xf0] }
 0x102   : > { %4424 = vmatpush.bf16.msra.mxu0 %v9118_v8  ;;  %v8286_v8 = vor.u32 %v10853_v5, %v8285_v4  ;;  %v7573_v4 = vld [vmem:[#allocation11 + $0x70] sm:$0xf]  ;;  %v10674_v5 = vld [vmem:[#allocation11 + $0x74] sm:$0xf0] }
 0x103   : > { %v7574_v9 = vor.u32 %v10674_v5, %v7573_v4  ;;  %v9341_v4 = vld [vmem:[#allocation14 + $0xdc0] sm:$0xf]  ;;  %v11117_v5 = vld [vmem:[#allocation14 + $0xdcc] sm:$0xf0] }
 0x105   : > { %4425 = vmatmul.bf16.vlgmr.msra.gmra.mxu0 %v12609_v19  ;;  %1091 = vmatpush.bf16.msra.mxu2 %v7574_v9  ;;  %v11083_v9 = vld [vmem:[#allocation14 + $0xcc4] sm:$0xf] }
 0x106   : > { %4473 = vmatpush.bf16.msrb.mxu0 %v7698_v11  ;;  %v924_v30 = vpop.f32.mrf.mxu0  ;;  %v1136_v11 = vld [vmem:[%s12544_s8 + $0x88] sm:$0xff] }
 0x107   : > { %v925_v36 = vadd.f32 %v11650_v32, %v924_v30  ;;  %v12615_v15 = vpack.c.bf16 %v1136_v11, %v1120_v10  ;;  %v10807_v30 = vld [vmem:[#allocation14 + $0x424] sm:$0xf]  ;;  %v7575_v10 = vld [vmem:[#allocation11 + $0x78] sm:$0xf0] }
 0x109   : > { %v929_v46 = vmax.f32 %v925_v36, 0.0 }
 0x10a   : > { %4474 = vmatpush.bf16.msrb.mxu0 %v7682_v20  ;;  %v8253_v20 = vld [vmem:[#allocation14 + $0x540] sm:$0xf] }
 0x10b   : > { %v8254_v23 = vor.u32 %v10845_v21, %v8253_v20  ;;  %v10671_v20 = vld [vmem:[#allocation11 + $0x64] sm:$0xf] }
 0x10c   : > { %v8765_v21 = vld [vmem:[#allocation14 + $0x940] sm:$0xf] }
 0x10e   : > { %4475 = vmatpush.bf16.msrb.mxu0 %v7666_v24  ;;  %v926_v40 = vpop.f32.mrf.mxu0  ;;  %v10811_v24 = vld [vmem:[#allocation14 + $0x444] sm:$0xf] }
 0x10f   : > { %v927_v42 = vadd.f32 %v11650_v32, %v926_v40  ;;  %v8130_v28 = vor.u32 %v10811_v24, %v8127_v25  ;;  %v8221_v32 = vld [vmem:[#allocation14 + $0x500] sm:$0xf]  ;;  %v8095_v40 = vld [vmem:[#allocation14 + $0x410] sm:$0xf0]  ;;  %v7567_v24 = vld [vmem:[#allocation11 + $0x68] sm:$0xf0] }
 0x110   : > { %v8222_v38 = vor.u32 %v10837_v33, %v8221_v32  ;;  %v7570_v25 = vor.u32 %v10671_v20, %v7567_v24  ;;  %v10669_v32 = vld [vmem:[#allocation11 + $0x54] sm:$0xf]  ;;  %v8749_v33 = vld [vmem:[#allocation14 + $0x920] sm:$0xf]  ;;  %v10664_v20 = vld [vmem:[#allocation11 + $0x24] sm:$0xf0] }
 0x111   : > { %v930_v47 = vmax.f32 %v927_v42, 0.0 }
 0x112   : > { %4476 = vmatpush.bf16.msrb.mxu0 %v7650_v27  ;;  %v10841_v27 = vld [vmem:[#allocation14 + $0x52c] sm:$0xf0] }
 0x113   : > { %v931_v53 = vpack.c.bf16 %v930_v47, %v929_v46  ;;  %v8238_v29 = vor.u32 %v10841_v27, %v8237_v26  ;;  %v10989_v46 = vld [vmem:[#allocation14 + $0x9cc] sm:$0xf0]  ;;  %v8098_v47 = vor.u32 %v10803_v39, %v8095_v40  ;;  %v10939_v27 = vld [vmem:[#allocation14 + $0x844] sm:$0xf] }
 0x114   : > { %v10935_v40 = vld [vmem:[#allocation14 + $0x824] sm:$0xf] }
 0x115   : > { %7514 = vmatmul.msk.bf16.vlgmr.msra.gmra.mxu1 %vm968_vm2, %v931_v53  ;;  %v8703_v53 = vld [vmem:[#allocation14 + $0x8d0] sm:$0xf0] }
 0x116   : > { %4477 = vmatpush.bf16.msrb.mxu0 %v7634_v31  ;;  %4319 = vmatpush.bf16.msra.mxu1 %v8334_v50  ;;  %v8111_v31 = vld [vmem:[#allocation14 + $0x430] sm:$0xf0]  ;;  %v1140_v50 = vld [vmem:[%s12544_s8 + $0xa8] sm:$0xff] }
 0x117   : > { %v8114_v36 = vor.u32 %v10807_v30, %v8111_v31  ;;  %v12620_v54 = vpack.c.bf16 %v1140_v50, %v1124_v49  ;;  %v7557_v30 = vld [vmem:[#allocation11 + $0x50] sm:$0xf]  ;;  %v10670_v31 = vld [vmem:[#allocation11 + $0x54] sm:$0xf0]  ;;  %v7551_v50 = vld [vmem:[#allocation11 + $0x48] sm:$0xf0] }
 0x11a   : > { %4478 = vmatpush.bf16.msrb.mxu0 %v7618_v35  ;;  %4320 = vmatpush.bf16.msra.mxu1 %v8318_v58  ;;  %v10993_v35 = vld [vmem:[#allocation14 + $0x9ec] sm:$0xf0] }
 0x11b   : > { %v8846_v42 = vor.u32 %v10993_v35, %v8845_v34  ;;  %v10969_v34 = vld [vmem:[#allocation14 + $0x92c] sm:$0xf0]  ;;  %v7558_v35 = vor.u32 %v10670_v31, %v7557_v30  ;;  %v10662_v30 = vld [vmem:[#allocation11 + $0x14] sm:$0xf0] }
 0x11c   : > { %v8750_v43 = vor.u32 %v10969_v34, %v8749_v33  ;;  %v10661_v31 = vld [vmem:[#allocation11 + $0x14] sm:$0xf] }
 0x11d   : > { %v11109_v33 = vld [vmem:[#allocation14 + $0xd8c] sm:$0xf0] }
 0x11e   : > { %4479 = vmatpush.bf16.msrb.mxu0 %v7602_v45  ;;  %4321 = vmatpush.bf16.msra.mxu1 %v8302_v1  ;;  %v8829_v45 = vld [vmem:[#allocation14 + $0x9c0] sm:$0xf]  ;;  %v10947_v1 = vld [vmem:[#allocation14 + $0x884] sm:$0xf] }
 0x11f   : > { %v8830_v51 = vor.u32 %v10989_v46, %v8829_v45  ;;  %v8674_v12 = vor.u32 %v10947_v1, %v8671_v2  ;;  %v10668_v45 = vld [vmem:[#allocation11 + $0x44] sm:$0xf0]  ;;  %v10667_v46 = vld [vmem:[#allocation11 + $0x44] sm:$0xf]  ;;  %v9231_v1 = vld [vmem:[#allocation14 + $0xcf0] sm:$0xf0] }
 0x120   : > { %v7550_v49 = vor.u32 %v10668_v45, %v7549_v44  ;;  %v7517_v45 = vld [vmem:[#allocation11] sm:$0xf] }
 0x122   : > { %4480 = vmatpush.bf16.msrb.mxu0 %v7586_v56  ;;  %4322 = vmatpush.bf16.msra.mxu1 %v8286_v8  ;;  %v10985_v56 = vld [vmem:[#allocation14 + $0x9ac] sm:$0xf0] }
 0x123   : > { %v8814_v58 = vor.u32 %v10985_v56, %v8813_v55  ;;  %v10977_v8 = vld [vmem:[#allocation14 + $0x96c] sm:$0xf0]  ;;  %v10931_v56 = vld [vmem:[#allocation14 + $0x804] sm:$0xf] }
 0x125   : > { %4481 = vmatmul.bf16.vlgmr.msrb.gmra.mxu0 %v12594_v37  ;;  %4271 = vmatmul.bf16.vlgmr.msrb.gmra.mxu1 %v12615_v15 }
 0x126   : > { %4529 = vmatpush.bf16.msra.mxu0 %v8210_v57  ;;  %4323 = vmatpush.bf16.msra.mxu1 %v8270_v16  ;;  %v8706_v57 = vor.u32 %v10955_v52, %v8703_v53  ;;  %v8782_v16 = vor.u32 %v10977_v8, %v8781_v7  ;;  %v11121_v52 = vld [vmem:[#allocation14 + $0xdec] sm:$0xf0]  ;;  %v7554_v53 = vor.u32 %v10667_v46, %v7551_v50  ;;  %v10660_v46 = vld [vmem:[#allocation11 + $0x4] sm:$0xf0]  ;;  %v7949_v50 = vld [vmem:[#allocation14 + $0x2e0] sm:$0xf] }
 0x12a   : > { %4530 = vmatpush.bf16.msra.mxu0 %v8194_v63  ;;  %4324 = vmatpush.bf16.msra.mxu1 %v8254_v23  ;;  %v8690_v63 = vor.u32 %v10951_v59, %v8687_v60  ;;  %v7566_v23 = vor.u32 %v10672_v18, %v7565_v17  ;;  %v7541_v59 = vld [vmem:[#allocation11 + $0x30] sm:$0xf]  ;;  %v10666_v60 = vld [vmem:[#allocation11 + $0x34] sm:$0xf0]  ;;  %v7533_v18 = vld [vmem:[#allocation11 + $0x20] sm:$0xf] }
 0x12b   : > { %v7542_v2 = vor.u32 %v10666_v60, %v7541_v59  ;;  %v9167_v59 = vld [vmem:[#allocation14 + $0xc70] sm:$0xf0] }
 0x12c   : > { %1092 = vmatpush.bf16.msra.mxu2 %v7566_v23  ;;  %v7535_v23 = vld [vmem:[#allocation11 + $0x28] sm:$0xf0] }
 0x12e   : > { %4531 = vmatpush.bf16.msra.mxu0 %v8178_v6  ;;  %4325 = vmatpush.bf16.msra.mxu1 %v8238_v29  ;;  %v10673_v6 = vld [vmem:[#allocation11 + $0x74] sm:$0xf] }
 0x12f   : > { %v7578_v11 = vor.u32 %v10673_v6, %v7575_v10  ;;  %v1128_v10 = vld [vmem:[%s12544_s8 + $0x48] sm:$0xff] }
 0x130   : > { %1093 = vmatpush.bf16.msra.mxu2 %v7558_v35  ;;  %v7527_v35 = vld [vmem:[#allocation11 + $0x18] sm:$0xf0] }
 0x131   : > { %1105 = vmatpush.bf16.msra.mxu3 %v7578_v11  ;;  %v1144_v11 = vld [vmem:[%s12544_s8 + $0xc8] sm:$0xff] }
 0x132   : > { %4532 = vmatpush.bf16.msra.mxu0 %v8162_v14  ;;  %4326 = vmatpush.bf16.msra.mxu1 %v8222_v38  ;;  %v8655_v14 = vld [vmem:[#allocation14 + $0x870] sm:$0xf0]  ;;  %v12626_v17 = vpack.c.bf16 %v1144_v11, %v1128_v10  ;;  %v7917_v11 = vld [vmem:[#allocation14 + $0x2a0] sm:$0xf] }
 0x133   : > { %v8658_v26 = vor.u32 %v10943_v13, %v8655_v14  ;;  %v9215_v13 = vld [vmem:[#allocation14 + $0xcd0] sm:$0xf0]  ;;  %v9325_v14 = vld [vmem:[#allocation14 + $0xda0] sm:$0xf] }
 0x134   : > { %1094 = vmatpush.bf16.msra.mxu2 %v7550_v49  ;;  %v9218_v24 = vor.u32 %v11083_v9, %v9215_v13  ;;  %v7519_v49 = vld [vmem:[#allocation11 + $0x8] sm:$0xf0]  ;;  %v9151_v9 = vld [vmem:[#allocation14 + $0xc50] sm:$0xf0]  ;;  %v8045_v13 = vld [vmem:[#allocation14 + $0x3a0] sm:$0xf] }
 0x135   : > { %4327 = vmatmul.bf16.vlgmr.msra.gmra.mxu1 %v12620_v54  ;;  %1106 = vmatpush.bf16.msra.mxu3 %v7570_v25  ;;  %v11079_v25 = vld [vmem:[#allocation14 + $0xca4] sm:$0xf] }
 0x136   : > { %4533 = vmatpush.bf16.msra.mxu0 %v8146_v22  ;;  %4375 = vmatpush.bf16.msrb.mxu1 %v8846_v42  ;;  %v10973_v22 = vld [vmem:[#allocation14 + $0x94c] sm:$0xf0]  ;;  %v8623_v42 = vld [vmem:[#allocation14 + $0x830] sm:$0xf0] }
 0x137   : > { %v8766_v29 = vor.u32 %v10973_v22, %v8765_v21  ;;  %v8626_v55 = vor.u32 %v10935_v40, %v8623_v42  ;;  %v10663_v21 = vld [vmem:[#allocation11 + $0x24] sm:$0xf]  ;;  %v7534_v22 = vor.u32 %v10664_v20, %v7533_v18  ;;  %v9183_v40 = vld [vmem:[#allocation14 + $0xc90] sm:$0xf0]  ;;  %v10793_v20 = vld [vmem:[#allocation14 + $0x3ac] sm:$0xf0] }
 0x138   : > { %1095 = vmatpush.bf16.msra.mxu2 %v7542_v2  ;;  %v9293_v42 = vld [vmem:[#allocation14 + $0xd60] sm:$0xf] }
 0x139   : > { %v9277_v2 = vld [vmem:[#allocation14 + $0xd40] sm:$0xf] }
 0x13a   : > { %4534 = vmatpush.bf16.msra.mxu0 %v8130_v28  ;;  %4376 = vmatpush.bf16.msrb.mxu1 %v8830_v51  ;;  %v8639_v28 = vld [vmem:[#allocation14 + $0x850] sm:$0xf0]  ;;  %v9357_v51 = vld [vmem:[#allocation14 + $0xde0] sm:$0xf] }
 0x13b   : > { %v8642_v39 = vor.u32 %v10939_v27, %v8639_v28  ;;  %v9358_v62 = vor.u32 %v11121_v52, %v9357_v51  ;;  %v7538_v27 = vor.u32 %v10663_v21, %v7535_v23  ;;  %v10769_v51 = vld [vmem:[#allocation14 + $0x2ec] sm:$0xf0]  ;;  %v8046_v21 = vor.u32 %v10793_v20, %v8045_v13  ;;  %v11063_v23 = vld [vmem:[#allocation14 + $0xc24] sm:$0xf]  ;;  %v7869_v13 = vld [vmem:[#allocation14 + $0x240] sm:$0xf] }
 0x13c   : > { %1096 = vmatpush.bf16.msra.mxu2 %v7534_v22  ;;  %v10781_v20 = vld [vmem:[#allocation14 + $0x34c] sm:$0xf0] }
 0x13e   : > { %4535 = vmatpush.bf16.msra.mxu0 %v8114_v36  ;;  %4377 = vmatpush.bf16.msrb.mxu1 %v8814_v58  ;;  %v7559_v36 = vld [vmem:[#allocation11 + $0x58] sm:$0xf0] }
 0x13f   : > { %v7562_v38 = vor.u32 %v10669_v32, %v7559_v36  ;;  %v9309_v32 = vld [vmem:[#allocation14 + $0xd80] sm:$0xf]  ;;  %v11075_v36 = vld [vmem:[#allocation14 + $0xc84] sm:$0xf] }
 0x140   : > { %v9310_v44 = vor.u32 %v11109_v33, %v9309_v32  ;;  %v10789_v32 = vld [vmem:[#allocation14 + $0x38c] sm:$0xf0]  ;;  %v10735_v33 = vld [vmem:[#allocation14 + $0x1e4] sm:$0xf] }
 0x141   : > { %1107 = vmatpush.bf16.msra.mxu3 %v7562_v38  ;;  %v7530_v38 = vor.u32 %v10661_v31, %v7527_v35 }
 0x142   : > { %4536 = vmatpush.bf16.msra.mxu0 %v8098_v47  ;;  %4378 = vmatpush.bf16.msrb.mxu1 %v8798_v3  ;;  %v8733_v47 = vld [vmem:[#allocation14 + $0x900] sm:$0xf]  ;;  %v7543_v3 = vld [vmem:[#allocation11 + $0x38] sm:$0xf0] }
 0x143   : > { %v7546_v6 = vor.u32 %v10665_v61, %v7543_v3  ;;  %v11101_v3 = vld [vmem:[#allocation14 + $0xd4c] sm:$0xf0] }
 0x144   : > { %v9278_v10 = vor.u32 %v11101_v3, %v9277_v2  ;;  %v10785_v2 = vld [vmem:[#allocation14 + $0x36c] sm:$0xf0] }
 0x145   : > { %4537 = vmatmul.bf16.vlgmr.msra.gmra.mxu0 %v12599_v0  ;;  %1108 = vmatpush.bf16.msra.mxu3 %v7554_v53  ;;  %v7950_v53 = vor.u32 %v10769_v51, %v7949_v50  ;;  %v7685_v50 = vld [vmem:[#allocation14 + $0xc8] sm:$0xf]  ;;  %v10702_v51 = vld [vmem:[#allocation14 + $0xd4] sm:$0xf0] }
 0x146   : > { %4585 = vmatpush.bf16.msrb.mxu0 %v8722_v48  ;;  %4379 = vmatpush.bf16.msrb.mxu1 %v8782_v16  ;;  %v10965_v48 = vld [vmem:[#allocation14 + $0x90c] sm:$0xf0] }
 0x147   : > { %v8734_v58 = vor.u32 %v10965_v48, %v8733_v47  ;;  %v11113_v16 = vld [vmem:[#allocation14 + $0xdac] sm:$0xf0]  ;;  %v10659_v47 = vld [vmem:[#allocation11 + $0x4] sm:$0xf]  ;;  %v7518_v48 = vor.u32 %v10660_v46, %v7517_v45  ;;  %v7807_v46 = vld [vmem:[#allocation14 + $0x1d0] sm:$0xf0] }
 0x148   : > { %v9326_v28 = vor.u32 %v11113_v16, %v9325_v14  ;;  %v7522_v52 = vor.u32 %v10659_v47, %v7519_v49  ;;  %v9261_v14 = vld [vmem:[#allocation14 + $0xd20] sm:$0xf]  ;;  %v11097_v16 = vld [vmem:[#allocation14 + $0xd2c] sm:$0xf0]  ;;  %v10731_v45 = vld [vmem:[#allocation14 + $0x1c4] sm:$0xf] }
 0x149   : > { %1109 = vmatpush.bf16.msra.mxu3 %v7546_v6  ;;  %v7810_v49 = vor.u32 %v10731_v45, %v7807_v46  ;;  %v7965_v45 = vld [vmem:[#allocation14 + $0x300] sm:$0xf]  ;;  %v10773_v46 = vld [vmem:[#allocation14 + $0x30c] sm:$0xf0] }
 0x14a   : > { %4586 = vmatpush.bf16.msrb.mxu0 %v8706_v57  ;;  %4380 = vmatpush.bf16.msrb.mxu1 %v8766_v29  ;;  %v8607_v57 = vld [vmem:[#allocation14 + $0x810] sm:$0xf0]  ;;  %v7525_v29 = vld [vmem:[#allocation11 + $0x10] sm:$0xf] }
 0x14b   : > { %v8610_v7 = vor.u32 %v10931_v56, %v8607_v57  ;;  %v7526_v34 = vor.u32 %v10662_v30, %v7525_v29  ;;  %v10801_v56 = vld [vmem:[#allocation14 + $0x3ec] sm:$0xf0]  ;;  %v9186_v57 = vor.u32 %v11075_v36, %v9183_v40  ;;  %v9245_v29 = vld [vmem:[#allocation14 + $0xd00] sm:$0xf]  ;;  %v9119_v40 = vld [vmem:[#allocation14 + $0xc10] sm:$0xf0] }
 0x14c   : > { %v11093_v30 = vld [vmem:[#allocation14 + $0xd0c] sm:$0xf0] }
 0x14d   : > { %1110 = vmatpush.bf16.msra.mxu3 %v7538_v27  ;;  %1097 = vmatpush.bf16.msra.mxu2 %v7526_v34  ;;  %v10757_v27 = vld [vmem:[#allocation14 + $0x28c] sm:$0xf0]  ;;  %v7823_v34 = vld [vmem:[#allocation14 + $0x1f0] sm:$0xf0] }
 0x14e   : > { %4587 = vmatpush.bf16.msrb.mxu0 %v8690_v63  ;;  %4381 = vmatpush.bf16.msrb.mxu1 %v8750_v43  ;;  %v11087_v63 = vld [vmem:[#allocation14 + $0xce4] sm:$0xf]  ;;  %v11105_v43 = vld [vmem:[#allocation14 + $0xd6c] sm:$0xf0] }
 0x14f   : > { %v9234_v8 = vor.u32 %v11087_v63, %v9231_v1  ;;  %v9294_v61 = vor.u32 %v11105_v43, %v9293_v42  ;;  %v10765_v63 = vld [vmem:[#allocation14 + $0x2cc] sm:$0xf0]  ;;  %v8061_v1 = vld [vmem:[#allocation14 + $0x3c0] sm:$0xf]  ;;  %v7826_v42 = vor.u32 %v10735_v33, %v7823_v34  ;;  %v7701_v43 = vld [vmem:[#allocation14 + $0xe8] sm:$0xf] }
 0x151   : > { %1111 = vmatpush.bf16.msra.mxu3 %v7530_v38  ;;  %1098 = vmatpush.bf16.msra.mxu2 %v7518_v48  ;;  %v9246_v38 = vor.u32 %v11093_v30, %v9245_v29  ;;  %v7743_v29 = vld [vmem:[#allocation14 + $0x150] sm:$0xf0] }
 0x152   : > { %4588 = vmatpush.bf16.msrb.mxu0 %v8674_v12  ;;  %4382 = vmatpush.bf16.msrb.mxu1 %v8734_v58  ;;  %v9342_v12 = vor.u32 %v11117_v5, %v9341_v4  ;;  %v11071_v58 = vld [vmem:[#allocation14 + $0xc64] sm:$0xf]  ;;  %v10797_v5 = vld [vmem:[#allocation14 + $0x3cc] sm:$0xf0] }
 0x153   : > { %v8062_v6 = vor.u32 %v10797_v5, %v8061_v1  ;;  %v1132_v5 = vld [vmem:[%s12544_s8 + $0x68] sm:$0xff] }
 0x155   : > { %4383 = vmatmul.bf16.vlgmr.msrb.gmra.mxu1 %v12626_v17  ;;  %1112 = vmatpush.bf16.msra.mxu3 %v7522_v52  ;;  %v10727_v52 = vld [vmem:[#allocation14 + $0x1a4] sm:$0xf] }
 0x156   : > { %4589 = vmatpush.bf16.msrb.mxu0 %v8658_v26  ;;  %4431 = vmatpush.bf16.msra.mxu1 %v9358_v62  ;;  %v9199_v26 = vld [vmem:[#allocation14 + $0xcb0] sm:$0xf0]  ;;  %v7933_v62 = vld [vmem:[#allocation14 + $0x2c0] sm:$0xf] }
 0x157   : > { %4277 = vmatpush.bf16.msrb.mxu2 %v7950_v53  ;;  %v7934_v4 = vor.u32 %v10765_v63, %v7933_v62  ;;  %v7791_v53 = vld [vmem:[#allocation14 + $0x1b0] sm:$0xf0]  ;;  %v10723_v62 = vld [vmem:[#allocation14 + $0x184] sm:$0xf] }
 0x158   : > { %v7775_v63 = vld [vmem:[#allocation14 + $0x190] sm:$0xf0] }
 0x15a   : > { %4590 = vmatpush.bf16.msrb.mxu0 %v8642_v39  ;;  %4432 = vmatpush.bf16.msra.mxu1 %v9342_v12  ;;  %v9202_v39 = vor.u32 %v11079_v25, %v9199_v26  ;;  %v10761_v12 = vld [vmem:[#allocation14 + $0x2ac] sm:$0xf0]  ;;  %v9262_v25 = vor.u32 %v11097_v16, %v9261_v14  ;;  %v7901_v26 = vld [vmem:[#allocation14 + $0x280] sm:$0xf] }
 0x15b   : > { %4278 = vmatpush.bf16.msrb.mxu2 %v7934_v4  ;;  %v7918_v18 = vor.u32 %v10761_v12, %v7917_v11  ;;  %v7902_v31 = vor.u32 %v10757_v27, %v7901_v26  ;;  %v7759_v12 = vld [vmem:[#allocation14 + $0x170] sm:$0xf0]  ;;  %v10749_v14 = vld [vmem:[#allocation14 + $0x24c] sm:$0xf0]  ;;  %v10715_v26 = vld [vmem:[#allocation14 + $0x144] sm:$0xf] }
 0x15c   : > { %v7870_v16 = vor.u32 %v10749_v14, %v7869_v13  ;;  %v7853_v27 = vld [vmem:[#allocation14 + $0x220] sm:$0xf]  ;;  %v8181_v13 = vld [vmem:[#allocation14 + $0x4a8] sm:$0xf]  ;;  %v10826_v14 = vld [vmem:[#allocation14 + $0x4b4] sm:$0xf0] }
 0x15e   : > { %4591 = vmatpush.bf16.msrb.mxu0 %v8626_v55  ;;  %4433 = vmatpush.bf16.msra.mxu1 %v9326_v28  ;;  %v8077_v55 = vld [vmem:[#allocation14 + $0x3e0] sm:$0xf] }
 0x15f   : > { %v8078_v60 = vor.u32 %v10801_v56, %v8077_v55  ;;  %v8029_v28 = vld [vmem:[#allocation14 + $0x380] sm:$0xf]  ;;  %4279 = vmatpush.bf16.msrb.mxu2 %v7918_v18  ;;  %v7686_v55 = vor.u32 %v10702_v51, %v7685_v50  ;;  %v7669_v56 = vld [vmem:[#allocation14 + $0xa8] sm:$0xf]  ;;  %v10682_v51 = vld [vmem:[#allocation14 + $0x34] sm:$0xf0] }
 0x160   : > { %v8030_v35 = vor.u32 %v10789_v32, %v8029_v28  ;;  %v7997_v18 = vld [vmem:[#allocation14 + $0x340] sm:$0xf]  ;;  %v10745_v28 = vld [vmem:[#allocation14 + $0x22c] sm:$0xf0]  ;;  %v7605_v50 = vld [vmem:[#allocation14 + $0x28] sm:$0xf] }
 0x161   : > { %4291 = vmatpush.bf16.msrb.mxu3 %v8078_v60  ;;  %v10753_v60 = vld [vmem:[#allocation14 + $0x26c] sm:$0xf0]  ;;  %v7854_v30 = vor.u32 %v10745_v28, %v7853_v27  ;;  %v11651_v27 = vld [vmem:[#allocation10] ss:$0 sm:$0xff] }
 0x162   : > { %4592 = vmatpush.bf16.msrb.mxu0 %v8610_v7  ;;  %4434 = vmatpush.bf16.msra.mxu1 %v9310_v44  ;;  %v9170_v7 = vor.u32 %v11071_v58, %v9167_v59  ;;  %v10706_v44 = vld [vmem:[#allocation14 + $0xf4] sm:$0xf0]  ;;  %v7794_v58 = vor.u32 %v10727_v52, %v7791_v53  ;;  %v7885_v59 = vld [vmem:[#allocation14 + $0x260] sm:$0xf]  ;;  %v10777_v32 = vld [vmem:[#allocation14 + $0x32c] sm:$0xf0] }
 0x163   : > { %4280 = vmatpush.bf16.msrb.mxu2 %v7902_v31  ;;  %v7702_v48 = vor.u32 %v10706_v44, %v7701_v43  ;;  %v7886_v1 = vor.u32 %v10753_v60, %v7885_v59  ;;  %v7981_v31 = vld [vmem:[#allocation14 + $0x320] sm:$0xf]  ;;  %v7727_v43 = vld [vmem:[#allocation14 + $0x130] sm:$0xf0]  ;;  %v10707_v52 = vld [vmem:[#allocation14 + $0x104] sm:$0xf] }
 0x164   : > { %v7982_v33 = vor.u32 %v10777_v32, %v7981_v31  ;;  %v7711_v53 = vld [vmem:[#allocation14 + $0x110] sm:$0xf0]  ;;  %v7589_v59 = vld [vmem:[#allocation14 + $0x8] sm:$0xf]  ;;  %v10678_v60 = vld [vmem:[#allocation14 + $0x14] sm:$0xf0] }
 0x165   : > { %4593 = vmatmul.bf16.vlgmr.msrb.gmra.mxu0 %v12604_v41  ;;  %4292 = vmatpush.bf16.msrb.mxu3 %v8062_v6  ;;  %v1148_v6 = vld [vmem:[%s12544_s8 + $0xe8] sm:$0xff]  ;;  %v10818_v31 = vld [vmem:[#allocation14 + $0x474] sm:$0xf0] }
 0x166   : > { %4641 = vmatpush.bf16.msra.mxu0 %v9234_v8  ;;  %v11067_v8 = vld [vmem:[#allocation14 + $0xc44] sm:$0xf]  ;;  %4435 = vmatpush.bf16.msra.mxu1 %v9294_v61  ;;  %v8013_v61 = vld [vmem:[#allocation14 + $0x360] sm:$0xf]  ;;  %v12633_v11 = vpack.c.bf16 %v1148_v6, %v1132_v5  ;;  %v8197_v6 = vld [vmem:[#allocation14 + $0x4c8] sm:$0xf] }
 0x167   : > { %v9154_v22 = vor.u32 %v11067_v8, %v9151_v9  ;;  %v8014_v3 = vor.u32 %v10785_v2, %v8013_v61  ;;  %4281 = vmatpush.bf16.msrb.mxu2 %v7886_v1  ;;  %v7653_v8 = vld [vmem:[#allocation14 + $0x88] sm:$0xf]  ;;  %v10694_v9 = vld [vmem:[#allocation14 + $0x94] sm:$0xf0]  ;;  %v10859_v1 = vld [vmem:[#allocation14 + $0x5c4] sm:$0xf] }
 0x168   : > { %v8319_v2 = vld [vmem:[#allocation14 + $0x5d0] sm:$0xf0]  ;;  %v10843_v32 = vld [vmem:[#allocation14 + $0x544] sm:$0xf] }
 0x169   : > { %4293 = vmatpush.bf16.msrb.mxu3 %v8046_v21  ;;  %v7654_v21 = vor.u32 %v10694_v9, %v7653_v8  ;;  %v8322_v5 = vor.u32 %v10859_v1, %v8319_v2  ;;  %v10855_v8 = vld [vmem:[#allocation14 + $0x5a4] sm:$0xf]  ;;  %v8303_v9 = vld [vmem:[#allocation14 + $0x5b0] sm:$0xf0] }
 0x16a   : > { %4642 = vmatpush.bf16.msra.mxu0 %v9218_v24  ;;  %v9135_v24 = vld [vmem:[#allocation14 + $0xc30] sm:$0xf0]  ;;  %4436 = vmatpush.bf16.msra.mxu1 %v9278_v10  ;;  %v10719_v10 = vld [vmem:[#allocation14 + $0x164] sm:$0xf] }
 0x16b   : > { %v9138_v36 = vor.u32 %v11063_v23, %v9135_v24  ;;  %v10690_v23 = vld [vmem:[#allocation14 + $0x74] sm:$0xf0]  ;;  %v7998_v24 = vor.u32 %v10781_v20, %v7997_v18  ;;  %4282 = vmatpush.bf16.msrb.mxu2 %v7870_v16  ;;  %v10851_v16 = vld [vmem:[#allocation14 + $0x584] sm:$0xf]  ;;  %v8287_v18 = vld [vmem:[#allocation14 + $0x590] sm:$0xf0]  ;;  %v8182_v20 = vor.u32 %v10826_v14, %v8181_v13 }
 0x16c   : > { %v8223_v1 = vld [vmem:[#allocation14 + $0x510] sm:$0xf0]  ;;  %v10991_v2 = vld [vmem:[#allocation14 + $0x9e4] sm:$0xf]  ;;  %v8101_v13 = vld [vmem:[#allocation14 + $0x408] sm:$0xf] }
 0x16d   : > { %4294 = vmatpush.bf16.msrb.mxu3 %v8030_v35  ;;  %v7621_v35 = vld [vmem:[#allocation14 + $0x48] sm:$0xf]  ;;  %v10806_v14 = vld [vmem:[#allocation14 + $0x414] sm:$0xf0] }
 0x16e   : > { %4643 = vmatpush.bf16.msra.mxu0 %v9202_v39  ;;  %4437 = vmatpush.bf16.msra.mxu1 %v9262_v25  ;;  %v11059_v39 = vld [vmem:[#allocation14 + $0xc04] sm:$0xf]  ;;  %v7762_v25 = vor.u32 %v10719_v10, %v7759_v12  ;;  %v8306_v12 = vor.u32 %v10855_v8, %v8303_v9  ;;  %v8557_v8 = vld [vmem:[#allocation14 + $0x7a0] sm:$0xf]  ;;  %v10921_v9 = vld [vmem:[#allocation14 + $0x7ac] sm:$0xf0] }
 0x16f   : > { %v9122_v47 = vor.u32 %v11059_v39, %v9119_v40  ;;  %v10711_v39 = vld [vmem:[#allocation14 + $0x124] sm:$0xf]  ;;  %4283 = vmatpush.bf16.msrb.mxu2 %v7854_v30  ;;  %v7837_v40 = vld [vmem:[#allocation14 + $0x200] sm:$0xf]  ;;  %v8149_v30 = vld [vmem:[#allocation14 + $0x468] sm:$0xf] }
 0x171   : > { %4295 = vmatpush.bf16.msrb.mxu3 %v8014_v3  ;;  %v7590_v3 = vor.u32 %v10678_v60, %v7589_v59 }
 0x172   : > { %4644 = vmatpush.bf16.msra.mxu0 %v9186_v57  ;;  %4438 = vmatpush.bf16.msra.mxu1 %v9246_v38  ;;  %v10698_v57 = vld [vmem:[#allocation14 + $0xb4] sm:$0xf0]  ;;  %v7746_v38 = vor.u32 %v10715_v26, %v7743_v29  ;;  %v8271_v26 = vld [vmem:[#allocation14 + $0x570] sm:$0xf0] }
 0x173   : > { %v7670_v4 = vor.u32 %v10698_v57, %v7669_v56  ;;  %v8335_v56 = vld [vmem:[#allocation14 + $0x5f0] sm:$0xf0]  ;;  %v7606_v57 = vor.u32 %v10682_v51, %v7605_v50 }
 0x175   : > { %4439 = vmatmul.bf16.vlgmr.msra.gmra.mxu1 %v12633_v11  ;;  %4296 = vmatpush.bf16.msrb.mxu3 %v7998_v24  ;;  %v10822_v24 = vld [vmem:[#allocation14 + $0x494] sm:$0xf0] }
 0x176   : > { %4645 = vmatpush.bf16.msra.mxu0 %v9170_v7  ;;  %4487 = vmatpush.bf16.msrb.mxu1 %v7826_v42  ;;  %v7778_v7 = vor.u32 %v10723_v62, %v7775_v63  ;;  %v10741_v42 = vld [vmem:[#allocation14 + $0x20c] sm:$0xf0]  ;;  %v8213_v62 = vld [vmem:[#allocation14 + $0x4e8] sm:$0xf]  ;;  %v10834_v63 = vld [vmem:[#allocation14 + $0x4f4] sm:$0xf0] }
 0x177   : > { %v7838_v44 = vor.u32 %v10741_v42, %v7837_v40 }
 0x179   : > { %4297 = vmatpush.bf16.msrb.mxu3 %v7982_v33  ;;  %4284 = vmatpush.bf16.msrb.mxu2 %v7838_v44  ;;  %v8255_v33 = vld [vmem:[#allocation14 + $0x550] sm:$0xf0]  ;;  %v10929_v44 = vld [vmem:[#allocation14 + $0x7ec] sm:$0xf0] }
 0x17a   : > { %4646 = vmatpush.bf16.msra.mxu0 %v9154_v22  ;;  %4488 = vmatpush.bf16.msrb.mxu1 %v7810_v49  ;;  %v7637_v22 = vld [vmem:[#allocation14 + $0x68] sm:$0xf]  ;;  %v7730_v49 = vor.u32 %v10711_v39, %v7727_v43  ;;  %v10897_v39 = vld [vmem:[#allocation14 + $0x6ec] sm:$0xf0]  ;;  %v8258_v40 = vor.u32 %v10843_v32, %v8255_v33  ;;  %v8589_v43 = vld [vmem:[#allocation14 + $0x7e0] sm:$0xf] }
 0x17b   : > { %v7638_v34 = vor.u32 %v10690_v23, %v7637_v22  ;;  %v8290_v22 = vor.u32 %v10851_v16, %v8287_v18  ;;  %v8165_v23 = vld [vmem:[#allocation14 + $0x488] sm:$0xf] }
 0x17c   : > { %v8166_v28 = vor.u32 %v10822_v24, %v8165_v23  ;;  %v8725_v18 = vld [vmem:[#allocation14 + $0x8e8] sm:$0xf]  ;;  %v8558_v24 = vor.u32 %v10921_v9, %v8557_v8  ;;  %v8365_v8 = vld [vmem:[#allocation14 + $0x620] sm:$0xf]  ;;  %v10873_v9 = vld [vmem:[#allocation14 + $0x62c] sm:$0xf0] }
 0x17e   : > { %4647 = vmatpush.bf16.msra.mxu0 %v9138_v36  ;;  %4489 = vmatpush.bf16.msrb.mxu1 %v7794_v58  ;;  %v10686_v36 = vld [vmem:[#allocation14 + $0x54] sm:$0xf0]  ;;  %v7714_v58 = vor.u32 %v10707_v52, %v7711_v53  ;;  %v8590_v52 = vor.u32 %v10929_v44, %v8589_v43  ;;  %v8445_v53 = vld [vmem:[#allocation14 + $0x6c0] sm:$0xf]  ;;  %v1122_v43 = vld [vmem:[%s12544_s8 + $0x18] sm:$0xff] }
 0x17f   : > { %v1138_v44 = vld [vmem:[%s12544_s8 + $0x98] sm:$0xff] }
 0x182   : > { %4648 = vmatpush.bf16.msra.mxu0 %v9122_v47  ;;  %4490 = vmatpush.bf16.msrb.mxu1 %v7778_v7  ;;  %v7966_v47 = vor.u32 %v10773_v46, %v7965_v45  ;;  %v10830_v7 = vld [vmem:[#allocation14 + $0x4d4] sm:$0xf0]  ;;  %v8133_v45 = vld [vmem:[#allocation14 + $0x448] sm:$0xf] }
 0x183   : > { %v8198_v10 = vor.u32 %v10830_v7, %v8197_v6  ;;  %v10814_v46 = vld [vmem:[#allocation14 + $0x454] sm:$0xf0]  ;;  %v8429_v6 = vld [vmem:[#allocation14 + $0x6a0] sm:$0xf]  ;;  %v10889_v7 = vld [vmem:[#allocation14 + $0x6ac] sm:$0xf0] }
 0x184   : > { %4298 = vmatpush.bf16.msrb.mxu3 %v7966_v47  ;;  %v10839_v47 = vld [vmem:[#allocation14 + $0x524] sm:$0xf]  ;;  %v8134_v59 = vor.u32 %v10814_v46, %v8133_v45  ;;  %v8430_v23 = vor.u32 %v10889_v7, %v8429_v6  ;;  %v10881_v45 = vld [vmem:[#allocation14 + $0x66c] sm:$0xf0]  ;;  %v8525_v46 = vld [vmem:[#allocation14 + $0x760] sm:$0xf] }
 0x185   : > { %4649 = vmatmul.bf16.vlgmr.msra.gmra.mxu0 %v12609_v19 }
 0x186   : > { %4697 = vmatpush.bf16.msrb.mxu0 %v7702_v48  ;;  %4491 = vmatpush.bf16.msrb.mxu1 %v7762_v25  ;;  %v7622_v48 = vor.u32 %v10686_v36, %v7621_v35  ;;  %v10847_v25 = vld [vmem:[#allocation14 + $0x564] sm:$0xf]  ;;  %v8150_v35 = vor.u32 %v10818_v31, %v8149_v30 }
 0x187   : > { %v8274_v29 = vor.u32 %v10847_v25, %v8271_v26  ;;  %v8413_v25 = vld [vmem:[#allocation14 + $0x680] sm:$0xf]  ;;  %v10885_v26 = vld [vmem:[#allocation14 + $0x68c] sm:$0xf0]  ;;  %v1121_v30 = vld [vmem:[%s12544_s8 + $0x10] sm:$0xff] }
 0x188   : > { %v1137_v31 = vld [vmem:[%s12544_s8 + $0x90] sm:$0xff] }
 0x18a   : > { %4698 = vmatpush.bf16.msrb.mxu0 %v7686_v55  ;;  %4492 = vmatpush.bf16.msrb.mxu1 %v7746_v38  ;;  %v10863_v55 = vld [vmem:[#allocation14 + $0x5e4] sm:$0xf]  ;;  %v8461_v38 = vld [vmem:[#allocation14 + $0x6e0] sm:$0xf] }
 0x18b   : > { %v8338_v61 = vor.u32 %v10863_v55, %v8335_v56  ;;  %v8462_v51 = vor.u32 %v10897_v39, %v8461_v38  ;;  %v10893_v55 = vld [vmem:[#allocation14 + $0x6cc] sm:$0xf0]  ;;  %v8815_v38 = vld [vmem:[#allocation14 + $0x9b0] sm:$0xf0]  ;;  %v8414_v39 = vor.u32 %v10885_v26, %v8413_v25  ;;  %v8477_v26 = vld [vmem:[#allocation14 + $0x700] sm:$0xf] }
 0x18c   : > { %v10869_v25 = vld [vmem:[#allocation14 + $0x60c] sm:$0xf0] }
 0x18e   : > { %4699 = vmatpush.bf16.msrb.mxu0 %v7670_v4  ;;  %4493 = vmatpush.bf16.msrb.mxu1 %v7730_v49  ;;  %v8214_v4 = vor.u32 %v10834_v63, %v8213_v62  ;;  %v10810_v62 = vld [vmem:[#allocation14 + $0x434] sm:$0xf0]  ;;  %v10835_v63 = vld [vmem:[#allocation14 + $0x504] sm:$0xf] }
 0x192   : > { %4700 = vmatpush.bf16.msrb.mxu0 %v7654_v21  ;;  %4494 = vmatpush.bf16.msrb.mxu1 %v7714_v58  ;;  %v981_v21 = vpop.f32.mrf.mxu1  ;;  %v10925_v58 = vld [vmem:[#allocation14 + $0x7cc] sm:$0xf0] }
 0x195   : > { %4495 = vmatmul.bf16.vlgmr.msrb.gmra.mxu1 %v12615_v15 }
 0x196   : > { %4701 = vmatpush.bf16.msrb.mxu0 %v7638_v34  ;;  %4543 = vmatpush.bf16.msra.mxu1 %v8338_v61  ;;  %v982_v34 = vadd.f32 %v11651_v27, %v981_v21  ;;  %v8117_v61 = vld [vmem:[#allocation14 + $0x428] sm:$0xf]  ;;  %v10987_v21 = vld [vmem:[#allocation14 + $0x9c4] sm:$0xf] }
 0x198   : > { %v986_v49 = vmax.f32 %v982_v34, 0.0  ;;  %v8709_v34 = vld [vmem:[#allocation14 + $0x8c8] sm:$0xf] }
 0x19a   : > { %4702 = vmatpush.bf16.msrb.mxu0 %v7622_v48  ;;  %4544 = vmatpush.bf16.msra.mxu1 %v8322_v5  ;;  %v983_v36 = vpop.f32.mrf.mxu1  ;;  %v8239_v48 = vld [vmem:[#allocation14 + $0x530] sm:$0xf0] }
 0x19b   : > { %v984_v42 = vadd.f32 %v11651_v27, %v983_v36  ;;  %v8242_v60 = vor.u32 %v10839_v47, %v8239_v48  ;;  %v8541_v27 = vld [vmem:[#allocation14 + $0x780] sm:$0xf]  ;;  %v10983_v36 = vld [vmem:[#allocation14 + $0x9a4] sm:$0xf]  ;;  %v10913_v47 = vld [vmem:[#allocation14 + $0x76c] sm:$0xf0] }
 0x19d   : > { %v987_v50 = vmax.f32 %v984_v42, 0.0  ;;  %v8397_v42 = vld [vmem:[#allocation14 + $0x660] sm:$0xf] }
 0x19e   : > { %4703 = vmatpush.bf16.msrb.mxu0 %v7606_v57  ;;  %4545 = vmatpush.bf16.msra.mxu1 %v8306_v12  ;;  %v8573_v57 = vld [vmem:[#allocation14 + $0x7c0] sm:$0xf]  ;;  %v8226_v12 = vor.u32 %v10835_v63, %v8223_v1 }
 0x19f   : > { %v988_v56 = vpack.c.bf16 %v987_v50, %v986_v49  ;;  %v8574_v5 = vor.u32 %v10925_v58, %v8573_v57  ;;  %v8818_v49 = vor.u32 %v10983_v36, %v8815_v38  ;;  %v8693_v50 = vld [vmem:[#allocation14 + $0x8a8] sm:$0xf]  ;;  %v8398_v57 = vor.u32 %v10881_v45, %v8397_v42  ;;  %v10942_v36 = vld [vmem:[#allocation14 + $0x854] sm:$0xf0]  ;;  %v10967_v38 = vld [vmem:[#allocation14 + $0x924] sm:$0xf] }
 0x1a0   : > { %v8526_v58 = vor.u32 %v10913_v47, %v8525_v46  ;;  %v1142_v45 = vld [vmem:[%s12544_s8 + $0xb8] sm:$0xff] }
 0x1a1   : > { %1099 = vmatmul.bf16.vlgmr.msra.gmra.mxu2 %v988_v56  ;;  %1113 = vmatmul.bf16.vlgmr.msra.gmra.mxu3 %v988_v56  ;;  %v8799_v56 = vld [vmem:[#allocation14 + $0x990] sm:$0xf0] }
 0x1a2   : > { %4704 = vmatpush.bf16.msrb.mxu0 %v7590_v3  ;;  %4546 = vmatpush.bf16.msra.mxu1 %v8290_v22  ;;  %v8847_v3 = vld [vmem:[#allocation14 + $0x9f0] sm:$0xf0] }
 0x1a3   : > { %4333 = vmatpush.bf16.msra.mxu2 %v8462_v51  ;;  %4347 = vmatpush.bf16.msra.mxu3 %v8590_v52  ;;  %v8850_v16 = vor.u32 %v10991_v2, %v8847_v3  ;;  %v8831_v22 = vld [vmem:[#allocation14 + $0x9d0] sm:$0xf0]  ;;  %v12643_v51 = vpack.c.bf16 %v1137_v31, %v1121_v30  ;;  %v12645_v52 = vpack.c.bf16 %v1138_v44, %v1122_v43  ;;  %v8677_v2 = vld [vmem:[#allocation14 + $0x888] sm:$0xf]  ;;  %v10950_v3 = vld [vmem:[#allocation14 + $0x894] sm:$0xf0] }
 0x1a4   : > { %v8834_v33 = vor.u32 %v10987_v21, %v8831_v22  ;;  %v10971_v21 = vld [vmem:[#allocation14 + $0x944] sm:$0xf]  ;;  %v8767_v22 = vld [vmem:[#allocation14 + $0x950] sm:$0xf0]  ;;  %v9101_v30 = vld [vmem:[#allocation14 + $0xbe0] sm:$0xf] }
 0x1a5   : > { %4705 = vmatmul.bf16.vlgmr.msrb.gmra.mxu0 %v12594_v37  ;;  %v11057_v31 = vld [vmem:[#allocation14 + $0xbec] sm:$0xf0]  ;;  %v1141_v43 = vld [vmem:[%s12544_s8 + $0xb0] sm:$0xff] }
 0x1a6   : > { %4753 = vmatpush.bf16.msra.mxu0 %v8214_v4  ;;  %4547 = vmatpush.bf16.msra.mxu1 %v8274_v29  ;;  %v8446_v4 = vor.u32 %v10893_v55, %v8445_v53  ;;  %v8102_v29 = vor.u32 %v10806_v14, %v8101_v13  ;;  %v10954_v53 = vld [vmem:[#allocation14 + $0x8b4] sm:$0xf0]  ;;  %v10979_v55 = vld [vmem:[#allocation14 + $0x984] sm:$0xf]  ;;  %v8678_v13 = vor.u32 %v10950_v3, %v8677_v2  ;;  %v1126_v44 = vld [vmem:[%s12544_s8 + $0x38] sm:$0xff] }
 0x1a7   : > { %4348 = vmatpush.bf16.msra.mxu3 %v8574_v5  ;;  %v8694_v63 = vor.u32 %v10954_v53, %v8693_v50  ;;  %v8802_v1 = vor.u32 %v10979_v55, %v8799_v56  ;;  %v8783_v5 = vld [vmem:[#allocation14 + $0x970] sm:$0xf0]  ;;  %v9102_v47 = vor.u32 %v11057_v31, %v9101_v30  ;;  %v9085_v50 = vld [vmem:[#allocation14 + $0xbc0] sm:$0xf]  ;;  %v11053_v53 = vld [vmem:[#allocation14 + $0xbcc] sm:$0xf0] }
 0x1a8   : > { %4334 = vmatpush.bf16.msra.mxu2 %v8446_v4  ;;  %v10975_v4 = vld [vmem:[#allocation14 + $0x964] sm:$0xf]  ;;  %v9086_v3 = vor.u32 %v11053_v53, %v9085_v50  ;;  %v9221_v30 = vld [vmem:[#allocation14 + $0xcc8] sm:$0xf]  ;;  %v11086_v31 = vld [vmem:[#allocation14 + $0xcd4] sm:$0xf0] }
 0x1a9   : > { %v8786_v14 = vor.u32 %v10975_v4, %v8783_v5  ;;  %v8941_v4 = vld [vmem:[#allocation14 + $0xaa0] sm:$0xf]  ;;  %v11017_v5 = vld [vmem:[#allocation14 + $0xaac] sm:$0xf0] }
 0x1aa   : > { %4754 = vmatpush.bf16.msra.mxu0 %v8198_v10  ;;  %4548 = vmatpush.bf16.msra.mxu1 %v8258_v40  ;;  %v8118_v10 = vor.u32 %v10810_v62, %v8117_v61  ;;  %v8509_v61 = vld [vmem:[#allocation14 + $0x740] sm:$0xf]  ;;  %v10909_v62 = vld [vmem:[#allocation14 + $0x74c] sm:$0xf0] }
 0x1ab   : > { %4349 = vmatpush.bf16.msra.mxu3 %v8558_v24  ;;  %v8510_v7 = vor.u32 %v10909_v62, %v8509_v61  ;;  %v10963_v61 = vld [vmem:[#allocation14 + $0x904] sm:$0xf]  ;;  %v8735_v62 = vld [vmem:[#allocation14 + $0x910] sm:$0xf0]  ;;  %v8893_v50 = vld [vmem:[#allocation14 + $0xa40] sm:$0xf] }
 0x1ac   : > { %4335 = vmatpush.bf16.msra.mxu2 %v8430_v23  ;;  %v8366_v23 = vor.u32 %v10873_v9, %v8365_v8  ;;  %v8738_v9 = vor.u32 %v10963_v61, %v8735_v62  ;;  %v11005_v53 = vld [vmem:[#allocation14 + $0xa4c] sm:$0xf0]  ;;  %v9189_v61 = vld [vmem:[#allocation14 + $0xc88] sm:$0xf]  ;;  %v11078_v62 = vld [vmem:[#allocation14 + $0xc94] sm:$0xf0] }
 0x1ae   : > { %4755 = vmatpush.bf16.msra.mxu0 %v8182_v20  ;;  %4549 = vmatpush.bf16.msra.mxu1 %v8242_v60  ;;  %v10962_v20 = vld [vmem:[#allocation14 + $0x8f4] sm:$0xf0]  ;;  %v10877_v60 = vld [vmem:[#allocation14 + $0x64c] sm:$0xf0] }
 0x1af   : > { %v8726_v32 = vor.u32 %v10962_v20, %v8725_v18  ;;  %v8349_v18 = vld [vmem:[#allocation14 + $0x600] sm:$0xf]  ;;  %v10946_v20 = vld [vmem:[#allocation14 + $0x874] sm:$0xf0] }
 0x1b0   : > { %4336 = vmatpush.bf16.msra.mxu2 %v8414_v39  ;;  %v8751_v39 = vld [vmem:[#allocation14 + $0x930] sm:$0xf0] }
 0x1b1   : > { %4285 = vmatmul.bf16.vlgmr.msrb.gmra.mxu2 %v12643_v51  ;;  %4299 = vmatmul.bf16.vlgmr.msrb.gmra.mxu3 %v12645_v52  ;;  %v8754_v56 = vor.u32 %v10967_v38, %v8751_v39  ;;  %v11009_v38 = vld [vmem:[#allocation14 + $0xa6c] sm:$0xf0]  ;;  %v9037_v39 = vld [vmem:[#allocation14 + $0xb60] sm:$0xf] }
 0x1b2   : > { %4756 = vmatpush.bf16.msra.mxu0 %v8166_v28  ;;  %v10917_v28 = vld [vmem:[#allocation14 + $0x78c] sm:$0xf0]  ;;  %4550 = vmatpush.bf16.msra.mxu1 %v8226_v12 }
 0x1b3   : > { %v8542_v40 = vor.u32 %v10917_v28, %v8541_v27  ;;  %v10905_v12 = vld [vmem:[#allocation14 + $0x72c] sm:$0xf0]  ;;  %v8973_v28 = vld [vmem:[#allocation14 + $0xae0] sm:$0xf] }
 0x1b4   : > { %4337 = vmatpush.bf16.msra.mxu2 %v8398_v57  ;;  %v10901_v27 = vld [vmem:[#allocation14 + $0x70c] sm:$0xf0]  ;;  %v8629_v57 = vld [vmem:[#allocation14 + $0x828] sm:$0xf] }
 0x1b5   : > { %4551 = vmatmul.bf16.vlgmr.msra.gmra.mxu1 %v12620_v54  ;;  %4350 = vmatpush.bf16.msra.mxu3 %v8542_v40  ;;  %v8350_v40 = vor.u32 %v10869_v25, %v8349_v18  ;;  %v8478_v42 = vor.u32 %v10901_v27, %v8477_v26  ;;  %v11115_v18 = vld [vmem:[#allocation14 + $0xdc4] sm:$0xf]  ;;  %v9053_v25 = vld [vmem:[#allocation14 + $0xb80] sm:$0xf]  ;;  %v11045_v26 = vld [vmem:[#allocation14 + $0xb8c] sm:$0xf0] }
 0x1b6   : > { %4757 = vmatpush.bf16.msra.mxu0 %v8150_v35  ;;  %4599 = vmatpush.bf16.msrb.mxu1 %v8850_v16  ;;  %v10958_v35 = vld [vmem:[#allocation14 + $0x8d4] sm:$0xf0]  ;;  %v8661_v16 = vld [vmem:[#allocation14 + $0x868] sm:$0xf] }
 0x1b7   : > { %v8710_v48 = vor.u32 %v10958_v35, %v8709_v34  ;;  %v8770_v34 = vor.u32 %v10971_v21, %v8767_v22  ;;  %v8645_v35 = vld [vmem:[#allocation14 + $0x848] sm:$0xf]  ;;  %v8942_v21 = vor.u32 %v11017_v5, %v8941_v4  ;;  %v8877_v4 = vld [vmem:[#allocation14 + $0xa20] sm:$0xf]  ;;  %v11001_v5 = vld [vmem:[#allocation14 + $0xa2c] sm:$0xf0] }
 0x1b8   : > { %v8646_v55 = vor.u32 %v10942_v36, %v8645_v35  ;;  %v9054_v35 = vor.u32 %v11045_v26, %v9053_v25  ;;  %v8909_v36 = vld [vmem:[#allocation14 + $0xa60] sm:$0xf]  ;;  %v11153_v25 = vld [vmem:[#allocation14 + $0xeec] sm:$0xf0] }
 0x1b9   : > { %4351 = vmatpush.bf16.msra.mxu3 %v8526_v58  ;;  %v9613_v26 = vld [vmem:[#allocation14 + $0xfe0] sm:$0xf] }
 0x1ba   : > { %4758 = vmatpush.bf16.msra.mxu0 %v8134_v59  ;;  %4600 = vmatpush.bf16.msrb.mxu1 %v8834_v33  ;;  %v8381_v59 = vld [vmem:[#allocation14 + $0x640] sm:$0xf]  ;;  %v8662_v33 = vor.u32 %v10946_v20, %v8661_v16  ;;  %v11090_v16 = vld [vmem:[#allocation14 + $0xcf4] sm:$0xf0]  ;;  %v9343_v20 = vld [vmem:[#allocation14 + $0xdd0] sm:$0xf0] }
 0x1bb   : > { %v8382_v6 = vor.u32 %v10877_v60, %v8381_v59  ;;  %v12656_v59 = vpack.c.bf16 %v1142_v45, %v1126_v44  ;;  %v10938_v60 = vld [vmem:[#allocation14 + $0x834] sm:$0xf0]  ;;  %v9205_v44 = vld [vmem:[#allocation14 + $0xca8] sm:$0xf] }
 0x1bc   : > { %v8630_v8 = vor.u32 %v10938_v60, %v8629_v57  ;;  %v11082_v45 = vld [vmem:[#allocation14 + $0xcb4] sm:$0xf0] }
 0x1bd   : > { %4338 = vmatpush.bf16.msra.mxu2 %v8382_v6  ;;  %4352 = vmatpush.bf16.msra.mxu3 %v8510_v7  ;;  %v9069_v6 = vld [vmem:[#allocation14 + $0xba0] sm:$0xf]  ;;  %v11049_v7 = vld [vmem:[#allocation14 + $0xbac] sm:$0xf0]  ;;  %v9206_v57 = vor.u32 %v11082_v45, %v9205_v44 }
 0x1be   : > { %4759 = vmatpush.bf16.msra.mxu0 %v8118_v10  ;;  %4601 = vmatpush.bf16.msrb.mxu1 %v8818_v49  ;;  %v8493_v10 = vld [vmem:[#allocation14 + $0x720] sm:$0xf]  ;;  %v11021_v49 = vld [vmem:[#allocation14 + $0xacc] sm:$0xf0]  ;;  %v9070_v22 = vor.u32 %v11049_v7, %v9069_v6 }
 0x1bf   : > { %v8494_v24 = vor.u32 %v10905_v12, %v8493_v10  ;;  %v8613_v10 = vld [vmem:[#allocation14 + $0x808] sm:$0xf]  ;;  %v10934_v12 = vld [vmem:[#allocation14 + $0x814] sm:$0xf0]  ;;  %v9005_v6 = vld [vmem:[#allocation14 + $0xb20] sm:$0xf] }
 0x1c0   : > { %v8614_v27 = vor.u32 %v10934_v12, %v8613_v10  ;;  %v11033_v7 = vld [vmem:[#allocation14 + $0xb2c] sm:$0xf0]  ;;  %v9173_v10 = vld [vmem:[#allocation14 + $0xc68] sm:$0xf]  ;;  %v8861_v12 = vld [vmem:[#allocation14 + $0xa00] sm:$0xf] }
 0x1c1   : > { %4339 = vmatpush.bf16.msra.mxu2 %v8366_v23  ;;  %4353 = vmatpush.bf16.msra.mxu3 %v8494_v24  ;;  %v8925_v23 = vld [vmem:[#allocation14 + $0xa80] sm:$0xf]  ;;  %v11013_v24 = vld [vmem:[#allocation14 + $0xa8c] sm:$0xf0] }
 0x1c2   : > { %4760 = vmatpush.bf16.msra.mxu0 %v8102_v29  ;;  %4602 = vmatpush.bf16.msrb.mxu1 %v8802_v1  ;;  %v11025_v29 = vld [vmem:[#allocation14 + $0xaec] sm:$0xf0]  ;;  %v9359_v1 = vld [vmem:[#allocation14 + $0xdf0] sm:$0xf0]  ;;  %v9469_v44 = vld [vmem:[#allocation14 + $0xec0] sm:$0xf] }
 0x1c3   : > { %v8974_v46 = vor.u32 %v11025_v29, %v8973_v28  ;;  %v9346_v29 = vor.u32 %v11115_v18, %v9343_v20  ;;  %v8878_v18 = vor.u32 %v11001_v5, %v8877_v4  ;;  %v9006_v20 = vor.u32 %v11033_v7, %v9005_v6  ;;  %v11149_v45 = vld [vmem:[#allocation14 + $0xecc] sm:$0xf0]  ;;  %v9581_v4 = vld [vmem:[#allocation14 + $0xfa0] sm:$0xf] }
 0x1c4   : > { %v11177_v5 = vld [vmem:[#allocation14 + $0xfac] sm:$0xf0] }
 0x1c5   : > { %4761 = vmatmul.bf16.vlgmr.msra.gmra.mxu0 %v12599_v0  ;;  %4340 = vmatpush.bf16.msra.mxu2 %v8350_v40  ;;  %v11041_v40 = vld [vmem:[#allocation14 + $0xb6c] sm:$0xf0] }
 0x1c6   : > { %4809 = vmatpush.bf16.msrb.mxu0 %v8726_v32  ;;  %v1125_v32 = vld [vmem:[%s12544_s8 + $0x30] sm:$0xff]  ;;  %4603 = vmatpush.bf16.msrb.mxu1 %v8786_v14 }
 0x1c7   : > { %v12654_v58 = vpack.c.bf16 %v1141_v43, %v1125_v32  ;;  %4354 = vmatpush.bf16.msra.mxu3 %v8478_v42  ;;  %v9237_v14 = vld [vmem:[#allocation14 + $0xce8] sm:$0xf]  ;;  %v11111_v32 = vld [vmem:[#allocation14 + $0xda4] sm:$0xf]  ;;  %v9222_v42 = vor.u32 %v11086_v31, %v9221_v30 }
 0x1c8   : > { %v9238_v28 = vor.u32 %v11090_v16, %v9237_v14  ;;  %v11099_v14 = vld [vmem:[#allocation14 + $0xd44] sm:$0xf]  ;;  %v9279_v16 = vld [vmem:[#allocation14 + $0xd50] sm:$0xf0]  ;;  %v9157_v31 = vld [vmem:[#allocation14 + $0xc48] sm:$0xf] }
 0x1c9   : > { %4389 = vmatpush.bf16.msrb.mxu2 %v8974_v46  ;;  %v11107_v46 = vld [vmem:[#allocation14 + $0xd84] sm:$0xf]  ;;  %v9282_v30 = vor.u32 %v11099_v14, %v9279_v16  ;;  %v7813_v14 = vld [vmem:[#allocation14 + $0x1c8] sm:$0xf]  ;;  %v10734_v16 = vld [vmem:[#allocation14 + $0x1d4] sm:$0xf0] }
 0x1ca   : > { %4810 = vmatpush.bf16.msrb.mxu0 %v8710_v48  ;;  %v8957_v48 = vld [vmem:[#allocation14 + $0xac0] sm:$0xf]  ;;  %4604 = vmatpush.bf16.msrb.mxu1 %v8770_v34  ;;  %v8926_v34 = vor.u32 %v11013_v24, %v8925_v23  ;;  %v11029_v23 = vld [vmem:[#allocation14 + $0xb0c] sm:$0xf0] }
 0x1cb   : > { %4403 = vmatpush.bf16.msrb.mxu3 %v9102_v47  ;;  %v8958_v2 = vor.u32 %v11021_v49, %v8957_v48  ;;  %4341 = vmatmul.bf16.vlgmr.msra.gmra.mxu2 %v12654_v58  ;;  %v9311_v47 = vld [vmem:[#allocation14 + $0xd90] sm:$0xf0]  ;;  %v8910_v48 = vor.u32 %v11009_v38, %v8909_v36  ;;  %v9038_v49 = vor.u32 %v11041_v40, %v9037_v39  ;;  %v9485_v24 = vld [vmem:[#allocation14 + $0xee0] sm:$0xf]  ;;  %v1145_v38 = vld [vmem:[%s12544_s8 + $0xd0] sm:$0xff] }
 0x1cc   : > { %4355 = vmatmul.bf16.vlgmr.msra.gmra.mxu3 %v12656_v59  ;;  %v9314_v60 = vor.u32 %v11107_v46, %v9311_v47  ;;  %v1130_v39 = vld [vmem:[%s12544_s8 + $0x58] sm:$0xff]  ;;  %v9597_v46 = vld [vmem:[#allocation14 + $0xfc0] sm:$0xf] }
 0x1cd   : > { %4390 = vmatpush.bf16.msrb.mxu2 %v8958_v2  ;;  %v8894_v2 = vor.u32 %v11005_v53, %v8893_v50  ;;  %v1146_v40 = vld [vmem:[%s12544_s8 + $0xd8] sm:$0xff]  ;;  %v9141_v50 = vld [vmem:[#allocation14 + $0xc28] sm:$0xf] }
 0x1ce   : > { %4811 = vmatpush.bf16.msrb.mxu0 %v8694_v63  ;;  %v11119_v63 = vld [vmem:[#allocation14 + $0xde4] sm:$0xf]  ;;  %4605 = vmatpush.bf16.msrb.mxu1 %v8754_v56  ;;  %v11037_v56 = vld [vmem:[#allocation14 + $0xb4c] sm:$0xf0] }
 0x1cf   : > { %4404 = vmatpush.bf16.msrb.mxu3 %v9086_v3  ;;  %v11181_v47 = vld [vmem:[#allocation14 + $0xfcc] sm:$0xf0] }
 0x1d1   : > { %4391 = vmatpush.bf16.msrb.mxu2 %v8942_v21  ;;  %v10997_v21 = vld [vmem:[#allocation14 + $0xa0c] sm:$0xf0] }
 0x1d2   : > { %4812 = vmatpush.bf16.msrb.mxu0 %v8678_v13  ;;  %v9362_v13 = vor.u32 %v11119_v63, %v9359_v1  ;;  %4606 = vmatpush.bf16.msrb.mxu1 %v8738_v9  ;;  %v11103_v63 = vld [vmem:[#allocation14 + $0xd64] sm:$0xf]  ;;  %v9295_v1 = vld [vmem:[#allocation14 + $0xd70] sm:$0xf0] }
 0x1d3   : > { %4405 = vmatpush.bf16.msrb.mxu3 %v9070_v22  ;;  %v9298_v9 = vor.u32 %v11103_v63, %v9295_v1  ;;  %v8989_v22 = vld [vmem:[#allocation14 + $0xb00] sm:$0xf]  ;;  %v9470_v63 = vor.u32 %v11149_v45, %v9469_v44  ;;  %v9598_v1 = vor.u32 %v11181_v47, %v9597_v46  ;;  %v7781_v44 = vld [vmem:[#allocation14 + $0x188] sm:$0xf]  ;;  %v10726_v45 = vld [vmem:[#allocation14 + $0x194] sm:$0xf0] }
 0x1d4   : > { %v8990_v36 = vor.u32 %v11029_v23, %v8989_v22  ;;  %v11141_v22 = vld [vmem:[#allocation14 + $0xe8c] sm:$0xf0]  ;;  %v9565_v23 = vld [vmem:[#allocation14 + $0xf80] sm:$0xf] }
 0x1d5   : > { %4607 = vmatmul.bf16.vlgmr.msrb.gmra.mxu1 %v12626_v17  ;;  %4392 = vmatpush.bf16.msrb.mxu2 %v8926_v34  ;;  %v9263_v34 = vld [vmem:[#allocation14 + $0xd30] sm:$0xf0] }
 0x1d6   : > { %4813 = vmatpush.bf16.msrb.mxu0 %v8662_v33  ;;  %4655 = vmatpush.bf16.msra.mxu1 %v9362_v13  ;;  %v9327_v33 = vld [vmem:[#allocation14 + $0xdb0] sm:$0xf0]  ;;  %v11074_v13 = vld [vmem:[#allocation14 + $0xc74] sm:$0xf0] }
 0x1d7   : > { %v9330_v43 = vor.u32 %v11111_v32, %v9327_v33  ;;  %4406 = vmatpush.bf16.msrb.mxu3 %v9054_v35  ;;  %v11070_v32 = vld [vmem:[#allocation14 + $0xc54] sm:$0xf0]  ;;  %v11095_v33 = vld [vmem:[#allocation14 + $0xd24] sm:$0xf]  ;;  %v8862_v35 = vor.u32 %v10997_v21, %v8861_v12  ;;  %v10704_v12 = vld [vmem:[#allocation14 + $0xec] sm:$0xf] }
 0x1d8   : > { %v9437_v21 = vld [vmem:[#allocation14 + $0xe80] sm:$0xf] }
 0x1d9   : > { %4393 = vmatpush.bf16.msrb.mxu2 %v8910_v48  ;;  %v9158_v48 = vor.u32 %v11070_v32, %v9157_v31  ;;  %v10730_v31 = vld [vmem:[#allocation14 + $0x1b4] sm:$0xf0]  ;;  %v9438_v32 = vor.u32 %v11141_v22, %v9437_v21  ;;  %v11125_v21 = vld [vmem:[#allocation14 + $0xe0c] sm:$0xf0]  ;;  %v9501_v22 = vld [vmem:[#allocation14 + $0xf00] sm:$0xf] }
 0x1da   : > { %4814 = vmatpush.bf16.msrb.mxu0 %v8646_v55  ;;  %4656 = vmatpush.bf16.msra.mxu1 %v9346_v29  ;;  %v9021_v55 = vld [vmem:[#allocation14 + $0xb40] sm:$0xf]  ;;  %v9174_v29 = vor.u32 %v11074_v13, %v9173_v10  ;;  %v7703_v13 = vld [vmem:[#allocation14 + $0xf8] sm:$0xf0] }
 0x1db   : > { %4407 = vmatpush.bf16.msrb.mxu3 %v9038_v49  ;;  %v9022_v3 = vor.u32 %v11037_v56, %v9021_v55  ;;  %v9266_v49 = vor.u32 %v11095_v33, %v9263_v34  ;;  %v12668_v55 = vpack.c.bf16 %v1146_v40, %v1130_v39  ;;  %v11066_v56 = vld [vmem:[#allocation14 + $0xc34] sm:$0xf0]  ;;  %v9421_v34 = vld [vmem:[#allocation14 + $0xe60] sm:$0xf] }
 0x1dc   : > { %v9142_v6 = vor.u32 %v11066_v56, %v9141_v50  ;;  %v9533_v50 = vld [vmem:[#allocation14 + $0xf40] sm:$0xf]  ;;  %v11165_v56 = vld [vmem:[#allocation14 + $0xf4c] sm:$0xf0] }
 0x1dd   : > { %4394 = vmatpush.bf16.msrb.mxu2 %v8894_v2  ;;  %v9453_v2 = vld [vmem:[#allocation14 + $0xea0] sm:$0xf] }
 0x1de   : > { %4815 = vmatpush.bf16.msrb.mxu0 %v8630_v8  ;;  %4657 = vmatpush.bf16.msra.mxu1 %v9330_v43  ;;  %v9190_v8 = vor.u32 %v11078_v62, %v9189_v61  ;;  %v7829_v61 = vld [vmem:[#allocation14 + $0x1e8] sm:$0xf]  ;;  %v10738_v62 = vld [vmem:[#allocation14 + $0x1f4] sm:$0xf0] }
 0x1df   : > { %4408 = vmatpush.bf16.msrb.mxu3 %v9022_v3  ;;  %v11145_v3 = vld [vmem:[#allocation14 + $0xeac] sm:$0xf0]  ;;  %v7830_v10 = vor.u32 %v10738_v62, %v7829_v61  ;;  %v10692_v61 = vld [vmem:[#allocation14 + $0x8c] sm:$0xf]  ;;  %v7655_v62 = vld [vmem:[#allocation14 + $0x98] sm:$0xf0] }
 0x1e1   : > { %4395 = vmatpush.bf16.msrb.mxu2 %v8878_v18  ;;  %v9454_v18 = vor.u32 %v11145_v3, %v9453_v2  ;;  %v9534_v3 = vor.u32 %v11165_v56, %v9533_v50  ;;  %v10680_v50 = vld [vmem:[#allocation14 + $0x2c] sm:$0xf] }
 0x1e2   : > { %4816 = vmatpush.bf16.msrb.mxu0 %v8614_v27  ;;  %4658 = vmatpush.bf16.msra.mxu1 %v9314_v60  ;;  %v11185_v27 = vld [vmem:[#allocation14 + $0xfec] sm:$0xf0]  ;;  %v9247_v60 = vld [vmem:[#allocation14 + $0xd10] sm:$0xf0] }
 0x1e3   : > { %4409 = vmatpush.bf16.msrb.mxu3 %v9006_v20  ;;  %v9614_v43 = vor.u32 %v11185_v27, %v9613_v26  ;;  %v9582_v20 = vor.u32 %v11177_v5, %v9581_v4  ;;  %v7706_v26 = vor.u32 %v10704_v12, %v7703_v13  ;;  %v7814_v27 = vor.u32 %v10734_v16, %v7813_v14  ;;  %v9389_v4 = vld [vmem:[#allocation14 + $0xe20] sm:$0xf]  ;;  %v11129_v5 = vld [vmem:[#allocation14 + $0xe2c] sm:$0xf0]  ;;  %v7639_v13 = vld [vmem:[#allocation14 + $0x78] sm:$0xf0] }
 0x1e4   : > { %v9373_v12 = vld [vmem:[#allocation14 + $0xe00] sm:$0xf]  ;;  %v7749_v14 = vld [vmem:[#allocation14 + $0x148] sm:$0xf]  ;;  %v10718_v16 = vld [vmem:[#allocation14 + $0x154] sm:$0xf0] }
 0x1e5   : > { %4817 = vmatmul.bf16.vlgmr.msrb.gmra.mxu0 %v12604_v41  ;;  %4396 = vmatpush.bf16.msrb.mxu2 %v8862_v35  ;;  %v11137_v35 = vld [vmem:[#allocation14 + $0xe6c] sm:$0xf0] }
 0x1e6   : > { %4865 = vmatpush.bf16.msra.mxu0 %v9238_v28  ;;  %v1129_v28 = vld [vmem:[%s12544_s8 + $0x50] sm:$0xff]  ;;  %4659 = vmatpush.bf16.msra.mxu1 %v9298_v9  ;;  %v11062_v9 = vld [vmem:[#allocation14 + $0xc14] sm:$0xf0]  ;;  %v9422_v46 = vor.u32 %v11137_v35, %v9421_v34  ;;  %v9374_v35 = vor.u32 %v11125_v21, %v9373_v12  ;;  %v7591_v12 = vld [vmem:[#allocation14 + $0x18] sm:$0xf0] }
 0x1e7   : > { %v12666_v53 = vpack.c.bf16 %v1145_v38, %v1129_v28  ;;  %4410 = vmatpush.bf16.msrb.mxu3 %v8990_v36  ;;  %v10700_v28 = vld [vmem:[#allocation14 + $0xcc] sm:$0xf]  ;;  %v9549_v36 = vld [vmem:[#allocation14 + $0xf60] sm:$0xf]  ;;  %v11169_v38 = vld [vmem:[#allocation14 + $0xf6c] sm:$0xf0] }
 0x1e8   : > { %v9550_v47 = vor.u32 %v11169_v38, %v9549_v36  ;;  %v10714_v34 = vld [vmem:[#allocation14 + $0x134] sm:$0xf0]  ;;  %v1149_v38 = vld [vmem:[%s12544_s8 + $0xf0] sm:$0xff] }
 0x1e9   : > { %4397 = vmatmul.bf16.vlgmr.msrb.gmra.mxu2 %v12666_v53  ;;  %v10862_v21 = vld [vmem:[#allocation14 + $0x5d4] sm:$0xf0] }
 0x1ea   : > { %4866 = vmatpush.bf16.msra.mxu0 %v9222_v42  ;;  %v9486_v42 = vor.u32 %v11153_v25, %v9485_v24  ;;  %4660 = vmatpush.bf16.msra.mxu1 %v9282_v30  ;;  %v11173_v24 = vld [vmem:[#allocation14 + $0xf8c] sm:$0xf0]  ;;  %v7797_v30 = vld [vmem:[#allocation14 + $0x1a8] sm:$0xf] }
 0x1eb   : > { %4459 = vmatpush.bf16.msra.mxu3 %v9614_v43  ;;  %v9566_v33 = vor.u32 %v11173_v24, %v9565_v23  ;;  %v7798_v40 = vor.u32 %v10730_v31, %v7797_v30  ;;  %v7671_v43 = vld [vmem:[#allocation14 + $0xb8] sm:$0xf0]  ;;  %v11157_v23 = vld [vmem:[#allocation14 + $0xf0c] sm:$0xf0]  ;;  %v10767_v24 = vld [vmem:[#allocation14 + $0x2e4] sm:$0xf]  ;;  %v7750_v30 = vor.u32 %v10718_v16, %v7749_v14  ;;  %v12684_v16 = vpop.f32.mrf.mxu0 }
 0x1ec   : > { %4445 = vmatpush.bf16.msra.mxu2 %v9486_v42  ;;  %4411 = vmatmul.bf16.vlgmr.msrb.gmra.mxu3 %v12668_v55  ;;  %v10696_v42 = vld [vmem:[#allocation14 + $0xac] sm:$0xf]  ;;  %v9502_v36 = vor.u32 %v11157_v23, %v9501_v22 }
 0x1ed   : > { %v10684_v31 = vld [vmem:[#allocation14 + $0x4c] sm:$0xf] }
 0x1ee   : > { %4867 = vmatpush.bf16.msra.mxu0 %v9206_v57  ;;  %v11091_v57 = vld [vmem:[#allocation14 + $0xd04] sm:$0xf]  ;;  %4661 = vmatpush.bf16.msra.mxu1 %v9266_v49  ;;  %v11133_v49 = vld [vmem:[#allocation14 + $0xe4c] sm:$0xf0]  ;;  %v10832_v14 = vld [vmem:[#allocation14 + $0x4ec] sm:$0xf] }
 0x1ef   : > { %v9250_v7 = vor.u32 %v11091_v57, %v9247_v60  ;;  %4460 = vmatpush.bf16.msra.mxu3 %v9598_v1  ;;  %v7674_v57 = vor.u32 %v10696_v42, %v7671_v43  ;;  %v7782_v60 = vor.u32 %v10726_v45, %v7781_v44  ;;  %v10722_v1 = vld [vmem:[#allocation14 + $0x174] sm:$0xf0]  ;;  %v10763_v44 = vld [vmem:[#allocation14 + $0x2c4] sm:$0xf]  ;;  %v7935_v45 = vld [vmem:[#allocation14 + $0x2d0] sm:$0xf0] }
 0x1f0   : > { %4446 = vmatpush.bf16.msra.mxu2 %v9470_v63  ;;  %v7765_v63 = vld [vmem:[#allocation14 + $0x168] sm:$0xf] }
 0x1f2   : > { %4868 = vmatpush.bf16.msra.mxu0 %v9190_v8  ;;  %v9125_v8 = vld [vmem:[#allocation14 + $0xc08] sm:$0xf]  ;;  %4662 = vmatpush.bf16.msra.mxu1 %v9250_v7  ;;  %v11161_v7 = vld [vmem:[#allocation14 + $0xf2c] sm:$0xf0] }
 0x1f3   : > { %v9126_v25 = vor.u32 %v11062_v9, %v9125_v8  ;;  %4461 = vmatpush.bf16.msra.mxu3 %v9582_v20  ;;  %v7658_v8 = vor.u32 %v10692_v61, %v7655_v62  ;;  %v7766_v9 = vor.u32 %v10722_v1, %v7765_v63  ;;  %v7717_v61 = vld [vmem:[#allocation14 + $0x108] sm:$0xf]  ;;  %v10710_v62 = vld [vmem:[#allocation14 + $0x114] sm:$0xf0] }
 0x1f4   : > { %4447 = vmatpush.bf16.msra.mxu2 %v9454_v18  ;;  %v9390_v18 = vor.u32 %v11129_v5, %v9389_v4  ;;  %v8341_v63 = vld [vmem:[#allocation14 + $0x5e8] sm:$0xf]  ;;  %v10866_v1 = vld [vmem:[#allocation14 + $0x5f4] sm:$0xf0]  ;;  %v10759_v4 = vld [vmem:[#allocation14 + $0x2a4] sm:$0xf] }
 0x1f5   : > { %4663 = vmatmul.bf16.vlgmr.msra.gmra.mxu1 %v12633_v11  ;;  %v7919_v5 = vld [vmem:[#allocation14 + $0x2b0] sm:$0xf0] }
 0x1f6   : > { %4869 = vmatpush.bf16.msra.mxu0 %v9174_v29  ;;  %4711 = vmatpush.bf16.msrb.mxu1 %v7830_v10  ;;  %v7687_v29 = vld [vmem:[#allocation14 + $0xd8] sm:$0xf0]  ;;  %v10688_v10 = vld [vmem:[#allocation14 + $0x6c] sm:$0xf]  ;;  %v7922_v22 = vor.u32 %v10759_v4, %v7919_v5 }
 0x1f7   : > { %v7690_v39 = vor.u32 %v10700_v28, %v7687_v29  ;;  %4462 = vmatpush.bf16.msra.mxu3 %v9566_v33  ;;  %v1133_v28 = vld [vmem:[%s12544_s8 + $0x70] sm:$0xff]  ;;  %v7642_v29 = vor.u32 %v10688_v10, %v7639_v13  ;;  %v8342_v13 = vor.u32 %v10866_v1, %v8341_v63  ;;  %v7999_v63 = vld [vmem:[#allocation14 + $0x350] sm:$0xf0]  ;;  %v12687_v1 = vpop.f32.mrf.mxu0  ;;  %v8167_v5 = vld [vmem:[#allocation14 + $0x498] sm:$0xf0] }
 0x1f8   : > { %4448 = vmatpush.bf16.msra.mxu2 %v9438_v32  ;;  %v7623_v32 = vld [vmem:[#allocation14 + $0x58] sm:$0xf0]  ;;  %v7733_v33 = vld [vmem:[#allocation14 + $0x128] sm:$0xf]  ;;  %v12678_v56 = vpack.c.bf16 %v1149_v38, %v1133_v28  ;;  %v10676_v10 = vld [vmem:[#allocation14 + $0xc] sm:$0xf] }
 0x1f9   : > { %v7594_v28 = vor.u32 %v10676_v10, %v7591_v12  ;;  %v10751_v38 = vld [vmem:[#allocation14 + $0x264] sm:$0xf]  ;;  %v10820_v4 = vld [vmem:[#allocation14 + $0x48c] sm:$0xf]  ;;  %v7855_v12 = vld [vmem:[#allocation14 + $0x230] sm:$0xf0] }
 0x1fa   : > { %4870 = vmatpush.bf16.msra.mxu0 %v9158_v48  ;;  %4712 = vmatpush.bf16.msrb.mxu1 %v7814_v27  ;;  %v9405_v48 = vld [vmem:[#allocation14 + $0xe40] sm:$0xf]  ;;  %v8079_v27 = vld [vmem:[#allocation14 + $0x3f0] sm:$0xf0]  ;;  %v10743_v10 = vld [vmem:[#allocation14 + $0x224] sm:$0xf] }
 0x1fb   : > { %4463 = vmatpush.bf16.msra.mxu3 %v9550_v47  ;;  %v9406_v2 = vor.u32 %v11133_v49, %v9405_v48  ;;  %v8063_v47 = vld [vmem:[#allocation14 + $0x3d0] sm:$0xf0]  ;;  %v7626_v48 = vor.u32 %v10684_v31, %v7623_v32  ;;  %v7734_v49 = vor.u32 %v10714_v34, %v7733_v33  ;;  %v10828_v31 = vld [vmem:[#allocation14 + $0x4cc] sm:$0xf]  ;;  %v8199_v32 = vld [vmem:[#allocation14 + $0x4d8] sm:$0xf0] }
 0x1fc   : > { %4449 = vmatpush.bf16.msra.mxu2 %v9422_v46  ;;  %v10795_v46 = vld [vmem:[#allocation14 + $0x3c4] sm:$0xf]  ;;  %v8309_v33 = vld [vmem:[#allocation14 + $0x5a8] sm:$0xf]  ;;  %v10858_v34 = vld [vmem:[#allocation14 + $0x5b4] sm:$0xf0] }
 0x1fe   : > { %4871 = vmatpush.bf16.msra.mxu0 %v9142_v6  ;;  %4713 = vmatpush.bf16.msrb.mxu1 %v7798_v40  ;;  %v9517_v6 = vld [vmem:[#allocation14 + $0xf20] sm:$0xf]  ;;  %v1150_v40 = vld [vmem:[%s12544_s8 + $0xf8] sm:$0xff] }
 0x1ff   : > { %4464 = vmatpush.bf16.msra.mxu3 %v9534_v3  ;;  %v9518_v20 = vor.u32 %v11161_v7, %v9517_v6  ;;  %v8066_v3 = vor.u32 %v10795_v46, %v8063_v47  ;;  %v10791_v6 = vld [vmem:[#allocation14 + $0x3a4] sm:$0xf]  ;;  %v8047_v7 = vld [vmem:[#allocation14 + $0x3b0] sm:$0xf0]  ;;  %v8183_v46 = vld [vmem:[#allocation14 + $0x4b8] sm:$0xf0] }
 0x200   : > { %4450 = vmatpush.bf16.msra.mxu2 %v9406_v2  ;;  %v7938_v2 = vor.u32 %v10763_v44, %v7935_v45  ;;  %v8050_v23 = vor.u32 %v10791_v6, %v8047_v7  ;;  %v8310_v44 = vor.u32 %v10858_v34, %v8309_v33  ;;  %v10824_v45 = vld [vmem:[#allocation14 + $0x4ac] sm:$0xf]  ;;  %v8293_v47 = vld [vmem:[#allocation14 + $0x588] sm:$0xf]  ;;  %v10850_v7 = vld [vmem:[#allocation14 + $0x574] sm:$0xf0] }
 0x201   : > { %v8277_v6 = vld [vmem:[#allocation14 + $0x568] sm:$0xf]  ;;  %v8591_v33 = vld [vmem:[#allocation14 + $0x7f0] sm:$0xf0] }
 0x202   : > { %4872 = vmatpush.bf16.msra.mxu0 %v9126_v25  ;;  %4714 = vmatpush.bf16.msrb.mxu1 %v7782_v60  ;;  %v7951_v25 = vld [vmem:[#allocation14 + $0x2f0] sm:$0xf0]  ;;  %v7607_v60 = vld [vmem:[#allocation14 + $0x38] sm:$0xf0] }
 0x203   : > { %4465 = vmatpush.bf16.msra.mxu3 %v9518_v20  ;;  %v7954_v42 = vor.u32 %v10767_v24, %v7951_v25  ;;  %v8325_v20 = vld [vmem:[#allocation14 + $0x5c8] sm:$0xf]  ;;  %v10755_v24 = vld [vmem:[#allocation14 + $0x284] sm:$0xf]  ;;  %v7903_v25 = vld [vmem:[#allocation14 + $0x290] sm:$0xf0] }
 0x204   : > { %4451 = vmatpush.bf16.msra.mxu2 %v9390_v18  ;;  %v8215_v18 = vld [vmem:[#allocation14 + $0x4f8] sm:$0xf0] }
 0x205   : > { %4873 = vmatmul.bf16.vlgmr.msra.gmra.mxu0 %v12609_v19 }
 0x206   : > { %4921 = vmatpush.bf16.msrb.mxu0 %v7706_v26  ;;  %v10799_v26 = vld [vmem:[#allocation14 + $0x3e4] sm:$0xf]  ;;  %4715 = vmatpush.bf16.msrb.mxu1 %v7766_v9  ;;  %v7718_v9 = vor.u32 %v10710_v62, %v7717_v61  ;;  %v7871_v61 = vld [vmem:[#allocation14 + $0x250] sm:$0xf0] }
 0x207   : > { %v8082_v43 = vor.u32 %v10799_v26, %v8079_v27  ;;  %4466 = vmatpush.bf16.msra.mxu3 %v9502_v36  ;;  %v10787_v26 = vld [vmem:[#allocation14 + $0x384] sm:$0xf]  ;;  %v8031_v27 = vld [vmem:[#allocation14 + $0x390] sm:$0xf0] }
 0x208   : > { %4452 = vmatpush.bf16.msra.mxu2 %v9374_v35  ;;  %v7906_v35 = vor.u32 %v10755_v24, %v7903_v25  ;;  %v8034_v36 = vor.u32 %v10787_v26, %v8031_v27  ;;  %v10779_v62 = vld [vmem:[#allocation14 + $0x344] sm:$0xf]  ;;  %v7858_v24 = vor.u32 %v10743_v10, %v7855_v12  ;;  %v7839_v27 = vld [vmem:[#allocation14 + $0x210] sm:$0xf0] }
 0x209   : > { %v10739_v26 = vld [vmem:[#allocation14 + $0x204] sm:$0xf]  ;;  %v8559_v10 = vld [vmem:[#allocation14 + $0x7b0] sm:$0xf0] }
 0x20a   : > { %4922 = vmatpush.bf16.msrb.mxu0 %v7690_v39  ;;  %v1134_v39 = vld [vmem:[%s12544_s8 + $0x78] sm:$0xff]  ;;  %4716 = vmatpush.bf16.msrb.mxu1 %v7750_v30  ;;  %v8326_v30 = vor.u32 %v10862_v21, %v8325_v20  ;;  %v8151_v21 = vld [vmem:[#allocation14 + $0x478] sm:$0xf0] }
 0x20b   : > { %4515 = vmatpush.bf16.msrb.mxu3 %v8082_v43  ;;  %4453 = vmatmul.bf16.vlgmr.msra.gmra.mxu2 %v12678_v56  ;;  %v8202_v43 = vor.u32 %v10828_v31, %v8199_v32  ;;  %v10816_v20 = vld [vmem:[#allocation14 + $0x46c] sm:$0xf]  ;;  %v8463_v31 = vld [vmem:[#allocation14 + $0x6f0] sm:$0xf0]  ;;  %v10927_v32 = vld [vmem:[#allocation14 + $0x7e4] sm:$0xf] }
 0x20c   : > { %4501 = vmatpush.bf16.msrb.mxu2 %v7954_v42  ;;  %v8015_v42 = vld [vmem:[#allocation14 + $0x370] sm:$0xf0]  ;;  %v8154_v34 = vor.u32 %v10816_v20, %v8151_v21  ;;  %v10960_v20 = vld [vmem:[#allocation14 + $0x8ec] sm:$0xf]  ;;  %v12692_v21 = vpop.f32.mrf.mxu0 }
 0x20e   : > { %4923 = vmatpush.bf16.msrb.mxu0 %v7674_v57  ;;  %v12680_v57 = vpack.c.bf16 %v1150_v40, %v1134_v39  ;;  %4717 = vmatpush.bf16.msrb.mxu1 %v7734_v49  ;;  %v7887_v39 = vld [vmem:[#allocation14 + $0x270] sm:$0xf0]  ;;  %v10783_v40 = vld [vmem:[#allocation14 + $0x364] sm:$0xf] }
 0x20f   : > { %4516 = vmatpush.bf16.msrb.mxu3 %v8066_v3  ;;  %v7890_v49 = vor.u32 %v10751_v38, %v7887_v39  ;;  %v8135_v38 = vld [vmem:[#allocation14 + $0x458] sm:$0xf0]  ;;  %v8245_v39 = vld [vmem:[#allocation14 + $0x528] sm:$0xf] }
 0x210   : > { %4467 = vmatmul.bf16.vlgmr.msra.gmra.mxu3 %v12680_v57  ;;  %4502 = vmatpush.bf16.msrb.mxu2 %v7938_v2  ;;  %v8186_v2 = vor.u32 %v10824_v45, %v8183_v46  ;;  %v8594_v45 = vor.u32 %v10927_v32, %v8591_v33  ;;  %v10891_v46 = vld [vmem:[#allocation14 + $0x6c4] sm:$0xf] }
 0x212   : > { %4924 = vmatpush.bf16.msrb.mxu0 %v7658_v8  ;;  %v7610_v8 = vor.u32 %v10680_v50, %v7607_v60  ;;  %4718 = vmatpush.bf16.msrb.mxu1 %v7718_v9  ;;  %v8018_v50 = vor.u32 %v10783_v40, %v8015_v42  ;;  %v10747_v60 = vld [vmem:[#allocation14 + $0x244] sm:$0xf]  ;;  %v8002_v9 = vor.u32 %v10779_v62, %v7999_v63  ;;  %v10842_v40 = vld [vmem:[#allocation14 + $0x534] sm:$0xf0]  ;;  %v8119_v62 = vld [vmem:[#allocation14 + $0x438] sm:$0xf0] }
 0x213   : > { %4517 = vmatpush.bf16.msrb.mxu3 %v8050_v23  ;;  %v10846_v23 = vld [vmem:[#allocation14 + $0x554] sm:$0xf0]  ;;  %v7842_v42 = vor.u32 %v10739_v26, %v7839_v27  ;;  %v8229_v63 = vld [vmem:[#allocation14 + $0x508] sm:$0xf]  ;;  %v10883_v27 = vld [vmem:[#allocation14 + $0x684] sm:$0xf] }
 0x214   : > { %4503 = vmatpush.bf16.msrb.mxu2 %v7922_v22  ;;  %v8261_v22 = vld [vmem:[#allocation14 + $0x548] sm:$0xf] }
 0x215   : > { %4719 = vmatmul.bf16.vlgmr.msrb.gmra.mxu1 %v12615_v15 }
 0x216   : > { %4925 = vmatpush.bf16.msrb.mxu0 %v7642_v29  ;;  %4767 = vmatpush.bf16.msra.mxu1 %v8342_v13  ;;  %v8218_v29 = vor.u32 %v10832_v14, %v8215_v18  ;;  %v10775_v13 = vld [vmem:[#allocation14 + $0x324] sm:$0xf]  ;;  %v7983_v14 = vld [vmem:[#allocation14 + $0x330] sm:$0xf0]  ;;  %v8170_v18 = vor.u32 %v10820_v4, %v8167_v5  ;;  %v10994_v4 = vld [vmem:[#allocation14 + $0x9f4] sm:$0xf0] }
 0x217   : > { %4518 = vmatpush.bf16.msrb.mxu3 %v8034_v36  ;;  %v7986_v25 = vor.u32 %v10775_v13, %v7983_v14  ;;  %v10812_v36 = vld [vmem:[#allocation14 + $0x44c] sm:$0xf] }
 0x218   : > { %4504 = vmatpush.bf16.msrb.mxu2 %v7906_v35  ;;  %v8262_v35 = vor.u32 %v10846_v23, %v8261_v22  ;;  %v10804_v14 = vld [vmem:[#allocation14 + $0x40c] sm:$0xf]  ;;  %v8727_v22 = vld [vmem:[#allocation14 + $0x8f8] sm:$0xf0]  ;;  %v8837_v23 = vld [vmem:[#allocation14 + $0x9c8] sm:$0xf] }
 0x219   : > { %v8730_v32 = vor.u32 %v10960_v20, %v8727_v22  ;;  %v10871_v22 = vld [vmem:[#allocation14 + $0x624] sm:$0xf] }
 0x21a   : > { %4926 = vmatpush.bf16.msrb.mxu0 %v7626_v48  ;;  %4768 = vmatpush.bf16.msra.mxu1 %v8326_v30  ;;  %v10854_v48 = vld [vmem:[#allocation14 + $0x594] sm:$0xf0]  ;;  %v10895_v30 = vld [vmem:[#allocation14 + $0x6e4] sm:$0xf] }
 0x21b   : > { %v8294_v3 = vor.u32 %v10854_v48, %v8293_v47  ;;  %4519 = vmatpush.bf16.msrb.mxu3 %v8018_v50  ;;  %v8447_v47 = vld [vmem:[#allocation14 + $0x6d0] sm:$0xf0]  ;;  %v10923_v48 = vld [vmem:[#allocation14 + $0x7c4] sm:$0xf]  ;;  %v8138_v50 = vor.u32 %v10812_v36, %v8135_v38  ;;  %v8821_v36 = vld [vmem:[#allocation14 + $0x9a8] sm:$0xf] }
 0x21c   : > { %4505 = vmatpush.bf16.msrb.mxu2 %v7890_v49  ;;  %v8575_v49 = vld [vmem:[#allocation14 + $0x7d0] sm:$0xf0]  ;;  %v8450_v5 = vor.u32 %v10891_v46, %v8447_v47  ;;  %v10986_v38 = vld [vmem:[#allocation14 + $0x9b4] sm:$0xf0] }
 0x21d   : > { %v8822_v47 = vor.u32 %v10986_v38, %v8821_v36  ;;  %v10899_v36 = vld [vmem:[#allocation14 + $0x704] sm:$0xf]  ;;  %v4272_v38 = vpop.f32.mrf.mxu1 }
 0x21e   : > { %4927 = vmatpush.bf16.msrb.mxu0 %v7610_v8  ;;  %4769 = vmatpush.bf16.msra.mxu1 %v8310_v44  ;;  %v7874_v8 = vor.u32 %v10747_v60, %v7871_v61  ;;  %v8466_v44 = vor.u32 %v10895_v30, %v8463_v31  ;;  %v8246_v60 = vor.u32 %v10842_v40, %v8245_v39  ;;  %v10808_v61 = vld [vmem:[#allocation14 + $0x42c] sm:$0xf]  ;;  %v8543_v30 = vld [vmem:[#allocation14 + $0x790] sm:$0xf0] }
 0x21f   : > { %4520 = vmatpush.bf16.msrb.mxu3 %v8002_v9  ;;  %v10919_v9 = vld [vmem:[#allocation14 + $0x7a4] sm:$0xf]  ;;  %v8122_v12 = vor.u32 %v10808_v61, %v8119_v62 }
 0x220   : > { %4506 = vmatpush.bf16.msrb.mxu2 %v7874_v8  ;;  %v8431_v8 = vld [vmem:[#allocation14 + $0x6b0] sm:$0xf0]  ;;  %v8562_v26 = vor.u32 %v10919_v9, %v8559_v10 }
 0x222   : > { %4928 = vmatpush.bf16.msrb.mxu0 %v7594_v28  ;;  %4770 = vmatpush.bf16.msra.mxu1 %v8294_v3  ;;  %v10771_v28 = vld [vmem:[#allocation14 + $0x304] sm:$0xf]  ;;  %v8853_v3 = vld [vmem:[#allocation14 + $0x9e8] sm:$0xf] }
 0x223   : > { %4521 = vmatpush.bf16.msrb.mxu3 %v7986_v25 }
 0x224   : > { %4507 = vmatpush.bf16.msrb.mxu2 %v7858_v24  ;;  %v10990_v24 = vld [vmem:[#allocation14 + $0x9d4] sm:$0xf0] }
 0x225   : > { %4929 = vmatmul.bf16.vlgmr.msrb.gmra.mxu0 %v12594_v37  ;;  %v8278_v37 = vor.u32 %v10850_v7, %v8277_v6  ;;  %v8578_v6 = vor.u32 %v10923_v48, %v8575_v49  ;;  %v10887_v7 = vld [vmem:[#allocation14 + $0x6a4] sm:$0xf]  ;;  %v8838_v33 = vor.u32 %v10990_v24, %v8837_v23  ;;  %v10952_v48 = vld [vmem:[#allocation14 + $0x8ac] sm:$0xf]  ;;  %v8695_v49 = vld [vmem:[#allocation14 + $0x8b8] sm:$0xf0] }
 0x226   : > { %4977 = vmatpush.bf16.msra.mxu0 %v8218_v29  ;;  %v7967_v29 = vld [vmem:[#allocation14 + $0x310] sm:$0xf0]  ;;  %v8434_v25 = vor.u32 %v10887_v7, %v8431_v8  ;;  %v12700_v7 = vpop.f32.mrf.mxu2  ;;  %v12702_v8 = vpop.f32.mrf.mxu3  ;;  %v8698_v9 = vor.u32 %v10952_v48, %v8695_v49  ;;  %v10903_v23 = vld [vmem:[#allocation14 + $0x724] sm:$0xf]  ;;  %v10940_v49 = vld [vmem:[#allocation14 + $0x84c] sm:$0xf] }
 0x227   : > { %4771 = vmatpush.bf16.msra.mxu1 %v8278_v37  ;;  %v8854_v37 = vor.u32 %v10994_v4, %v8853_v3  ;;  %v8383_v3 = vld [vmem:[#allocation14 + $0x650] sm:$0xf0]  ;;  %v10907_v4 = vld [vmem:[#allocation14 + $0x744] sm:$0xf] }
 0x228   : > { %4508 = vmatpush.bf16.msrb.mxu2 %v7842_v42  ;;  %v10879_v42 = vld [vmem:[#allocation14 + $0x664] sm:$0xf]  ;;  %v8495_v24 = vld [vmem:[#allocation14 + $0x730] sm:$0xf0] }
 0x22a   : > { %4978 = vmatpush.bf16.msra.mxu0 %v8202_v43  ;;  %v7970_v43 = vor.u32 %v10771_v28, %v7967_v29  ;;  %v8415_v28 = vld [vmem:[#allocation14 + $0x690] sm:$0xf0]  ;;  %v10915_v29 = vld [vmem:[#allocation14 + $0x784] sm:$0xf] }
 0x22b   : > { %4772 = vmatpush.bf16.msra.mxu1 %v8262_v35  ;;  %4509 = vmatmul.bf16.vlgmr.msrb.gmra.mxu2 %v12643_v51  ;;  %v8711_v35 = vld [vmem:[#allocation14 + $0x8d8] sm:$0xf0]  ;;  %v8418_v39 = vor.u32 %v10883_v27, %v8415_v28  ;;  %v8546_v40 = vor.u32 %v10915_v29, %v8543_v30  ;;  %v10944_v28 = vld [vmem:[#allocation14 + $0x86c] sm:$0xf]  ;;  %v8773_v30 = vld [vmem:[#allocation14 + $0x948] sm:$0xf] }
 0x22c   : > { %4522 = vmatpush.bf16.msrb.mxu3 %v7970_v43  ;;  %4557 = vmatpush.bf16.msra.mxu2 %v8466_v44  ;;  %v8399_v43 = vld [vmem:[#allocation14 + $0x670] sm:$0xf0]  ;;  %v10911_v44 = vld [vmem:[#allocation14 + $0x764] sm:$0xf]  ;;  %v8663_v29 = vld [vmem:[#allocation14 + $0x878] sm:$0xf0] }
 0x22d   : > { %v8402_v61 = vor.u32 %v10879_v42, %v8399_v43  ;;  %v8975_v42 = vld [vmem:[#allocation14 + $0xaf0] sm:$0xf0] }
 0x22e   : > { %4979 = vmatpush.bf16.msra.mxu0 %v8186_v2  ;;  %v10838_v2 = vld [vmem:[#allocation14 + $0x514] sm:$0xf0]  ;;  %v12705_v43 = vpop.f32.mrf.mxu2 }
 0x22f   : > { %4773 = vmatpush.bf16.msra.mxu1 %v8246_v60  ;;  %v8230_v13 = vor.u32 %v10838_v2, %v8229_v63  ;;  %4523 = vmatmul.bf16.vlgmr.msrb.gmra.mxu3 %v12645_v52  ;;  %v10982_v60 = vld [vmem:[#allocation14 + $0x994] sm:$0xf0]  ;;  %v10875_v63 = vld [vmem:[#allocation14 + $0x644] sm:$0xf]  ;;  %v12695_v2 = vpop.f32.mrf.mxu0 }
 0x230   : > { %4571 = vmatpush.bf16.msra.mxu3 %v8594_v45  ;;  %4558 = vmatpush.bf16.msra.mxu2 %v8450_v5  ;;  %v8527_v45 = vld [vmem:[#allocation14 + $0x770] sm:$0xf0] }
 0x231   : > { %v8530_v62 = vor.u32 %v10911_v44, %v8527_v45  ;;  %v8511_v5 = vld [vmem:[#allocation14 + $0x750] sm:$0xf0]  ;;  %v12707_v44 = vpop.f32.mrf.mxu3  ;;  %v11055_v45 = vld [vmem:[#allocation14 + $0xbe4] sm:$0xf] }
 0x232   : > { %4980 = vmatpush.bf16.msra.mxu0 %v8170_v18  ;;  %v8103_v18 = vld [vmem:[#allocation14 + $0x418] sm:$0xf0]  ;;  %v8514_v20 = vor.u32 %v10907_v4, %v8511_v5 }
 0x233   : > { %4774 = vmatpush.bf16.msra.mxu1 %v8230_v13  ;;  %v8106_v31 = vor.u32 %v10804_v14, %v8103_v18  ;;  %v8679_v13 = vld [vmem:[#allocation14 + $0x898] sm:$0xf0]  ;;  %v8789_v14 = vld [vmem:[#allocation14 + $0x968] sm:$0xf]  ;;  %v10978_v18 = vld [vmem:[#allocation14 + $0x974] sm:$0xf0] }
 0x234   : > { %4572 = vmatpush.bf16.msra.mxu3 %v8578_v6  ;;  %4559 = vmatpush.bf16.msra.mxu2 %v8434_v25  ;;  %v12698_v6 = vld [vmem:[#allocation16] sm:$0xf]  ;;  %v8790_v27 = vor.u32 %v10978_v18, %v8789_v14 }
 0x235   : > { %v1681_v25 = vperm.slane %v12698_v6, 0 }
 0x236   : > { %4981 = vmatpush.bf16.msra.mxu0 %v8154_v34  ;;  %v10956_v34 = vld [vmem:[#allocation14 + $0x8cc] sm:$0xf]  ;;  %4775 = vmatmul.bf16.vlgmr.msra.gmra.mxu1 %v12620_v54 }
 0x237   : > { %4823 = vmatpush.bf16.msrb.mxu1 %v8854_v37  ;;  %v8714_v46 = vor.u32 %v10956_v34, %v8711_v35  ;;  %v8386_v37 = vor.u32 %v10875_v63, %v8383_v3  ;;  %v10867_v34 = vld [vmem:[#allocation14 + $0x604] sm:$0xf]  ;;  %v8351_v35 = vld [vmem:[#allocation14 + $0x610] sm:$0xf0] }
 0x238   : > { %4573 = vmatpush.bf16.msra.mxu3 %v8562_v26  ;;  %4560 = vmatpush.bf16.msra.mxu2 %v8418_v39  ;;  %v8479_v39 = vld [vmem:[#allocation14 + $0x710] sm:$0xf0]  ;;  %v8354_v63 = vor.u32 %v10867_v34, %v8351_v35 }
 0x239   : > { %v8482_v3 = vor.u32 %v10899_v36, %v8479_v39  ;;  %v4261_v36 = vadd.f32 %v12687_v1, %v1681_v25  ;;  %v10932_v39 = vld [vmem:[#allocation14 + $0x80c] sm:$0xf] }
 0x23a   : > { %4982 = vmatpush.bf16.msra.mxu0 %v8138_v50  ;;  %v8805_v50 = vld [vmem:[#allocation14 + $0x988] sm:$0xf] }
 0x23b   : > { %4824 = vmatpush.bf16.msrb.mxu1 %v8838_v33  ;;  %v8806_v10 = vor.u32 %v10982_v60, %v8805_v50  ;;  %v8498_v33 = vor.u32 %v10903_v23, %v8495_v24  ;;  %v4259_v50 = vadd.f32 %v12684_v16, %v1681_v25  ;;  %v8647_v60 = vld [vmem:[#allocation14 + $0x858] sm:$0xf0]  ;;  %v9365_v23 = vld [vmem:[#allocation14 + $0xde8] sm:$0xf]  ;;  %v11122_v24 = vld [vmem:[#allocation14 + $0xdf4] sm:$0xf0] }
 0x23c   : > { %4574 = vmatpush.bf16.msra.mxu3 %v8546_v40  ;;  %4561 = vmatpush.bf16.msra.mxu2 %v8402_v61  ;;  %v11023_v40 = vld [vmem:[#allocation14 + $0xae4] sm:$0xf]  ;;  %v8757_v61 = vld [vmem:[#allocation14 + $0x928] sm:$0xf]  ;;  %v8650_v14 = vor.u32 %v10940_v49, %v8647_v60  ;;  %v8631_v16 = vld [vmem:[#allocation14 + $0x838] sm:$0xf0] }
 0x23d   : > { %v8978_v4 = vor.u32 %v11023_v40, %v8975_v42  ;;  %v8615_v40 = vld [vmem:[#allocation14 + $0x818] sm:$0xf0]  ;;  %v9366_v42 = vor.u32 %v11122_v24, %v9365_v23  ;;  %v9349_v49 = vld [vmem:[#allocation14 + $0xdc8] sm:$0xf]  ;;  %v11011_v25 = vld [vmem:[#allocation14 + $0xa84] sm:$0xf] }
 0x23e   : > { %4983 = vmatpush.bf16.msra.mxu0 %v8122_v12  ;;  %v10948_v12 = vld [vmem:[#allocation14 + $0x88c] sm:$0xf]  ;;  %v8911_v23 = vld [vmem:[#allocation14 + $0xa70] sm:$0xf0]  ;;  %v11039_v24 = vld [vmem:[#allocation14 + $0xb64] sm:$0xf] }
 0x23f   : > { %4825 = vmatpush.bf16.msrb.mxu1 %v8822_v47  ;;  %v8682_v26 = vor.u32 %v10948_v12, %v8679_v13  ;;  %v8666_v47 = vor.u32 %v10944_v28, %v8663_v29  ;;  %v11051_v12 = vld [vmem:[#allocation14 + $0xbc4] sm:$0xf]  ;;  %v9087_v13 = vld [vmem:[#allocation14 + $0xbd0] sm:$0xf0]  ;;  %v4286_v29 = vpop.f32.mrf.mxu2 }
 0x240   : > { %4575 = vmatpush.bf16.msra.mxu3 %v8530_v62  ;;  %4562 = vmatpush.bf16.msra.mxu2 %v8386_v37  ;;  %v10970_v62 = vld [vmem:[#allocation14 + $0x934] sm:$0xf0]  ;;  %v10936_v37 = vld [vmem:[#allocation14 + $0x82c] sm:$0xf]  ;;  %v11015_v28 = vld [vmem:[#allocation14 + $0xaa4] sm:$0xf] }
 0x241   : > { %v8758_v18 = vor.u32 %v10970_v62, %v8757_v61  ;;  %v8634_v34 = vor.u32 %v10936_v37, %v8631_v16  ;;  %v8927_v61 = vld [vmem:[#allocation14 + $0xa90] sm:$0xf0]  ;;  %v11043_v62 = vld [vmem:[#allocation14 + $0xb84] sm:$0xf] }
 0x242   : > { %4984 = vmatpush.bf16.msra.mxu0 %v8106_v31  ;;  %v10974_v31 = vld [vmem:[#allocation14 + $0x954] sm:$0xf0]  ;;  %v8930_v37 = vor.u32 %v11011_v25, %v8927_v61  ;;  %v11007_v16 = vld [vmem:[#allocation14 + $0xa64] sm:$0xf] }
 0x243   : > { %4826 = vmatpush.bf16.msrb.mxu1 %v8806_v10  ;;  %v8774_v48 = vor.u32 %v10974_v31, %v8773_v30  ;;  %v8959_v10 = vld [vmem:[#allocation14 + $0xad0] sm:$0xf0]  ;;  %v4300_v30 = vpop.f32.mrf.mxu3  ;;  %v11106_v25 = vld [vmem:[#allocation14 + $0xd74] sm:$0xf0] }
 0x244   : > { %4576 = vmatpush.bf16.msra.mxu3 %v8514_v20  ;;  %v4273_v20 = vadd.f32 %v4272_v38, %v4259_v50  ;;  %v8943_v31 = vld [vmem:[#allocation14 + $0xab0] sm:$0xf0]  ;;  %v11118_v50 = vld [vmem:[#allocation14 + $0xdd4] sm:$0xf0] }
 0x245   : > { %4985 = vmatmul.bf16.vlgmr.msra.gmra.mxu0 %v12599_v0  ;;  %v8367_v0 = vld [vmem:[#allocation14 + $0x630] sm:$0xf0]  ;;  %v8946_v6 = vor.u32 %v11015_v28, %v8943_v31  ;;  %v9317_v31 = vld [vmem:[#allocation14 + $0xd88] sm:$0xf] }
 0x246   : > { %5033 = vmatpush.bf16.msrb.mxu0 %v8730_v32  ;;  %v8370_v32 = vor.u32 %v10871_v22, %v8367_v0  ;;  %v8741_v22 = vld [vmem:[#allocation14 + $0x908] sm:$0xf]  ;;  %v10966_v0 = vld [vmem:[#allocation14 + $0x914] sm:$0xf0]  ;;  %v4287_v38 = vadd.f32 %v4286_v29, %v4273_v20  ;;  %v11080_v29 = vld [vmem:[#allocation14 + $0xcac] sm:$0xf] }
 0x247   : > { %4827 = vmatpush.bf16.msrb.mxu1 %v8790_v27  ;;  %v9090_v27 = vor.u32 %v11051_v12, %v9087_v13  ;;  %v8742_v35 = vor.u32 %v10966_v0, %v8741_v22  ;;  %v11084_v12 = vld [vmem:[#allocation14 + $0xccc] sm:$0xf]  ;;  %v9223_v13 = vld [vmem:[#allocation14 + $0xcd8] sm:$0xf0]  ;;  %v4288_v22 = vpop.f32.mrf.mxu2 }
 0x248   : > { %4563 = vmatpush.bf16.msra.mxu2 %v8370_v32  ;;  %4577 = vmatpush.bf16.msra.mxu3 %v8498_v33  ;;  %v11047_v32 = vld [vmem:[#allocation14 + $0xba4] sm:$0xf]  ;;  %v9071_v33 = vld [vmem:[#allocation14 + $0xbb0] sm:$0xf0]  ;;  %v4301_v60 = vadd.f32 %v4300_v30, %v4287_v38  ;;  %v9207_v30 = vld [vmem:[#allocation14 + $0xcb8] sm:$0xf0] }
 0x249   : > { %v9074_v1 = vor.u32 %v11047_v32, %v9071_v33  ;;  %v11110_v32 = vld [vmem:[#allocation14 + $0xd94] sm:$0xf0] }
 0x24a   : > { %5034 = vmatpush.bf16.msrb.mxu0 %v8714_v46  ;;  %v9103_v46 = vld [vmem:[#allocation14 + $0xbf0] sm:$0xf0] }
 0x24b   : > { %v9106_v5 = vor.u32 %v11055_v45, %v9103_v46  ;;  %4828 = vmatpush.bf16.msrb.mxu1 %v8774_v48  ;;  %v11088_v45 = vld [vmem:[#allocation14 + $0xcec] sm:$0xf]  ;;  %v12717_v46 = vpop.f32.mrf.mxu0  ;;  %v9239_v48 = vld [vmem:[#allocation14 + $0xcf8] sm:$0xf0]  ;;  %v4302_v0 = vpop.f32.mrf.mxu3 }
 0x24c   : > { %4564 = vmatpush.bf16.msra.mxu2 %v8354_v63  ;;  %4578 = vmatpush.bf16.msra.mxu3 %v8482_v3  ;;  %v9055_v63 = vld [vmem:[#allocation14 + $0xb90] sm:$0xf0]  ;;  %v8618_v3 = vor.u32 %v10932_v39, %v8615_v40 }
 0x24d   : > { %v9058_v20 = vor.u32 %v11043_v62, %v9055_v63  ;;  %v8895_v40 = vld [vmem:[#allocation14 + $0xa50] sm:$0xf0]  ;;  %v10999_v63 = vld [vmem:[#allocation14 + $0xa24] sm:$0xf] }
 0x24e   : > { %5035 = vmatpush.bf16.msrb.mxu0 %v8698_v9  ;;  %v11019_v9 = vld [vmem:[#allocation14 + $0xac4] sm:$0xf] }
 0x24f   : > { %4829 = vmatpush.bf16.msrb.mxu1 %v8758_v18  ;;  %4565 = vmatmul.bf16.vlgmr.msra.gmra.mxu2 %v12654_v58  ;;  %v11114_v18 = vld [vmem:[#allocation14 + $0xdb4] sm:$0xf0] }
 0x250   : > { %4613 = vmatpush.bf16.msrb.mxu2 %v8978_v4  ;;  %4627 = vmatpush.bf16.msrb.mxu3 %v9106_v5  ;;  %v4315_v5 = vadd.f32 %v12692_v21, %v4301_v60  ;;  %v11076_v60 = vld [vmem:[#allocation14 + $0xc8c] sm:$0xf] }
 0x251   : > { %4579 = vmatmul.bf16.vlgmr.msra.gmra.mxu3 %v12656_v59 }
 0x252   : > { %5036 = vmatpush.bf16.msrb.mxu0 %v8682_v26  ;;  %v8962_v26 = vor.u32 %v11019_v9, %v8959_v10  ;;  %v9242_v9 = vor.u32 %v11088_v45, %v9239_v48  ;;  %v9350_v10 = vor.u32 %v11118_v50, %v9349_v49  ;;  %v9023_v45 = vld [vmem:[#allocation14 + $0xb50] sm:$0xf0]  ;;  %v9318_v50 = vor.u32 %v11110_v32, %v9317_v31 }
 0x253   : > { %4830 = vmatpush.bf16.msrb.mxu1 %v8742_v35  ;;  %v12721_v38 = vpop.f32.mrf.mxu0 }
 0x254   : > { %4614 = vmatpush.bf16.msrb.mxu2 %v8962_v26  ;;  %4628 = vmatpush.bf16.msrb.mxu3 %v9090_v27  ;;  %v9039_v26 = vld [vmem:[#allocation14 + $0xb70] sm:$0xf0]  ;;  %v9226_v27 = vor.u32 %v11084_v12, %v9223_v13  ;;  %v11072_v12 = vld [vmem:[#allocation14 + $0xc6c] sm:$0xf]  ;;  %v4356_v13 = vpop.f32.mrf.mxu3 }
 0x255   : > { %v9042_v35 = vor.u32 %v11039_v24, %v9039_v26  ;;  %v11027_v24 = vld [vmem:[#allocation14 + $0xb04] sm:$0xf]  ;;  %v8991_v26 = vld [vmem:[#allocation14 + $0xb10] sm:$0xf0] }
 0x256   : > { %5037 = vmatpush.bf16.msrb.mxu0 %v8666_v47  ;;  %v4274_v47 = vpop.f32.mrf.mxu1  ;;  %4831 = vmatmul.bf16.vlgmr.msrb.gmra.mxu1 %v12626_v17 }
 0x257   : > { %v4275_v4 = vadd.f32 %v4274_v47, %v4261_v36  ;;  %4879 = vmatpush.bf16.msra.mxu1 %v9366_v42  ;;  %v11003_v36 = vld [vmem:[#allocation14 + $0xa44] sm:$0xf]  ;;  %v9210_v47 = vor.u32 %v11080_v29, %v9207_v30  ;;  %v9615_v30 = vld [vmem:[#allocation14 + $0xff0] sm:$0xf0] }
 0x258   : > { %4615 = vmatpush.bf16.msrb.mxu2 %v8946_v6  ;;  %4629 = vmatpush.bf16.msrb.mxu3 %v9074_v1  ;;  %v11035_v42 = vld [vmem:[#allocation14 + $0xb44] sm:$0xf]  ;;  %v9191_v6 = vld [vmem:[#allocation14 + $0xc98] sm:$0xf0]  ;;  %v9301_v1 = vld [vmem:[#allocation14 + $0xd68] sm:$0xf]  ;;  %v8898_v61 = vor.u32 %v11003_v36, %v8895_v40  ;;  %v8994_v40 = vor.u32 %v11027_v24, %v8991_v26 }
 0x259   : > { %v4289_v21 = vadd.f32 %v4288_v22, %v4275_v4  ;;  %v9026_v62 = vor.u32 %v11035_v42, %v9023_v45  ;;  %v8879_v4 = vld [vmem:[#allocation14 + $0xa30] sm:$0xf0]  ;;  %v11183_v29 = vld [vmem:[#allocation14 + $0xfe4] sm:$0xf]  ;;  %v11098_v36 = vld [vmem:[#allocation14 + $0xd34] sm:$0xf0] }
 0x25a   : > { %5038 = vmatpush.bf16.msrb.mxu0 %v8650_v14  ;;  %v9333_v14 = vld [vmem:[#allocation14 + $0xda8] sm:$0xf]  ;;  %v9618_v45 = vor.u32 %v11183_v29, %v9615_v30  ;;  %v11171_v29 = vld [vmem:[#allocation14 + $0xf84] sm:$0xf]  ;;  %v9567_v30 = vld [vmem:[#allocation14 + $0xf90] sm:$0xf0] }
 0x25b   : > { %4880 = vmatpush.bf16.msra.mxu1 %v9350_v10  ;;  %v9334_v28 = vor.u32 %v11114_v18, %v9333_v14  ;;  %v4303_v33 = vadd.f32 %v4302_v0, %v4289_v21  ;;  %v9302_v10 = vor.u32 %v11106_v25, %v9301_v1  ;;  %v9175_v14 = vld [vmem:[#allocation14 + $0xc78] sm:$0xf0]  ;;  %v9285_v18 = vld [vmem:[#allocation14 + $0xd48] sm:$0xf]  ;;  %v10995_v0 = vld [vmem:[#allocation14 + $0xa04] sm:$0xf] }
 0x25c   : > { %4616 = vmatpush.bf16.msrb.mxu2 %v8930_v37  ;;  %4630 = vmatpush.bf16.msrb.mxu3 %v9058_v20  ;;  %v11102_v37 = vld [vmem:[#allocation14 + $0xd54] sm:$0xf0]  ;;  %v11151_v21 = vld [vmem:[#allocation14 + $0xee4] sm:$0xf]  ;;  %v9178_v31 = vor.u32 %v11072_v12, %v9175_v14  ;;  %v11064_v1 = vld [vmem:[#allocation14 + $0xc2c] sm:$0xf] }
 0x25d   : > { %v12725_v49 = vadd.f32 %v12695_v2, %v4303_v33  ;;  %v9194_v2 = vor.u32 %v11076_v60, %v9191_v6  ;;  %v9286_v32 = vor.u32 %v11102_v37, %v9285_v18  ;;  %v11068_v33 = vld [vmem:[#allocation14 + $0xc4c] sm:$0xf]  ;;  %v9143_v25 = vld [vmem:[#allocation14 + $0xc38] sm:$0xf0] }
 0x25e   : > { %5039 = vmatpush.bf16.msrb.mxu0 %v8634_v34  ;;  %v8914_v34 = vor.u32 %v11007_v16, %v8911_v23  ;;  %v4328_v39 = vpop.f32.mrf.mxu1  ;;  %v8882_v16 = vor.u32 %v10999_v63, %v8879_v4  ;;  %v8863_v23 = vld [vmem:[#allocation14 + $0xa10] sm:$0xf0]  ;;  %v10736_v63 = vld [vmem:[#allocation14 + $0x1ec] sm:$0xf]  ;;  %v9146_v12 = vor.u32 %v11064_v1, %v9143_v25  ;;  %v9127_v18 = vld [vmem:[#allocation14 + $0xc18] sm:$0xf0] }
 0x25f   : > { %v4329_v48 = vadd.f32 %v4328_v39, %v4315_v5  ;;  %4881 = vmatpush.bf16.msra.mxu1 %v9334_v28  ;;  %v8866_v39 = vor.u32 %v10995_v0, %v8863_v23  ;;  %v11060_v14 = vld [vmem:[#allocation14 + $0xc0c] sm:$0xf]  ;;  %v7815_v23 = vld [vmem:[#allocation14 + $0x1d8] sm:$0xf0] }
 0x260   : > { %4617 = vmatpush.bf16.msrb.mxu2 %v8914_v34  ;;  %4631 = vmatpush.bf16.msrb.mxu3 %v9042_v35  ;;  %v9159_v34 = vld [vmem:[#allocation14 + $0xc58] sm:$0xf0]  ;;  %v9269_v35 = vld [vmem:[#allocation14 + $0xd28] sm:$0xf]  ;;  %v10732_v0 = vld [vmem:[#allocation14 + $0x1cc] sm:$0xf] }
 0x261   : > { %v9162_v60 = vor.u32 %v11068_v33, %v9159_v34  ;;  %v9270_v6 = vor.u32 %v11098_v36, %v9269_v35  ;;  %v7818_v33 = vor.u32 %v10732_v0, %v7815_v23  ;;  %v9677_v34 = vld [vmem:[#allocation17 + $0x60] sm:$0xf]  ;;  %v11200_v35 = vld [vmem:[#allocation17 + $0x64] sm:$0xf0]  ;;  %v11198_v1 = vld [vmem:[#allocation17 + $0x54] sm:$0xf0] }
 0x262   : > { %5040 = vmatpush.bf16.msrb.mxu0 %v8618_v3  ;;  %v4342_v3 = vpop.f32.mrf.mxu2  ;;  %v10728_v36 = vld [vmem:[#allocation14 + $0x1ac] sm:$0xf]  ;;  %v11127_v0 = vld [vmem:[#allocation14 + $0xe24] sm:$0xf]  ;;  %v9391_v23 = vld [vmem:[#allocation14 + $0xe30] sm:$0xf0] }
 0x263   : > { %v4343_v5 = vadd.f32 %v4342_v3, %v4329_v48  ;;  %4882 = vmatpush.bf16.msra.mxu1 %v9318_v50  ;;  %v9471_v48 = vld [vmem:[#allocation14 + $0xed0] sm:$0xf0]  ;;  %v7831_v3 = vld [vmem:[#allocation14 + $0x1f8] sm:$0xf0]  ;;  %v10724_v25 = vld [vmem:[#allocation14 + $0x18c] sm:$0xf] }
 0x264   : > { %4618 = vmatpush.bf16.msrb.mxu2 %v8898_v61  ;;  %4632 = vmatpush.bf16.msrb.mxu3 %v9026_v62  ;;  %v9599_v50 = vld [vmem:[#allocation14 + $0xfd0] sm:$0xf0]  ;;  %v9253_v61 = vld [vmem:[#allocation14 + $0xd08] sm:$0xf]  ;;  %v11094_v62 = vld [vmem:[#allocation14 + $0xd14] sm:$0xf0]  ;;  %v7834_v37 = vor.u32 %v10736_v63, %v7831_v3 }
 0x265   : > { %5041 = vmatmul.bf16.vlgmr.msrb.gmra.mxu0 %v12604_v41  ;;  %v9007_v41 = vld [vmem:[#allocation14 + $0xb30] sm:$0xf0]  ;;  %v4357_v20 = vadd.f32 %v4356_v13, %v4343_v5  ;;  %v9254_v13 = vor.u32 %v11094_v62, %v9253_v61  ;;  %v7783_v61 = vld [vmem:[#allocation14 + $0x198] sm:$0xf0] }
 0x266   : > { %5089 = vmatpush.bf16.msra.mxu0 %v9242_v9  ;;  %v11031_v9 = vld [vmem:[#allocation14 + $0xb24] sm:$0xf]  ;;  %v9455_v5 = vld [vmem:[#allocation14 + $0xeb0] sm:$0xf0]  ;;  %v4330_v62 = vpop.f32.mrf.mxu1 }
 0x267   : > { %v9010_v22 = vor.u32 %v11031_v9, %v9007_v41  ;;  %v12728_v28 = vadd.f32 %v12717_v46, %v4357_v20  ;;  %4883 = vmatpush.bf16.msra.mxu1 %v9302_v10  ;;  %v11179_v46 = vld [vmem:[#allocation14 + $0xfc4] sm:$0xf]  ;;  %v9583_v10 = vld [vmem:[#allocation14 + $0xfb0] sm:$0xf0] }
 0x268   : > { %4619 = vmatpush.bf16.msrb.mxu2 %v8882_v16  ;;  %v9602_v9 = vor.u32 %v11179_v46, %v9599_v50  ;;  %v11143_v41 = vld [vmem:[#allocation14 + $0xea4] sm:$0xf]  ;;  %v9685_v20 = vld [vmem:[#allocation17 + $0x70] sm:$0xf]  ;;  %v12732_v16 = vpop.f32.mrf.mxu0  ;;  %v9678_v50 = vor.u32 %v11200_v35, %v9677_v34  ;;  %v9394_v34 = vor.u32 %v11127_v0, %v9391_v23  ;;  %v11190_v0 = vld [vmem:[#allocation17 + $0x14] sm:$0xf0] }
 0x269   : > { %4633 = vmatpush.bf16.msrb.mxu3 %v9010_v22  ;;  %v11202_v22 = vld [vmem:[#allocation17 + $0x74] sm:$0xf0]  ;;  %v9458_v24 = vor.u32 %v11143_v41, %v9455_v5  ;;  %v9551_v46 = vld [vmem:[#allocation14 + $0xf70] sm:$0xf0]  ;;  %v11163_v5 = vld [vmem:[#allocation14 + $0xf44] sm:$0xf] }
 0x26a   : > { %5090 = vmatpush.bf16.msra.mxu0 %v9226_v27  ;;  %v9487_v27 = vld [vmem:[#allocation14 + $0xef0] sm:$0xf0]  ;;  %v10708_v23 = vld [vmem:[#allocation14 + $0x10c] sm:$0xf] }
 0x26b   : > { %v9490_v42 = vor.u32 %v11151_v21, %v9487_v27  ;;  %4884 = vmatpush.bf16.msra.mxu1 %v9286_v32  ;;  %v11139_v21 = vld [vmem:[#allocation14 + $0xe84] sm:$0xf]  ;;  %v9439_v27 = vld [vmem:[#allocation14 + $0xe90] sm:$0xf0]  ;;  %v9686_v32 = vor.u32 %v11202_v22, %v9685_v20 }
 0x26c   : > { %4620 = vmatpush.bf16.msrb.mxu2 %v8866_v39  ;;  %v7799_v39 = vld [vmem:[#allocation14 + $0x1b8] sm:$0xf0]  ;;  %v9407_v41 = vld [vmem:[#allocation14 + $0xe50] sm:$0xf0] }
 0x26d   : > { %4634 = vmatpush.bf16.msrb.mxu3 %v8994_v40  ;;  %v9442_v40 = vor.u32 %v11139_v21, %v9439_v27  ;;  %v9653_v27 = vld [vmem:[#allocation17 + $0x30] sm:$0xf] }
 0x26e   : > { %5091 = vmatpush.bf16.msra.mxu0 %v9210_v47  ;;  %v11147_v47 = vld [vmem:[#allocation14 + $0xec4] sm:$0xf] }
 0x26f   : > { %v9474_v4 = vor.u32 %v11147_v47, %v9471_v48  ;;  %4885 = vmatpush.bf16.msra.mxu1 %v9270_v6  ;;  %4621 = vmatmul.bf16.vlgmr.msrb.gmra.mxu2 %v12666_v53  ;;  %v9423_v47 = vld [vmem:[#allocation14 + $0xe70] sm:$0xf0]  ;;  %v11167_v48 = vld [vmem:[#allocation14 + $0xf64] sm:$0xf] }
 0x270   : > { %4669 = vmatpush.bf16.msra.mxu2 %v9490_v42  ;;  %4635 = vmatmul.bf16.vlgmr.msrb.gmra.mxu3 %v12668_v55  ;;  %v9570_v42 = vor.u32 %v11171_v29, %v9567_v30  ;;  %v9669_v6 = vld [vmem:[#allocation17 + $0x50] sm:$0xf]  ;;  %v9554_v3 = vor.u32 %v11167_v48, %v9551_v46  ;;  %v11194_v29 = vld [vmem:[#allocation17 + $0x34] sm:$0xf0]  ;;  %v10716_v30 = vld [vmem:[#allocation14 + $0x14c] sm:$0xf]  ;;  %v12738_v48 = vpop.f32.mrf.mxu1 }
 0x271   : > { %4683 = vmatpush.bf16.msra.mxu3 %v9618_v45  ;;  %v11135_v45 = vld [vmem:[#allocation14 + $0xe64] sm:$0xf]  ;;  %v8085_v46 = vld [vmem:[#allocation14 + $0x3e8] sm:$0xf] }
 0x272   : > { %5092 = vmatpush.bf16.msra.mxu0 %v9194_v2  ;;  %v11175_v2 = vld [vmem:[#allocation14 + $0xfa4] sm:$0xf]  ;;  %v9426_v63 = vor.u32 %v11135_v45, %v9423_v47  ;;  %v7957_v45 = vld [vmem:[#allocation14 + $0x2e8] sm:$0xf]  ;;  %v10770_v47 = vld [vmem:[#allocation14 + $0x2f4] sm:$0xf0] }
 0x273   : > { %v9586_v26 = vor.u32 %v11175_v2, %v9583_v10  ;;  %4886 = vmatpush.bf16.msra.mxu1 %v9254_v13  ;;  %v9535_v2 = vld [vmem:[#allocation14 + $0xf50] sm:$0xf0]  ;;  %v9670_v10 = vor.u32 %v11198_v1, %v9669_v6  ;;  %v9661_v13 = vld [vmem:[#allocation17 + $0x40] sm:$0xf] }
 0x274   : > { %4670 = vmatpush.bf16.msra.mxu2 %v9474_v4  ;;  %v11131_v4 = vld [vmem:[#allocation14 + $0xe44] sm:$0xf]  ;;  %v9538_v22 = vor.u32 %v11163_v5, %v9535_v2  ;;  %v7958_v5 = vor.u32 %v10770_v47, %v7957_v45  ;;  %v11201_v45 = vld [vmem:[#allocation17 + $0x74] sm:$0xf] }
 0x275   : > { %4684 = vmatpush.bf16.msra.mxu3 %v9602_v9  ;;  %v12735_v9 = vpop.f32.mrf.mxu0  ;;  %v9410_v20 = vor.u32 %v11131_v4, %v9407_v41  ;;  %v9645_v1 = vld [vmem:[#allocation17 + $0x20] sm:$0xf]  ;;  %v4331_v41 = vadd.f32 %v4330_v62, %v12725_v49  ;;  %v10864_v49 = vld [vmem:[#allocation14 + $0x5ec] sm:$0xf]  ;;  %v8343_v62 = vld [vmem:[#allocation14 + $0x5f8] sm:$0xf0] }
 0x276   : > { %5093 = vmatpush.bf16.msra.mxu0 %v9178_v31  ;;  %v9130_v31 = vor.u32 %v11060_v14, %v9127_v18  ;;  %4887 = vmatmul.bf16.vlgmr.msra.gmra.mxu1 %v12633_v11  ;;  %v11196_v14 = vld [vmem:[#allocation17 + $0x44] sm:$0xf0] }
 0x277   : > { %4935 = vmatpush.bf16.msrb.mxu1 %v7834_v37  ;;  %v10720_v18 = vld [vmem:[#allocation14 + $0x16c] sm:$0xf]  ;;  %v7767_v37 = vld [vmem:[#allocation14 + $0x178] sm:$0xf0]  ;;  %v9662_v21 = vor.u32 %v11196_v14, %v9661_v13  ;;  %v8069_v13 = vld [vmem:[#allocation14 + $0x3c8] sm:$0xf] }
 0x278   : > { %4671 = vmatpush.bf16.msra.mxu2 %v9458_v24  ;;  %v11159_v24 = vld [vmem:[#allocation14 + $0xf24] sm:$0xf]  ;;  %v10798_v14 = vld [vmem:[#allocation14 + $0x3d4] sm:$0xf0]  ;;  %v4386_v47 = vpop.f32.mrf.mxu1 }
 0x279   : > { %4685 = vmatpush.bf16.msra.mxu3 %v9586_v26  ;;  %v9519_v26 = vld [vmem:[#allocation14 + $0xf30] sm:$0xf0] }
 0x27a   : > { %5094 = vmatpush.bf16.msra.mxu0 %v9162_v60  ;;  %v7802_v60 = vor.u32 %v10728_v36, %v7799_v39  ;;  %v9522_v35 = vor.u32 %v11159_v24, %v9519_v26  ;;  %v11123_v36 = vld [vmem:[#allocation14 + $0xe04] sm:$0xf]  ;;  %v9375_v39 = vld [vmem:[#allocation14 + $0xe10] sm:$0xf0]  ;;  %v7719_v24 = vld [vmem:[#allocation14 + $0x118] sm:$0xf0] }
 0x27b   : > { %4936 = vmatpush.bf16.msrb.mxu1 %v7818_v33  ;;  %v4358_v33 = vpop.f32.mrf.mxu3 }
 0x27c   : > { %4672 = vmatpush.bf16.msra.mxu2 %v9442_v40  ;;  %v11155_v40 = vld [vmem:[#allocation14 + $0xf04] sm:$0xf] }
 0x27d   : > { %4686 = vmatpush.bf16.msra.mxu3 %v9570_v42  ;;  %v9503_v42 = vld [vmem:[#allocation14 + $0xf10] sm:$0xf0] }
 0x27e   : > { %5095 = vmatpush.bf16.msra.mxu0 %v9146_v12  ;;  %v7786_v12 = vor.u32 %v10724_v25, %v7783_v61  ;;  %v11192_v25 = vld [vmem:[#allocation17 + $0x24] sm:$0xf0]  ;;  %v9506_v4 = vor.u32 %v11155_v40, %v9503_v42  ;;  %v8346_v42 = vor.u32 %v10864_v49, %v8343_v62  ;;  %v8021_v49 = vld [vmem:[#allocation14 + $0x368] sm:$0xf] }
 0x27f   : > { %4937 = vmatpush.bf16.msrb.mxu1 %v7802_v60  ;;  %v9654_v60 = vor.u32 %v11194_v29, %v9653_v27  ;;  %v10712_v61 = vld [vmem:[#allocation14 + $0x12c] sm:$0xf]  ;;  %v8070_v27 = vor.u32 %v10798_v14, %v8069_v13  ;;  %v7925_v29 = vld [vmem:[#allocation14 + $0x2a8] sm:$0xf]  ;;  %v8311_v14 = vld [vmem:[#allocation14 + $0x5b8] sm:$0xf0] }
 0x280   : > { %4673 = vmatpush.bf16.msra.mxu2 %v9426_v63  ;;  %v7735_v63 = vld [vmem:[#allocation14 + $0x138] sm:$0xf0]  ;;  %v11188_v40 = vld [vmem:[#allocation17 + $0x4] sm:$0xf0] }
 0x281   : > { %4687 = vmatpush.bf16.msra.mxu3 %v9554_v3  ;;  %v9378_v3 = vor.u32 %v11123_v36, %v9375_v39  ;;  %v9629_v39 = vld [vmem:[#allocation17] sm:$0xf]  ;;  %v10856_v13 = vld [vmem:[#allocation14 + $0x5ac] sm:$0xf] }
 0x282   : > { %5096 = vmatpush.bf16.msra.mxu0 %v9130_v31  ;;  %v7751_v31 = vld [vmem:[#allocation14 + $0x158] sm:$0xf0]  ;;  %v8314_v62 = vor.u32 %v10856_v13, %v8311_v14  ;;  %v7845_v13 = vld [vmem:[#allocation14 + $0x208] sm:$0xf]  ;;  %v9655_v14 = vld [vmem:[#allocation17 + $0x38] sm:$0xf0] }
 0x283   : > { %4938 = vmatpush.bf16.msrb.mxu1 %v7786_v12  ;;  %v7754_v6 = vor.u32 %v10716_v30, %v7751_v31  ;;  %v10766_v12 = vld [vmem:[#allocation14 + $0x2d4] sm:$0xf0]  ;;  %v8053_v31 = vld [vmem:[#allocation14 + $0x3a8] sm:$0xf] }
 0x284   : > { %4674 = vmatpush.bf16.msra.mxu2 %v9410_v20  ;;  %v9637_v20 = vld [vmem:[#allocation17 + $0x10] sm:$0xf]  ;;  %v10762_v30 = vld [vmem:[#allocation14 + $0x2b4] sm:$0xf0] }
 0x285   : > { %5097 = vmatmul.bf16.vlgmr.msra.gmra.mxu0 %v12609_v19  ;;  %v7770_v19 = vor.u32 %v10720_v18, %v7767_v37  ;;  %4688 = vmatpush.bf16.msra.mxu3 %v9538_v22  ;;  %v9646_v18 = vor.u32 %v11192_v25, %v9645_v1  ;;  %v7738_v37 = vor.u32 %v10712_v61, %v7735_v63  ;;  %v7909_v25 = vld [vmem:[#allocation14 + $0x288] sm:$0xf]  ;;  %v10758_v61 = vld [vmem:[#allocation14 + $0x294] sm:$0xf0] }
 0x286   : > { %5547 = vmatpush.bf16.msrb.mxu0 %v9686_v32  ;;  %v4344_v32 = vpop.f32.mrf.mxu2  ;;  %v8037_v63 = vld [vmem:[#allocation14 + $0x388] sm:$0xf] }
 0x287   : > { %4939 = vmatpush.bf16.msrb.mxu1 %v7770_v19  ;;  %v4345_v22 = vadd.f32 %v4344_v32, %v4331_v41  ;;  %v9638_v32 = vor.u32 %v11190_v0, %v9637_v20  ;;  %v10754_v0 = vld [vmem:[#allocation14 + $0x274] sm:$0xf0] }
 0x288   : > { %4675 = vmatpush.bf16.msra.mxu2 %v9394_v34  ;;  %v10794_v34 = vld [vmem:[#allocation14 + $0x3b4] sm:$0xf0] }
 0x289   : > { %4689 = vmatpush.bf16.msra.mxu3 %v9522_v35  ;;  %v7722_v35 = vor.u32 %v10708_v23, %v7719_v24  ;;  %v4359_v36 = vadd.f32 %v4358_v33, %v4345_v22  ;;  %v8054_v1 = vor.u32 %v10794_v34, %v8053_v31  ;;  %v10790_v33 = vld [vmem:[#allocation14 + $0x394] sm:$0xf0]  ;;  %v7893_v22 = vld [vmem:[#allocation14 + $0x268] sm:$0xf]  ;;  %v8295_v31 = vld [vmem:[#allocation14 + $0x598] sm:$0xf0] }
 0x28a   : > { %5548 = vmatpush.bf16.msrb.mxu0 %v9678_v50  ;;  %v10802_v50 = vld [vmem:[#allocation14 + $0x3f4] sm:$0xf0]  ;;  %v8038_v20 = vor.u32 %v10790_v33, %v8037_v63 }
 0x28b   : > { %v8086_v2 = vor.u32 %v10802_v50, %v8085_v46  ;;  %4940 = vmatpush.bf16.msrb.mxu1 %v7754_v6  ;;  %v9687_v46 = vld [vmem:[#allocation17 + $0x78] sm:$0xf0]  ;;  %v10860_v50 = vld [vmem:[#allocation14 + $0x5cc] sm:$0xf]  ;;  %v7926_v6 = vor.u32 %v10762_v30, %v7925_v29  ;;  %v4373_v41 = vadd.f32 %v12721_v38, %v4359_v36  ;;  %v7877_v36 = vld [vmem:[#allocation14 + $0x248] sm:$0xf] }
 0x28c   : > { %4676 = vmatpush.bf16.msra.mxu2 %v9378_v3  ;;  %v9630_v3 = vor.u32 %v11188_v40, %v9629_v39  ;;  %v9671_v29 = vld [vmem:[#allocation17 + $0x58] sm:$0xf0]  ;;  %v10852_v30 = vld [vmem:[#allocation14 + $0x58c] sm:$0xf]  ;;  %v10750_v39 = vld [vmem:[#allocation14 + $0x254] sm:$0xf0] }
 0x28d   : > { %4690 = vmatpush.bf16.msra.mxu3 %v9506_v4  ;;  %v4385_v4 = vadd.f32 %v12738_v48, %v12728_v28  ;;  %v10786_v28 = vld [vmem:[#allocation14 + $0x374] sm:$0xf0]  ;;  %v4387_v38 = vadd.f32 %v4386_v47, %v4373_v41  ;;  %v11195_v47 = vld [vmem:[#allocation17 + $0x44] sm:$0xf] }
 0x28e   : > { %5549 = vmatpush.bf16.msrb.mxu0 %v9670_v10  ;;  %v7941_v10 = vld [vmem:[#allocation14 + $0x2c8] sm:$0xf]  ;;  %v4398_v26 = vpop.f32.mrf.mxu2  ;;  %v10782_v40 = vld [vmem:[#allocation14 + $0x354] sm:$0xf0] }
 0x28f   : > { %v7942_v19 = vor.u32 %v10766_v12, %v7941_v10  ;;  %4941 = vmatpush.bf16.msrb.mxu1 %v7738_v37  ;;  %4677 = vmatmul.bf16.vlgmr.msra.gmra.mxu2 %v12678_v56  ;;  %v11199_v10 = vld [vmem:[#allocation17 + $0x64] sm:$0xf]  ;;  %v9679_v12 = vld [vmem:[#allocation17 + $0x68] sm:$0xf0]  ;;  %v7910_v37 = vor.u32 %v10758_v61, %v7909_v25  ;;  %v10746_v63 = vld [vmem:[#allocation14 + $0x234] sm:$0xf0] }
 0x290   : > { %4725 = vmatpush.bf16.msrb.mxu2 %v7958_v5  ;;  %4691 = vmatmul.bf16.vlgmr.msra.gmra.mxu3 %v12680_v57  ;;  %v9690_v5 = vor.u32 %v11201_v45, %v9687_v46  ;;  %v9682_v48 = vor.u32 %v11199_v10, %v9679_v12  ;;  %v8298_v45 = vor.u32 %v10852_v30, %v8295_v31  ;;  %v7861_v61 = vld [vmem:[#allocation14 + $0x228] sm:$0xf]  ;;  %v10778_v41 = vld [vmem:[#allocation14 + $0x334] sm:$0xf0] }
 0x291   : > { %4739 = vmatpush.bf16.msrb.mxu3 %v8086_v2  ;;  %v7878_v46 = vor.u32 %v10750_v39, %v7877_v36  ;;  %v11193_v10 = vld [vmem:[#allocation17 + $0x34] sm:$0xf]  ;;  %v7862_v12 = vor.u32 %v10746_v63, %v7861_v61  ;;  %v11191_v31 = vld [vmem:[#allocation17 + $0x24] sm:$0xf]  ;;  %v10836_v61 = vld [vmem:[#allocation14 + $0x50c] sm:$0xf] }
 0x292   : > { %5550 = vmatpush.bf16.msrb.mxu0 %v9662_v21  ;;  %v12741_v21 = vpop.f32.mrf.mxu3  ;;  %v8231_v63 = vld [vmem:[#allocation14 + $0x518] sm:$0xf0] }
 0x293   : > { %4942 = vmatpush.bf16.msrb.mxu1 %v7722_v35  ;;  %v8022_v35 = vor.u32 %v10786_v28, %v8021_v49  ;;  %v10774_v49 = vld [vmem:[#allocation14 + $0x314] sm:$0xf0] }
 0x294   : > { %4726 = vmatpush.bf16.msrb.mxu2 %v7942_v19  ;;  %v11197_v19 = vld [vmem:[#allocation17 + $0x54] sm:$0xf] }
 0x295   : > { %4740 = vmatpush.bf16.msrb.mxu3 %v8070_v27  ;;  %v7894_v27 = vor.u32 %v10754_v0, %v7893_v22 }
 0x296   : > { %5551 = vmatpush.bf16.msrb.mxu0 %v9654_v60  ;;  %v8327_v60 = vld [vmem:[#allocation14 + $0x5d8] sm:$0xf0]  ;;  %v4400_v23 = vpop.f32.mrf.mxu2  ;;  %4943 = vmatmul.bf16.vlgmr.msrb.gmra.mxu1 %v12615_v15  ;;  %v8005_v15 = vld [vmem:[#allocation14 + $0x348] sm:$0xf] }
 0x297   : > { %4991 = vmatpush.bf16.msra.mxu1 %v8346_v42  ;;  %v8330_v2 = vor.u32 %v10860_v50, %v8327_v60  ;;  %v9674_v42 = vor.u32 %v11197_v19, %v9671_v29  ;;  %v9663_v50 = vld [vmem:[#allocation17 + $0x48] sm:$0xf0]  ;;  %v10848_v60 = vld [vmem:[#allocation14 + $0x56c] sm:$0xf]  ;;  %v8006_v25 = vor.u32 %v10782_v40, %v8005_v15  ;;  %v9658_v29 = vor.u32 %v11193_v10, %v9655_v14  ;;  %v8437_v10 = vld [vmem:[#allocation14 + $0x6a8] sm:$0xf] }
 0x298   : > { %4727 = vmatpush.bf16.msrb.mxu2 %v7926_v6  ;;  %v8279_v6 = vld [vmem:[#allocation14 + $0x578] sm:$0xf0] }
 0x299   : > { %4741 = vmatpush.bf16.msrb.mxu3 %v8054_v1 }
 0x29a   : > { %5552 = vmatpush.bf16.msrb.mxu0 %v9646_v18  ;;  %v4399_v18 = vadd.f32 %v4398_v26, %v4385_v4  ;;  %v4414_v24 = vpop.f32.mrf.mxu3  ;;  %v4440_v26 = vpop.f32.mrf.mxu1  ;;  %v7989_v4 = vld [vmem:[#allocation14 + $0x328] sm:$0xf] }
 0x29b   : > { %4992 = vmatpush.bf16.msra.mxu1 %v8330_v2  ;;  %v8282_v2 = vor.u32 %v10848_v60, %v8279_v6  ;;  %v7990_v0 = vor.u32 %v10778_v41, %v7989_v4  ;;  %v10894_v60 = vld [vmem:[#allocation14 + $0x6d4] sm:$0xf0]  ;;  %v8581_v6 = vld [vmem:[#allocation14 + $0x7c8] sm:$0xf]  ;;  %v9639_v4 = vld [vmem:[#allocation17 + $0x18] sm:$0xf0] }
 0x29c   : > { %v4413_v34 = vadd.f32 %v12741_v21, %v4399_v18  ;;  %4728 = vmatpush.bf16.msrb.mxu2 %v7910_v37  ;;  %v10844_v18 = vld [vmem:[#allocation14 + $0x54c] sm:$0xf]  ;;  %v12751_v37 = vpop.f32.mrf.mxu0 }
 0x29d   : > { %4742 = vmatpush.bf16.msrb.mxu3 %v8038_v20  ;;  %v10992_v41 = vld [vmem:[#allocation14 + $0x9ec] sm:$0xf] }
 0x29e   : > { %5553 = vmatpush.bf16.msrb.mxu0 %v9638_v32  ;;  %v4401_v32 = vadd.f32 %v4400_v23, %v4387_v38  ;;  %v4427_v1 = vadd.f32 %v12732_v16, %v4413_v34  ;;  %v4454_v33 = vpop.f32.mrf.mxu2  ;;  %v8263_v16 = vld [vmem:[#allocation14 + $0x558] sm:$0xf0]  ;;  %v10742_v23 = vld [vmem:[#allocation14 + $0x214] sm:$0xf0]  ;;  %v8469_v38 = vld [vmem:[#allocation14 + $0x6e8] sm:$0xf] }
 0x29f   : > { %4993 = vmatpush.bf16.msra.mxu1 %v8314_v62  ;;  %v8597_v62 = vld [vmem:[#allocation14 + $0x7e8] sm:$0xf]  ;;  %v8266_v30 = vor.u32 %v10844_v18, %v8263_v16  ;;  %v10840_v34 = vld [vmem:[#allocation14 + $0x52c] sm:$0xf] }
 0x2a0   : > { %v4415_v21 = vadd.f32 %v4414_v24, %v4401_v32  ;;  %4729 = vmatpush.bf16.msrb.mxu2 %v7894_v27  ;;  %v4441_v20 = vadd.f32 %v4440_v26, %v4427_v1  ;;  %v7973_v24 = vld [vmem:[#allocation14 + $0x308] sm:$0xf]  ;;  %v10930_v27 = vld [vmem:[#allocation14 + $0x7f4] sm:$0xf0]  ;;  %v9647_v26 = vld [vmem:[#allocation17 + $0x28] sm:$0xf0] }
 0x2a1   : > { %4743 = vmatpush.bf16.msrb.mxu3 %v8022_v35  ;;  %v7846_v35 = vor.u32 %v10742_v23, %v7845_v13  ;;  %v7974_v36 = vor.u32 %v10774_v49, %v7973_v24  ;;  %v10926_v1 = vld [vmem:[#allocation14 + $0x7d4] sm:$0xf0]  ;;  %v8565_v16 = vld [vmem:[#allocation14 + $0x7a8] sm:$0xf] }
 0x2a2   : > { %5554 = vmatpush.bf16.msrb.mxu0 %v9630_v3  ;;  %v4468_v3 = vpop.f32.mrf.mxu3  ;;  %v4429_v22 = vadd.f32 %v12735_v9, %v4415_v21  ;;  %v4442_v28 = vpop.f32.mrf.mxu1  ;;  %v4455_v19 = vadd.f32 %v4454_v33, %v4441_v20  ;;  %v8247_v9 = vld [vmem:[#allocation14 + $0x538] sm:$0xf0]  ;;  %v10922_v20 = vld [vmem:[#allocation14 + $0x7b4] sm:$0xf0]  ;;  %v11187_v23 = vld [vmem:[#allocation17 + $0x4] sm:$0xf] }
 0x2a3   : > { %4994 = vmatpush.bf16.msra.mxu1 %v8298_v45  ;;  %v8453_v45 = vld [vmem:[#allocation14 + $0x6c8] sm:$0xf]  ;;  %v8250_v21 = vor.u32 %v10840_v34, %v8247_v9  ;;  %v10984_v9 = vld [vmem:[#allocation14 + $0x9ac] sm:$0xf] }
 0x2a4   : > { %4730 = vmatpush.bf16.msrb.mxu2 %v7878_v46  ;;  %v4443_v32 = vadd.f32 %v4442_v28, %v4429_v22  ;;  %v4469_v46 = vadd.f32 %v4468_v3, %v4455_v19  ;;  %v8582_v3 = vor.u32 %v10926_v1, %v8581_v6  ;;  %v12754_v13 = vpop.f32.mrf.mxu0  ;;  %v8234_v22 = vor.u32 %v10836_v61, %v8231_v63  ;;  %v9631_v28 = vld [vmem:[#allocation17 + $0x8] sm:$0xf0]  ;;  %v8389_v1 = vld [vmem:[#allocation14 + $0x648] sm:$0xf]  ;;  %v10910_v61 = vld [vmem:[#allocation14 + $0x754] sm:$0xf0] }
 0x2a5   : > { %4744 = vmatpush.bf16.msrb.mxu3 %v8006_v25  ;;  %v11189_v25 = vld [vmem:[#allocation17 + $0x14] sm:$0xf]  ;;  %v8566_v19 = vor.u32 %v10922_v20, %v8565_v16 }
 0x2a6   : > { %5603 = vmatpush.bf16.msra.mxu0 %v9690_v5  ;;  %v9666_v5 = vor.u32 %v11195_v47, %v9663_v50  ;;  %v4456_v39 = vpop.f32.mrf.mxu2  ;;  %v9650_v47 = vor.u32 %v11191_v31, %v9647_v26  ;;  %v5145_v14 = vmax.f32 %v4469_v46, 0.0  ;;  %v10918_v31 = vld [vmem:[#allocation14 + $0x794] sm:$0xf0]  ;;  %v9634_v26 = vor.u32 %v11187_v23, %v9631_v28  ;;  %v10980_v46 = vld [vmem:[#allocation14 + $0x98c] sm:$0xf] }
 0x2a7   : > { %4995 = vmatpush.bf16.msra.mxu1 %v8282_v2  ;;  %v4457_v50 = vadd.f32 %v4456_v39, %v4443_v32  ;;  %v8454_v2 = vor.u32 %v10894_v60, %v8453_v45  ;;  %v8823_v32 = vld [vmem:[#allocation14 + $0x9b8] sm:$0xf0]  ;;  %v8405_v39 = vld [vmem:[#allocation14 + $0x668] sm:$0xf]  ;;  %v10902_v28 = vld [vmem:[#allocation14 + $0x714] sm:$0xf0] }
 0x2a8   : > { %4731 = vmatpush.bf16.msrb.mxu2 %v7862_v12  ;;  %v10890_v12 = vld [vmem:[#allocation14 + $0x6b4] sm:$0xf0]  ;;  %v8826_v45 = vor.u32 %v10984_v9, %v8823_v32  ;;  %v8965_v32 = vld [vmem:[#allocation14 + $0xac8] sm:$0xf] }
 0x2a9   : > { %4745 = vmatpush.bf16.msrb.mxu3 %v7990_v0  ;;  %v9642_v0 = vor.u32 %v11189_v25, %v9639_v4  ;;  %v8517_v25 = vld [vmem:[#allocation14 + $0x748] sm:$0xf]  ;;  %v8791_v4 = vld [vmem:[#allocation14 + $0x978] sm:$0xf0] }
 0x2aa   : > { %5604 = vmatpush.bf16.msra.mxu0 %v9682_v48  ;;  %v10898_v48 = vld [vmem:[#allocation14 + $0x6f4] sm:$0xf0]  ;;  %v4470_v15 = vpop.f32.mrf.mxu3 }
 0x2ab   : > { %v8470_v40 = vor.u32 %v10898_v48, %v8469_v38  ;;  %4996 = vmatpush.bf16.msra.mxu1 %v8266_v30  ;;  %v4471_v33 = vadd.f32 %v4470_v15, %v4457_v50  ;;  %v10988_v38 = vld [vmem:[#allocation14 + $0x9cc] sm:$0xf]  ;;  %v8839_v48 = vld [vmem:[#allocation14 + $0x9d8] sm:$0xf0]  ;;  %v8549_v30 = vld [vmem:[#allocation14 + $0x788] sm:$0xf] }
 0x2ac   : > { %4732 = vmatpush.bf16.msrb.mxu2 %v7846_v35  ;;  %v8842_v34 = vor.u32 %v10988_v38, %v8839_v48  ;;  %v10882_v15 = vld [vmem:[#allocation14 + $0x674] sm:$0xf0]  ;;  %v8807_v50 = vld [vmem:[#allocation14 + $0x998] sm:$0xf0]  ;;  %v8981_v38 = vld [vmem:[#allocation14 + $0xae8] sm:$0xf] }
 0x2ad   : > { %4746 = vmatpush.bf16.msrb.mxu3 %v7974_v36  ;;  %v5149_v18 = vmax.f32 %v4471_v33, 0.0  ;;  %v8550_v36 = vor.u32 %v10918_v31, %v8549_v30  ;;  %v8406_v60 = vor.u32 %v10882_v15, %v8405_v39  ;;  %v8810_v63 = vor.u32 %v10980_v46, %v8807_v50  ;;  %v10976_v33 = vld [vmem:[#allocation14 + $0x96c] sm:$0xf]  ;;  %v11026_v48 = vld [vmem:[#allocation14 + $0xaf4] sm:$0xf0] }
 0x2ae   : > { %5605 = vmatpush.bf16.msra.mxu0 %v9674_v42  ;;  %v8598_v42 = vor.u32 %v10930_v27, %v8597_v62  ;;  %v8438_v62 = vor.u32 %v10890_v12, %v8437_v10  ;;  %v8421_v27 = vld [vmem:[#allocation14 + $0x688] sm:$0xf]  ;;  %v10906_v10 = vld [vmem:[#allocation14 + $0x734] sm:$0xf0]  ;;  %v8794_v12 = vor.u32 %v10976_v33, %v8791_v4  ;;  %v8759_v30 = vld [vmem:[#allocation14 + $0x938] sm:$0xf0] }
 0x2af   : > { %4997 = vmatpush.bf16.msra.mxu1 %v8250_v21  ;;  %4733 = vmatmul.bf16.vlgmr.msrb.gmra.mxu2 %v12643_v51  ;;  %v12758_v49 = vpack.c.bf16 %v5149_v18, %v5145_v14  ;;  %v10878_v21 = vld [vmem:[#allocation14 + $0x654] sm:$0xf0]  ;;  %v10972_v14 = vld [vmem:[#allocation14 + $0x94c] sm:$0xf]  ;;  %v8775_v18 = vld [vmem:[#allocation14 + $0x958] sm:$0xf0] }
 0x2b0   : > { %4781 = vmatpush.bf16.msra.mxu2 %v8470_v40  ;;  %4747 = vmatmul.bf16.vlgmr.msrb.gmra.mxu3 %v12645_v52  ;;  %v8533_v40 = vld [vmem:[#allocation14 + $0x768] sm:$0xf]  ;;  %v10964_v15 = vld [vmem:[#allocation14 + $0x90c] sm:$0xf]  ;;  %v9351_v33 = vld [vmem:[#allocation14 + $0xdd8] sm:$0xf0] }
 0x2b1   : > { %4795 = vmatpush.bf16.msra.mxu3 %v8598_v42  ;;  %5555 = vmatmul.bf16.vlgmr.msrb.gmra.mxu0 %v12758_v49  ;;  %v10914_v42 = vld [vmem:[#allocation14 + $0x774] sm:$0xf0] }
 0x2b2   : > { %5606 = vmatpush.bf16.msra.mxu0 %v9666_v5  ;;  %v8855_v5 = vld [vmem:[#allocation14 + $0x9f8] sm:$0xf0]  ;;  %v8534_v6 = vor.u32 %v10914_v42, %v8533_v40  ;;  %v11120_v42 = vld [vmem:[#allocation14 + $0xdec] sm:$0xf] }
 0x2b3   : > { %v8858_v24 = vor.u32 %v10992_v41, %v8855_v5  ;;  %4998 = vmatpush.bf16.msra.mxu1 %v8234_v22  ;;  %v8518_v41 = vor.u32 %v10910_v61, %v8517_v25  ;;  %v8373_v5 = vld [vmem:[#allocation14 + $0x628] sm:$0xf]  ;;  %v8743_v40 = vld [vmem:[#allocation14 + $0x918] sm:$0xf0] }
 0x2b4   : > { %4782 = vmatpush.bf16.msra.mxu2 %v8454_v2  ;;  %v10874_v2 = vld [vmem:[#allocation14 + $0x634] sm:$0xf0]  ;;  %v8357_v22 = vld [vmem:[#allocation14 + $0x608] sm:$0xf]  ;;  %v8746_v25 = vor.u32 %v10964_v15, %v8743_v40 }
 0x2b5   : > { %4796 = vmatpush.bf16.msra.mxu3 %v8582_v3  ;;  %v8501_v3 = vld [vmem:[#allocation14 + $0x728] sm:$0xf]  ;;  %v8374_v16 = vor.u32 %v10874_v2, %v8373_v5  ;;  %v11014_v5 = vld [vmem:[#allocation14 + $0xa94] sm:$0xf0] }
 0x2b6   : > { %5607 = vmatpush.bf16.msra.mxu0 %v9658_v29  ;;  %v10886_v29 = vld [vmem:[#allocation14 + $0x694] sm:$0xf0]  ;;  %4999 = vmatmul.bf16.vlgmr.msra.gmra.mxu1 %v12620_v54  ;;  %v8390_v54 = vor.u32 %v10878_v21, %v8389_v1  ;;  %v8502_v20 = vor.u32 %v10906_v10, %v8501_v3  ;;  %v9077_v1 = vld [vmem:[#allocation14 + $0xba8] sm:$0xf] }
 0x2b7   : > { %5047 = vmatpush.bf16.msrb.mxu1 %v8858_v24  ;;  %v8422_v35 = vor.u32 %v10886_v29, %v8421_v27  ;;  %v8485_v24 = vld [vmem:[#allocation14 + $0x708] sm:$0xf]  ;;  %v8778_v27 = vor.u32 %v10972_v14, %v8775_v18  ;;  %v10968_v29 = vld [vmem:[#allocation14 + $0x92c] sm:$0xf]  ;;  %v11050_v21 = vld [vmem:[#allocation14 + $0xbb4] sm:$0xf0] }
 0x2b8   : > { %4783 = vmatpush.bf16.msra.mxu2 %v8438_v62  ;;  %v9109_v62 = vld [vmem:[#allocation14 + $0xbe8] sm:$0xf]  ;;  %v8762_v39 = vor.u32 %v10968_v29, %v8759_v30  ;;  %v11046_v3 = vld [vmem:[#allocation14 + $0xb94] sm:$0xf0]  ;;  %v9335_v14 = vld [vmem:[#allocation14 + $0xdb8] sm:$0xf0] }
 0x2b9   : > { %4797 = vmatpush.bf16.msra.mxu3 %v8566_v19  ;;  %v11058_v19 = vld [vmem:[#allocation14 + $0xbf4] sm:$0xf0]  ;;  %v9061_v2 = vld [vmem:[#allocation14 + $0xb88] sm:$0xf] }
 0x2ba   : > { %5608 = vmatpush.bf16.msra.mxu0 %v9650_v47  ;;  %v12762_v47 = vpop.f32.mrf.mxu0  ;;  %v9110_v9 = vor.u32 %v11058_v19, %v9109_v62  ;;  %v9319_v62 = vld [vmem:[#allocation14 + $0xd98] sm:$0xf0]  ;;  %v8901_v29 = vld [vmem:[#allocation14 + $0xa48] sm:$0xf]  ;;  %v11006_v30 = vld [vmem:[#allocation14 + $0xa54] sm:$0xf0] }
 0x2bb   : > { %5048 = vmatpush.bf16.msrb.mxu1 %v8842_v34  ;;  %v8982_v34 = vor.u32 %v11026_v48, %v8981_v38  ;;  %v12770_v38 = vpop.f32.mrf.mxu1  ;;  %v11108_v48 = vld [vmem:[#allocation14 + $0xd8c] sm:$0xf]  ;;  %v11034_v15 = vld [vmem:[#allocation14 + $0xb34] sm:$0xf0] }
 0x2bc   : > { %4784 = vmatpush.bf16.msra.mxu2 %v8422_v35  ;;  %v11022_v35 = vld [vmem:[#allocation14 + $0xad4] sm:$0xf0] }
 0x2bd   : > { %4798 = vmatpush.bf16.msra.mxu3 %v8550_v36  ;;  %v9093_v36 = vld [vmem:[#allocation14 + $0xbc8] sm:$0xf]  ;;  %v8966_v46 = vor.u32 %v11022_v35, %v8965_v32  ;;  %v9303_v32 = vld [vmem:[#allocation14 + $0xd78] sm:$0xf0] }
 0x2be   : > { %5609 = vmatpush.bf16.msra.mxu0 %v9642_v0  ;;  %v10870_v0 = vld [vmem:[#allocation14 + $0x614] sm:$0xf0] }
 0x2bf   : > { %5049 = vmatpush.bf16.msrb.mxu1 %v8826_v45  ;;  %v8358_v31 = vor.u32 %v10870_v0, %v8357_v22  ;;  %v9367_v45 = vld [vmem:[#allocation14 + $0xdf8] sm:$0xf0]  ;;  %v11010_v22 = vld [vmem:[#allocation14 + $0xa74] sm:$0xf0]  ;;  %v9045_v0 = vld [vmem:[#allocation14 + $0xb68] sm:$0xf] }
 0x2c0   : > { %4785 = vmatpush.bf16.msra.mxu2 %v8406_v60  ;;  %v8949_v60 = vld [vmem:[#allocation14 + $0xaa8] sm:$0xf]  ;;  %v9370_v61 = vor.u32 %v11120_v42, %v9367_v45  ;;  %v12772_v42 = vpop.f32.mrf.mxu2  ;;  %v12774_v45 = vpop.f32.mrf.mxu3 }
 0x2c1   : > { %4799 = vmatpush.bf16.msra.mxu3 %v8534_v6  ;;  %v11018_v6 = vld [vmem:[#allocation14 + $0xab4] sm:$0xf0] }
 0x2c2   : > { %5610 = vmatpush.bf16.msra.mxu0 %v9634_v26  ;;  %v12764_v23 = vpop.f32.mrf.mxu0  ;;  %v8486_v26 = vor.u32 %v10902_v28, %v8485_v24  ;;  %v8950_v4 = vor.u32 %v11018_v6, %v8949_v60  ;;  %v11042_v24 = vld [vmem:[#allocation14 + $0xb74] sm:$0xf0] }
 0x2c3   : > { %5050 = vmatpush.bf16.msrb.mxu1 %v8810_v63  ;;  %v11116_v63 = vld [vmem:[#allocation14 + $0xdcc] sm:$0xf] }
 0x2c4   : > { %4786 = vmatpush.bf16.msra.mxu2 %v8390_v54  ;;  %v9078_v54 = vor.u32 %v11050_v21, %v9077_v1  ;;  %v9354_v10 = vor.u32 %v11116_v63, %v9351_v33  ;;  %v8869_v1 = vld [vmem:[#allocation14 + $0xa08] sm:$0xf]  ;;  %v10998_v21 = vld [vmem:[#allocation14 + $0xa14] sm:$0xf0] }
 0x2c5   : > { %4800 = vmatpush.bf16.msra.mxu3 %v8518_v41  ;;  %5611 = vmatmul.bf16.vlgmr.msra.gmra.mxu0 %v12758_v49  ;;  %v11054_v49 = vld [vmem:[#allocation14 + $0xbd4] sm:$0xf0]  ;;  %v8933_v41 = vld [vmem:[#allocation14 + $0xa88] sm:$0xf] }
 0x2c6   : > { %v9094_v50 = vor.u32 %v11054_v49, %v9093_v36  ;;  %v8934_v18 = vor.u32 %v11014_v5, %v8933_v41  ;;  %v8885_v36 = vld [vmem:[#allocation14 + $0xa28] sm:$0xf]  ;;  %v11002_v49 = vld [vmem:[#allocation14 + $0xa34] sm:$0xf0] }
 0x2c7   : > { %5051 = vmatpush.bf16.msrb.mxu1 %v8794_v12  ;;  %v11112_v12 = vld [vmem:[#allocation14 + $0xdac] sm:$0xf]  ;;  %v8886_v60 = vor.u32 %v11002_v49, %v8885_v36  ;;  %v11030_v63 = vld [vmem:[#allocation14 + $0xb14] sm:$0xf0]  ;;  %v9493_v33 = vld [vmem:[#allocation14 + $0xee8] sm:$0xf] }
 0x2c8   : > { %4787 = vmatpush.bf16.msra.mxu2 %v8374_v16  ;;  %v9062_v16 = vor.u32 %v11046_v3, %v9061_v2  ;;  %v9338_v28 = vor.u32 %v11112_v12, %v9335_v14  ;;  %v11186_v41 = vld [vmem:[#allocation14 + $0xff4] sm:$0xf0]  ;;  %v11096_v2 = vld [vmem:[#allocation14 + $0xd2c] sm:$0xf]  ;;  %v9271_v3 = vld [vmem:[#allocation14 + $0xd38] sm:$0xf0]  ;;  %v8870_v14 = vor.u32 %v10998_v21, %v8869_v1 }
 0x2c9   : > { %4801 = vmatpush.bf16.msra.mxu3 %v8502_v20  ;;  %v8917_v20 = vld [vmem:[#allocation14 + $0xa68] sm:$0xf]  ;;  %v11178_v36 = vld [vmem:[#allocation14 + $0xfb4] sm:$0xf0] }
 0x2ca   : > { %v8918_v19 = vor.u32 %v11010_v22, %v8917_v20  ;;  %v9477_v22 = vld [vmem:[#allocation14 + $0xec8] sm:$0xf]  ;;  %v11142_v21 = vld [vmem:[#allocation14 + $0xe94] sm:$0xf0] }
 0x2cb   : > { %5052 = vmatpush.bf16.msrb.mxu1 %v8778_v27  ;;  %v9046_v27 = vor.u32 %v11042_v24, %v9045_v0  ;;  %v11150_v0 = vld [vmem:[#allocation14 + $0xed4] sm:$0xf0]  ;;  %v9605_v24 = vld [vmem:[#allocation14 + $0xfc8] sm:$0xf] }
 0x2cc   : > { %4788 = vmatpush.bf16.msra.mxu2 %v8358_v31  ;;  %v9029_v31 = vld [vmem:[#allocation14 + $0xb48] sm:$0xf] }
 0x2cd   : > { %4802 = vmatpush.bf16.msra.mxu3 %v8486_v26  ;;  %v11038_v26 = vld [vmem:[#allocation14 + $0xb54] sm:$0xf0] }
 0x2ce   : > { %v9030_v35 = vor.u32 %v11038_v26, %v9029_v31  ;;  %v4512_v31 = vpop.f32.mrf.mxu2  ;;  %v12782_v26 = vpop.f32.mrf.mxu3 }
 0x2cf   : > { %5053 = vmatpush.bf16.msrb.mxu1 %v8762_v39  ;;  %4789 = vmatmul.bf16.vlgmr.msra.gmra.mxu2 %v12654_v58  ;;  %v9013_v39 = vld [vmem:[#allocation14 + $0xb28] sm:$0xf] }
 0x2d0   : > { %4837 = vmatpush.bf16.msrb.mxu2 %v8982_v34  ;;  %4803 = vmatmul.bf16.vlgmr.msra.gmra.mxu3 %v12656_v59  ;;  %v9322_v34 = vor.u32 %v11108_v48, %v9319_v62  ;;  %v9014_v6 = vor.u32 %v11034_v15, %v9013_v39  ;;  %v9274_v48 = vor.u32 %v11096_v2, %v9271_v3  ;;  %v11092_v62 = vld [vmem:[#allocation14 + $0xd0c] sm:$0xf]  ;;  %v9429_v2 = vld [vmem:[#allocation14 + $0xe68] sm:$0xf] }
 0x2d1   : > { %4851 = vmatpush.bf16.msrb.mxu3 %v9110_v9  ;;  %v11104_v9 = vld [vmem:[#allocation14 + $0xd6c] sm:$0xf] }
 0x2d2   : > { %v9306_v40 = vor.u32 %v11104_v9, %v9303_v32  ;;  %v9461_v32 = vld [vmem:[#allocation14 + $0xea8] sm:$0xf] }
 0x2d3   : > { %5054 = vmatpush.bf16.msrb.mxu1 %v8746_v25  ;;  %v12776_v25 = vpop.f32.mrf.mxu1 }
 0x2d4   : > { %4838 = vmatpush.bf16.msrb.mxu2 %v8966_v46  ;;  %v11100_v46 = vld [vmem:[#allocation14 + $0xd4c] sm:$0xf] }
 0x2d5   : > { %4852 = vmatpush.bf16.msrb.mxu3 %v9094_v50  ;;  %v9287_v50 = vld [vmem:[#allocation14 + $0xd58] sm:$0xf0] }
 0x2d6   : > { %5055 = vmatmul.bf16.vlgmr.msrb.gmra.mxu1 %v12626_v17  ;;  %v8902_v17 = vor.u32 %v11006_v30, %v8901_v29  ;;  %v9290_v5 = vor.u32 %v11100_v46, %v9287_v50  ;;  %v9749_v29 = vld [vmem:[#allocation17 + $0xf0] sm:$0xf]  ;;  %v11218_v30 = vld [vmem:[#allocation17 + $0xf4] sm:$0xf0]  ;;  %v11216_v46 = vld [vmem:[#allocation17 + $0xe4] sm:$0xf0] }
 0x2d7   : > { %5103 = vmatpush.bf16.msra.mxu1 %v9370_v61  ;;  %v8997_v61 = vld [vmem:[#allocation14 + $0xb08] sm:$0xf] }
 0x2d8   : > { %4839 = vmatpush.bf16.msrb.mxu2 %v8950_v4  ;;  %v11154_v4 = vld [vmem:[#allocation14 + $0xef4] sm:$0xf0] }
 0x2d9   : > { %4853 = vmatpush.bf16.msrb.mxu3 %v9078_v54  ;;  %v9621_v54 = vld [vmem:[#allocation14 + $0xfe8] sm:$0xf] }
 0x2da   : > { %v9622_v20 = vor.u32 %v11186_v41, %v9621_v54  ;;  %v9733_v54 = vld [vmem:[#allocation17 + $0xd0] sm:$0xf]  ;;  %v11214_v41 = vld [vmem:[#allocation17 + $0xd4] sm:$0xf0] }
 0x2db   : > { %5104 = vmatpush.bf16.msra.mxu1 %v9354_v10  ;;  %v12778_v10 = vld [vmem:[#allocation16] sm:$0xf]  ;;  %v12784_v39 = vpop.f32.mrf.mxu1 }
 0x2dc   : > { %4840 = vmatpush.bf16.msrb.mxu2 %v8934_v18  ;;  %v1682_v12 = vperm.slane %v12778_v10, 1  ;;  %v8998_v18 = vor.u32 %v11030_v63, %v8997_v61  ;;  %v9573_v61 = vld [vmem:[#allocation14 + $0xf88] sm:$0xf]  ;;  %v11174_v63 = vld [vmem:[#allocation14 + $0xf94] sm:$0xf0] }
 0x2dd   : > { %4854 = vmatpush.bf16.msrb.mxu3 %v9062_v16  ;;  %v9494_v16 = vor.u32 %v11154_v4, %v9493_v33 }
 0x2de   : > { %v4485_v1 = vadd.f32 %v12754_v13, %v1682_v12  ;;  %v11170_v13 = vld [vmem:[#allocation14 + $0xf74] sm:$0xf0] }
 0x2df   : > { %5105 = vmatpush.bf16.msra.mxu1 %v9338_v28  ;;  %v11182_v28 = vld [vmem:[#allocation14 + $0xfd4] sm:$0xf0] }
 0x2e0   : > { %4841 = vmatpush.bf16.msrb.mxu2 %v8918_v19  ;;  %v9255_v19 = vld [vmem:[#allocation14 + $0xd18] sm:$0xf0]  ;;  %v9606_v9 = vor.u32 %v11182_v28, %v9605_v24  ;;  %v4499_v3 = vadd.f32 %v12776_v25, %v4485_v1  ;;  %v9413_v25 = vld [vmem:[#allocation14 + $0xe48] sm:$0xf] }
 0x2e1   : > { %4855 = vmatpush.bf16.msrb.mxu3 %v9046_v27  ;;  %v4483_v27 = vadd.f32 %v12751_v37, %v1682_v12  ;;  %v9258_v49 = vor.u32 %v11092_v62, %v9255_v19  ;;  %v9750_v37 = vor.u32 %v11218_v30, %v9749_v29  ;;  %v4566_v12 = vpop.f32.mrf.mxu2  ;;  %v11134_v19 = vld [vmem:[#allocation14 + $0xe54] sm:$0xf0] }
 0x2e2   : > { %v4513_v62 = vadd.f32 %v4512_v31, %v4499_v3  ;;  %v11166_v29 = vld [vmem:[#allocation14 + $0xf54] sm:$0xf0]  ;;  %v9525_v31 = vld [vmem:[#allocation14 + $0xf28] sm:$0xf]  ;;  %v9701_v3 = vld [vmem:[#allocation17 + $0x90] sm:$0xf] }
 0x2e3   : > { %5106 = vmatpush.bf16.msra.mxu1 %v9322_v34  ;;  %v9478_v34 = vor.u32 %v11150_v0, %v9477_v22  ;;  %v4497_v15 = vadd.f32 %v12770_v38, %v4483_v27  ;;  %v9725_v22 = vld [vmem:[#allocation17 + $0xc0] sm:$0xf]  ;;  %v11212_v0 = vld [vmem:[#allocation17 + $0xc4] sm:$0xf0]  ;;  %v4554_v24 = vpop.f32.mrf.mxu1  ;;  %v9541_v27 = vld [vmem:[#allocation14 + $0xf48] sm:$0xf] }
 0x2e4   : > { %4842 = vmatpush.bf16.msrb.mxu2 %v8902_v17  ;;  %v11146_v17 = vld [vmem:[#allocation14 + $0xeb4] sm:$0xf0] }
 0x2e5   : > { %4856 = vmatpush.bf16.msrb.mxu3 %v9030_v35  ;;  %v9589_v35 = vld [vmem:[#allocation14 + $0xfa8] sm:$0xf]  ;;  %v9462_v50 = vor.u32 %v11146_v17, %v9461_v32  ;;  %v4511_v4 = vadd.f32 %v12772_v42, %v4497_v15  ;;  %v9542_v32 = vor.u32 %v11166_v29, %v9541_v27  ;;  %v11204_v29 = vld [vmem:[#allocation17 + $0x84] sm:$0xf0] }
 0x2e6   : > { %v9397_v17 = vld [vmem:[#allocation14 + $0xe28] sm:$0xf] }
 0x2e7   : > { %5107 = vmatpush.bf16.msra.mxu1 %v9306_v40  ;;  %v9741_v40 = vld [vmem:[#allocation17 + $0xe0] sm:$0xf]  ;;  %v4525_v42 = vadd.f32 %v12774_v45, %v4511_v4  ;;  %v9414_v45 = vor.u32 %v11134_v19, %v9413_v25  ;;  %v10768_v4 = vld [vmem:[#allocation14 + $0x2ec] sm:$0xf] }
 0x2e8   : > { %4843 = vmatpush.bf16.msrb.mxu2 %v8886_v60  ;;  %v9590_v60 = vor.u32 %v11178_v36, %v9589_v35  ;;  %v9742_v33 = vor.u32 %v11216_v46, %v9741_v40  ;;  %v12797_v35 = vpop.f32.mrf.mxu0  ;;  %v4527_v36 = vadd.f32 %v12782_v26, %v4513_v62  ;;  %v9709_v46 = vld [vmem:[#allocation17 + $0xa0] sm:$0xf]  ;;  %v9509_v26 = vld [vmem:[#allocation14 + $0xf08] sm:$0xf] }
 0x2e9   : > { %4857 = vmatpush.bf16.msrb.mxu3 %v9014_v6  ;;  %v9445_v6 = vld [vmem:[#allocation14 + $0xe88] sm:$0xf]  ;;  %v4539_v30 = vadd.f32 %v12762_v47, %v4525_v42  ;;  %v11208_v47 = vld [vmem:[#allocation17 + $0xa4] sm:$0xf0] }
 0x2ea   : > { %v9446_v38 = vor.u32 %v11142_v21, %v9445_v6  ;;  %v9381_v21 = vld [vmem:[#allocation14 + $0xe08] sm:$0xf] }
 0x2eb   : > { %5108 = vmatpush.bf16.msra.mxu1 %v9290_v5  ;;  %v9574_v5 = vor.u32 %v11174_v63, %v9573_v61  ;;  %v4553_v40 = vadd.f32 %v12784_v39, %v4539_v30  ;;  %v11126_v61 = vld [vmem:[#allocation14 + $0xe14] sm:$0xf0]  ;;  %v4541_v63 = vadd.f32 %v12764_v23, %v4527_v36  ;;  %v9710_v39 = vor.u32 %v11208_v47, %v9709_v46  ;;  %v10764_v23 = vld [vmem:[#allocation14 + $0x2cc] sm:$0xf]  ;;  %v11215_v46 = vld [vmem:[#allocation17 + $0xe4] sm:$0xf] }
 0x2ec   : > { %4844 = vmatpush.bf16.msrb.mxu2 %v8870_v14  ;;  %v11138_v14 = vld [vmem:[#allocation14 + $0xe74] sm:$0xf0]  ;;  %v10792_v36 = vld [vmem:[#allocation14 + $0x3ac] sm:$0xf]  ;;  %v9743_v47 = vld [vmem:[#allocation17 + $0xe8] sm:$0xf0] }
 0x2ed   : > { %4858 = vmatpush.bf16.msrb.mxu3 %v8998_v18  ;;  %v9557_v18 = vld [vmem:[#allocation14 + $0xf68] sm:$0xf]  ;;  %v9430_v28 = vor.u32 %v11138_v14, %v9429_v2  ;;  %v4567_v2 = vadd.f32 %v4566_v12, %v4553_v40  ;;  %v11206_v14 = vld [vmem:[#allocation17 + $0x94] sm:$0xf0]  ;;  %v9693_v12 = vld [vmem:[#allocation17 + $0x80] sm:$0xf] }
 0x2ee   : > { %v9702_v25 = vor.u32 %v11206_v14, %v9701_v3  ;;  %v7895_v3 = vld [vmem:[#allocation14 + $0x278] sm:$0xf0] }
 0x2ef   : > { %5109 = vmatpush.bf16.msra.mxu1 %v9274_v48  ;;  %4845 = vmatmul.bf16.vlgmr.msrb.gmra.mxu2 %v12666_v53  ;;  %v9558_v48 = vor.u32 %v11170_v13, %v9557_v18  ;;  %v9382_v18 = vor.u32 %v11126_v61, %v9381_v21  ;;  %v7911_v21 = vld [vmem:[#allocation14 + $0x298] sm:$0xf0]  ;;  %v10788_v61 = vld [vmem:[#allocation14 + $0x38c] sm:$0xf] }
 0x2f0   : > { %4893 = vmatpush.bf16.msra.mxu2 %v9494_v16  ;;  %4859 = vmatmul.bf16.vlgmr.msrb.gmra.mxu3 %v12668_v55  ;;  %v12793_v16 = vpop.f32.mrf.mxu3  ;;  %v4596_v62 = vpop.f32.mrf.mxu0 }
 0x2f1   : > { %4907 = vmatpush.bf16.msra.mxu3 %v9622_v20  ;;  %v9734_v20 = vor.u32 %v11214_v41, %v9733_v54  ;;  %v4608_v54 = vpop.f32.mrf.mxu1  ;;  %v7959_v41 = vld [vmem:[#allocation14 + $0x2f8] sm:$0xf0]  ;;  %v4581_v19 = vadd.f32 %v12793_v16, %v4567_v2  ;;  %v10752_v2 = vld [vmem:[#allocation14 + $0x26c] sm:$0xf] }
 0x2f2   : > { %v7962_v42 = vor.u32 %v10768_v4, %v7959_v41  ;;  %v9735_v4 = vld [vmem:[#allocation17 + $0xd8] sm:$0xf0] }
 0x2f3   : > { %5110 = vmatpush.bf16.msra.mxu1 %v9258_v49  ;;  %v11130_v49 = vld [vmem:[#allocation14 + $0xe34] sm:$0xf0]  ;;  %v4595_v16 = vadd.f32 %v12797_v35, %v4581_v19  ;;  %v10748_v19 = vld [vmem:[#allocation14 + $0x24c] sm:$0xf] }
 0x2f4   : > { %4894 = vmatpush.bf16.msra.mxu2 %v9478_v34  ;;  %v9717_v34 = vld [vmem:[#allocation17 + $0xb0] sm:$0xf]  ;;  %v9398_v6 = vor.u32 %v11130_v49, %v9397_v17  ;;  %v7927_v17 = vld [vmem:[#allocation14 + $0x2b8] sm:$0xf0] }
 0x2f5   : > { %4908 = vmatpush.bf16.msra.mxu3 %v9606_v9  ;;  %v11210_v9 = vld [vmem:[#allocation17 + $0xb4] sm:$0xf0] }
 0x2f6   : > { %5111 = vmatmul.bf16.vlgmr.msra.gmra.mxu1 %v12633_v11  ;;  %v9726_v11 = vor.u32 %v11212_v0, %v9725_v22  ;;  %v9718_v15 = vor.u32 %v11210_v9, %v9717_v34  ;;  %v7943_v0 = vld [vmem:[#allocation14 + $0x2d8] sm:$0xf0]  ;;  %v11217_v34 = vld [vmem:[#allocation17 + $0xf4] sm:$0xf] }
 0x2f7   : > { %5561 = vmatpush.bf16.msrb.mxu1 %v9750_v37  ;;  %v11162_v37 = vld [vmem:[#allocation14 + $0xf34] sm:$0xf0]  ;;  %v7946_v9 = vor.u32 %v10764_v23, %v7943_v0  ;;  %v8055_v49 = vld [vmem:[#allocation14 + $0x3b8] sm:$0xf0]  ;;  %v7898_v23 = vor.u32 %v10752_v2, %v7895_v3  ;;  %v11211_v0 = vld [vmem:[#allocation17 + $0xc4] sm:$0xf] }
 0x2f8   : > { %4895 = vmatpush.bf16.msra.mxu2 %v9462_v50  ;;  %v4568_v50 = vpop.f32.mrf.mxu2  ;;  %v9526_v1 = vor.u32 %v11162_v37, %v9525_v31  ;;  %v9694_v31 = vor.u32 %v11204_v29, %v9693_v12  ;;  %v4650_v41 = vpop.f32.mrf.mxu0  ;;  %v10780_v12 = vld [vmem:[#allocation14 + $0x34c] sm:$0xf]  ;;  %v8007_v29 = vld [vmem:[#allocation14 + $0x358] sm:$0xf0]  ;;  %v11205_v2 = vld [vmem:[#allocation17 + $0x94] sm:$0xf] }
 0x2f9   : > { %4909 = vmatpush.bf16.msra.mxu3 %v9590_v60  ;;  %v4582_v60 = vpop.f32.mrf.mxu3  ;;  %v4610_v40 = vpop.f32.mrf.mxu1  ;;  %v9703_v3 = vld [vmem:[#allocation17 + $0x98] sm:$0xf0] }
 0x2fb   : > { %5562 = vmatpush.bf16.msrb.mxu1 %v9742_v33  ;;  %v11158_v33 = vld [vmem:[#allocation14 + $0xf14] sm:$0xf0] }
 0x2fc   : > { %4896 = vmatpush.bf16.msra.mxu2 %v9446_v38  ;;  %v10800_v38 = vld [vmem:[#allocation14 + $0x3ec] sm:$0xf]  ;;  %v9510_v13 = vor.u32 %v11158_v33, %v9509_v26  ;;  %v4609_v26 = vadd.f32 %v4608_v54, %v4595_v16  ;;  %v11213_v33 = vld [vmem:[#allocation17 + $0xd4] sm:$0xf] }
 0x2fd   : > { %4910 = vmatpush.bf16.msra.mxu3 %v9574_v5  ;;  %v8087_v5 = vld [vmem:[#allocation14 + $0x3f8] sm:$0xf0]  ;;  %v9738_v54 = vor.u32 %v11213_v33, %v9735_v4  ;;  %v10776_v16 = vld [vmem:[#allocation14 + $0x32c] sm:$0xf] }
 0x2fe   : > { %v8090_v22 = vor.u32 %v10800_v38, %v8087_v5  ;;  %v10896_v33 = vld [vmem:[#allocation14 + $0x6ec] sm:$0xf] }
 0x2ff   : > { %5563 = vmatpush.bf16.msrb.mxu1 %v9734_v20  ;;  %v4555_v20 = vadd.f32 %v4554_v24, %v4541_v63  ;;  %v9751_v24 = vld [vmem:[#allocation17 + $0xf8] sm:$0xf0]  ;;  %v8039_v63 = vld [vmem:[#allocation14 + $0x398] sm:$0xf0] }
 0x300   : > { %4897 = vmatpush.bf16.msra.mxu2 %v9430_v28  ;;  %v10796_v28 = vld [vmem:[#allocation14 + $0x3cc] sm:$0xf] }
 0x301   : > { %4911 = vmatpush.bf16.msra.mxu3 %v9558_v48  ;;  %v8071_v48 = vld [vmem:[#allocation14 + $0x3d8] sm:$0xf0]  ;;  %v4569_v27 = vadd.f32 %v4568_v50, %v4555_v20  ;;  %v4636_v30 = vpop.f32.mrf.mxu3 }
 0x302   : > { %v8023_v20 = vld [vmem:[#allocation14 + $0x378] sm:$0xf0] }
 0x303   : > { %5564 = vmatpush.bf16.msrb.mxu1 %v9726_v11  ;;  %v4622_v11 = vpop.f32.mrf.mxu2  ;;  %v4583_v37 = vadd.f32 %v4582_v60, %v4569_v27  ;;  %v9746_v60 = vor.u32 %v11215_v46, %v9743_v47  ;;  %v7879_v27 = vld [vmem:[#allocation14 + $0x258] sm:$0xf0]  ;;  %v11207_v47 = vld [vmem:[#allocation17 + $0xa4] sm:$0xf] }
 0x304   : > { %4898 = vmatpush.bf16.msra.mxu2 %v9414_v45  ;;  %v8074_v45 = vor.u32 %v10796_v28, %v8071_v48  ;;  %v4623_v38 = vadd.f32 %v4622_v11, %v4609_v26  ;;  %v9727_v28 = vld [vmem:[#allocation17 + $0xc8] sm:$0xf0] }
 0x305   : > { %4912 = vmatpush.bf16.msra.mxu3 %v9542_v32  ;;  %v10760_v32 = vld [vmem:[#allocation14 + $0x2ac] sm:$0xf]  ;;  %v4597_v35 = vadd.f32 %v4596_v62, %v4583_v37  ;;  %v9730_v11 = vor.u32 %v11211_v0, %v9727_v28  ;;  %v7991_v37 = vld [vmem:[#allocation14 + $0x338] sm:$0xf0] }
 0x306   : > { %v7930_v50 = vor.u32 %v10760_v32, %v7927_v17  ;;  %v4637_v48 = vadd.f32 %v4636_v30, %v4623_v38  ;;  %v8010_v17 = vor.u32 %v10780_v12, %v8007_v29  ;;  %v7863_v30 = vld [vmem:[#allocation14 + $0x238] sm:$0xf0]  ;;  %v10928_v38 = vld [vmem:[#allocation14 + $0x7ec] sm:$0xf]  ;;  %v11203_v12 = vld [vmem:[#allocation17 + $0x84] sm:$0xf] }
 0x307   : > { %5565 = vmatpush.bf16.msrb.mxu1 %v9718_v15  ;;  %v9754_v15 = vor.u32 %v11217_v34, %v9751_v24  ;;  %v7882_v34 = vor.u32 %v10748_v19, %v7879_v27  ;;  %v11209_v24 = vld [vmem:[#allocation17 + $0xb4] sm:$0xf]  ;;  %v9706_v19 = vor.u32 %v11205_v2, %v9703_v3  ;;  %v9695_v29 = vld [vmem:[#allocation17 + $0x88] sm:$0xf0] }
 0x308   : > { %4899 = vmatpush.bf16.msra.mxu2 %v9398_v6  ;;  %v8058_v6 = vor.u32 %v10792_v36, %v8055_v49  ;;  %v10744_v36 = vld [vmem:[#allocation14 + $0x22c] sm:$0xf] }
 0x309   : > { %4913 = vmatpush.bf16.msra.mxu3 %v9526_v1  ;;  %v10756_v1 = vld [vmem:[#allocation14 + $0x28c] sm:$0xf]  ;;  %v7866_v46 = vor.u32 %v10744_v36, %v7863_v30  ;;  %v8567_v36 = vld [vmem:[#allocation14 + $0x7b8] sm:$0xf0]  ;;  %v9698_v30 = vor.u32 %v11203_v12, %v9695_v29 }
 0x30a   : > { %v7914_v5 = vor.u32 %v10756_v1, %v7911_v21  ;;  %v7994_v21 = vor.u32 %v10776_v16, %v7991_v37  ;;  %v10884_v37 = vld [vmem:[#allocation14 + $0x68c] sm:$0xf]  ;;  %v9095_v12 = vld [vmem:[#allocation14 + $0xbd8] sm:$0xf0] }
 0x30b   : > { %5566 = vmatpush.bf16.msrb.mxu1 %v9710_v39  ;;  %v8042_v39 = vor.u32 %v10788_v61, %v8039_v63  ;;  %v4624_v14 = vpop.f32.mrf.mxu2  ;;  %v10740_v61 = vld [vmem:[#allocation14 + $0x20c] sm:$0xf]  ;;  %v7847_v63 = vld [vmem:[#allocation14 + $0x218] sm:$0xf0] }
 0x30c   : > { %4900 = vmatpush.bf16.msra.mxu2 %v9382_v18  ;;  %v4638_v18 = vpop.f32.mrf.mxu3 }
 0x30d   : > { %4914 = vmatpush.bf16.msra.mxu3 %v9510_v13  ;;  %v10784_v13 = vld [vmem:[#allocation14 + $0x36c] sm:$0xf] }
 0x30e   : > { %v8026_v62 = vor.u32 %v10784_v13, %v8023_v20 }
 0x30f   : > { %5567 = vmatpush.bf16.msrb.mxu1 %v9702_v25  ;;  %4901 = vmatmul.bf16.vlgmr.msra.gmra.mxu2 %v12678_v56 }
 0x310   : > { %4949 = vmatpush.bf16.msrb.mxu2 %v7962_v42  ;;  %4915 = vmatmul.bf16.vlgmr.msra.gmra.mxu3 %v12680_v57  ;;  %v4611_v42 = vadd.f32 %v4610_v40, %v4597_v35  ;;  %v4652_v40 = vpop.f32.mrf.mxu0  ;;  %v10772_v35 = vld [vmem:[#allocation14 + $0x30c] sm:$0xf] }
 0x311   : > { %4963 = vmatpush.bf16.msrb.mxu3 %v8090_v22  ;;  %v4664_v22 = vpop.f32.mrf.mxu1 }
 0x312   : > { %v4625_v25 = vadd.f32 %v4624_v14, %v4611_v42 }
 0x313   : > { %5568 = vmatpush.bf16.msrb.mxu1 %v9694_v31  ;;  %v4678_v49 = vpop.f32.mrf.mxu2 }
 0x314   : > { %4950 = vmatpush.bf16.msrb.mxu2 %v7946_v9  ;;  %v9719_v9 = vld [vmem:[#allocation17 + $0xb8] sm:$0xf0]  ;;  %v4639_v32 = vadd.f32 %v4638_v18, %v4625_v25  ;;  %v4692_v31 = vpop.f32.mrf.mxu3  ;;  %v7850_v18 = vor.u32 %v10740_v61, %v7847_v63  ;;  %v10924_v25 = vld [vmem:[#allocation14 + $0x7cc] sm:$0xf] }
 0x315   : > { %4964 = vmatpush.bf16.msrb.mxu3 %v8074_v45  ;;  %v4651_v45 = vadd.f32 %v4650_v41, %v4637_v48  ;;  %v8471_v41 = vld [vmem:[#allocation14 + $0x6f8] sm:$0xf0]  ;;  %v10876_v63 = vld [vmem:[#allocation14 + $0x64c] sm:$0xf] }
 0x316   : > { %v4653_v1 = vadd.f32 %v4652_v40, %v4639_v32  ;;  %v8455_v48 = vld [vmem:[#allocation14 + $0x6d8] sm:$0xf0]  ;;  %v10916_v40 = vld [vmem:[#allocation14 + $0x78c] sm:$0xf] }
 0x317   : > { %5617 = vmatpush.bf16.msra.mxu1 %v9754_v15  ;;  %v9722_v15 = vor.u32 %v11209_v24, %v9719_v9  ;;  %v10888_v24 = vld [vmem:[#allocation14 + $0x6ac] sm:$0xf]  ;;  %v8439_v9 = vld [vmem:[#allocation14 + $0x6b8] sm:$0xf0] }
 0x318   : > { %4951 = vmatpush.bf16.msrb.mxu2 %v7930_v50  ;;  %v9711_v50 = vld [vmem:[#allocation17 + $0xa8] sm:$0xf0] }
 0x319   : > { %4965 = vmatpush.bf16.msrb.mxu3 %v8058_v6  ;;  %v4665_v6 = vadd.f32 %v4664_v22, %v4651_v45  ;;  %v4666_v26 = vpop.f32.mrf.mxu1 }
 0x31a   : > { %v4667_v14 = vadd.f32 %v4666_v26, %v4653_v1  ;;  %v10912_v1 = vld [vmem:[#allocation14 + $0x76c] sm:$0xf]  ;;  %v8391_v26 = vld [vmem:[#allocation14 + $0x658] sm:$0xf0] }
 0x31b   : > { %5618 = vmatpush.bf16.msra.mxu1 %v9746_v60  ;;  %v7975_v60 = vld [vmem:[#allocation14 + $0x318] sm:$0xf0]  ;;  %v4679_v4 = vadd.f32 %v4678_v49, %v4665_v6  ;;  %v4680_v20 = vpop.f32.mrf.mxu2  ;;  %v10880_v6 = vld [vmem:[#allocation14 + $0x66c] sm:$0xf] }
 0x31c   : > { %4952 = vmatpush.bf16.msrb.mxu2 %v7914_v5  ;;  %v8599_v5 = vld [vmem:[#allocation14 + $0x7f8] sm:$0xf0]  ;;  %v7978_v13 = vor.u32 %v10772_v35, %v7975_v60  ;;  %v4694_v42 = vpop.f32.mrf.mxu3  ;;  %v4681_v28 = vadd.f32 %v4680_v20, %v4667_v14  ;;  %v10908_v35 = vld [vmem:[#allocation14 + $0x74c] sm:$0xf] }
 0x31d   : > { %4966 = vmatpush.bf16.msrb.mxu3 %v8042_v39  ;;  %v9714_v39 = vor.u32 %v11207_v47, %v9711_v50  ;;  %v8602_v22 = vor.u32 %v10928_v38, %v8599_v5  ;;  %v4693_v0 = vadd.f32 %v4692_v31, %v4679_v4  ;;  %v8442_v31 = vor.u32 %v10888_v24, %v8439_v9  ;;  %v8519_v60 = vld [vmem:[#allocation14 + $0x758] sm:$0xf0]  ;;  %v10904_v5 = vld [vmem:[#allocation14 + $0x72c] sm:$0xf] }
 0x31e   : > { %v4695_v27 = vadd.f32 %v4694_v42, %v4681_v28  ;;  %v8522_v4 = vor.u32 %v10908_v35, %v8519_v60  ;;  %v8375_v38 = vld [vmem:[#allocation14 + $0x638] sm:$0xf0]  ;;  %v10868_v14 = vld [vmem:[#allocation14 + $0x60c] sm:$0xf] }
 0x31f   : > { %5619 = vmatpush.bf16.msra.mxu1 %v9738_v54  ;;  %v8474_v54 = vor.u32 %v10896_v33, %v8471_v41  ;;  %v5146_v45 = vmax.f32 %v4693_v0, 0.0  ;;  %v8394_v33 = vor.u32 %v10876_v63, %v8391_v26  ;;  %v10872_v41 = vld [vmem:[#allocation14 + $0x62c] sm:$0xf]  ;;  %v8487_v20 = vld [vmem:[#allocation14 + $0x718] sm:$0xf0] }
 0x320   : > { %4953 = vmatpush.bf16.msrb.mxu2 %v7898_v23  ;;  %v10892_v23 = vld [vmem:[#allocation14 + $0x6cc] sm:$0xf]  ;;  %v5150_v32 = vmax.f32 %v4695_v27, 0.0  ;;  %v8378_v2 = vor.u32 %v10872_v41, %v8375_v38  ;;  %v8951_v24 = vld [vmem:[#allocation14 + $0xab8] sm:$0xf0] }
 0x321   : > { %4967 = vmatpush.bf16.msrb.mxu3 %v8026_v62  ;;  %v8583_v62 = vld [vmem:[#allocation14 + $0x7d8] sm:$0xf0]  ;;  %v11024_v42 = vld [vmem:[#allocation14 + $0xaec] sm:$0xf] }
 0x322   : > { %v5154_v49 = vpack.c.bf16 %v5150_v32, %v5146_v45  ;;  %v11052_v27 = vld [vmem:[#allocation14 + $0xbcc] sm:$0xf]  ;;  %v9079_v45 = vld [vmem:[#allocation14 + $0xbb8] sm:$0xf0] }
 0x323   : > { %5620 = vmatpush.bf16.msra.mxu1 %v9730_v11  ;;  %v8458_v11 = vor.u32 %v10892_v23, %v8455_v48  ;;  %v9111_v23 = vld [vmem:[#allocation14 + $0xbf8] sm:$0xf0]  ;;  %v11048_v9 = vld [vmem:[#allocation14 + $0xbac] sm:$0xf] }
 0x324   : > { %4954 = vmatpush.bf16.msrb.mxu2 %v7882_v34  ;;  %v8586_v34 = vor.u32 %v10924_v25, %v8583_v62  ;;  %5569 = vmatmul.bf16.vlgmr.msrb.gmra.mxu1 %v5154_v49  ;;  %v11020_v62 = vld [vmem:[#allocation14 + $0xacc] sm:$0xf]  ;;  %v8887_v60 = vld [vmem:[#allocation14 + $0xa38] sm:$0xf0] }
 0x325   : > { %4968 = vmatpush.bf16.msrb.mxu3 %v8010_v17  ;;  %v10920_v17 = vld [vmem:[#allocation14 + $0x7ac] sm:$0xf] }
 0x326   : > { %v8570_v16 = vor.u32 %v10920_v17, %v8567_v36  ;;  %v9082_v17 = vor.u32 %v11048_v9, %v9079_v45  ;;  %v11012_v36 = vld [vmem:[#allocation14 + $0xa8c] sm:$0xf] }
 0x327   : > { %5621 = vmatpush.bf16.msra.mxu1 %v9722_v15  ;;  %v8423_v15 = vld [vmem:[#allocation14 + $0x698] sm:$0xf0]  ;;  %v11000_v35 = vld [vmem:[#allocation14 + $0xa2c] sm:$0xf] }
 0x328   : > { %4955 = vmatpush.bf16.msrb.mxu2 %v7866_v46  ;;  %v8551_v46 = vld [vmem:[#allocation14 + $0x798] sm:$0xf0]  ;;  %v8426_v47 = vor.u32 %v10884_v37, %v8423_v15  ;;  %v11144_v45 = vld [vmem:[#allocation14 + $0xeac] sm:$0xf] }
 0x329   : > { %4969 = vmatpush.bf16.msrb.mxu3 %v7994_v21  ;;  %v8554_v50 = vor.u32 %v10916_v40, %v8551_v46  ;;  %v11008_v40 = vld [vmem:[#allocation14 + $0xa6c] sm:$0xf]  ;;  %v8919_v46 = vld [vmem:[#allocation14 + $0xa78] sm:$0xf0] }
 0x32b   : > { %5622 = vmatpush.bf16.msra.mxu1 %v9714_v39  ;;  %v8503_v39 = vld [vmem:[#allocation14 + $0x738] sm:$0xf0] }
 0x32c   : > { %4956 = vmatpush.bf16.msrb.mxu2 %v7850_v18  ;;  %v8506_v3 = vor.u32 %v10904_v5, %v8503_v39  ;;  %v8359_v18 = vld [vmem:[#allocation14 + $0x618] sm:$0xf0]  ;;  %v8890_v5 = vor.u32 %v11000_v35, %v8887_v60 }
 0x32d   : > { %4970 = vmatpush.bf16.msrb.mxu3 %v7978_v13  ;;  %v10900_v13 = vld [vmem:[#allocation14 + $0x70c] sm:$0xf]  ;;  %v8362_v0 = vor.u32 %v10868_v14, %v8359_v18 }
 0x32e   : > { %v8490_v28 = vor.u32 %v10900_v13, %v8487_v20  ;;  %v11028_v18 = vld [vmem:[#allocation14 + $0xb0c] sm:$0xf]  ;;  %v8999_v13 = vld [vmem:[#allocation14 + $0xb18] sm:$0xf0] }
 0x32f   : > { %5623 = vmatpush.bf16.msra.mxu1 %v9706_v19  ;;  %4957 = vmatmul.bf16.vlgmr.msrb.gmra.mxu2 %v12643_v51  ;;  %v8407_v51 = vld [vmem:[#allocation14 + $0x678] sm:$0xf0]  ;;  %v11152_v20 = vld [vmem:[#allocation14 + $0xeec] sm:$0xf] }
 0x330   : > { %5005 = vmatpush.bf16.msra.mxu2 %v8474_v54  ;;  %4971 = vmatmul.bf16.vlgmr.msrb.gmra.mxu3 %v12645_v52  ;;  %v8535_v52 = vld [vmem:[#allocation14 + $0x778] sm:$0xf0]  ;;  %v8410_v21 = vor.u32 %v10880_v6, %v8407_v51  ;;  %v11004_v51 = vld [vmem:[#allocation14 + $0xa4c] sm:$0xf] }
 0x331   : > { %5019 = vmatpush.bf16.msra.mxu3 %v8602_v22  ;;  %v8538_v61 = vor.u32 %v10912_v1, %v8535_v52  ;;  %v8983_v54 = vld [vmem:[#allocation14 + $0xaf8] sm:$0xf0]  ;;  %v11056_v22 = vld [vmem:[#allocation14 + $0xbec] sm:$0xf] }
 0x332   : > { %v8986_v48 = vor.u32 %v11024_v42, %v8983_v54  ;;  %v9114_v25 = vor.u32 %v11056_v22, %v9111_v23  ;;  %v8967_v19 = vld [vmem:[#allocation14 + $0xad8] sm:$0xf0]  ;;  %v11036_v52 = vld [vmem:[#allocation14 + $0xb4c] sm:$0xf]  ;;  %v4734_v41 = vpop.f32.mrf.mxu2  ;;  %v1683_v23 = vperm.slane %v12778_v10, 2 }
 0x333   : > { %5624 = vmatpush.bf16.msra.mxu1 %v9698_v30  ;;  %v8970_v29 = vor.u32 %v11020_v62, %v8967_v19  ;;  %v8935_v30 = vld [vmem:[#allocation14 + $0xa98] sm:$0xf0]  ;;  %v12810_v38 = vpop.f32.mrf.mxu3  ;;  %v11184_v54 = vld [vmem:[#allocation14 + $0xfec] sm:$0xf] }
 0x334   : > { %5006 = vmatpush.bf16.msra.mxu2 %v8458_v11  ;;  %v9098_v11 = vor.u32 %v11052_v27, %v9095_v12  ;;  %v8938_v37 = vor.u32 %v11012_v36, %v8935_v30  ;;  %v8903_v1 = vld [vmem:[#allocation14 + $0xa58] sm:$0xf0]  ;;  %v11148_v62 = vld [vmem:[#allocation14 + $0xecc] sm:$0xf] }
 0x335   : > { %5020 = vmatpush.bf16.msra.mxu3 %v8586_v34  ;;  %v11016_v34 = vld [vmem:[#allocation14 + $0xaac] sm:$0xf]  ;;  %v8906_v63 = vor.u32 %v11004_v51, %v8903_v1  ;;  %v9495_v42 = vld [vmem:[#allocation14 + $0xef8] sm:$0xf0] }
 0x336   : > { %5625 = vmatmul.bf16.vlgmr.msra.gmra.mxu1 %v5154_v49  ;;  %v8954_v32 = vor.u32 %v11016_v34, %v8951_v24  ;;  %v11044_v49 = vld [vmem:[#allocation14 + $0xb8c] sm:$0xf]  ;;  %v9623_v22 = vld [vmem:[#allocation14 + $0xff8] sm:$0xf0] }
 0x337   : > { %v9479_v27 = vld [vmem:[#allocation14 + $0xed8] sm:$0xf0]  ;;  %v11180_v12 = vld [vmem:[#allocation14 + $0xfcc] sm:$0xf] }
 0x338   : > { %5007 = vmatpush.bf16.msra.mxu2 %v8442_v31  ;;  %v9063_v31 = vld [vmem:[#allocation14 + $0xb98] sm:$0xf0]  ;;  %v9482_v9 = vor.u32 %v11148_v62, %v9479_v27  ;;  %v11136_v1 = vld [vmem:[#allocation14 + $0xe6c] sm:$0xf] }
 0x339   : > { %5021 = vmatpush.bf16.msra.mxu3 %v8570_v16  ;;  %v4706_v16 = vpop.f32.mrf.mxu0  ;;  %v9066_v15 = vor.u32 %v11044_v49, %v9063_v31  ;;  %v9591_v36 = vld [vmem:[#allocation14 + $0xfb8] sm:$0xf0]  ;;  %v11156_v27 = vld [vmem:[#allocation14 + $0xf0c] sm:$0xf] }
 0x33a   : > { %v4736_v34 = vpop.f32.mrf.mxu2 }
 0x33b   : > { %v4750_v24 = vpop.f32.mrf.mxu3 }
 0x33c   : > { %5008 = vmatpush.bf16.msra.mxu2 %v8426_v47  ;;  %v11040_v47 = vld [vmem:[#allocation14 + $0xb6c] sm:$0xf] }
 0x33d   : > { %5022 = vmatpush.bf16.msra.mxu3 %v8554_v50  ;;  %v9047_v50 = vld [vmem:[#allocation14 + $0xb78] sm:$0xf0] }
 0x33e   : > { %v9050_v6 = vor.u32 %v11040_v47, %v9047_v50  ;;  %v9575_v47 = vld [vmem:[#allocation14 + $0xf98] sm:$0xf0] }
 0x340   : > { %5009 = vmatpush.bf16.msra.mxu2 %v8410_v21  ;;  %v9031_v21 = vld [vmem:[#allocation14 + $0xb58] sm:$0xf0] }
 0x341   : > { %5023 = vmatpush.bf16.msra.mxu3 %v8538_v61  ;;  %v4708_v61 = vpop.f32.mrf.mxu0  ;;  %v9034_v26 = vor.u32 %v11036_v52, %v9031_v21  ;;  %v9431_v52 = vld [vmem:[#allocation14 + $0xe78] sm:$0xf0] }
 0x344   : > { %5010 = vmatpush.bf16.msra.mxu2 %v8394_v33  ;;  %v11032_v33 = vld [vmem:[#allocation14 + $0xb2c] sm:$0xf] }
 0x345   : > { %5024 = vmatpush.bf16.msra.mxu3 %v8522_v4  ;;  %v9015_v4 = vld [vmem:[#allocation14 + $0xb38] sm:$0xf0] }
 0x346   : > { %v9018_v39 = vor.u32 %v11032_v33, %v9015_v4  ;;  %v11132_v33 = vld [vmem:[#allocation14 + $0xe4c] sm:$0xf] }
 0x348   : > { %5011 = vmatpush.bf16.msra.mxu2 %v8378_v2  ;;  %v10996_v2 = vld [vmem:[#allocation14 + $0xa0c] sm:$0xf] }
 0x349   : > { %5025 = vmatpush.bf16.msra.mxu3 %v8506_v3  ;;  %v8871_v3 = vld [vmem:[#allocation14 + $0xa18] sm:$0xf0]  ;;  %v4762_v19 = vpop.f32.mrf.mxu0 }
 0x34c   : > { %5012 = vmatpush.bf16.msra.mxu2 %v8362_v0  ;;  %v8874_v0 = vor.u32 %v10996_v2, %v8871_v3 }
 0x34d   : > { %5026 = vmatpush.bf16.msra.mxu3 %v8490_v28  ;;  %v9002_v28 = vor.u32 %v11028_v18, %v8999_v13  ;;  %v11128_v18 = vld [vmem:[#allocation14 + $0xe2c] sm:$0xf] }
 0x34f   : > { %5013 = vmatmul.bf16.vlgmr.msra.gmra.mxu2 %v12654_v58  ;;  %v4720_v58 = vpop.f32.mrf.mxu1 }
 0x350   : > { %5061 = vmatpush.bf16.msrb.mxu2 %v8986_v48  ;;  %5027 = vmatmul.bf16.vlgmr.msra.gmra.mxu3 %v12656_v59  ;;  %v8922_v59 = vor.u32 %v11008_v40, %v8919_v46  ;;  %v9498_v48 = vor.u32 %v11152_v20, %v9495_v42  ;;  %v9447_v40 = vld [vmem:[#allocation14 + $0xe98] sm:$0xf0]  ;;  %v11172_v46 = vld [vmem:[#allocation14 + $0xf8c] sm:$0xf] }
 0x351   : > { %5075 = vmatpush.bf16.msrb.mxu3 %v9114_v25  ;;  %v9626_v25 = vor.u32 %v11184_v54, %v9623_v22  ;;  %v4764_v50 = vpop.f32.mrf.mxu0  ;;  %v9578_v51 = vor.u32 %v11172_v46, %v9575_v47  ;;  %v9399_v42 = vld [vmem:[#allocation14 + $0xe38] sm:$0xf0] }
 0x352   : > { %v4790_v21 = vpop.f32.mrf.mxu2  ;;  %v9527_v54 = vld [vmem:[#allocation14 + $0xf38] sm:$0xf0] }
 0x353   : > { %v11230_v46 = vld [vmem:[#allocation17 + $0x154] sm:$0xf0] }
 0x354   : > { %5062 = vmatpush.bf16.msrb.mxu2 %v8970_v29  ;;  %v9607_v29 = vld [vmem:[#allocation14 + $0xfd8] sm:$0xf0] }
 0x355   : > { %5076 = vmatpush.bf16.msrb.mxu3 %v9098_v11  ;;  %v4707_v11 = vadd.f32 %v4706_v16, %v1683_v23  ;;  %v9610_v10 = vor.u32 %v11180_v12, %v9607_v29  ;;  %v9511_v12 = vld [vmem:[#allocation14 + $0xf18] sm:$0xf0] }
 0x357   : > { %v4722_v14 = vpop.f32.mrf.mxu1  ;;  %v4721_v49 = vadd.f32 %v4720_v58, %v4707_v11  ;;  %v9559_v58 = vld [vmem:[#allocation14 + $0xf78] sm:$0xf0]  ;;  %v9813_v11 = vld [vmem:[#allocation17 + $0x170] sm:$0xf] }
 0x358   : > { %5063 = vmatpush.bf16.msrb.mxu2 %v8954_v32  ;;  %v9463_v32 = vld [vmem:[#allocation14 + $0xeb8] sm:$0xf0] }
 0x359   : > { %5077 = vmatpush.bf16.msrb.mxu3 %v9082_v17  ;;  %v11176_v17 = vld [vmem:[#allocation14 + $0xfac] sm:$0xf]  ;;  %v9466_v31 = vor.u32 %v11144_v45, %v9463_v32  ;;  %v4818_v13 = vpop.f32.mrf.mxu0 }
 0x35a   : > { %v9594_v16 = vor.u32 %v11176_v17, %v9591_v36  ;;  %v9805_v17 = vld [vmem:[#allocation17 + $0x160] sm:$0xf]  ;;  %v11232_v36 = vld [vmem:[#allocation17 + $0x164] sm:$0xf0] }
 0x35c   : > { %5064 = vmatpush.bf16.msrb.mxu2 %v8938_v37  ;;  %v11140_v37 = vld [vmem:[#allocation14 + $0xe8c] sm:$0xf] }
 0x35d   : > { %5078 = vmatpush.bf16.msrb.mxu3 %v9066_v15  ;;  %v4709_v15 = vadd.f32 %v4708_v61, %v1683_v23  ;;  %v9434_v61 = vor.u32 %v11136_v1, %v9431_v52  ;;  %v4792_v23 = vpop.f32.mrf.mxu2  ;;  %v11228_v1 = vld [vmem:[#allocation17 + $0x144] sm:$0xf0] }
 0x35f   : > { %v4776_v30 = vpop.f32.mrf.mxu1 }
 0x360   : > { %5065 = vmatpush.bf16.msrb.mxu2 %v8922_v59  ;;  %v4735_v59 = vadd.f32 %v4734_v41, %v4721_v49  ;;  %v9415_v41 = vld [vmem:[#allocation14 + $0xe58] sm:$0xf0] }
 0x361   : > { %5079 = vmatpush.bf16.msrb.mxu3 %v9050_v6  ;;  %v9450_v6 = vor.u32 %v11140_v37, %v9447_v40  ;;  %v9418_v3 = vor.u32 %v11132_v33, %v9415_v41  ;;  %v9797_v40 = vld [vmem:[#allocation17 + $0x150] sm:$0xf]  ;;  %v9773_v41 = vld [vmem:[#allocation17 + $0x120] sm:$0xf] }
 0x364   : > { %5066 = vmatpush.bf16.msrb.mxu2 %v8906_v63  ;;  %v4804_v63 = vpop.f32.mrf.mxu3 }
 0x365   : > { %5080 = vmatpush.bf16.msrb.mxu3 %v9034_v26  ;;  %v4749_v26 = vadd.f32 %v12810_v38, %v4735_v59  ;;  %v11160_v38 = vld [vmem:[#allocation14 + $0xf2c] sm:$0xf] }
 0x367   : > { %v4778_v35 = vpop.f32.mrf.mxu1  ;;  %v4763_v2 = vadd.f32 %v4762_v19, %v4749_v26  ;;  %v9383_v19 = vld [vmem:[#allocation14 + $0xe18] sm:$0xf0] }
 0x368   : > { %5067 = vmatpush.bf16.msrb.mxu2 %v8890_v5  ;;  %v11164_v5 = vld [vmem:[#allocation14 + $0xf4c] sm:$0xf] }
 0x369   : > { %5081 = vmatpush.bf16.msrb.mxu3 %v9018_v39  ;;  %v9543_v39 = vld [vmem:[#allocation14 + $0xf58] sm:$0xf0]  ;;  %v4777_v22 = vadd.f32 %v4776_v30, %v4763_v2  ;;  %v4820_v30 = vpop.f32.mrf.mxu0 }
 0x36c   : > { %5068 = vmatpush.bf16.msrb.mxu2 %v8874_v0  ;;  %v4806_v0 = vpop.f32.mrf.mxu3 }
 0x36d   : > { %5082 = vmatpush.bf16.msrb.mxu3 %v9002_v28  ;;  %v9402_v28 = vor.u32 %v11128_v18, %v9399_v42 }
 0x36f   : > { %5069 = vmatmul.bf16.vlgmr.msrb.gmra.mxu2 %v12666_v53  ;;  %v4723_v53 = vadd.f32 %v4722_v14, %v4709_v15  ;;  %v9546_v14 = vor.u32 %v11164_v5, %v9543_v39  ;;  %v4832_v29 = vpop.f32.mrf.mxu1  ;;  %v9806_v15 = vor.u32 %v11232_v36, %v9805_v17  ;;  %v11224_v5 = vld [vmem:[#allocation17 + $0x124] sm:$0xf0] }
 0x370   : > { %5117 = vmatpush.bf16.msra.mxu2 %v9498_v48  ;;  %5083 = vmatmul.bf16.vlgmr.msrb.gmra.mxu3 %v12668_v55  ;;  %v11168_v55 = vld [vmem:[#allocation14 + $0xf6c] sm:$0xf]  ;;  %v9530_v48 = vor.u32 %v11160_v38, %v9527_v54 }
 0x371   : > { %5131 = vmatpush.bf16.msra.mxu3 %v9626_v25  ;;  %v9562_v60 = vor.u32 %v11168_v55, %v9559_v58  ;;  %v4737_v4 = vadd.f32 %v4736_v34, %v4723_v53  ;;  %v11124_v25 = vld [vmem:[#allocation14 + $0xe0c] sm:$0xf]  ;;  %v11234_v34 = vld [vmem:[#allocation17 + $0x174] sm:$0xf0]  ;;  %v4874_v55 = vpop.f32.mrf.mxu0 }
 0x372   : > { %v9814_v32 = vor.u32 %v11234_v34, %v9813_v11 }
 0x373   : > { %v4751_v20 = vadd.f32 %v4750_v24, %v4737_v4  ;;  %v9386_v24 = vor.u32 %v11124_v25, %v9383_v19  ;;  %v9815_v25 = vld [vmem:[#allocation17 + $0x178] sm:$0xf0] }
 0x374   : > { %5118 = vmatpush.bf16.msra.mxu2 %v9482_v9  ;;  %v4791_v9 = vadd.f32 %v4790_v21, %v4777_v22  ;;  %v4860_v37 = vpop.f32.mrf.mxu3 }
 0x375   : > { %5132 = vmatpush.bf16.msra.mxu3 %v9610_v10  ;;  %v4765_v62 = vadd.f32 %v4764_v50, %v4751_v20  ;;  %v9514_v10 = vor.u32 %v11156_v27, %v9511_v12  ;;  %v11222_v20 = vld [vmem:[#allocation17 + $0x114] sm:$0xf0] }
 0x376   : > { %v4805_v49 = vadd.f32 %v4804_v63, %v4791_v9 }
 0x377   : > { %v4779_v45 = vadd.f32 %v4778_v35, %v4765_v62  ;;  %v4834_v59 = vpop.f32.mrf.mxu1  ;;  %v9781_v35 = vld [vmem:[#allocation17 + $0x130] sm:$0xf] }
 0x378   : > { %5119 = vmatpush.bf16.msra.mxu2 %v9466_v31  ;;  %v4819_v47 = vadd.f32 %v4818_v13, %v4805_v49  ;;  %v9765_v13 = vld [vmem:[#allocation17 + $0x110] sm:$0xf]  ;;  %v9799_v49 = vld [vmem:[#allocation17 + $0x158] sm:$0xf0] }
 0x379   : > { %5133 = vmatpush.bf16.msra.mxu3 %v9594_v16  ;;  %v4793_v31 = vadd.f32 %v4792_v23, %v4779_v45  ;;  %v4846_v16 = vpop.f32.mrf.mxu2  ;;  %v4876_v42 = vpop.f32.mrf.mxu0  ;;  %v9766_v22 = vor.u32 %v11222_v20, %v9765_v13  ;;  %v9757_v23 = vld [vmem:[#allocation17 + $0x100] sm:$0xf] }
 0x37a   : > { %v4833_v52 = vadd.f32 %v4832_v29, %v4819_v47  ;;  %v9783_v47 = vld [vmem:[#allocation17 + $0x138] sm:$0xf0]  ;;  %v9853_v20 = vld [vmem:[#allocation17 + $0x1c0] sm:$0xf] }
 0x37b   : > { %v4807_v50 = vadd.f32 %v4806_v0, %v4793_v31  ;;  %v11220_v0 = vld [vmem:[#allocation17 + $0x104] sm:$0xf0] }
 0x37c   : > { %5120 = vmatpush.bf16.msra.mxu2 %v9450_v6  ;;  %v9798_v6 = vor.u32 %v11230_v46, %v9797_v40  ;;  %v4847_v58 = vadd.f32 %v4846_v16, %v4833_v52  ;;  %v4862_v26 = vpop.f32.mrf.mxu3  ;;  %v9758_v27 = vor.u32 %v11220_v0, %v9757_v23  ;;  %v11225_v46 = vld [vmem:[#allocation17 + $0x134] sm:$0xf]  ;;  %v11242_v23 = vld [vmem:[#allocation17 + $0x1b4] sm:$0xf0] }
 0x37d   : > { %5134 = vmatpush.bf16.msra.mxu3 %v9578_v51  ;;  %v9789_v51 = vld [vmem:[#allocation17 + $0x140] sm:$0xf]  ;;  %v4821_v53 = vadd.f32 %v4820_v30, %v4807_v50  ;;  %v11229_v30 = vld [vmem:[#allocation17 + $0x154] sm:$0xf]  ;;  %v9786_v50 = vor.u32 %v11225_v46, %v9783_v47  ;;  %v9879_v46 = vld [vmem:[#allocation17 + $0x1f8] sm:$0xf0] }
 0x37e   : > { %v9790_v21 = vor.u32 %v11228_v1, %v9789_v51  ;;  %v4861_v33 = vadd.f32 %v4860_v37, %v4847_v58  ;;  %v9802_v16 = vor.u32 %v11229_v30, %v9799_v49  ;;  %v11227_v37 = vld [vmem:[#allocation17 + $0x144] sm:$0xf]  ;;  %v11221_v1 = vld [vmem:[#allocation17 + $0x114] sm:$0xf]  ;;  %v9759_v58 = vld [vmem:[#allocation17 + $0x108] sm:$0xf0] }
 0x37f   : > { %v4888_v4 = vpop.f32.mrf.mxu1 }
 0x380   : > { %5121 = vmatpush.bf16.msra.mxu2 %v9434_v61  ;;  %v11226_v61 = vld [vmem:[#allocation17 + $0x134] sm:$0xf0]  ;;  %v4875_v39 = vadd.f32 %v4874_v55, %v4861_v33  ;;  %v11219_v55 = vld [vmem:[#allocation17 + $0x104] sm:$0xf] }
 0x381   : > { %5135 = vmatpush.bf16.msra.mxu3 %v9562_v60  ;;  %v4848_v63 = vpop.f32.mrf.mxu2  ;;  %v4835_v60 = vadd.f32 %v4834_v59, %v4821_v53  ;;  %v11223_v59 = vld [vmem:[#allocation17 + $0x124] sm:$0xf]  ;;  %v9767_v53 = vld [vmem:[#allocation17 + $0x118] sm:$0xf0] }
 0x382   : > { %v4889_v54 = vadd.f32 %v4888_v4, %v4875_v39  ;;  %v9770_v52 = vor.u32 %v11221_v1, %v9767_v53  ;;  %v9871_v1 = vld [vmem:[#allocation17 + $0x1e8] sm:$0xf0] }
 0x384   : > { %5122 = vmatpush.bf16.msra.mxu2 %v9418_v3  ;;  %v9774_v3 = vor.u32 %v11224_v5, %v9773_v41 }
 0x385   : > { %5136 = vmatpush.bf16.msra.mxu3 %v9546_v14 }
 0x387   : > { %v4890_v62 = vpop.f32.mrf.mxu1 }
 0x388   : > { %5123 = vmatpush.bf16.msra.mxu2 %v9402_v28 }
 0x389   : > { %5137 = vmatpush.bf16.msra.mxu3 %v9530_v48  ;;  %v11233_v48 = vld [vmem:[#allocation17 + $0x174] sm:$0xf] }
 0x38a   : > { %v9818_v11 = vor.u32 %v11233_v48, %v9815_v25 }
 0x38c   : > { %5124 = vmatpush.bf16.msra.mxu2 %v9386_v24  ;;  %v11231_v24 = vld [vmem:[#allocation17 + $0x164] sm:$0xf] }
 0x38d   : > { %5138 = vmatpush.bf16.msra.mxu3 %v9514_v10  ;;  %v9807_v10 = vld [vmem:[#allocation17 + $0x168] sm:$0xf0] }
 0x38f   : > { %5125 = vmatmul.bf16.vlgmr.msra.gmra.mxu2 %v12678_v56  ;;  %v4849_v56 = vadd.f32 %v4848_v63, %v4835_v60  ;;  %v4930_v63 = vpop.f32.mrf.mxu0 }
 0x390   : > { %5575 = vmatpush.bf16.msrb.mxu2 %v9814_v32  ;;  %5139 = vmatmul.bf16.vlgmr.msra.gmra.mxu3 %v12680_v57  ;;  %v9782_v57 = vor.u32 %v11226_v61, %v9781_v35  ;;  %v9810_v32 = vor.u32 %v11231_v24, %v9807_v10  ;;  %v9877_v35 = vld [vmem:[#allocation17 + $0x1f0] sm:$0xf]  ;;  %v11250_v61 = vld [vmem:[#allocation17 + $0x1f4] sm:$0xf0] }
 0x391   : > { %v4863_v2 = vadd.f32 %v4862_v26, %v4849_v56  ;;  %v4944_v26 = vpop.f32.mrf.mxu1  ;;  %v9878_v60 = vor.u32 %v11250_v61, %v9877_v35  ;;  %v9869_v56 = vld [vmem:[#allocation17 + $0x1e0] sm:$0xf] }
 0x392   : > { %v4902_v14 = vpop.f32.mrf.mxu2 }
 0x393   : > { %v4916_v18 = vpop.f32.mrf.mxu3  ;;  %v4877_v38 = vadd.f32 %v4876_v42, %v4863_v2  ;;  %v4903_v28 = vadd.f32 %v4902_v14, %v4889_v54  ;;  %5589 = vmatpush.bf16.msrb.mxu3 %v9878_v60  ;;  %v9861_v2 = vld [vmem:[#allocation17 + $0x1d0] sm:$0xf]  ;;  %v11244_v42 = vld [vmem:[#allocation17 + $0x1c4] sm:$0xf0] }
 0x394   : > { %5576 = vmatpush.bf16.msrb.mxu2 %v9806_v15  ;;  %v9791_v15 = vld [vmem:[#allocation17 + $0x148] sm:$0xf0]  ;;  %v9854_v54 = vor.u32 %v11244_v42, %v9853_v20 }
 0x395   : > { %v4891_v19 = vadd.f32 %v4890_v62, %v4877_v38  ;;  %v4917_v34 = vadd.f32 %v4916_v18, %v4903_v28  ;;  %v9794_v40 = vor.u32 %v11227_v37, %v9791_v15  ;;  %v11654_v18 = vld [vmem:[#allocation16] sm:$0xf]  ;;  %v9837_v62 = vld [vmem:[#allocation17 + $0x1a0] sm:$0xf] }
 0x396   : > { %v1684_v13 = vperm.slane %v11654_v18, 3  ;;  %v9847_v18 = vld [vmem:[#allocation17 + $0x1b8] sm:$0xf0] }
 0x397   : > { %v5147_v17 = vmax.f32 %v4917_v34, 0.0  ;;  %v4932_v33 = vpop.f32.mrf.mxu0  ;;  %v11238_v34 = vld [vmem:[#allocation17 + $0x194] sm:$0xf0] }
 0x398   : > { %5577 = vmatpush.bf16.msrb.mxu2 %v9798_v6  ;;  %v9775_v6 = vld [vmem:[#allocation17 + $0x128] sm:$0xf0]  ;;  %v4931_v0 = vadd.f32 %v4930_v63, %v1684_v13  ;;  %v11245_v63 = vld [vmem:[#allocation17 + $0x1d4] sm:$0xf] }
 0x399   : > { %v9778_v51 = vor.u32 %v11223_v59, %v9775_v6  ;;  %v4946_v39 = vpop.f32.mrf.mxu1 }
 0x39a   : > { %v4904_v12 = vpop.f32.mrf.mxu2 }
 0x39b   : > { %v4918_v29 = vpop.f32.mrf.mxu3  ;;  %v4905_v9 = vadd.f32 %v4904_v12, %v4891_v19  ;;  %v11240_v19 = vld [vmem:[#allocation17 + $0x1a4] sm:$0xf0]  ;;  %v4945_v12 = vadd.f32 %v4944_v26, %v4931_v0  ;;  %v9863_v26 = vld [vmem:[#allocation17 + $0x1d8] sm:$0xf0]  ;;  %v11237_v0 = vld [vmem:[#allocation17 + $0x194] sm:$0xf] }
 0x39c   : > { %5578 = vmatpush.bf16.msrb.mxu2 %v9790_v21  ;;  %v9762_v21 = vor.u32 %v11219_v55, %v9759_v58  ;;  %v9866_v61 = vor.u32 %v11245_v63, %v9863_v26  ;;  %v9999_v26 = vld [vmem:[#allocation22 + $0xf0] sm:$0xf0] }
 0x39d   : > { %v4919_v45 = vadd.f32 %v4918_v29, %v4905_v9  ;;  %v9838_v29 = vor.u32 %v11240_v19, %v9837_v62  ;;  %v4933_v9 = vadd.f32 %v4932_v33, %v1684_v13 }
 0x39f   : > { %v5151_v36 = vmax.f32 %v4919_v45, 0.0  ;;  %v4986_v38 = vpop.f32.mrf.mxu0 }
 0x3a0   : > { %5579 = vmatpush.bf16.msrb.mxu2 %v9782_v57  ;;  %v11248_v57 = vld [vmem:[#allocation17 + $0x1e4] sm:$0xf0] }
 0x3a1   : > { %v5155_v31 = vpack.c.bf16 %v5151_v36, %v5147_v17  ;;  %v9870_v4 = vor.u32 %v11248_v57, %v9869_v56  ;;  %v11243_v56 = vld [vmem:[#allocation17 + $0x1c4] sm:$0xf]  ;;  %v9855_v57 = vld [vmem:[#allocation17 + $0x1c8] sm:$0xf0] }
 0x3a3   : > { %5590 = vmatpush.bf16.msrb.mxu3 %v9870_v4  ;;  %v9858_v4 = vor.u32 %v11243_v56, %v9855_v57  ;;  %v9983_v56 = vld [vmem:[#allocation22 + $0xd0] sm:$0xf0] }
 0x3a4   : > { %5580 = vmatpush.bf16.msrb.mxu2 %v9774_v3  ;;  %v11246_v3 = vld [vmem:[#allocation17 + $0x1d4] sm:$0xf0] }
 0x3a5   : > { %v9862_v14 = vor.u32 %v11246_v3, %v9861_v2 }
 0x3a7   : > { %5591 = vmatpush.bf16.msrb.mxu3 %v9862_v14  ;;  %v4988_v24 = vpop.f32.mrf.mxu0  ;;  %v11241_v14 = vld [vmem:[#allocation17 + $0x1b4] sm:$0xf] }
 0x3a8   : > { %5581 = vmatpush.bf16.msrb.mxu2 %v9766_v22  ;;  %v9845_v22 = vld [vmem:[#allocation17 + $0x1b0] sm:$0xf]  ;;  %v9850_v13 = vor.u32 %v11241_v14, %v9847_v18 }
 0x3a9   : > { %v9846_v28 = vor.u32 %v11242_v23, %v9845_v22  ;;  %v11377_v14 = vld [vmem:[#allocation22 + $0x1ec] sm:$0xf0] }
 0x3ab   : > { %5592 = vmatpush.bf16.msrb.mxu3 %v9854_v54  ;;  %v9839_v54 = vld [vmem:[#allocation17 + $0x1a8] sm:$0xf0] }
 0x3ac   : > { %5582 = vmatpush.bf16.msrb.mxu2 %v9758_v27  ;;  %v5000_v27 = vpop.f32.mrf.mxu1 }
 0x3af   : > { %5583 = vmatmul.bf16.vlgmr.msrb.gmra.mxu2 %v5155_v31  ;;  %5593 = vmatpush.bf16.msrb.mxu3 %v9846_v28  ;;  %v5042_v59 = vpop.f32.mrf.mxu0  ;;  %v9831_v28 = vld [vmem:[#allocation17 + $0x198] sm:$0xf0] }
 0x3b0   : > { %5631 = vmatpush.bf16.msra.mxu2 %v9818_v11  ;;  %v9829_v11 = vld [vmem:[#allocation17 + $0x190] sm:$0xf]  ;;  %v9834_v62 = vor.u32 %v11237_v0, %v9831_v28  ;;  %v10109_v0 = vld [vmem:[#allocation22 + $0x1c0] sm:$0xf]  ;;  %v11331_v28 = vld [vmem:[#allocation22 + $0x84] sm:$0xf] }
 0x3b1   : > { %v9830_v45 = vor.u32 %v11238_v34, %v9829_v11 }
 0x3b2   : > { %v4958_v41 = vpop.f32.mrf.mxu2 }
 0x3b3   : > { %v4972_v5 = vpop.f32.mrf.mxu3  ;;  %v4959_v10 = vadd.f32 %v4958_v41, %v4945_v12  ;;  %5594 = vmatpush.bf16.msrb.mxu3 %v9838_v29  ;;  %v11235_v12 = vld [vmem:[#allocation17 + $0x184] sm:$0xf]  ;;  %v9823_v29 = vld [vmem:[#allocation17 + $0x188] sm:$0xf0] }
 0x3b4   : > { %5632 = vmatpush.bf16.msra.mxu2 %v9810_v32  ;;  %v4947_v32 = vadd.f32 %v4946_v39, %v4933_v9  ;;  %v5002_v49 = vpop.f32.mrf.mxu1 }
 0x3b5   : > { %v4973_v30 = vadd.f32 %v4972_v5, %v4959_v10 }
 0x3b7   : > { %5595 = vmatpush.bf16.msrb.mxu3 %v9830_v45  ;;  %v5044_v41 = vpop.f32.mrf.mxu0 }
 0x3b8   : > { %5633 = vmatpush.bf16.msra.mxu2 %v9802_v16  ;;  %v11236_v16 = vld [vmem:[#allocation17 + $0x184] sm:$0xf0] }
 0x3ba   : > { %v4960_v48 = vpop.f32.mrf.mxu2 }
 0x3bb   : > { %v4974_v25 = vpop.f32.mrf.mxu3  ;;  %v4961_v37 = vadd.f32 %v4960_v48, %v4947_v32 }
 0x3bc   : > { %5634 = vmatpush.bf16.msra.mxu2 %v9794_v40  ;;  %v11249_v40 = vld [vmem:[#allocation17 + $0x1f4] sm:$0xf]  ;;  %v5056_v35 = vpop.f32.mrf.mxu1 }
 0x3bd   : > { %v9882_v47 = vor.u32 %v11249_v40, %v9879_v46  ;;  %v4975_v6 = vadd.f32 %v4974_v25, %v4961_v37 }
 0x3bf   : > { %v5098_v19 = vpop.f32.mrf.mxu0 }
 0x3c0   : > { %5635 = vmatpush.bf16.msra.mxu2 %v9786_v50  ;;  %v4987_v50 = vadd.f32 %v4986_v38, %v4973_v30  ;;  %v11239_v38 = vld [vmem:[#allocation17 + $0x1a4] sm:$0xf] }
 0x3c1   : > { %v9842_v23 = vor.u32 %v11239_v38, %v9839_v54  ;;  %v9949_v54 = vld [vmem:[#allocation22 + $0x80] sm:$0xf] }
 0x3c4   : > { %5636 = vmatpush.bf16.msra.mxu2 %v9778_v51  ;;  %v11247_v51 = vld [vmem:[#allocation17 + $0x1e4] sm:$0xf]  ;;  %v5058_v22 = vpop.f32.mrf.mxu1 }
 0x3c5   : > { %v9874_v53 = vor.u32 %v11247_v51, %v9871_v1 }
 0x3c8   : > { %5637 = vmatpush.bf16.msra.mxu2 %v9770_v52  ;;  %v5001_v52 = vadd.f32 %v5000_v27, %v4987_v50 }
 0x3cc   : > { %5638 = vmatpush.bf16.msra.mxu2 %v9762_v21  ;;  %v4989_v21 = vadd.f32 %v4988_v24, %v4975_v6  ;;  %v9826_v24 = vor.u32 %v11235_v12, %v9823_v29  ;;  %v5112_v32 = vpop.f32.mrf.mxu1 }
 0x3ce   : > { %v5003_v33 = vadd.f32 %v5002_v49, %v4989_v21  ;;  %v11343_v21 = vld [vmem:[#allocation22 + $0xe4] sm:$0xf] }
 0x3cf   : > { %5639 = vmatmul.bf16.vlgmr.msra.gmra.mxu2 %v5155_v31  ;;  %v9821_v31 = vld [vmem:[#allocation17 + $0x180] sm:$0xf] }
 0x3d0   : > { %v9822_v15 = vor.u32 %v11236_v16, %v9821_v31  ;;  %v5100_v31 = vpop.f32.mrf.mxu0 }
 0x3d2   : > { %v5014_v17 = vpop.f32.mrf.mxu2  ;;  %5596 = vmatpush.bf16.msrb.mxu3 %v9822_v15 }
 0x3d3   : > { %v5028_v36 = vpop.f32.mrf.mxu3  ;;  %v5015_v60 = vadd.f32 %v5014_v17, %v5001_v52 }
 0x3d4   : > { %v5114_v40 = vpop.f32.mrf.mxu1 }
 0x3d5   : > { %v5029_v5 = vadd.f32 %v5028_v36, %v5015_v60  ;;  %v10002_v60 = vor.u32 %v11343_v21, %v9999_v26  ;;  %v10063_v21 = vld [vmem:[#allocation22 + $0x170] sm:$0xf0]  ;;  %v9901_v26 = vld [vmem:[#allocation22 + $0x20] sm:$0xf] }
 0x3d6   : > { %5645 = vmatpush.bf16.msra.mxu3 %v9882_v47 }
 0x3d7   : > { %v5043_v20 = vadd.f32 %v5042_v59, %v5029_v5  ;;  %6143 = vmatpush.bf16.msrb.mxu2 %v10002_v60  ;;  %v11337_v5 = vld [vmem:[#allocation22 + $0xac] sm:$0xf0]  ;;  %v9903_v60 = vld [vmem:[#allocation22 + $0x30] sm:$0xf0] }
 0x3d9   : > { %v5057_v25 = vadd.f32 %v5056_v35, %v5043_v20  ;;  %v9981_v35 = vld [vmem:[#allocation22 + $0xc0] sm:$0xf]  ;;  %v11375_v20 = vld [vmem:[#allocation22 + $0x1e4] sm:$0xf] }
 0x3da   : > { %v5016_v55 = vpop.f32.mrf.mxu2  ;;  %5646 = vmatpush.bf16.msra.mxu3 %v9874_v53 }
 0x3db   : > { %v5030_v58 = vpop.f32.mrf.mxu3  ;;  %v5017_v39 = vadd.f32 %v5016_v55, %v5003_v33  ;;  %v9997_v55 = vld [vmem:[#allocation22 + $0xe0] sm:$0xf]  ;;  %v11339_v33 = vld [vmem:[#allocation22 + $0xc4] sm:$0xf] }
 0x3dd   : > { %v5031_v42 = vadd.f32 %v5030_v58, %v5017_v39  ;;  %v11345_v58 = vld [vmem:[#allocation22 + $0xec] sm:$0xf0]  ;;  %v11335_v39 = vld [vmem:[#allocation22 + $0xa4] sm:$0xf] }
 0x3de   : > { %5647 = vmatpush.bf16.msra.mxu3 %v9866_v61  ;;  %v9998_v63 = vor.u32 %v11345_v58, %v9997_v55  ;;  %v11341_v61 = vld [vmem:[#allocation22 + $0xcc] sm:$0xf0]  ;;  %v11359_v58 = vld [vmem:[#allocation22 + $0x164] sm:$0xf] }
 0x3df   : > { %v5045_v48 = vadd.f32 %v5044_v41, %v5031_v42  ;;  %v9982_v57 = vor.u32 %v11341_v61, %v9981_v35  ;;  %v9965_v41 = vld [vmem:[#allocation22 + $0xa0] sm:$0xf]  ;;  %v10127_v42 = vld [vmem:[#allocation22 + $0x1f0] sm:$0xf0]  ;;  %v11321_v35 = vld [vmem:[#allocation22 + $0x2c] sm:$0xf0] }
 0x3e0   : > { %6115 = vmatpush.bf16.msrb.mxu0 %v9998_v63  ;;  %v9966_v18 = vor.u32 %v11337_v5, %v9965_v41  ;;  %v11319_v61 = vld [vmem:[#allocation22 + $0x24] sm:$0xf]  ;;  %v9902_v41 = vor.u32 %v11321_v35, %v9901_v26  ;;  %v9885_v5 = vld [vmem:[#allocation22] sm:$0xf]  ;;  %v11378_v26 = vld [vmem:[#allocation22 + $0x1f4] sm:$0xf0] }
 0x3e1   : > { %v5059_v9 = vadd.f32 %v5058_v22, %v5045_v48  ;;  %v11333_v22 = vld [vmem:[#allocation22 + $0x8c] sm:$0xf0]  ;;  %v9951_v48 = vld [vmem:[#allocation22 + $0x90] sm:$0xf0]  ;;  %v11328_v35 = vld [vmem:[#allocation22 + $0x6c] sm:$0xf] }
 0x3e2   : > { %5648 = vmatpush.bf16.msra.mxu3 %v9858_v4  ;;  %v9986_v4 = vor.u32 %v11339_v33, %v9983_v56  ;;  %v9950_v12 = vor.u32 %v11333_v22, %v9949_v54  ;;  %v10066_v56 = vor.u32 %v11359_v58, %v10063_v21  ;;  %v10007_v22 = vld [vmem:[#allocation22 + $0xf8] sm:$0xf0] }
 0x3e4   : > { %6116 = vmatpush.bf16.msrb.mxu0 %v9982_v57  ;;  %6144 = vmatpush.bf16.msrb.mxu2 %v9986_v4  ;;  %v10045_v57 = vld [vmem:[#allocation22 + $0x140] sm:$0xf]  ;;  %v11357_v4 = vld [vmem:[#allocation22 + $0x14c] sm:$0xf0] }
 0x3e5   : > { %v10046_v54 = vor.u32 %v11357_v4, %v10045_v57 }
 0x3e6   : > { %5649 = vmatpush.bf16.msra.mxu3 %v9850_v13 }
 0x3e8   : > { %6117 = vmatpush.bf16.msrb.mxu0 %v9966_v18  ;;  %v11315_v18 = vld [vmem:[#allocation22 + $0x4] sm:$0xf] }
 0x3ea   : > { %5650 = vmatpush.bf16.msra.mxu3 %v9842_v23  ;;  %v10130_v23 = vor.u32 %v11375_v20, %v10127_v42  ;;  %v10005_v20 = vld [vmem:[#allocation22 + $0xe8] sm:$0xf]  ;;  %v11346_v42 = vld [vmem:[#allocation22 + $0xf4] sm:$0xf0] }
 0x3ec   : > { %6118 = vmatpush.bf16.msrb.mxu0 %v9950_v12 }
 0x3ee   : > { %5651 = vmatpush.bf16.msra.mxu3 %v9834_v62 }
 0x3f2   : > { %v5070_v2 = vpop.f32.mrf.mxu2  ;;  %5652 = vmatpush.bf16.msra.mxu3 %v9826_v24  ;;  %v9933_v24 = vld [vmem:[#allocation22 + $0x60] sm:$0xf] }
 0x3f3   : > { %v5084_v3 = vpop.f32.mrf.mxu3  ;;  %v5071_v27 = vadd.f32 %v5070_v2, %v5057_v25  ;;  %v9967_v2 = vld [vmem:[#allocation22 + $0xb0] sm:$0xf0]  ;;  %v11373_v25 = vld [vmem:[#allocation22 + $0x1cc] sm:$0xf0] }
 0x3f4   : > { %v9970_v38 = vor.u32 %v11335_v39, %v9967_v2  ;;  %v10110_v62 = vor.u32 %v11373_v25, %v10109_v0  ;;  %v11355_v39 = vld [vmem:[#allocation22 + $0x144] sm:$0xf]  ;;  %v10047_v2 = vld [vmem:[#allocation22 + $0x150] sm:$0xf0]  ;;  %v10029_v0 = vld [vmem:[#allocation22 + $0x120] sm:$0xf] }
 0x3f5   : > { %v5085_v10 = vadd.f32 %v5084_v3, %v5071_v27  ;;  %v10125_v3 = vld [vmem:[#allocation22 + $0x1e0] sm:$0xf]  ;;  %v10111_v27 = vld [vmem:[#allocation22 + $0x1d0] sm:$0xf0]  ;;  %v11351_v25 = vld [vmem:[#allocation22 + $0x124] sm:$0xf] }
 0x3f6   : > { %v10126_v13 = vor.u32 %v11377_v14, %v10125_v3  ;;  %6145 = vmatpush.bf16.msrb.mxu2 %v9970_v38  ;;  %v9906_v3 = vor.u32 %v11319_v61, %v9903_v60  ;;  %v11317_v14 = vld [vmem:[#allocation22 + $0xc] sm:$0xf0]  ;;  %v11344_v38 = vld [vmem:[#allocation22 + $0xec] sm:$0xf]  ;;  %v9943_v60 = vld [vmem:[#allocation22 + $0x78] sm:$0xf0] }
 0x3f7   : > { %v5099_v17 = vadd.f32 %v5098_v19, %v5085_v10  ;;  %v11371_v19 = vld [vmem:[#allocation22 + $0x1c4] sm:$0xf]  ;;  %v11329_v10 = vld [vmem:[#allocation22 + $0x6c] sm:$0xf0]  ;;  %v10010_v12 = vor.u32 %v11344_v38, %v10007_v22  ;;  %v9946_v57 = vor.u32 %v11328_v35, %v9943_v60  ;;  %v10119_v38 = vld [vmem:[#allocation22 + $0x1d8] sm:$0xf0] }
 0x3f8   : > { %6129 = vmatpush.bf16.msrb.mxu1 %v10126_v13  ;;  %v10114_v29 = vor.u32 %v11371_v19, %v10111_v27  ;;  %v9887_v13 = vld [vmem:[#allocation22 + $0x10] sm:$0xf0]  ;;  %v10006_v27 = vor.u32 %v11346_v42, %v10005_v20  ;;  %v11372_v42 = vld [vmem:[#allocation22 + $0x1cc] sm:$0xf]  ;;  %v9909_v22 = vld [vmem:[#allocation22 + $0x28] sm:$0xf] }
 0x3f9   : > { %v5113_v37 = vadd.f32 %v5112_v32, %v5099_v17  ;;  %v11327_v32 = vld [vmem:[#allocation22 + $0x64] sm:$0xf]  ;;  %v9935_v17 = vld [vmem:[#allocation22 + $0x70] sm:$0xf0]  ;;  %v9890_v19 = vor.u32 %v11315_v18, %v9887_v13  ;;  %v9927_v18 = vld [vmem:[#allocation22 + $0x58] sm:$0xf0] }
 0x3fa   : > { %v5072_v11 = vpop.f32.mrf.mxu2  ;;  %v11352_v35 = vld [vmem:[#allocation22 + $0x12c] sm:$0xf]  ;;  %v10039_v60 = vld [vmem:[#allocation22 + $0x138] sm:$0xf0] }
 0x3fb   : > { %v5086_v34 = vpop.f32.mrf.mxu3  ;;  %v5073_v45 = vadd.f32 %v5072_v11, %v5059_v9  ;;  %v10093_v11 = vld [vmem:[#allocation22 + $0x1a0] sm:$0xf]  ;;  %v9954_v9 = vor.u32 %v11331_v28, %v9951_v48  ;;  %v11353_v28 = vld [vmem:[#allocation22 + $0x12c] sm:$0xf0]  ;;  %v9886_v48 = vor.u32 %v11317_v14, %v9885_v5  ;;  %v11326_v5 = vld [vmem:[#allocation22 + $0x54] sm:$0xf0] }
 0x3fc   : > { %6130 = vmatpush.bf16.msrb.mxu1 %v10110_v62  ;;  %v10031_v62 = vld [vmem:[#allocation22 + $0x130] sm:$0xf0]  ;;  %v11324_v14 = vld [vmem:[#allocation22 + $0x4c] sm:$0xf] }
 0x3fd   : > { %v5087_v36 = vadd.f32 %v5086_v34, %v5073_v45  ;;  %v11369_v34 = vld [vmem:[#allocation22 + $0x1ac] sm:$0xf0]  ;;  %v11367_v45 = vld [vmem:[#allocation22 + $0x1a4] sm:$0xf]  ;;  %6146 = vmatpush.bf16.msrb.mxu2 %v9954_v9  ;;  %v11340_v9 = vld [vmem:[#allocation22 + $0xcc] sm:$0xf]  ;;  %v9930_v20 = vor.u32 %v11324_v14, %v9927_v18 }
 0x3ff   : > { %v5101_v16 = vadd.f32 %v5100_v31, %v5087_v36  ;;  %v10094_v36 = vor.u32 %v11369_v34, %v10093_v11  ;;  %v10077_v31 = vld [vmem:[#allocation22 + $0x180] sm:$0xf]  ;;  %v11342_v11 = vld [vmem:[#allocation22 + $0xd4] sm:$0xf0]  ;;  %v10030_v34 = vor.u32 %v11353_v28, %v10029_v0  ;;  %v10101_v0 = vld [vmem:[#allocation22 + $0x1a8] sm:$0xf] }
 0x401   : > { %v5115_v46 = vadd.f32 %v5114_v40, %v5101_v16  ;;  %v11365_v16 = vld [vmem:[#allocation22 + $0x18c] sm:$0xf0]  ;;  %v10079_v40 = vld [vmem:[#allocation22 + $0x190] sm:$0xf0]  ;;  %6131 = vmatpush.bf16.msrb.mxu1 %v10094_v36  ;;  %v11338_v36 = vld [vmem:[#allocation22 + $0xb4] sm:$0xf0] }
 0x412   : > { %v5126_v30 = vpop.f32.mrf.mxu2 }
 0x413   : > { %v5140_v49 = vpop.f32.mrf.mxu3  ;;  %v5127_v15 = vadd.f32 %v5126_v30, %v5113_v37  ;;  %v10095_v30 = vld [vmem:[#allocation22 + $0x1b0] sm:$0xf0]  ;;  %v9934_v37 = vor.u32 %v11329_v10, %v9933_v24  ;;  %v9991_v24 = vld [vmem:[#allocation22 + $0xd8] sm:$0xf0]  ;;  %v10034_v10 = vor.u32 %v11351_v25, %v10031_v62  ;;  %v11320_v25 = vld [vmem:[#allocation22 + $0x2c] sm:$0xf] }
 0x414   : > { %v9911_v62 = vld [vmem:[#allocation22 + $0x38] sm:$0xf0] }
 0x415   : > { %v5141_v50 = vadd.f32 %v5140_v49, %v5127_v15  ;;  %v10098_v49 = vor.u32 %v11367_v45, %v10095_v30  ;;  %v11363_v15 = vld [vmem:[#allocation22 + $0x184] sm:$0xf]  ;;  %6119 = vmatpush.bf16.msrb.mxu0 %v9934_v37  ;;  %v11336_v30 = vld [vmem:[#allocation22 + $0xac] sm:$0xf]  ;;  %v9957_v37 = vld [vmem:[#allocation22 + $0x88] sm:$0xf] }
 0x417   : > { %v5148_v1 = vmax.f32 %v5141_v50, 0.0  ;;  %v11325_v50 = vld [vmem:[#allocation22 + $0x4c] sm:$0xf0] }
 0x41a   : > { %v5128_v47 = vpop.f32.mrf.mxu2 }
 0x41b   : > { %v5129_v59 = vadd.f32 %v5128_v47, %v5115_v46  ;;  %v5142_v6 = vpop.f32.mrf.mxu3  ;;  %v9938_v46 = vor.u32 %v11327_v32, %v9935_v17  ;;  %v9917_v47 = vld [vmem:[#allocation22 + $0x40] sm:$0xf]  ;;  %v9994_v32 = vor.u32 %v11340_v9, %v9991_v24  ;;  %v9973_v17 = vld [vmem:[#allocation22 + $0xa8] sm:$0xf]  ;;  %v11318_v9 = vld [vmem:[#allocation22 + $0x14] sm:$0xf0] }
 0x41c   : > { %v9918_v55 = vor.u32 %v11325_v50, %v9917_v47  ;;  %v10085_v24 = vld [vmem:[#allocation22 + $0x188] sm:$0xf] }
 0x41d   : > { %v5143_v51 = vadd.f32 %v5142_v6, %v5129_v59  ;;  %v11323_v59 = vld [vmem:[#allocation22 + $0x44] sm:$0xf]  ;;  %v9919_v6 = vld [vmem:[#allocation22 + $0x50] sm:$0xf0]  ;;  %6147 = vmatpush.bf16.msrb.mxu2 %v9938_v46  ;;  %v9959_v46 = vld [vmem:[#allocation22 + $0x98] sm:$0xf0] }
 0x41e   : > { %v9922_v63 = vor.u32 %v11323_v59, %v9919_v6  ;;  %6120 = vmatpush.bf16.msrb.mxu0 %v9918_v55  ;;  %v10013_v59 = vld [vmem:[#allocation22 + $0x100] sm:$0xf]  ;;  %v11349_v6 = vld [vmem:[#allocation22 + $0x10c] sm:$0xf0]  ;;  %v11330_v55 = vld [vmem:[#allocation22 + $0x74] sm:$0xf0] }
 0x41f   : > { %v5152_v53 = vmax.f32 %v5143_v51, 0.0  ;;  %v10078_v51 = vor.u32 %v11365_v16, %v10077_v31  ;;  %v9974_v31 = vor.u32 %v11338_v36, %v9973_v17  ;;  %v9895_v17 = vld [vmem:[#allocation22 + $0x18] sm:$0xf0] }
 0x421   : > { %v5156_v52 = vpack.c.bf16 %v5152_v53, %v5148_v1  ;;  %v10082_v1 = vor.u32 %v11363_v15, %v10079_v40  ;;  %v10061_v53 = vld [vmem:[#allocation22 + $0x160] sm:$0xf]  ;;  %6132 = vmatpush.bf16.msrb.mxu1 %v10078_v51  ;;  %6148 = vmatpush.bf16.msrb.mxu2 %v9922_v63  ;;  %v11334_v15 = vld [vmem:[#allocation22 + $0x94] sm:$0xf0]  ;;  %v11332_v40 = vld [vmem:[#allocation22 + $0x8c] sm:$0xf] }
 0x422   : > { %6121 = vmatpush.bf16.msrb.mxu0 %v9902_v41  ;;  %v9958_v47 = vor.u32 %v11334_v15, %v9957_v37  ;;  %v9962_v50 = vor.u32 %v11332_v40, %v9959_v46  ;;  %v11347_v51 = vld [vmem:[#allocation22 + $0x104] sm:$0xf]  ;;  %v10133_v63 = vld [vmem:[#allocation22 + $0x1e8] sm:$0xf]  ;;  %v11362_v15 = vld [vmem:[#allocation22 + $0x174] sm:$0xf0] }
 0x423   : > { %5597 = vmatmul.bf16.vlgmr.msrb.gmra.mxu3 %v5156_v52  ;;  %v10134_v61 = vor.u32 %v11378_v26, %v10133_v63  ;;  %v9925_v41 = vld [vmem:[#allocation22 + $0x48] sm:$0xf]  ;;  %v11360_v40 = vld [vmem:[#allocation22 + $0x16c] sm:$0xf]  ;;  %v11354_v26 = vld [vmem:[#allocation22 + $0x134] sm:$0xf0] }
 0x424   : > { %6157 = vmatpush.bf16.msrb.mxu3 %v10130_v23  ;;  %v10050_v23 = vor.u32 %v11355_v39, %v10047_v2  ;;  %v10117_v39 = vld [vmem:[#allocation22 + $0x1c8] sm:$0xf]  ;;  %v9926_v2 = vor.u32 %v11326_v5, %v9925_v41  ;;  %v11350_v41 = vld [vmem:[#allocation22 + $0x114] sm:$0xf0]  ;;  %v11348_v5 = vld [vmem:[#allocation22 + $0x10c] sm:$0xf] }
 0x425   : > { %6149 = vmatpush.bf16.msrb.mxu2 %v9906_v3  ;;  %v11374_v3 = vld [vmem:[#allocation22 + $0x1d4] sm:$0xf0]  ;;  %v10069_v37 = vld [vmem:[#allocation22 + $0x168] sm:$0xf] }
 0x426   : > { %6122 = vmatpush.bf16.msrb.mxu0 %v9886_v48  ;;  %v10118_v13 = vor.u32 %v11374_v3, %v10117_v39  ;;  %v11370_v48 = vld [vmem:[#allocation22 + $0x1b4] sm:$0xf0]  ;;  %v10070_v46 = vor.u32 %v11362_v15, %v10069_v37  ;;  %v10037_v63 = vld [vmem:[#allocation22 + $0x128] sm:$0xf]  ;;  %v10023_v3 = vld [vmem:[#allocation22 + $0x118] sm:$0xf0] }
 0x427   : > { %v10026_v18 = vor.u32 %v11348_v5, %v10023_v3  ;;  %v10381_v3 = vld [vmem:[#allocation20 + $0x1e0] sm:$0xf] }
 0x428   : > { %6158 = vmatpush.bf16.msrb.mxu3 %v10114_v29  ;;  %v9989_v29 = vld [vmem:[#allocation22 + $0xc8] sm:$0xf] }
 0x429   : > { %6150 = vmatpush.bf16.msrb.mxu2 %v9890_v19  ;;  %v9990_v45 = vor.u32 %v11342_v11, %v9989_v29  ;;  %v10102_v19 = vor.u32 %v11370_v48, %v10101_v0  ;;  %v10103_v29 = vld [vmem:[#allocation22 + $0x1b8] sm:$0xf0] }
 0x42a   : > { %6171 = vmatpush.bf16.msra.mxu0 %v10006_v27  ;;  %v9914_v27 = vor.u32 %v11320_v25, %v9911_v62 }
 0x42c   : > { %6159 = vmatpush.bf16.msrb.mxu3 %v10098_v49  ;;  %v9975_v49 = vld [vmem:[#allocation22 + $0xb8] sm:$0xf0] }
 0x42d   : > { %6199 = vmatpush.bf16.msra.mxu2 %v10010_v12  ;;  %v9978_v16 = vor.u32 %v11336_v30, %v9975_v49  ;;  %v11368_v12 = vld [vmem:[#allocation22 + $0x1ac] sm:$0xf] }
 0x42e   : > { %6172 = vmatpush.bf16.msra.mxu0 %v9990_v45  ;;  %v10106_v11 = vor.u32 %v11368_v12, %v10103_v29  ;;  %v11366_v45 = vld [vmem:[#allocation22 + $0x194] sm:$0xf0]  ;;  %v11364_v49 = vld [vmem:[#allocation22 + $0x18c] sm:$0xf]  ;;  %v11281_v12 = vld [vmem:[#allocation20 + $0xec] sm:$0xf0] }
 0x42f   : > { %v10086_v36 = vor.u32 %v11366_v45, %v10085_v24  ;;  %v11279_v29 = vld [vmem:[#allocation20 + $0xe4] sm:$0xf] }
 0x430   : > { %6160 = vmatpush.bf16.msrb.mxu3 %v10082_v1  ;;  %v10014_v1 = vor.u32 %v11349_v6, %v10013_v59  ;;  %v5570_v6 = vpop.f32.mrf.mxu1 }
 0x431   : > { %6200 = vmatpush.bf16.msra.mxu2 %v9994_v32  ;;  %v11316_v32 = vld [vmem:[#allocation22 + $0xc] sm:$0xf] }
 0x432   : > { %6173 = vmatpush.bf16.msra.mxu0 %v9974_v31  ;;  %v9898_v30 = vor.u32 %v11316_v32, %v9895_v17  ;;  %v10087_v31 = vld [vmem:[#allocation22 + $0x198] sm:$0xf0]  ;;  %v10237_v17 = vld [vmem:[#allocation20 + $0xc0] sm:$0xf] }
 0x433   : > { %5653 = vmatmul.bf16.vlgmr.msra.gmra.mxu3 %v5156_v52  ;;  %v11361_v52 = vld [vmem:[#allocation22 + $0x16c] sm:$0xf0] }
 0x434   : > { %v10062_v33 = vor.u32 %v11361_v52, %v10061_v53  ;;  %6161 = vmatpush.bf16.msrb.mxu3 %v10066_v56  ;;  %v10015_v53 = vld [vmem:[#allocation22 + $0x110] sm:$0xf0]  ;;  %v9941_v52 = vld [vmem:[#allocation22 + $0x68] sm:$0xf]  ;;  %v10135_v56 = vld [vmem:[#allocation22 + $0x1f8] sm:$0xf0] }
 0x435   : > { %6201 = vmatpush.bf16.msra.mxu2 %v9978_v16  ;;  %v10018_v58 = vor.u32 %v11347_v51, %v10015_v53  ;;  %v9942_v21 = vor.u32 %v11330_v55, %v9941_v52  ;;  %v10090_v16 = vor.u32 %v11364_v49, %v10087_v31  ;;  %v10053_v51 = vld [vmem:[#allocation22 + $0x148] sm:$0xf]  ;;  %v11356_v53 = vld [vmem:[#allocation22 + $0x14c] sm:$0xf]  ;;  %v10055_v55 = vld [vmem:[#allocation22 + $0x158] sm:$0xf0] }
 0x436   : > { %6133 = vmatpush.bf16.msrb.mxu1 %v10062_v33  ;;  %6174 = vmatpush.bf16.msra.mxu0 %v9958_v47  ;;  %v11376_v33 = vld [vmem:[#allocation22 + $0x1ec] sm:$0xf]  ;;  %v10071_v47 = vld [vmem:[#allocation22 + $0x178] sm:$0xf0]  ;;  %v11275_v49 = vld [vmem:[#allocation20 + $0xc4] sm:$0xf] }
 0x437   : > { %v10138_v4 = vor.u32 %v11376_v33, %v10135_v56  ;;  %v10074_v59 = vor.u32 %v11360_v40, %v10071_v47  ;;  %v5221_v33 = vld [vmem:[#allocation19] sm:$0x3]  ;;  %v10042_v56 = vor.u32 %v11352_v35, %v10039_v60  ;;  %v10239_v31 = vld [vmem:[#allocation20 + $0xd0] sm:$0xf0]  ;;  %v11269_v35 = vld [vmem:[#allocation20 + $0x8c] sm:$0xf0] }
 0x438   : > { %6162 = vmatpush.bf16.msrb.mxu3 %v10050_v23  ;;  %v11322_v23 = vld [vmem:[#allocation22 + $0x34] sm:$0xf0]  ;;  %v5223_v39 = vperm.slane %v5221_v33, 0  ;;  %v5572_v14 = vpop.f32.mrf.mxu1  ;;  %v10242_v40 = vor.u32 %v11275_v49, %v10239_v31  ;;  %v10207_v60 = vld [vmem:[#allocation20 + $0x90] sm:$0xf0] }
 0x439   : > { %6202 = vmatpush.bf16.msra.mxu2 %v9962_v50  ;;  %v9910_v28 = vor.u32 %v11322_v23, %v9909_v22  ;;  %v5556_v50 = vpop.f32.mrf.mxu0  ;;  %v11305_v49 = vld [vmem:[#allocation20 + $0x1ac] sm:$0xf0]  ;;  %v11255_v31 = vld [vmem:[#allocation20 + $0x24] sm:$0xf] }
 0x43a   : > { %6134 = vmatpush.bf16.msrb.mxu1 %v10046_v54  ;;  %6175 = vmatpush.bf16.msra.mxu0 %v9942_v21  ;;  %v10122_v54 = vor.u32 %v11372_v42, %v10119_v38  ;;  %v5584_v21 = vpop.f32.mrf.mxu2 }
 0x43c   : > { %6163 = vmatpush.bf16.msrb.mxu3 %v10034_v10 }
 0x43d   : > { %6203 = vmatpush.bf16.msra.mxu2 %v9946_v57 }
 0x43e   : > { %6135 = vmatpush.bf16.msrb.mxu1 %v10030_v34  ;;  %6176 = vmatpush.bf16.msra.mxu0 %v9926_v2  ;;  %v9893_v34 = vld [vmem:[#allocation22 + $0x8] sm:$0xf] }
 0x43f   : > { %v9894_v10 = vor.u32 %v11318_v9, %v9893_v34 }
 0x440   : > { %6164 = vmatpush.bf16.msrb.mxu3 %v10018_v58  ;;  %v10058_v58 = vor.u32 %v11356_v53, %v10055_v55  ;;  %v5626_v25 = vpop.f32.mrf.mxu1 }
 0x441   : > { %6204 = vmatpush.bf16.msra.mxu2 %v9930_v20  ;;  %v5558_v57 = vpop.f32.mrf.mxu0  ;;  %v5557_v20 = vadd.f32 %v5556_v50, %v5223_v39  ;;  %v11273_v50 = vld [vmem:[#allocation20 + $0xac] sm:$0xf0] }
 0x442   : > { %6136 = vmatpush.bf16.msrb.mxu1 %v10014_v1  ;;  %6177 = vmatpush.bf16.msra.mxu0 %v9910_v28  ;;  %v11358_v1 = vld [vmem:[#allocation22 + $0x154] sm:$0xf0]  ;;  %v5586_v42 = vpop.f32.mrf.mxu2  ;;  %v5559_v38 = vadd.f32 %v5558_v57, %v5223_v39  ;;  %v10189_v39 = vld [vmem:[#allocation20 + $0x60] sm:$0xf] }
 0x443   : > { %v10054_v52 = vor.u32 %v11358_v1, %v10053_v51 }
 0x444   : > { %6213 = vmatpush.bf16.msra.mxu3 %v10138_v4  ;;  %v10021_v4 = vld [vmem:[#allocation22 + $0x108] sm:$0xf]  ;;  %v5573_v22 = vadd.f32 %v5572_v14, %v5559_v38  ;;  %v11313_v14 = vld [vmem:[#allocation20 + $0x1ec] sm:$0xf0]  ;;  %v11311_v38 = vld [vmem:[#allocation20 + $0x1e4] sm:$0xf] }
 0x445   : > { %6205 = vmatpush.bf16.msra.mxu2 %v9914_v27  ;;  %v10022_v2 = vor.u32 %v11350_v41, %v10021_v4 }
 0x446   : > { %6185 = vmatpush.bf16.msra.mxu1 %v10134_v61  ;;  %6178 = vmatpush.bf16.msra.mxu0 %v9894_v10  ;;  %v10038_v61 = vor.u32 %v11354_v26, %v10037_v63  ;;  %v5587_v28 = vadd.f32 %v5586_v42, %v5573_v22  ;;  %v5224_v10 = vperm.slane %v5221_v33, 1 }
 0x448   : > { %6214 = vmatpush.bf16.msra.mxu3 %v10122_v54  ;;  %v5571_v54 = vadd.f32 %v5570_v6, %v5557_v20  ;;  %v10223_v6 = vld [vmem:[#allocation20 + $0xb0] sm:$0xf0]  ;;  %v5628_v51 = vpop.f32.mrf.mxu1 }
 0x449   : > { %6206 = vmatpush.bf16.msra.mxu2 %v9898_v30  ;;  %v5612_v0 = vpop.f32.mrf.mxu0  ;;  %v11277_v30 = vld [vmem:[#allocation20 + $0xcc] sm:$0xf0] }
 0x44a   : > { %6186 = vmatpush.bf16.msra.mxu1 %v10118_v13  ;;  %v5585_v23 = vadd.f32 %v5584_v21, %v5571_v54  ;;  %v10238_v15 = vor.u32 %v11277_v30, %v10237_v17  ;;  %v5613_v47 = vadd.f32 %v5612_v0, %v5224_v10  ;;  %v10205_v21 = vld [vmem:[#allocation20 + $0x80] sm:$0xf]  ;;  %v10383_v54 = vld [vmem:[#allocation20 + $0x1f0] sm:$0xf0]  ;;  %v10382_v0 = vor.u32 %v11313_v14, %v10381_v3  ;;  %v11295_v3 = vld [vmem:[#allocation20 + $0x164] sm:$0xf] }
 0x44b   : > { %v10206_v4 = vor.u32 %v11269_v35, %v10205_v21  ;;  %v10349_v30 = vld [vmem:[#allocation20 + $0x1a0] sm:$0xf]  ;;  %v10261_v21 = vld [vmem:[#allocation20 + $0xe8] sm:$0xf]  ;;  %v10263_v35 = vld [vmem:[#allocation20 + $0xf8] sm:$0xf0] }
 0x44c   : > { %6215 = vmatpush.bf16.msra.mxu3 %v10106_v11  ;;  %v10255_v11 = vld [vmem:[#allocation20 + $0xf0] sm:$0xf0]  ;;  %v5627_v53 = vadd.f32 %v5626_v25, %v5613_v47  ;;  %v10141_v47 = vld [vmem:[#allocation20] sm:$0xf] }
 0x44d   : > { %v10258_v32 = vor.u32 %v11279_v29, %v10255_v11  ;;  %v10175_v29 = vld [vmem:[#allocation20 + $0x50] sm:$0xf0]  ;;  %v11307_v11 = vld [vmem:[#allocation20 + $0x1c4] sm:$0xf] }
 0x44e   : > { %6187 = vmatpush.bf16.msra.mxu1 %v10102_v19  ;;  %v10253_v19 = vld [vmem:[#allocation20 + $0xe0] sm:$0xf]  ;;  %v10319_v14 = vld [vmem:[#allocation20 + $0x170] sm:$0xf0] }
 0x44f   : > { %v10254_v45 = vor.u32 %v11281_v12, %v10253_v19  ;;  %v10365_v19 = vld [vmem:[#allocation20 + $0x1c0] sm:$0xf]  ;;  %v11259_v12 = vld [vmem:[#allocation20 + $0x44] sm:$0xf] }
 0x450   : > { %6216 = vmatpush.bf16.msra.mxu3 %v10090_v16 }
 0x451   : > { %v5614_v16 = vpop.f32.mrf.mxu0 }
 0x452   : > { %6188 = vmatpush.bf16.msra.mxu1 %v10086_v36  ;;  %v5640_v34 = vpop.f32.mrf.mxu2  ;;  %v5615_v1 = vadd.f32 %v5614_v16, %v5224_v10  ;;  %v10157_v10 = vld [vmem:[#allocation20 + $0x20] sm:$0xf]  ;;  %v10159_v16 = vld [vmem:[#allocation20 + $0x30] sm:$0xf0] }
 0x453   : > { %v5641_v26 = vadd.f32 %v5640_v34, %v5627_v53  ;;  %v10367_v34 = vld [vmem:[#allocation20 + $0x1d0] sm:$0xf0]  ;;  %v11251_v53 = vld [vmem:[#allocation20 + $0x4] sm:$0xf] }
 0x454   : > { %6217 = vmatpush.bf16.msra.mxu3 %v10074_v59  ;;  %v11271_v59 = vld [vmem:[#allocation20 + $0xa4] sm:$0xf]  ;;  %v5629_v63 = vadd.f32 %v5628_v51, %v5615_v1  ;;  %v10370_v17 = vor.u32 %v11307_v11, %v10367_v34  ;;  %v11301_v1 = vld [vmem:[#allocation20 + $0x18c] sm:$0xf0] }
 0x456   : > { %6189 = vmatpush.bf16.msra.mxu1 %v10070_v46  ;;  %v10221_v46 = vld [vmem:[#allocation20 + $0xa0] sm:$0xf] }
 0x457   : > { %v10222_v55 = vor.u32 %v11273_v50, %v10221_v46  ;;  %v10350_v46 = vor.u32 %v11305_v49, %v10349_v30  ;;  %v11253_v50 = vld [vmem:[#allocation20 + $0xc] sm:$0xf0]  ;;  %v11270_v30 = vld [vmem:[#allocation20 + $0x94] sm:$0xf0]  ;;  %v11268_v49 = vld [vmem:[#allocation20 + $0x8c] sm:$0xf] }
 0x458   : > { %6218 = vmatpush.bf16.msra.mxu3 %v10058_v58  ;;  %v10226_v58 = vor.u32 %v11271_v59, %v10223_v6  ;;  %v10333_v59 = vld [vmem:[#allocation20 + $0x180] sm:$0xf]  ;;  %v10162_v6 = vor.u32 %v11255_v31, %v10159_v16  ;;  %v10215_v31 = vld [vmem:[#allocation20 + $0x98] sm:$0xf0] }
 0x45a   : > { %6190 = vmatpush.bf16.msra.mxu1 %v10054_v52  ;;  %v5642_v52 = vpop.f32.mrf.mxu2 }
 0x45b   : > { %v5643_v33 = vadd.f32 %v5642_v52, %v5629_v63  ;;  %v10143_v52 = vld [vmem:[#allocation20 + $0x10] sm:$0xf0]  ;;  %v11282_v63 = vld [vmem:[#allocation20 + $0xf4] sm:$0xf0] }
 0x45c   : > { %6219 = vmatpush.bf16.msra.mxu3 %v10042_v56 }
 0x45e   : > { %6191 = vmatpush.bf16.msra.mxu1 %v10038_v61  ;;  %v11267_v61 = vld [vmem:[#allocation20 + $0x84] sm:$0xf] }
 0x45f   : > { %v10210_v41 = vor.u32 %v11267_v61, %v10207_v60  ;;  %v10142_v60 = vor.u32 %v11253_v50, %v10141_v47  ;;  %v11283_v47 = vld [vmem:[#allocation20 + $0x104] sm:$0xf]  ;;  %v10271_v50 = vld [vmem:[#allocation20 + $0x110] sm:$0xf0] }
 0x460   : > { %6220 = vmatpush.bf16.msra.mxu3 %v10026_v18  ;;  %v11263_v18 = vld [vmem:[#allocation20 + $0x64] sm:$0xf] }
 0x462   : > { %6192 = vmatpush.bf16.msra.mxu1 %v10022_v2  ;;  %v11265_v2 = vld [vmem:[#allocation20 + $0x6c] sm:$0xf0] }
 0x4a6   : > { %v5598_v13 = vpop.f32.mrf.mxu3 }
 0x4a7   : > { %v5599_v48 = vadd.f32 %v5598_v13, %v5585_v23  ;;  %v10191_v13 = vld [vmem:[#allocation20 + $0x70] sm:$0xf0]  ;;  %v10190_v23 = vor.u32 %v11265_v2, %v10189_v39  ;;  %v10262_v39 = vor.u32 %v11282_v63, %v10261_v21  ;;  %v11312_v21 = vld [vmem:[#allocation20 + $0x1ec] sm:$0xf]  ;;  %v10391_v63 = vld [vmem:[#allocation20 + $0x1f8] sm:$0xf0] }
 0x4a8   : > { %v10194_v25 = vor.u32 %v11263_v18, %v10191_v13  ;;  %v10245_v18 = vld [vmem:[#allocation20 + $0xc8] sm:$0xf]  ;;  %v11278_v13 = vld [vmem:[#allocation20 + $0xd4] sm:$0xf0] }
 0x4a9   : > { %v5659_v9 = vmax.f32 %v5599_v48, 0.0  ;;  %v11261_v48 = vld [vmem:[#allocation20 + $0x4c] sm:$0xf0] }
 0x4ae   : > { %v5600_v62 = vpop.f32.mrf.mxu3 }
 0x4af   : > { %v5601_v27 = vadd.f32 %v5600_v62, %v5587_v28  ;;  %v10173_v28 = vld [vmem:[#allocation20 + $0x40] sm:$0xf]  ;;  %v10386_v62 = vor.u32 %v11311_v38, %v10383_v54 }
 0x4b1   : > { %v5661_v24 = vmax.f32 %v5601_v27, 0.0  ;;  %v11309_v27 = vld [vmem:[#allocation20 + $0x1cc] sm:$0xf0] }
 0x4b3   : > { %v12818_v36 = vpack.c.bf16 %v5661_v24, %v5659_v9  ;;  %v10174_v9 = vor.u32 %v11261_v48, %v10173_v28  ;;  %v10366_v24 = vor.u32 %v11309_v27, %v10365_v19  ;;  %v11293_v28 = vld [vmem:[#allocation20 + $0x14c] sm:$0xf0]  ;;  %v10303_v19 = vld [vmem:[#allocation20 + $0x150] sm:$0xf0]  ;;  %v10229_v27 = vld [vmem:[#allocation20 + $0xa8] sm:$0xf] }
 0x4b5   : > { %6123 = vmatmul.bf16.vlgmr.msrb.gmra.mxu0 %v12818_v36  ;;  %6151 = vmatmul.bf16.vlgmr.msrb.gmra.mxu2 %v12818_v36 }
 0x4b6   : > { %6547 = vmatpush.bf16.msrb.mxu0 %v10254_v45  ;;  %6575 = vmatpush.bf16.msrb.mxu2 %v10258_v32  ;;  %v5654_v37 = vpop.f32.mrf.mxu3  ;;  %v11257_v45 = vld [vmem:[#allocation20 + $0x2c] sm:$0xf0]  ;;  %v10178_v32 = vor.u32 %v11259_v12, %v10175_v29  ;;  %v11272_v12 = vld [vmem:[#allocation20 + $0xac] sm:$0xf]  ;;  %v10231_v29 = vld [vmem:[#allocation20 + $0xb8] sm:$0xf0] }
 0x4b7   : > { %v5655_v56 = vadd.f32 %v5654_v37, %v5641_v26  ;;  %v11303_v37 = vld [vmem:[#allocation20 + $0x1a4] sm:$0xf]  ;;  %v11280_v26 = vld [vmem:[#allocation20 + $0xec] sm:$0xf] }
 0x4b8   : > { %v10266_v2 = vor.u32 %v11280_v26, %v10263_v35  ;;  %v10274_v35 = vor.u32 %v11283_v47, %v10271_v50  ;;  %v10309_v47 = vld [vmem:[#allocation20 + $0x148] sm:$0xf]  ;;  %v11294_v50 = vld [vmem:[#allocation20 + $0x154] sm:$0xf0] }
 0x4b9   : > { %v5660_v20 = vmax.f32 %v5655_v56, 0.0  ;;  %v10146_v56 = vor.u32 %v11251_v53, %v10143_v52  ;;  %v11314_v53 = vld [vmem:[#allocation20 + $0x1f4] sm:$0xf0] }
 0x4ba   : > { %6548 = vmatpush.bf16.msrb.mxu0 %v10238_v15  ;;  %6576 = vmatpush.bf16.msrb.mxu2 %v10242_v40  ;;  %v10351_v15 = vld [vmem:[#allocation20 + $0x1b0] sm:$0xf0]  ;;  %v12828_v40 = vld [vmem:[#allocation13] sm:$0x3] }
 0x4bb   : > { %v10354_v51 = vor.u32 %v11303_v37, %v10351_v15  ;;  %v1007_v61 = vperm.slane %v12828_v40, 0  ;;  %v1008_v16 = vperm.slane %v12828_v40, 1  ;;  %v10269_v15 = vld [vmem:[#allocation20 + $0x100] sm:$0xf]  ;;  %v11266_v52 = vld [vmem:[#allocation20 + $0x74] sm:$0xf0] }
 0x4bd   : > { %v1101_v38 = vadd.f32 %v12700_v7, %v1007_v61  ;;  %v11274_v7 = vld [vmem:[#allocation20 + $0xb4] sm:$0xf0]  ;;  %v1117_v26 = vadd.f32 %v12707_v44, %v1008_v16 }
 0x4be   : > { %6549 = vmatpush.bf16.msrb.mxu0 %v10222_v55  ;;  %6577 = vmatpush.bf16.msrb.mxu2 %v10226_v58  ;;  %v5656_v57 = vpop.f32.mrf.mxu3  ;;  %v11299_v55 = vld [vmem:[#allocation20 + $0x184] sm:$0xf]  ;;  %v10335_v58 = vld [vmem:[#allocation20 + $0x190] sm:$0xf0] }
 0x4bf   : > { %v5657_v5 = vadd.f32 %v5656_v57, %v5643_v33  ;;  %v10334_v33 = vor.u32 %v11301_v1, %v10333_v59  ;;  %v10338_v57 = vor.u32 %v11299_v55, %v10335_v58  ;;  %v10389_v1 = vld [vmem:[#allocation20 + $0x1e8] sm:$0xf]  ;;  %v11264_v55 = vld [vmem:[#allocation20 + $0x6c] sm:$0xf]  ;;  %v10199_v58 = vld [vmem:[#allocation20 + $0x78] sm:$0xf0] }
 0x4c1   : > { %v5662_v42 = vmax.f32 %v5657_v5, 0.0  ;;  %v1103_v5 = vadd.f32 %v12705_v43, %v1007_v61  ;;  %v10246_v43 = vor.u32 %v11278_v13, %v10245_v18  ;;  %v10390_v61 = vor.u32 %v11314_v53, %v10389_v1  ;;  %v10375_v18 = vld [vmem:[#allocation20 + $0x1d8] sm:$0xf0]  ;;  %v10293_v53 = vld [vmem:[#allocation20 + $0x128] sm:$0xf] }
 0x4c2   : > { %6550 = vmatpush.bf16.msrb.mxu0 %v10206_v4  ;;  %6578 = vmatpush.bf16.msrb.mxu2 %v10210_v41  ;;  %v10317_v4 = vld [vmem:[#allocation20 + $0x160] sm:$0xf]  ;;  %v11297_v41 = vld [vmem:[#allocation20 + $0x16c] sm:$0xf0] }
 0x4c3   : > { %v12822_v22 = vpack.c.bf16 %v5662_v42, %v5660_v20  ;;  %v11276_v20 = vld [vmem:[#allocation20 + $0xcc] sm:$0xf]  ;;  %v10247_v42 = vld [vmem:[#allocation20 + $0xd8] sm:$0xf0]  ;;  %v10318_v54 = vor.u32 %v11297_v41, %v10317_v4  ;;  %v12833_v48 = vpack.c.bf16 %v1103_v5, %v1101_v38  ;;  %v11310_v4 = vld [vmem:[#allocation20 + $0x1d4] sm:$0xf0]  ;;  %v1115_v41 = vadd.f32 %v12702_v8, %v1008_v16 }
 0x4c4   : > { %v10394_v5 = vor.u32 %v11312_v21, %v10391_v63  ;;  %v10165_v38 = vld [vmem:[#allocation20 + $0x28] sm:$0xf]  ;;  %v11298_v16 = vld [vmem:[#allocation20 + $0x174] sm:$0xf0] }
 0x4c5   : > { %6137 = vmatmul.bf16.vlgmr.msrb.gmra.mxu1 %v12822_v22  ;;  %6165 = vmatmul.bf16.vlgmr.msrb.gmra.mxu3 %v12822_v22  ;;  %v12842_v44 = vpack.c.bf16 %v1117_v26, %v1115_v41  ;;  %v10277_v63 = vld [vmem:[#allocation20 + $0x108] sm:$0xf]  ;;  %v11286_v26 = vld [vmem:[#allocation20 + $0x114] sm:$0xf0]  ;;  %v11392_v41 = vld [vmem:[#allocation25 + $0x64] sm:$0xf0] }
 0x4c6   : > { %6179 = vmatmul.bf16.vlgmr.msra.gmra.mxu0 %v12818_v36  ;;  %6207 = vmatmul.bf16.vlgmr.msra.gmra.mxu2 %v12818_v36  ;;  %v10158_v36 = vor.u32 %v11257_v45, %v10157_v10  ;;  %v10230_v10 = vor.u32 %v11274_v7, %v10229_v27  ;;  %v10234_v45 = vor.u32 %v11272_v12, %v10231_v29  ;;  %v10149_v12 = vld [vmem:[#allocation20 + $0x8] sm:$0xf] }
 0x4c7   : > { %6551 = vmatpush.bf16.msrb.mxu0 %v10190_v23  ;;  %6561 = vmatpush.bf16.msrb.mxu1 %v10382_v0  ;;  %v10322_v23 = vor.u32 %v11295_v3, %v10319_v14  ;;  %v10301_v0 = vld [vmem:[#allocation20 + $0x140] sm:$0xf]  ;;  %v10183_v3 = vld [vmem:[#allocation20 + $0x58] sm:$0xf0]  ;;  %v11308_v14 = vld [vmem:[#allocation20 + $0x1cc] sm:$0xf] }
 0x4c8   : > { %6579 = vmatpush.bf16.msrb.mxu2 %v10194_v25  ;;  %6589 = vmatpush.bf16.msrb.mxu3 %v10386_v62  ;;  %v10250_v25 = vor.u32 %v11276_v20, %v10247_v42  ;;  %v11291_v62 = vld [vmem:[#allocation20 + $0x144] sm:$0xf]  ;;  %v10302_v11 = vor.u32 %v11293_v28, %v10301_v0  ;;  %v10378_v8 = vor.u32 %v11308_v14, %v10375_v18  ;;  %v11258_v0 = vld [vmem:[#allocation20 + $0x34] sm:$0xf0]  ;;  %v11256_v28 = vld [vmem:[#allocation20 + $0x2c] sm:$0xf] }
 0x4c9   : > { %v10306_v34 = vor.u32 %v11291_v62, %v10303_v19  ;;  %v10359_v62 = vld [vmem:[#allocation20 + $0x1b8] sm:$0xf0]  ;;  %v10166_v27 = vor.u32 %v11258_v0, %v10165_v38  ;;  %v10341_v29 = vld [vmem:[#allocation20 + $0x188] sm:$0xf]  ;;  %v10501_v0 = vld [vmem:[#allocation25 + $0xd0] sm:$0xf] }
 0x4ca   : > { %v11390_v14 = vld [vmem:[#allocation25 + $0x54] sm:$0xf0] }
 0x4cb   : > { %6552 = vmatpush.bf16.msrb.mxu0 %v10174_v9  ;;  %6562 = vmatpush.bf16.msrb.mxu1 %v10366_v24  ;;  %v10285_v9 = vld [vmem:[#allocation20 + $0x120] sm:$0xf]  ;;  %v11289_v24 = vld [vmem:[#allocation20 + $0x12c] sm:$0xf0] }
 0x4cc   : > { %6580 = vmatpush.bf16.msrb.mxu2 %v10178_v32  ;;  %6590 = vmatpush.bf16.msrb.mxu3 %v10370_v17  ;;  %v11287_v32 = vld [vmem:[#allocation20 + $0x124] sm:$0xf]  ;;  %v10287_v17 = vld [vmem:[#allocation20 + $0x130] sm:$0xf0]  ;;  %v10286_v37 = vor.u32 %v11289_v24, %v10285_v9  ;;  %v11254_v9 = vld [vmem:[#allocation20 + $0x14] sm:$0xf0] }
 0x4cd   : > { %v11252_v24 = vld [vmem:[#allocation20 + $0xc] sm:$0xf] }
 0x4cf   : > { %6553 = vmatpush.bf16.msrb.mxu0 %v10158_v36  ;;  %6563 = vmatpush.bf16.msrb.mxu1 %v10350_v46  ;;  %v10290_v36 = vor.u32 %v11287_v32, %v10287_v17  ;;  %v11285_v46 = vld [vmem:[#allocation20 + $0x10c] sm:$0xf0]  ;;  %v10343_v32 = vld [vmem:[#allocation20 + $0x198] sm:$0xf0] }
 0x4d0   : > { %6581 = vmatpush.bf16.msrb.mxu2 %v10162_v6  ;;  %6591 = vmatpush.bf16.msrb.mxu3 %v10354_v51  ;;  %v10218_v6 = vor.u32 %v11268_v49, %v10215_v31  ;;  %v10197_v51 = vld [vmem:[#allocation20 + $0x68] sm:$0xf]  ;;  %v10270_v40 = vor.u32 %v11285_v46, %v10269_v15  ;;  %v10327_v15 = vld [vmem:[#allocation20 + $0x178] sm:$0xf0] }
 0x4d1   : > { %v10325_v31 = vld [vmem:[#allocation20 + $0x168] sm:$0xf] }
 0x4d3   : > { %6554 = vmatpush.bf16.msrb.mxu0 %v10142_v60  ;;  %6564 = vmatpush.bf16.msrb.mxu1 %v10334_v33  ;;  %v10198_v60 = vor.u32 %v11266_v52, %v10197_v51  ;;  %v10202_v33 = vor.u32 %v11264_v55, %v10199_v58  ;;  %v10310_v51 = vor.u32 %v11294_v50, %v10309_v47  ;;  %v11290_v52 = vld [vmem:[#allocation20 + $0x134] sm:$0xf0]  ;;  %v11288_v55 = vld [vmem:[#allocation20 + $0x12c] sm:$0xf]  ;;  %v10295_v58 = vld [vmem:[#allocation20 + $0x138] sm:$0xf0] }
 0x4d4   : > { %6582 = vmatpush.bf16.msrb.mxu2 %v10146_v56  ;;  %6592 = vmatpush.bf16.msrb.mxu3 %v10338_v57  ;;  %v10181_v56 = vld [vmem:[#allocation20 + $0x48] sm:$0xf]  ;;  %v10298_v21 = vor.u32 %v11288_v55, %v10295_v58  ;;  %v10581_v47 = vld [vmem:[#allocation25 + $0x170] sm:$0xf]  ;;  %v11426_v50 = vld [vmem:[#allocation25 + $0x174] sm:$0xf0] }
 0x4d5   : > { %6193 = vmatmul.bf16.vlgmr.msra.gmra.mxu1 %v12822_v22  ;;  %6221 = vmatmul.bf16.vlgmr.msra.gmra.mxu3 %v12822_v22  ;;  %v10213_v22 = vld [vmem:[#allocation20 + $0x88] sm:$0xf]  ;;  %v11398_v55 = vld [vmem:[#allocation25 + $0x94] sm:$0xf0] }
 0x4d6   : > { %6555 = vmatmul.bf16.vlgmr.msrb.gmra.mxu0 %v12833_v48  ;;  %v10214_v59 = vor.u32 %v11270_v30, %v10213_v22  ;;  %v10373_v57 = vld [vmem:[#allocation20 + $0x1c8] sm:$0xf]  ;;  %v10150_v22 = vor.u32 %v11254_v9, %v10149_v12 }
 0x4d7   : > { %6603 = vmatpush.bf16.msra.mxu0 %v10262_v39  ;;  %6565 = vmatpush.bf16.msrb.mxu1 %v10318_v54  ;;  %v11262_v39 = vld [vmem:[#allocation20 + $0x54] sm:$0xf0]  ;;  %v10374_v13 = vor.u32 %v11310_v4, %v10373_v57  ;;  %v10357_v54 = vld [vmem:[#allocation20 + $0x1a8] sm:$0xf]  ;;  %v10445_v4 = vld [vmem:[#allocation25 + $0x60] sm:$0xf] }
 0x4d8   : > { %6631 = vmatpush.bf16.msra.mxu2 %v10266_v2  ;;  %6593 = vmatpush.bf16.msrb.mxu3 %v10322_v23  ;;  %v11260_v2 = vld [vmem:[#allocation20 + $0x4c] sm:$0xf]  ;;  %v10182_v20 = vor.u32 %v11262_v39, %v10181_v56  ;;  %v11306_v23 = vld [vmem:[#allocation20 + $0x1b4] sm:$0xf0]  ;;  %v11394_v56 = vld [vmem:[#allocation25 + $0x74] sm:$0xf0]  ;;  %v10446_v39 = vor.u32 %v11392_v41, %v10445_v4 }
 0x4d9   : > { %6583 = vmatmul.bf16.vlgmr.msrb.gmra.mxu2 %v12833_v48  ;;  %v10186_v42 = vor.u32 %v11260_v2, %v10183_v3  ;;  %v10358_v19 = vor.u32 %v11306_v23, %v10357_v54  ;;  %v11410_v2 = vld [vmem:[#allocation25 + $0xf4] sm:$0xf0]  ;;  %v10437_v3 = vld [vmem:[#allocation25 + $0x50] sm:$0xf]  ;;  %v11388_v54 = vld [vmem:[#allocation25 + $0x44] sm:$0xf0] }
 0x4da   : > { %v10645_v4 = vld [vmem:[#allocation25 + $0x1f0] sm:$0xf] }
 0x4db   : > { %6604 = vmatpush.bf16.msra.mxu0 %v10246_v43  ;;  %6566 = vmatpush.bf16.msrb.mxu1 %v10302_v11  ;;  %v10167_v43 = vld [vmem:[#allocation20 + $0x38] sm:$0xf0]  ;;  %v11302_v11 = vld [vmem:[#allocation20 + $0x194] sm:$0xf0] }
 0x4dc   : > { %6632 = vmatpush.bf16.msra.mxu2 %v10250_v25  ;;  %6594 = vmatpush.bf16.msrb.mxu3 %v10306_v34  ;;  %v11304_v25 = vld [vmem:[#allocation20 + $0x1ac] sm:$0xf]  ;;  %v10170_v7 = vor.u32 %v11256_v28, %v10167_v43  ;;  %v10342_v17 = vor.u32 %v11302_v11, %v10341_v29  ;;  %v11406_v28 = vld [vmem:[#allocation25 + $0xd4] sm:$0xf0]  ;;  %v10421_v43 = vld [vmem:[#allocation25 + $0x30] sm:$0xf] }
 0x4dd   : > { %v10362_v34 = vor.u32 %v11304_v25, %v10359_v62  ;;  %v10502_v25 = vor.u32 %v11406_v28, %v10501_v0  ;;  %v11386_v62 = vld [vmem:[#allocation25 + $0x34] sm:$0xf0]  ;;  %v10413_v11 = vld [vmem:[#allocation25 + $0x20] sm:$0xf]  ;;  %v11407_v28 = vld [vmem:[#allocation25 + $0xe4] sm:$0xf] }
 0x4df   : > { %6605 = vmatpush.bf16.msra.mxu0 %v10230_v10  ;;  %6567 = vmatpush.bf16.msrb.mxu1 %v10286_v37  ;;  %v10151_v10 = vld [vmem:[#allocation20 + $0x18] sm:$0xf0]  ;;  %v11296_v37 = vld [vmem:[#allocation20 + $0x16c] sm:$0xf] }
 0x4e0   : > { %6633 = vmatpush.bf16.msra.mxu2 %v10234_v45  ;;  %6595 = vmatpush.bf16.msrb.mxu3 %v10290_v36  ;;  %v11300_v45 = vld [vmem:[#allocation20 + $0x18c] sm:$0xf]  ;;  %v10154_v30 = vor.u32 %v11252_v24, %v10151_v10  ;;  %v10326_v36 = vor.u32 %v11298_v16, %v10325_v31  ;;  %v10330_v46 = vor.u32 %v11296_v37, %v10327_v15  ;;  %v10485_v24 = vld [vmem:[#allocation25 + $0xb0] sm:$0xf]  ;;  %v11402_v10 = vld [vmem:[#allocation25 + $0xb4] sm:$0xf0] }
 0x4e1   : > { %v10346_v49 = vor.u32 %v11300_v45, %v10343_v32  ;;  %v10405_v45 = vld [vmem:[#allocation25 + $0x10] sm:$0xf]  ;;  %v10486_v32 = vor.u32 %v11402_v10, %v10485_v24  ;;  %v10477_v31 = vld [vmem:[#allocation25 + $0xa0] sm:$0xf]  ;;  %v11400_v16 = vld [vmem:[#allocation25 + $0xa4] sm:$0xf0] }
 0x4e2   : > { %v10478_v37 = vor.u32 %v11400_v16, %v10477_v31  ;;  %v10397_v15 = vld [vmem:[#allocation25] sm:$0xf]  ;;  %v10629_v24 = vld [vmem:[#allocation25 + $0x1d0] sm:$0xf]  ;;  %v11438_v10 = vld [vmem:[#allocation25 + $0x1d4] sm:$0xf0] }
 0x4e3   : > { %6606 = vmatpush.bf16.msra.mxu0 %v10214_v59  ;;  %6568 = vmatpush.bf16.msrb.mxu1 %v10270_v40  ;;  %v11292_v59 = vld [vmem:[#allocation20 + $0x14c] sm:$0xf]  ;;  %v10294_v40 = vor.u32 %v11290_v52, %v10293_v53  ;;  %v10469_v53 = vld [vmem:[#allocation25 + $0x90] sm:$0xf]  ;;  %v10503_v31 = vld [vmem:[#allocation25 + $0xd8] sm:$0xf0] }
 0x4e4   : > { %6634 = vmatpush.bf16.msra.mxu2 %v10218_v6  ;;  %6596 = vmatpush.bf16.msrb.mxu3 %v10274_v35  ;;  %v10311_v6 = vld [vmem:[#allocation20 + $0x158] sm:$0xf0]  ;;  %v11284_v35 = vld [vmem:[#allocation20 + $0x10c] sm:$0xf] }
 0x4e5   : > { %v10314_v1 = vor.u32 %v11292_v59, %v10311_v6  ;;  %v10582_v6 = vor.u32 %v11426_v50, %v10581_v47  ;;  %v10423_v47 = vld [vmem:[#allocation25 + $0x38] sm:$0xf0] }
 0x4e6   : > { %6569 = vmatmul.bf16.vlgmr.msrb.gmra.mxu1 %v12842_v44 }
 0x4e7   : > { %6617 = vmatpush.bf16.msra.mxu1 %v10390_v61  ;;  %6607 = vmatpush.bf16.msra.mxu0 %v10198_v60  ;;  %v10279_v61 = vld [vmem:[#allocation20 + $0x118] sm:$0xf0]  ;;  %v10278_v60 = vor.u32 %v11286_v26, %v10277_v63  ;;  %v11424_v63 = vld [vmem:[#allocation25 + $0x164] sm:$0xf0] }
 0x4e8   : > { %6635 = vmatpush.bf16.msra.mxu2 %v10202_v33  ;;  %6645 = vmatpush.bf16.msra.mxu3 %v10394_v5  ;;  %v10453_v33 = vld [vmem:[#allocation25 + $0x70] sm:$0xf] }
 0x4e9   : > { %6597 = vmatmul.bf16.vlgmr.msrb.gmra.mxu3 %v12842_v44  ;;  %v10454_v57 = vor.u32 %v11394_v56, %v10453_v33  ;;  %v10517_v5 = vld [vmem:[#allocation25 + $0xf0] sm:$0xf]  ;;  %v10461_v56 = vld [vmem:[#allocation25 + $0x80] sm:$0xf] }
 0x4ea   : > { %v10518_v18 = vor.u32 %v11410_v2, %v10517_v5  ;;  %v11442_v5 = vld [vmem:[#allocation25 + $0x1f4] sm:$0xf0] }
 0x4eb   : > { %6618 = vmatpush.bf16.msra.mxu1 %v10374_v13  ;;  %6608 = vmatpush.bf16.msra.mxu0 %v10182_v20  ;;  %v10438_v13 = vor.u32 %v11390_v14, %v10437_v3  ;;  %v10509_v20 = vld [vmem:[#allocation25 + $0xe0] sm:$0xf]  ;;  %v10646_v2 = vor.u32 %v11442_v5, %v10645_v4  ;;  %v10519_v3 = vld [vmem:[#allocation25 + $0xf8] sm:$0xf0]  ;;  %v10565_v14 = vld [vmem:[#allocation25 + $0x150] sm:$0xf] }
 0x4ec   : > { %6636 = vmatpush.bf16.msra.mxu2 %v10186_v42  ;;  %6646 = vmatpush.bf16.msra.mxu3 %v10378_v8  ;;  %v11408_v42 = vld [vmem:[#allocation25 + $0xe4] sm:$0xf0]  ;;  %v11434_v4 = vld [vmem:[#allocation25 + $0x1b4] sm:$0xf0] }
 0x4ed   : > { %v10510_v38 = vor.u32 %v11408_v42, %v10509_v20  ;;  %v11389_v42 = vld [vmem:[#allocation25 + $0x54] sm:$0xf] }
 0x4ef   : > { %6619 = vmatpush.bf16.msra.mxu1 %v10358_v19  ;;  %6609 = vmatpush.bf16.msra.mxu0 %v10166_v27  ;;  %v10422_v19 = vor.u32 %v11386_v62, %v10421_v43  ;;  %v10493_v27 = vld [vmem:[#allocation25 + $0xc0] sm:$0xf]  ;;  %v10511_v43 = vld [vmem:[#allocation25 + $0xe8] sm:$0xf0] }
 0x4f0   : > { %6637 = vmatpush.bf16.msra.mxu2 %v10170_v7  ;;  %6647 = vmatpush.bf16.msra.mxu3 %v10362_v34  ;;  %v11404_v7 = vld [vmem:[#allocation25 + $0xc4] sm:$0xf0] }
 0x4f1   : > { %v10494_v12 = vor.u32 %v11404_v7, %v10493_v27  ;;  %v11384_v34 = vld [vmem:[#allocation25 + $0x24] sm:$0xf0]  ;;  %v10557_v27 = vld [vmem:[#allocation25 + $0x140] sm:$0xf] }
 0x4f2   : > { %v10414_v9 = vor.u32 %v11384_v34, %v10413_v11  ;;  %v11420_v7 = vld [vmem:[#allocation25 + $0x144] sm:$0xf0]  ;;  %v11387_v11 = vld [vmem:[#allocation25 + $0x44] sm:$0xf]  ;;  %v10431_v34 = vld [vmem:[#allocation25 + $0x48] sm:$0xf0] }
 0x4f3   : > { %6620 = vmatpush.bf16.msra.mxu1 %v10342_v17  ;;  %6610 = vmatpush.bf16.msra.mxu0 %v10150_v22  ;;  %v11382_v17 = vld [vmem:[#allocation25 + $0x14] sm:$0xf0] }
 0x4f4   : > { %6638 = vmatpush.bf16.msra.mxu2 %v10154_v30  ;;  %6648 = vmatpush.bf16.msra.mxu3 %v10346_v49  ;;  %v10406_v30 = vor.u32 %v11382_v17, %v10405_v45  ;;  %v10630_v17 = vor.u32 %v11438_v10, %v10629_v24  ;;  %v11425_v24 = vld [vmem:[#allocation25 + $0x174] sm:$0xf] }
 0x4f6   : > { %6611 = vmatmul.bf16.vlgmr.msra.gmra.mxu0 %v12833_v48 }
 0x4f7   : > { %6639 = vmatmul.bf16.vlgmr.msra.gmra.mxu2 %v12833_v48  ;;  %6621 = vmatpush.bf16.msra.mxu1 %v10326_v36  ;;  %v10282_v48 = vor.u32 %v11284_v35, %v10279_v61  ;;  %v11380_v36 = vld [vmem:[#allocation25 + $0x4] sm:$0xf0]  ;;  %v11391_v61 = vld [vmem:[#allocation25 + $0x64] sm:$0xf] }
 0x4f8   : > { %6649 = vmatpush.bf16.msra.mxu3 %v10330_v46  ;;  %7079 = vmatpush.bf16.msrb.mxu0 %v10454_v57  ;;  %v10398_v46 = vor.u32 %v11380_v36, %v10397_v15  ;;  %v11396_v57 = vld [vmem:[#allocation25 + $0x84] sm:$0xf0]  ;;  %v11418_v15 = vld [vmem:[#allocation25 + $0x134] sm:$0xf0] }
 0x4f9   : > { %7107 = vmatpush.bf16.msrb.mxu2 %v10582_v6  ;;  %v10462_v41 = vor.u32 %v11396_v57, %v10461_v56  ;;  %v10621_v6 = vld [vmem:[#allocation25 + $0x1c0] sm:$0xf]  ;;  %v10613_v57 = vld [vmem:[#allocation25 + $0x1b0] sm:$0xf] }
 0x4fa   : > { %v10614_v5 = vor.u32 %v11434_v4, %v10613_v57 }
 0x4fb   : > { %6622 = vmatpush.bf16.msra.mxu1 %v10310_v51  ;;  %v11393_v51 = vld [vmem:[#allocation25 + $0x74] sm:$0xf] }
 0x4fc   : > { %6650 = vmatpush.bf16.msra.mxu3 %v10314_v1  ;;  %7080 = vmatpush.bf16.msrb.mxu0 %v10446_v39  ;;  %v10455_v1 = vld [vmem:[#allocation25 + $0x78] sm:$0xf0]  ;;  %v11409_v39 = vld [vmem:[#allocation25 + $0xf4] sm:$0xf] }
 0x4fd   : > { %v10458_v52 = vor.u32 %v11393_v51, %v10455_v1  ;;  %v11436_v51 = vld [vmem:[#allocation25 + $0x1c4] sm:$0xf0] }
 0x4fe   : > { %v10622_v1 = vor.u32 %v11436_v51, %v10621_v6  ;;  %v12884_v51 = vld [vmem:[#allocation23] sm:$0xf] }
 0x4ff   : > { %6623 = vmatpush.bf16.msra.mxu1 %v10294_v40  ;;  %v10470_v40 = vor.u32 %v11398_v55, %v10469_v53  ;;  %v11403_v53 = vld [vmem:[#allocation25 + $0xc4] sm:$0xf]  ;;  %v6661_v4 = vperm.slane %v12884_v51, 0 }
 0x500   : > { %6651 = vmatpush.bf16.msra.mxu3 %v10298_v21  ;;  %7081 = vmatpush.bf16.msrb.mxu0 %v10438_v13  ;;  %v10573_v21 = vld [vmem:[#allocation25 + $0x160] sm:$0xf]  ;;  %v10522_v13 = vor.u32 %v11409_v39, %v10519_v3  ;;  %v11401_v39 = vld [vmem:[#allocation25 + $0xb4] sm:$0xf]  ;;  %v10533_v3 = vld [vmem:[#allocation25 + $0x110] sm:$0xf] }
 0x501   : > { %v10574_v35 = vor.u32 %v11424_v63, %v10573_v21  ;;  %v11416_v21 = vld [vmem:[#allocation25 + $0x124] sm:$0xf0] }
 0x503   : > { %6624 = vmatpush.bf16.msra.mxu1 %v10278_v60  ;;  %v10447_v60 = vld [vmem:[#allocation25 + $0x68] sm:$0xf0]  ;;  %7108 = vmatpush.bf16.msrb.mxu2 %v10574_v35 }
 0x504   : > { %6652 = vmatpush.bf16.msra.mxu3 %v10282_v48  ;;  %v10450_v33 = vor.u32 %v11391_v61, %v10447_v60  ;;  %v11383_v61 = vld [vmem:[#allocation25 + $0x24] sm:$0xf]  ;;  %v10415_v60 = vld [vmem:[#allocation25 + $0x28] sm:$0xf0] }
 0x505   : > { %v10418_v56 = vor.u32 %v11383_v61, %v10415_v60  ;;  %v11395_v60 = vld [vmem:[#allocation25 + $0x84] sm:$0xf] }
 0x506   : > { %6625 = vmatmul.bf16.vlgmr.msra.gmra.mxu1 %v12842_v44 }
 0x507   : > { %6653 = vmatmul.bf16.vlgmr.msra.gmra.mxu3 %v12842_v44  ;;  %7093 = vmatpush.bf16.msrb.mxu1 %v10518_v18  ;;  %v10429_v44 = vld [vmem:[#allocation25 + $0x40] sm:$0xf]  ;;  %v11422_v18 = vld [vmem:[#allocation25 + $0x154] sm:$0xf0] }
 0x508   : > { %v10430_v8 = vor.u32 %v11388_v54, %v10429_v44  ;;  %v10566_v20 = vor.u32 %v11422_v18, %v10565_v14  ;;  %7121 = vmatpush.bf16.msrb.mxu3 %v10646_v2  ;;  %v10637_v54 = vld [vmem:[#allocation25 + $0x1e0] sm:$0xf]  ;;  %v10487_v2 = vld [vmem:[#allocation25 + $0xb8] sm:$0xf0]  ;;  %v11414_v18 = vld [vmem:[#allocation25 + $0x114] sm:$0xf0] }
 0x509   : > { %v10490_v14 = vor.u32 %v11401_v39, %v10487_v2  ;;  %v10647_v39 = vld [vmem:[#allocation25 + $0x1f8] sm:$0xf0] }
 0x50a   : > { %7082 = vmatpush.bf16.msrb.mxu0 %v10430_v8  ;;  %v11440_v8 = vld [vmem:[#allocation25 + $0x1e4] sm:$0xf0]  ;;  %7109 = vmatpush.bf16.msrb.mxu2 %v10566_v20  ;;  %v10534_v20 = vor.u32 %v11414_v18, %v10533_v3  ;;  %v11421_v3 = vld [vmem:[#allocation25 + $0x154] sm:$0xf] }
 0x50b   : > { %7094 = vmatpush.bf16.msrb.mxu1 %v10510_v38  ;;  %v10439_v38 = vld [vmem:[#allocation25 + $0x58] sm:$0xf0]  ;;  %v10638_v0 = vor.u32 %v11440_v8, %v10637_v54  ;;  %v10605_v54 = vld [vmem:[#allocation25 + $0x1a0] sm:$0xf]  ;;  %v11432_v8 = vld [vmem:[#allocation25 + $0x1a4] sm:$0xf0] }
 0x50c   : > { %v10442_v44 = vor.u32 %v11389_v42, %v10439_v38  ;;  %v11381_v42 = vld [vmem:[#allocation25 + $0x14] sm:$0xf]  ;;  %v10407_v38 = vld [vmem:[#allocation25 + $0x18] sm:$0xf0] }
 0x50d   : > { %7122 = vmatpush.bf16.msrb.mxu3 %v10638_v0  ;;  %v10606_v0 = vor.u32 %v11432_v8, %v10605_v54 }
 0x50e   : > { %7083 = vmatpush.bf16.msrb.mxu0 %v10422_v19  ;;  %v10514_v19 = vor.u32 %v11407_v28, %v10511_v43  ;;  %v11399_v28 = vld [vmem:[#allocation25 + $0xa4] sm:$0xf]  ;;  %v10479_v43 = vld [vmem:[#allocation25 + $0xa8] sm:$0xf0] }
 0x50f   : > { %7095 = vmatpush.bf16.msrb.mxu1 %v10502_v25 }
 0x511   : > { %7123 = vmatpush.bf16.msrb.mxu3 %v10630_v17  ;;  %v10583_v17 = vld [vmem:[#allocation25 + $0x178] sm:$0xf0] }
 0x512   : > { %7084 = vmatpush.bf16.msrb.mxu0 %v10414_v9  ;;  %v10434_v9 = vor.u32 %v11387_v11, %v10431_v34  ;;  %v11379_v34 = vld [vmem:[#allocation25 + $0x4] sm:$0xf] }
 0x513   : > { %7096 = vmatpush.bf16.msrb.mxu1 %v10494_v12  ;;  %v10558_v12 = vor.u32 %v11420_v7, %v10557_v27  ;;  %v10525_v27 = vld [vmem:[#allocation25 + $0x100] sm:$0xf]  ;;  %v11412_v7 = vld [vmem:[#allocation25 + $0x104] sm:$0xf0] }
 0x514   : > { %v10526_v11 = vor.u32 %v11412_v7, %v10525_v27 }
 0x515   : > { %7110 = vmatpush.bf16.msrb.mxu2 %v10558_v12  ;;  %7124 = vmatpush.bf16.msrb.mxu3 %v10622_v1  ;;  %v11423_v1 = vld [vmem:[#allocation25 + $0x164] sm:$0xf] }
 0x516   : > { %7085 = vmatpush.bf16.msrb.mxu0 %v10406_v30  ;;  %v11405_v30 = vld [vmem:[#allocation25 + $0xd4] sm:$0xf] }
 0x517   : > { %7097 = vmatpush.bf16.msrb.mxu1 %v10486_v32  ;;  %v10506_v16 = vor.u32 %v11405_v30, %v10503_v31  ;;  %v10597_v30 = vld [vmem:[#allocation25 + $0x190] sm:$0xf] }
 0x519   : > { %7125 = vmatpush.bf16.msrb.mxu3 %v10614_v5 }
 0x51a   : > { %7086 = vmatpush.bf16.msrb.mxu0 %v10398_v46  ;;  %v11385_v46 = vld [vmem:[#allocation25 + $0x34] sm:$0xf] }
 0x51b   : > { %7098 = vmatpush.bf16.msrb.mxu1 %v10478_v37  ;;  %v10549_v37 = vld [vmem:[#allocation25 + $0x130] sm:$0xf]  ;;  %v10426_v50 = vor.u32 %v11385_v46, %v10423_v47 }
 0x51c   : > { %v10550_v36 = vor.u32 %v11418_v15, %v10549_v37  ;;  %v11430_v37 = vld [vmem:[#allocation25 + $0x194] sm:$0xf0]  ;;  %v11397_v15 = vld [vmem:[#allocation25 + $0x94] sm:$0xf] }
 0x51d   : > { %7126 = vmatpush.bf16.msrb.mxu3 %v10606_v0 }
 0x51e   : > { %7135 = vmatpush.bf16.msra.mxu0 %v10458_v52  ;;  %v10495_v52 = vld [vmem:[#allocation25 + $0xc8] sm:$0xf0]  ;;  %7111 = vmatpush.bf16.msrb.mxu2 %v10550_v36  ;;  %v10471_v36 = vld [vmem:[#allocation25 + $0x98] sm:$0xf0] }
 0x51f   : > { %7099 = vmatpush.bf16.msrb.mxu1 %v10470_v40  ;;  %v10498_v55 = vor.u32 %v11403_v53, %v10495_v52  ;;  %v10541_v40 = vld [vmem:[#allocation25 + $0x120] sm:$0xf]  ;;  %v10474_v6 = vor.u32 %v11397_v15, %v10471_v36  ;;  %v10575_v53 = vld [vmem:[#allocation25 + $0x168] sm:$0xf0] }
 0x520   : > { %v10542_v35 = vor.u32 %v11416_v21, %v10541_v40  ;;  %v10589_v40 = vld [vmem:[#allocation25 + $0x180] sm:$0xf]  ;;  %v11428_v21 = vld [vmem:[#allocation25 + $0x184] sm:$0xf0] }
 0x521   : > { %v10590_v61 = vor.u32 %v11428_v21, %v10589_v40  ;;  %v11433_v21 = vld [vmem:[#allocation25 + $0x1b4] sm:$0xf] }
 0x522   : > { %7136 = vmatpush.bf16.msra.mxu0 %v10450_v33  ;;  %7112 = vmatpush.bf16.msrb.mxu2 %v10542_v35 }
 0x523   : > { %7100 = vmatpush.bf16.msrb.mxu1 %v10462_v41 }
 0x526   : > { %7137 = vmatpush.bf16.msra.mxu0 %v10442_v44  ;;  %v10410_v44 = vor.u32 %v11381_v42, %v10407_v38  ;;  %7113 = vmatpush.bf16.msrb.mxu2 %v10534_v20 }
 0x527   : > { %7149 = vmatpush.bf16.msra.mxu1 %v10522_v13 }
 0x52a   : > { %7138 = vmatpush.bf16.msra.mxu0 %v10434_v9  ;;  %v10399_v9 = vld [vmem:[#allocation25 + $0x8] sm:$0xf0]  ;;  %7114 = vmatpush.bf16.msrb.mxu2 %v10526_v11 }
 0x52b   : > { %7150 = vmatpush.bf16.msra.mxu1 %v10514_v19  ;;  %v10482_v19 = vor.u32 %v11399_v28, %v10479_v43  ;;  %v10402_v10 = vor.u32 %v11379_v34, %v10399_v9  ;;  %v11419_v28 = vld [vmem:[#allocation25 + $0x144] sm:$0xf]  ;;  %v10559_v43 = vld [vmem:[#allocation25 + $0x148] sm:$0xf0]  ;;  %v10631_v9 = vld [vmem:[#allocation25 + $0x1d8] sm:$0xf0] }
 0x52c   : > { %v10562_v7 = vor.u32 %v11419_v28, %v10559_v43 }
 0x52e   : > { %7139 = vmatpush.bf16.msra.mxu0 %v10426_v50  ;;  %v10598_v50 = vor.u32 %v11430_v37, %v10597_v30 }
 0x52f   : > { %7151 = vmatpush.bf16.msra.mxu1 %v10506_v16  ;;  %v10586_v16 = vor.u32 %v11425_v24, %v10583_v17 }
 0x530   : > { %7127 = vmatpush.bf16.msrb.mxu3 %v10598_v50 }
 0x531   : > { %7163 = vmatpush.bf16.msra.mxu2 %v10586_v16  ;;  %v10551_v16 = vld [vmem:[#allocation25 + $0x138] sm:$0xf0] }
 0x532   : > { %v12850_v23 = vpop.f32.mrf.mxu0  ;;  %7140 = vmatpush.bf16.msra.mxu0 %v10418_v56 }
 0x533   : > { %7152 = vmatpush.bf16.msra.mxu1 %v10498_v55  ;;  %v10578_v55 = vor.u32 %v11423_v1, %v10575_v53  ;;  %v11415_v1 = vld [vmem:[#allocation25 + $0x124] sm:$0xf]  ;;  %v10543_v53 = vld [vmem:[#allocation25 + $0x128] sm:$0xf0] }
 0x534   : > { %7128 = vmatpush.bf16.msrb.mxu3 %v10590_v61 }
 0x535   : > { %7164 = vmatpush.bf16.msra.mxu2 %v10578_v55 }
 0x536   : > { %7141 = vmatpush.bf16.msra.mxu0 %v10410_v44 }
 0x537   : > { %7153 = vmatpush.bf16.msra.mxu1 %v10490_v14  ;;  %v10567_v14 = vld [vmem:[#allocation25 + $0x158] sm:$0xf0] }
 0x538   : > { %v12852_v29 = vpop.f32.mrf.mxu2  ;;  %v10570_v20 = vor.u32 %v11421_v3, %v10567_v14  ;;  %v11429_v14 = vld [vmem:[#allocation25 + $0x194] sm:$0xf] }
 0x53a   : > { %v12854_v22 = vpop.f32.mrf.mxu0  ;;  %7142 = vmatpush.bf16.msra.mxu0 %v10402_v10  ;;  %7165 = vmatpush.bf16.msra.mxu2 %v10570_v20 }
 0x53b   : > { %7154 = vmatpush.bf16.msra.mxu1 %v10482_v19 }
 0x53e   : > { %7166 = vmatpush.bf16.msra.mxu2 %v10562_v7 }
 0x53f   : > { %7155 = vmatpush.bf16.msra.mxu1 %v10474_v6 }
 0x540   : > { %v12858_v59 = vpop.f32.mrf.mxu2 }
 0x542   : > { %v12856_v49 = vpop.f32.mrf.mxu1 }
 0x543   : > { %v12862_v26 = vpop.f32.mrf.mxu0  ;;  %v6139_v46 = vadd.f32 %v12856_v49, %v12850_v23  ;;  %v10463_v23 = vld [vmem:[#allocation25 + $0x88] sm:$0xf0]  ;;  %v11441_v49 = vld [vmem:[#allocation25 + $0x1f4] sm:$0xf] }
 0x544   : > { %v10466_v5 = vor.u32 %v11395_v60, %v10463_v23  ;;  %v10650_v2 = vor.u32 %v11441_v49, %v10647_v39  ;;  %v11413_v23 = vld [vmem:[#allocation25 + $0x114] sm:$0xf]  ;;  %v10535_v49 = vld [vmem:[#allocation25 + $0x118] sm:$0xf0]  ;;  %v10527_v39 = vld [vmem:[#allocation25 + $0x108] sm:$0xf0] }
 0x546   : > { %7156 = vmatpush.bf16.msra.mxu1 %v10466_v5  ;;  %7177 = vmatpush.bf16.msra.mxu3 %v10650_v2  ;;  %v11411_v5 = vld [vmem:[#allocation25 + $0x104] sm:$0xf] }
 0x548   : > { %v12860_v58 = vpop.f32.mrf.mxu3 }
 0x549   : > { %v12866_v25 = vpop.f32.mrf.mxu2  ;;  %v6167_v42 = vadd.f32 %v12860_v58, %v12852_v29  ;;  %v6662_v29 = vperm.slane %v12884_v51, 1  ;;  %v11437_v58 = vld [vmem:[#allocation25 + $0x1d4] sm:$0xf] }
 0x54a   : > { %v12864_v48 = vpop.f32.mrf.mxu1  ;;  %v10634_v17 = vor.u32 %v11437_v58, %v10631_v9 }
 0x54b   : > { %v12870_v45 = vpop.f32.mrf.mxu0  ;;  %v6141_v56 = vadd.f32 %v12864_v48, %v12854_v22  ;;  %v11439_v22 = vld [vmem:[#allocation25 + $0x1e4] sm:$0xf]  ;;  %v10639_v48 = vld [vmem:[#allocation25 + $0x1e8] sm:$0xf0] }
 0x54c   : > { %v10642_v8 = vor.u32 %v11439_v22, %v10639_v48  ;;  %v11427_v48 = vld [vmem:[#allocation25 + $0x184] sm:$0xf] }
 0x54e   : > { %7178 = vmatpush.bf16.msra.mxu3 %v10642_v8 }
 0x550   : > { %v12868_v62 = vpop.f32.mrf.mxu3 }
 0x551   : > { %v12876_v33 = vpop.f32.mrf.mxu2  ;;  %v6169_v11 = vadd.f32 %v12868_v62, %v12858_v59  ;;  %v11435_v59 = vld [vmem:[#allocation25 + $0x1c4] sm:$0xf]  ;;  %v10623_v62 = vld [vmem:[#allocation25 + $0x1c8] sm:$0xf0] }
 0x552   : > { %v12872_v32 = vpop.f32.mrf.mxu1  ;;  %7179 = vmatpush.bf16.msra.mxu3 %v10634_v17  ;;  %v10626_v50 = vor.u32 %v11435_v59, %v10623_v62  ;;  %v6753_v62 = vld [vmem:[#allocation26] sm:$0x3] }
 0x553   : > { %v6556_v13 = vpop.f32.mrf.mxu0 }
 0x554   : > { %v6557_v52 = vadd.f32 %v6556_v13, %v6139_v46 }
 0x556   : > { %7180 = vmatpush.bf16.msra.mxu3 %v10626_v50 }
 0x558   : > { %v12874_v63 = vpop.f32.mrf.mxu3 }
 0x55a   : > { %v12878_v41 = vpop.f32.mrf.mxu1 }
 0x55b   : > { %v6558_v35 = vpop.f32.mrf.mxu0  ;;  %v6197_v28 = vadd.f32 %v12878_v41, %v12870_v45  ;;  %v6664_v41 = vperm.slane %v12884_v51, 3 }
 0x55c   : > { %v6584_v47 = vpop.f32.mrf.mxu2  ;;  %v6559_v18 = vadd.f32 %v6558_v35, %v6141_v56  ;;  %v10615_v35 = vld [vmem:[#allocation25 + $0x1b8] sm:$0xf0]  ;;  %v11431_v56 = vld [vmem:[#allocation25 + $0x1a4] sm:$0xf] }
 0x55d   : > { %v6585_v0 = vadd.f32 %v6584_v47, %v6167_v42  ;;  %v10618_v61 = vor.u32 %v11433_v21, %v10615_v35 }
 0x55f   : > { %7181 = vmatpush.bf16.msra.mxu3 %v10618_v61 }
 0x560   : > { %v12880_v12 = vpop.f32.mrf.mxu3 }
 0x563   : > { %v6570_v31 = vpop.f32.mrf.mxu1 }
 0x564   : > { %v6571_v57 = vadd.f32 %v6570_v31, %v6557_v52  ;;  %v6586_v19 = vpop.f32.mrf.mxu2  ;;  %v11417_v31 = vld [vmem:[#allocation25 + $0x134] sm:$0xf]  ;;  %v10546_v52 = vor.u32 %v11415_v1, %v10543_v53  ;;  %v6755_v1 = vperm.slane %v6753_v62, 0 }
 0x565   : > { %v6587_v30 = vadd.f32 %v6586_v19, %v6169_v11  ;;  %v10554_v36 = vor.u32 %v11417_v31, %v10551_v16  ;;  %v6663_v19 = vperm.slane %v12884_v51, 2 }
 0x566   : > { %v6669_v44 = vadd.f32 %v6661_v4, %v6571_v57  ;;  %v10538_v57 = vor.u32 %v11413_v23, %v10535_v49 }
 0x567   : > { %7167 = vmatpush.bf16.msra.mxu2 %v10554_v36 }
 0x568   : > { %v6677_v24 = vmax.f32 %v6669_v44, 0.0  ;;  %v10591_v44 = vld [vmem:[#allocation25 + $0x188] sm:$0xf0] }
 0x56b   : > { %v6572_v38 = vpop.f32.mrf.mxu1  ;;  %7168 = vmatpush.bf16.msra.mxu2 %v10546_v52 }
 0x56c   : > { %v6598_v13 = vpop.f32.mrf.mxu3  ;;  %v6573_v54 = vadd.f32 %v6572_v38, %v6559_v18  ;;  %v10599_v18 = vld [vmem:[#allocation25 + $0x198] sm:$0xf0]  ;;  %v6195_v38 = vadd.f32 %v12872_v32, %v12862_v26  ;;  %v6223_v26 = vadd.f32 %v12874_v63, %v12866_v25 }
 0x56d   : > { %v6599_v34 = vadd.f32 %v6598_v13, %v6585_v0  ;;  %v10530_v13 = vor.u32 %v11411_v5, %v10527_v39  ;;  %v10602_v20 = vor.u32 %v11429_v14, %v10599_v18 }
 0x56e   : > { %v6673_v27 = vadd.f32 %v6661_v4, %v6573_v54  ;;  %v10607_v4 = vld [vmem:[#allocation25 + $0x1a8] sm:$0xf0]  ;;  %v10594_v54 = vor.u32 %v11427_v48, %v10591_v44 }
 0x56f   : > { %v6670_v46 = vadd.f32 %v6662_v29, %v6599_v34  ;;  %v10610_v3 = vor.u32 %v11431_v56, %v10607_v4  ;;  %7169 = vmatpush.bf16.msra.mxu2 %v10538_v57  ;;  %v7195_v57 = vld [vmem:[#allocation28] sm:$0x3] }
 0x570   : > { %v6681_v10 = vmax.f32 %v6673_v27, 0.0 }
 0x571   : > { %v6678_v55 = vmax.f32 %v6670_v46, 0.0  ;;  %7182 = vmatpush.bf16.msra.mxu3 %v10610_v3 }
 0x572   : > { %v6685_v37 = vpack.c.bf16 %v6681_v10, %v6677_v24  ;;  %v6225_v24 = vadd.f32 %v12880_v12, %v12876_v33 }
 0x573   : > { %v6612_v2 = vpop.f32.mrf.mxu0  ;;  %7170 = vmatpush.bf16.msra.mxu2 %v10530_v13 }
 0x574   : > { %v6600_v15 = vpop.f32.mrf.mxu3  ;;  %7087 = vmatmul.bf16.vlgmr.msrb.gmra.mxu0 %v6685_v37  ;;  %v6613_v8 = vadd.f32 %v6612_v2, %v6195_v38  ;;  %v7197_v2 = vperm.slane %v7195_v57, 0 }
 0x575   : > { %v6601_v47 = vadd.f32 %v6600_v15, %v6587_v30  ;;  %7183 = vmatpush.bf16.msra.mxu3 %v10602_v20  ;;  %v7198_v20 = vperm.slane %v7195_v57, 1 }
 0x577   : > { %v6674_v6 = vadd.f32 %v6662_v29, %v6601_v47 }
 0x579   : > { %v6682_v40 = vmax.f32 %v6674_v6, 0.0  ;;  %7184 = vmatpush.bf16.msra.mxu3 %v10594_v54 }
 0x57a   : > { %v6640_v22 = vpop.f32.mrf.mxu2 }
 0x57b   : > { %v6686_v60 = vpack.c.bf16 %v6682_v40, %v6678_v55  ;;  %v6614_v0 = vpop.f32.mrf.mxu0  ;;  %v6641_v29 = vadd.f32 %v6640_v22, %v6223_v26  ;;  %v6756_v55 = vperm.slane %v6753_v62, 1 }
 0x57c   : > { %v6615_v27 = vadd.f32 %v6614_v0, %v6197_v28 }
 0x57d   : > { %7101 = vmatmul.bf16.vlgmr.msrb.gmra.mxu1 %v6686_v60 }
 0x582   : > { %v6642_v58 = vpop.f32.mrf.mxu2 }
 0x583   : > { %v6626_v42 = vpop.f32.mrf.mxu1  ;;  %v6643_v30 = vadd.f32 %v6642_v58, %v6225_v24  ;;  %v11652_v58 = vld [vmem:[#allocation2] ss:$0 sm:$0xff] }
 0x584   : > { %7143 = vmatmul.bf16.vlgmr.msra.gmra.mxu0 %v6685_v37  ;;  %v6627_v43 = vadd.f32 %v6626_v42, %v6613_v8 }
 0x586   : > { %v6671_v11 = vadd.f32 %v6663_v19, %v6627_v43 }
 0x588   : > { %v6679_v10 = vmax.f32 %v6671_v11, 0.0 }
 0x58a   : > { %v6654_v7 = vpop.f32.mrf.mxu3 }
 0x58b   : > { %v6628_v32 = vpop.f32.mrf.mxu1  ;;  %v6655_v45 = vadd.f32 %v6654_v7, %v6641_v29 }
 0x58c   : > { %v6629_v34 = vadd.f32 %v6628_v32, %v6615_v27 }
 0x58d   : > { %7157 = vmatmul.bf16.vlgmr.msra.gmra.mxu1 %v6686_v60  ;;  %v6672_v37 = vadd.f32 %v6664_v41, %v6655_v45 }
 0x58e   : > { %v6675_v9 = vadd.f32 %v6663_v19, %v6629_v34 }
 0x58f   : > { %v6680_v15 = vmax.f32 %v6672_v37, 0.0 }
 0x590   : > { %v6683_v17 = vmax.f32 %v6675_v9, 0.0 }
 0x592   : > { %v6687_v31 = vpack.c.bf16 %v6683_v17, %v6679_v10  ;;  %v6656_v16 = vpop.f32.mrf.mxu3 }
 0x593   : > { %v6657_v25 = vadd.f32 %v6656_v16, %v6643_v30 }
 0x594   : > { %7115 = vmatmul.bf16.vlgmr.msrb.gmra.mxu2 %v6687_v31 }
 0x595   : > { %v6676_v63 = vadd.f32 %v6664_v41, %v6657_v25 }
 0x597   : > { %v6684_v36 = vmax.f32 %v6676_v63, 0.0 }
 0x599   : > { %v6688_v46 = vpack.c.bf16 %v6684_v36, %v6680_v15 }
 0x59b   : > { %7129 = vmatmul.bf16.vlgmr.msrb.gmra.mxu3 %v6688_v46 }
 0x5a4   : > { %7171 = vmatmul.bf16.vlgmr.msra.gmra.mxu2 %v6687_v31 }
 0x5ab   : > { %7185 = vmatmul.bf16.vlgmr.msra.gmra.mxu3 %v6688_v46 }
 0x5f1   : > { %v7088_v47 = vpop.f32.mrf.mxu0 }
 0x5f2   : > { %v7089_v52 = vadd.f32 %v7088_v47, %v6755_v1 }
 0x5f9   : > { %v7090_v59 = vpop.f32.mrf.mxu0 }
 0x5fa   : > { %v7102_v33 = vpop.f32.mrf.mxu1  ;;  %v7091_v4 = vadd.f32 %v7090_v59, %v6755_v1 }
 0x5fb   : > { %v7103_v35 = vadd.f32 %v7102_v33, %v7089_v52 }
 0x601   : > { %v7144_v53 = vpop.f32.mrf.mxu0 }
 0x602   : > { %v7104_v51 = vpop.f32.mrf.mxu1  ;;  %v7145_v60 = vadd.f32 %v7144_v53, %v6756_v55 }
 0x603   : > { %v7105_v14 = vadd.f32 %v7104_v51, %v7091_v4 }
 0x609   : > { %v7146_v39 = vpop.f32.mrf.mxu0 }
 0x60a   : > { %v7158_v40 = vpop.f32.mrf.mxu1  ;;  %v7147_v38 = vadd.f32 %v7146_v39, %v6756_v55 }
 0x60b   : > { %v7159_v49 = vadd.f32 %v7158_v40, %v7145_v60 }
 0x612   : > { %v7160_v42 = vpop.f32.mrf.mxu1 }
 0x613   : > { %v7161_v54 = vadd.f32 %v7160_v42, %v7147_v38 }
 0x617   : > { %v7116_v12 = vpop.f32.mrf.mxu2 }
 0x618   : > { %v7117_v23 = vadd.f32 %v7116_v12, %v7103_v35 }
 0x61e   : > { %v7130_v50 = vpop.f32.mrf.mxu3 }
 0x61f   : > { %v7118_v6 = vpop.f32.mrf.mxu2  ;;  %v7131_v56 = vadd.f32 %v7130_v50, %v7117_v23 }
 0x620   : > { %v7119_v22 = vadd.f32 %v7118_v6, %v7105_v14 }
 0x621   : > { %v7191_v18 = vmax.f32 %v7131_v56, 0.0 }
 0x623   : > { %v7201_v0 = vmul.f32 %v7197_v2, %v7191_v18 }
 0x626   : > { %v7132_v21 = vpop.f32.mrf.mxu3 }
 0x627   : > { %v7172_v61 = vpop.f32.mrf.mxu2  ;;  %v7133_v8 = vadd.f32 %v7132_v21, %v7119_v22 }
 0x628   : > { %v7173_v5 = vadd.f32 %v7172_v61, %v7159_v49 }
 0x629   : > { %v7193_v7 = vmax.f32 %v7133_v8, 0.0 }
 0x62b   : > { %v7203_v11 = vmul.f32 %v7197_v2, %v7193_v7 }
 0x62e   : > { %v7186_v3 = vpop.f32.mrf.mxu3 }
 0x62f   : > { %v7187_v13 = vadd.f32 %v7186_v3, %v7173_v5  ;;  %v7174_v44 = vpop.f32.mrf.mxu2 }
 0x630   : > { %v7175_v43 = vadd.f32 %v7174_v44, %v7161_v54 }
 0x631   : > { %v7192_v48 = vmax.f32 %v7187_v13, 0.0 }
 0x633   : > { %v7202_v28 = vmul.f32 %v7198_v20, %v7192_v48 }
 0x635   : > { %v7205_v19 = vadd.f32 %v7202_v28, %v7201_v0 }
 0x636   : > { %v7188_v27 = vpop.f32.mrf.mxu3 }
 0x637   : > { %v7189_v26 = vadd.f32 %v7188_v27, %v7175_v43  ;;  %7206 = vadd.xlane.f32.xlu0 %v7205_v19 }
 0x639   : > { %v7194_v32 = vmax.f32 %v7189_v26, 0.0 }
 0x63b   : > { %v7204_v34 = vmul.f32 %v7198_v20, %v7194_v32 }
 0x63d   : > { %v7208_v29 = vadd.f32 %v7204_v34, %v7203_v11 }
 0x63f   : > { %7209 = vadd.xlane.f32.xlu0 %v7208_v29 }
 0x6aa   : > { %v7207_v9 = vpop.xlane.xlu0 %7206 }
 0x6ab   : > { %v7215_v24 = vadd.f32 %v11652_v58, %v7207_v9 }
 0x6ad   : > { %7218 = vst.msk [vmem:[%s896_s17] sm:$0xff] %vm7217_vm3, %v7215_v24 }
 0x6b2   : > { %v7210_v45 = vpop.xlane.xlu0 %7209 }
 0x6b3   : > { %v7216_v41 = vadd.f32 %v11652_v58, %v7210_v45 }
 0x6b5   : > { %7219 = vst.msk [vmem:[%s896_s17 + $0x8] sm:$0xff] %vm7217_vm3, %v7216_v41 }
 0x6b6 PF: > { %p39_p1 = scmp.ge.s32.totalorder %s12499_s2, 4   ;;  %s12987_s20 = smov %s12223_s21 }
 0x6b7   : > { %s12988_s21 = smov %s12227_s1  ;;  %s12989_s1 = smov %s12511_s4 }
 0x6b8   : > { %s12990_s22 = smov %s12499_s2  ;;  %41 = sbr.rel (!%p39_p1) target bundleno = 23 (0x17), region = 203 }
 0x6bd   :  { %7242 = vsyncpa [#allocation4], 1 }
 0x6be   :  { %7244 = vsyncpa [#allocation4 + $0x1], 1 }
 0x6bf   :  { %7245 = vsyncpa [#allocation6], 1 }
 0x6c0   :  { %7246 = vsyncpa [#allocation9], 1 }
 0x6c1   :  { %7247 = vsyncpa [#allocation12], 1 }
 0x6c2   :  { %7248 = vsyncpa [#allocation15], 1 }
 0x6c3   :  { %7249 = vsyncpa [#allocation18], 1 }
 0x6c4   :  { %7250 = vsyncpa [#allocation21], 1 }
 0x6c5   :  { %7251 = vsyncpa [#allocation24], 1 }
 0x6c6   :  { %7252 = vsyncpa [#allocation27], 1 }

</bundles_post_ra>
